<compile_context>
chip_gen: v6e
topology: v6e:2x2x1
jax: 0.10.0
libtpu: 0.0.40
codegen_flags: <defaults>
</compile_context>

<pallas_src>
import functools

import jax
import jax.numpy as jnp
from jax.experimental import pallas as pl
from jax.experimental.pallas import tpu as pltpu


def _round_up(x, m):
    return (x + m - 1) // m * m


# ----------------------------------------------------------------------------
# Kernel: Conv2d(3x3, pad 1) + BatchNorm2d(eval, folded) + ReLU + MaxPool2d((2,1))
# ----------------------------------------------------------------------------
def _conv_block_kernel(x_ref, w_ref, b_ref, o_ref, *, cin_is_one):
    """x_ref: (1, F+2, T+2, Cin) padded activations (f32, one batch element)
       w_ref: (9, Cin, Cout) bf16 BN-folded taps, b_ref: (1, Cout) f32 folded bias
       o_ref: (1, F//2, T, Cout) pooled output (f32).

    The 9 conv taps are accumulated in-kernel on shifted slices of the padded
    tile (no im2col in HBM); ReLU + frequency maxpool are fused in the epilogue.
    Per-row dots keep lowering simple (no in-kernel reshapes)."""
    F2 = o_ref.shape[1]
    T = o_ref.shape[2]
    Cout = o_ref.shape[3]

    bias = b_ref[...]                                    # [1, Cout] f32

    @pl.loop(0, F2)
    def _(j):                                            # one pooled output row
        acc0 = jnp.zeros((T, Cout), jnp.float32)         # conv row 2j
        acc1 = jnp.zeros((T, Cout), jnp.float32)         # conv row 2j+1
        for kh in range(3):
            r0 = 2 * j + kh
            r1 = 2 * j + 1 + kh
            for kw in range(3):
                wk = w_ref[3 * kh + kw]                  # [Cin, Cout] bf16
                x0 = x_ref[0, r0, kw:kw + T, :]          # [T, Cin] f32
                x1 = x_ref[0, r1, kw:kw + T, :]
                if cin_is_one:
                    # Cin == 1 (first layer): rank-1 update on the VPU instead
                    # of a degenerate K=1 MXU contraction.
                    wf = wk.astype(jnp.float32)          # [1, Cout]
                    acc0 = acc0 + x0 * wf
                    acc1 = acc1 + x1 * wf
                else:
                    acc0 = acc0 + jnp.dot(x0.astype(jnp.bfloat16), wk,
                                          preferred_element_type=jnp.float32)
                    acc1 = acc1 + jnp.dot(x1.astype(jnp.bfloat16), wk,
                                          preferred_element_type=jnp.float32)
        y0 = jnp.maximum(acc0 + bias, 0.0)
        y1 = jnp.maximum(acc1 + bias, 0.0)
        o_ref[0, j] = jnp.maximum(y0, y1).astype(o_ref.dtype)   # MaxPool (2,1)


def conv_bn_relu_pool(x, w, b, gamma, beta, mean, var, eps=1e-5):
    """x: [B, F, T, Cin] f32, w: [3, 3, Cin, Cout] -> [B, F//2, T, Cout] f32."""
    B, F, T, Cin = x.shape
    Cout = w.shape[-1]
    scale = gamma / jnp.sqrt(var + eps)
    w_f = (w * scale[None, None, None, :]).reshape(9, Cin, Cout).astype(jnp.bfloat16)
    b_f = ((b - mean) * scale + beta).reshape(1, Cout).astype(jnp.float32)
    xp = jnp.pad(x, ((0, 0), (1, 1), (1, 1), (0, 0)))            # pad=1 (F, T)
    F2 = F // 2
    # TODO(synk): for very large mel/time the full padded (F+2, T+2, Cin) block
    # per batch would need frequency tiling with halo; fine at these sizes.
    return pl.pallas_call(
        functools.partial(_conv_block_kernel, cin_is_one=(Cin == 1)),
        out_shape=jax.ShapeDtypeStruct((B, F2, T, Cout), jnp.float32),
        grid=(B,),
        in_specs=[
            pl.BlockSpec((1, F + 2, T + 2, Cin), lambda bi: (bi, 0, 0, 0)),
            pl.BlockSpec((9, Cin, Cout), lambda bi: (0, 0, 0)),
            pl.BlockSpec((1, Cout), lambda bi: (0, 0)),
        ],
        out_specs=pl.BlockSpec((1, F2, T, Cout), lambda bi: (bi, 0, 0, 0)),
        compiler_params=pltpu.CompilerParams(dimension_semantics=("parallel",)),
    )(xp, w_f, b_f)


# ----------------------------------------------------------------------------
# Kernel: fused bf16 matmul + bias (+ optional ReLU), f32 accumulation
# ----------------------------------------------------------------------------
def _matmul_bias_kernel(x_ref, w_ref, b_ref, o_ref, *, relu):
    y = jnp.dot(x_ref[...], w_ref[...], preferred_element_type=jnp.float32)
    y = y + b_ref[...]
    if relu:
        y = jnp.maximum(y, 0.0)
    o_ref[...] = y.astype(o_ref.dtype)


def fused_matmul(x, w, b, relu=False):
    """x: [M, K], w: [K, N], b: [N] -> [M, N] f32. bf16 MXU, padded-M tiling."""
    M, K = x.shape
    K2, N = w.shape
    assert K == K2
    # No degenerate tiles: pad M up to a multiple of 8 (or of 256 for big M).
    tm = 256 if M >= 256 else _round_up(max(M, 8), 8)
    Mp = _round_up(M, tm)
    if Mp != M:
        x = jnp.pad(x, ((0, Mp - M), (0, 0)))
    out = pl.pallas_call(
        functools.partial(_matmul_bias_kernel, relu=relu),
        out_shape=jax.ShapeDtypeStruct((Mp, N), jnp.float32),
        grid=(Mp // tm,),
        in_specs=[
            pl.BlockSpec((tm, K), lambda i: (i, 0)),
            pl.BlockSpec((K, N), lambda i: (0, 0)),
            pl.BlockSpec((1, N), lambda i: (0, 0)),
        ],
        out_specs=pl.BlockSpec((tm, N), lambda i: (i, 0)),
        compiler_params=pltpu.CompilerParams(dimension_semantics=("parallel",)),
    )(x.astype(jnp.bfloat16), w.astype(jnp.bfloat16),
      b.reshape(1, N).astype(jnp.float32))
    return out[:M]


# ----------------------------------------------------------------------------
# Kernel: bidirectional LSTM layer — both directions, single grid step,
# in-kernel time loop, in-kernel time reversal for the backward direction.
# ----------------------------------------------------------------------------
def _bilstm_kernel(gf_ref, gr_ref, whf_ref, whr_ref, ho_f_ref, ho_r_ref,
                   hf, cf, hr, cr):
    """gf/gr: [T, B, 4H] f32 precomputed x@Wih^T + b_ih + b_hh (natural time order)
       whf/whr: [H, 4H] bf16, outputs ho_f/ho_r: [T, B, H] f32."""
    T = gf_ref.shape[0]
    H = hf.shape[1]

    hf[...] = jnp.zeros_like(hf)
    cf[...] = jnp.zeros_like(cf)
    hr[...] = jnp.zeros_like(hr)
    cr[...] = jnp.zeros_like(cr)

    whf = whf_ref[...]
    whr = whr_ref[...]

    def cell(gates, h_prev, c_prev, whh):
        z = gates + jnp.dot(h_prev.astype(jnp.bfloat16), whh,
                            preferred_element_type=jnp.float32)
        # PyTorch gate order: i, f, g, o
        i_g = jax.nn.sigmoid(z[:, 0 * H:1 * H])
        f_g = jax.nn.sigmoid(z[:, 1 * H:2 * H])
        g_g = jnp.tanh(z[:, 2 * H:3 * H])
        o_g = jax.nn.sigmoid(z[:, 3 * H:4 * H])
        c = f_g * c_prev + i_g * g_g
        h = o_g * jnp.tanh(c)
        return h, c

    @pl.loop(0, T)
    def _(t):
        # forward direction
        h, c = cell(gf_ref[t], hf[...], cf[...], whf)
        hf[...] = h
        cf[...] = c
        ho_f_ref[t] = h
        # reverse direction (time reversed via indexing — no HBM flip copies)
        tr = T - 1 - t
        h2, c2 = cell(gr_ref[tr], hr[...], cr[...], whr)
        hr[...] = h2
        cr[...] = c2
        ho_r_ref[tr] = h2


def bilstm_layer(x_tbf, p):
    """Bidirectional LSTM layer, time-major. x_tbf: [T, B, F] -> [T, B, 2H]."""
    T, B, F = x_tbf.shape
    H = p['whh_f'].shape[1]
    x2 = x_tbf.reshape(T * B, F)

    def gates(wih, bih, bhh):
        g = fused_matmul(x2, wih.T, bih + bhh, relu=False)      # [T*B, 4H]
        return g.reshape(T, B, 4 * H)                           # time-major

    gf = gates(p['wih_f'], p['bih_f'], p['bhh_f'])
    gr = gates(p['wih_r'], p['bih_r'], p['bhh_r'])
    whf = p['whh_f'].T.astype(jnp.bfloat16)                     # [H, 4H]
    whr = p['whh_r'].T.astype(jnp.bfloat16)

    h_f, h_r = pl.pallas_call(
        _bilstm_kernel,
        out_shape=(jax.ShapeDtypeStruct((T, B, H), jnp.float32),
                   jax.ShapeDtypeStruct((T, B, H), jnp.float32)),
        grid=(1,),
        in_specs=[
            pl.BlockSpec((T, B, 4 * H), lambda i: (0, 0, 0)),
            pl.BlockSpec((T, B, 4 * H), lambda i: (0, 0, 0)),
            pl.BlockSpec((H, 4 * H), lambda i: (0, 0)),
            pl.BlockSpec((H, 4 * H), lambda i: (0, 0)),
        ],
        out_specs=(pl.BlockSpec((T, B, H), lambda i: (0, 0, 0)),
                   pl.BlockSpec((T, B, H), lambda i: (0, 0, 0))),
        scratch_shapes=[pltpu.VMEM((B, H), jnp.float32)] * 4,   # h_f, c_f, h_r, c_r
        compiler_params=pltpu.CompilerParams(dimension_semantics=("arbitrary",)),
    )(gf, gr, whf, whr)
    # TODO(synk): with H=32 the per-direction stores are sub-128-lane anyway;
    # the (tiny) concat stays in JAX rather than lane-sliced in-kernel stores.
    return jnp.concatenate([h_f, h_r], axis=-1)                 # [T, B, 2H]


# ----------------------------------------------------------------------------
# Kernel: AdaptiveAvgPool1d(1) over time (tiled, running sum) + projection MLP
# ----------------------------------------------------------------------------
def _pool_proj_kernel(r_ref, w1_ref, b1_ref, w2_ref, b2_ref, o_ref, sum_ref, *,
                      inv_t):
    i = pl.program_id(0)

    @pl.when(i == 0)
    def _():
        sum_ref[...] = jnp.zeros_like(sum_ref)

    sum_ref[...] += jnp.sum(r_ref[...], axis=0)                 # [B, 2H]

    @pl.when(i == pl.num_programs(0) - 1)
    def _():
        pooled = sum_ref[...] * inv_t
        h = jnp.dot(pooled.astype(jnp.bfloat16), w1_ref[...],
                    preferred_element_type=jnp.float32) + b1_ref[...]
        h = jnp.maximum(h, 0.0)
        y = jnp.dot(h.astype(jnp.bfloat16), w2_ref[...],
                    preferred_element_type=jnp.float32) + b2_ref[...]
        o_ref[...] = y.astype(o_ref.dtype)


def pool_and_project(rnn_tbf, w1, b1, w2, b2):
    """rnn_tbf: [T, B, 2H] time-major -> [B, O]."""
    T, B, F = rnn_tbf.shape
    H = w1.shape[1]
    O = w2.shape[1]
    tt = min(T, 128)
    Tp = _round_up(T, tt)
    if Tp != T:  # zero rows do not affect the sum; divide by the true T
        rnn_tbf = jnp.pad(rnn_tbf, ((0, Tp - T), (0, 0), (0, 0)))
    return pl.pallas_call(
        functools.partial(_pool_proj_kernel, inv_t=1.0 / T),
        out_shape=jax.ShapeDtypeStruct((B, O), jnp.float32),
        grid=(Tp // tt,),
        in_specs=[
            pl.BlockSpec((tt, B, F), lambda i: (i, 0, 0)),
            pl.BlockSpec((F, H), lambda i: (0, 0)),
            pl.BlockSpec((1, H), lambda i: (0, 0)),
            pl.BlockSpec((H, O), lambda i: (0, 0)),
            pl.BlockSpec((1, O), lambda i: (0, 0)),
        ],
        out_specs=pl.BlockSpec((B, O), lambda i: (0, 0)),
        scratch_shapes=[pltpu.VMEM((B, F), jnp.float32)],
        compiler_params=pltpu.CompilerParams(dimension_semantics=("arbitrary",)),
    )(rnn_tbf, w1.astype(jnp.bfloat16), b1.reshape(1, H).astype(jnp.float32),
      w2.astype(jnp.bfloat16), b2.reshape(1, O).astype(jnp.float32))


# ----------------------------------------------------------------------------
# Model glue
# ----------------------------------------------------------------------------
def multiscale_crnn_forward(x_nchw, params):
    """x_nchw: [B, 1, mel, time] -> features [B, output_size]."""
    x = x_nchw.transpose(0, 2, 3, 1).astype(jnp.float32)        # [B, F, T, 1]
    for cp in params['conv']:
        x = conv_bn_relu_pool(x, *cp)                           # freq halves
    Bc, F16, Tt, Cc = x.shape
    # PyTorch: permute(0,3,1,2).view(B, T, C*F16)  (feature index = c*F16 + f)
    # — built here directly in time-major layout [T, B, C*F16] for the RNN stack.
    conv_feat = x.transpose(2, 0, 3, 1).reshape(Tt, Bc, Cc * F16)
    rnn_out = conv_feat
    for lp in params['lstm']:
        rnn_out = bilstm_layer(rnn_out, lp)                     # [T, B, 2H]
    pr = params['proj']
    return pool_and_project(rnn_out, pr['w1'], pr['b1'], pr['w2'], pr['b2'])


# ----------------------------------------------------------------------------
# Deterministic parameter initialization (shapes from the module's __init__)
# ----------------------------------------------------------------------------
def init_params(key, mel=32, hidden=32, out_size=32):
    keys = iter(jax.random.split(key, 64))

    def nrm(shape, s=0.05):
        return jax.random.normal(next(keys), shape, jnp.float32) * s

    conv = []
    cin = 1
    for cout in (64, 128, 256, 512):
        w = nrm((3, 3, cin, cout))
        b = nrm((cout,))
        gamma = 1.0 + nrm((cout,))
        beta = nrm((cout,))
        running_mean = jnp.zeros((cout,), jnp.float32)
        running_var = jnp.ones((cout,), jnp.float32)
        conv.append((w, b, gamma, beta, running_mean, running_var))
        cin = cout

    conv_out = 512 * (mel // 16)
    lstm = []
    in_size = conv_out
    for _ in range(2):                                # num_layers = 2
        p = {}
        for sfx in ('f', 'r'):                        # bidirectional
            p['wih_' + sfx] = nrm((4 * hidden, in_size))
            p['whh_' + sfx] = nrm((4 * hidden, hidden))
            p['bih_' + sfx] = nrm((4 * hidden,))
            p['bhh_' + sfx] = nrm((4 * hidden,))
        lstm.append(p)
        in_size = 2 * hidden

    proj = dict(
        w1=nrm((2 * hidden, hidden)), b1=nrm((hidden,)),
        w2=nrm((hidden, out_size)), b2=nrm((out_size,)),
    )
    return dict(conv=conv, lstm=lstm, proj=proj)


# TODO(synk): Dropout / Dropout2d and BatchNorm batch-statistics (training mode)
# are not modeled; eval-mode semantics (identity dropout, folded BN) are used.
# TODO(synk): on v7x the two LSTM directions could run on separate TensorCores
# (core-parallel grid axis); here they share one kernel on a single core.

if __name__ == "__main__":
    key = jax.random.PRNGKey(0)
    kx, kp = jax.random.split(key)

    # small shapes consistent with the module: mel bands divisible by 16
    B, mel, T = 2, 32, 8
    hidden, out_size = 32, 32

    x = jax.random.normal(kx, (B, 1, mel, T), jnp.float32)   # [batch, 1, mel, time]
    params = init_params(kp, mel=mel, hidden=hidden, out_size=out_size)

    fwd = jax.jit(multiscale_crnn_forward)
    y = jax.block_until_ready(fwd(x, params))

    assert y.shape == (B, out_size), y.shape
    assert bool(jnp.all(jnp.isfinite(y)))
    print("KERNEL_OK")
</pallas_src>

<mosaic_0001>
module attributes {stable_mosaic.version = 11 : i64} {
  func.func @_conv_block_kernel(%arg0: i32, %arg1: memref<1x34x10x1xf32, #tpu.memory_space<vmem>>, %arg2: memref<9x1x64xbf16, #tpu.memory_space<vmem>>, %arg3: memref<1x64xf32, #tpu.memory_space<vmem>>, %arg4: memref<1x16x8x64xf32, #tpu.memory_space<vmem>>) attributes {dimension_semantics = [#tpu.dimension_semantics<parallel>], iteration_bounds = array<i64: 2>, scalar_prefetch = 0 : i64, scratch_operands = 0 : i64, tpu.core_type = #tpu.core_type<tc>, window_params = [{transform_indices = @transform_0, window_bounds = array<i64: 1, 34, 10, 1>}, {pipeline_mode = #tpu.pipeline_mode<synchronous>, transform_indices = @transform_1, window_bounds = array<i64: 9, 1, 64>}, {pipeline_mode = #tpu.pipeline_mode<synchronous>, transform_indices = @transform_2, window_bounds = array<i64: 1, 64>}, {transform_indices = @transform_3, window_bounds = array<i64: 1, 16, 8, 64>}]} {
    %c0 = arith.constant 0 : index
    %c0_0 = arith.constant 0 : index
    %0 = vector.load %arg3[%c0, %c0_0] : memref<1x64xf32, #tpu.memory_space<vmem>>, vector<1x64xf32>
    %c0_i32 = arith.constant 0 : i32
    %c16_i32 = arith.constant 16 : i32
    %1 = arith.addi %c0_i32, %c16_i32 : i32
    %c1_i32 = arith.constant 1 : i32
    scf.for %arg5 = %c0_i32 to %1 step %c1_i32  : i32 {
      %c1_i32_2 = arith.constant 1 : i32
      %2 = arith.muli %arg5, %c1_i32_2 : i32
      %c0_i32_3 = arith.constant 0 : i32
      %3 = arith.addi %c0_i32_3, %2 : i32
      %cst = arith.constant 0.000000e+00 : f32
      %4 = vector.broadcast %cst : f32 to vector<8x64xf32>
      %cst_4 = arith.constant 0.000000e+00 : f32
      %5 = vector.broadcast %cst_4 : f32 to vector<8x64xf32>
      %c2_i32 = arith.constant 2 : i32
      %6 = arith.muli %c2_i32, %3 : i32
      %c0_i32_5 = arith.constant 0 : i32
      %7 = arith.addi %6, %c0_i32_5 : i32
      %c2_i32_6 = arith.constant 2 : i32
      %8 = arith.muli %c2_i32_6, %3 : i32
      %c1_i32_7 = arith.constant 1 : i32
      %9 = arith.addi %8, %c1_i32_7 : i32
      %c0_i32_8 = arith.constant 0 : i32
      %10 = arith.addi %9, %c0_i32_8 : i32
      %c0_9 = arith.constant 0 : index
      %c0_10 = arith.constant 0 : index
      %c0_11 = arith.constant 0 : index
      %11 = vector.load %arg2[%c0_9, %c0_10, %c0_11] : memref<9x1x64xbf16, #tpu.memory_space<vmem>>, vector<1x1x64xbf16>
      %12 = vector.shape_cast %11 : vector<1x1x64xbf16> to vector<1x64xbf16>
      %c0_12 = arith.constant 0 : index
      %13 = arith.index_cast %7 : i32 to index
      %c0_13 = arith.constant 0 : index
      %c0_14 = arith.constant 0 : index
      %14 = vector.load %arg1[%c0_12, %13, %c0_13, %c0_14] : memref<1x34x10x1xf32, #tpu.memory_space<vmem>>, vector<1x1x8x1xf32>
      %15 = vector.shape_cast %14 : vector<1x1x8x1xf32> to vector<8x1xf32>
      %c0_15 = arith.constant 0 : index
      %16 = arith.index_cast %10 : i32 to index
      %c0_16 = arith.constant 0 : index
      %c0_17 = arith.constant 0 : index
      %17 = vector.load %arg1[%c0_15, %16, %c0_16, %c0_17] : memref<1x34x10x1xf32, #tpu.memory_space<vmem>>, vector<1x1x8x1xf32>
      %18 = vector.shape_cast %17 : vector<1x1x8x1xf32> to vector<8x1xf32>
      %19 = arith.extf %12 : vector<1x64xbf16> to vector<1x64xf32>
      %20 = vector.broadcast %15 : vector<8x1xf32> to vector<8x64xf32>
      %21 = vector.broadcast %19 : vector<1x64xf32> to vector<8x64xf32>
      %22 = arith.mulf %20, %21 : vector<8x64xf32>
      %23 = arith.addf %4, %22 : vector<8x64xf32>
      %24 = vector.broadcast %18 : vector<8x1xf32> to vector<8x64xf32>
      %25 = vector.broadcast %19 : vector<1x64xf32> to vector<8x64xf32>
      %26 = arith.mulf %24, %25 : vector<8x64xf32>
      %27 = arith.addf %5, %26 : vector<8x64xf32>
      %c1 = arith.constant 1 : index
      %c0_18 = arith.constant 0 : index
      %c0_19 = arith.constant 0 : index
      %28 = vector.load %arg2[%c1, %c0_18, %c0_19] : memref<9x1x64xbf16, #tpu.memory_space<vmem>>, vector<1x1x64xbf16>
      %29 = vector.shape_cast %28 : vector<1x1x64xbf16> to vector<1x64xbf16>
      %c0_20 = arith.constant 0 : index
      %30 = arith.index_cast %7 : i32 to index
      %c1_21 = arith.constant 1 : index
      %c0_22 = arith.constant 0 : index
      %31 = vector.load %arg1[%c0_20, %30, %c1_21, %c0_22] : memref<1x34x10x1xf32, #tpu.memory_space<vmem>>, vector<1x1x8x1xf32>
      %32 = vector.shape_cast %31 : vector<1x1x8x1xf32> to vector<8x1xf32>
      %c0_23 = arith.constant 0 : index
      %33 = arith.index_cast %10 : i32 to index
      %c1_24 = arith.constant 1 : index
      %c0_25 = arith.constant 0 : index
      %34 = vector.load %arg1[%c0_23, %33, %c1_24, %c0_25] : memref<1x34x10x1xf32, #tpu.memory_space<vmem>>, vector<1x1x8x1xf32>
      %35 = vector.shape_cast %34 : vector<1x1x8x1xf32> to vector<8x1xf32>
      %36 = arith.extf %29 : vector<1x64xbf16> to vector<1x64xf32>
      %37 = vector.broadcast %32 : vector<8x1xf32> to vector<8x64xf32>
      %38 = vector.broadcast %36 : vector<1x64xf32> to vector<8x64xf32>
      %39 = arith.mulf %37, %38 : vector<8x64xf32>
      %40 = arith.addf %23, %39 : vector<8x64xf32>
      %41 = vector.broadcast %35 : vector<8x1xf32> to vector<8x64xf32>
      %42 = vector.broadcast %36 : vector<1x64xf32> to vector<8x64xf32>
      %43 = arith.mulf %41, %42 : vector<8x64xf32>
      %44 = arith.addf %27, %43 : vector<8x64xf32>
      %c2 = arith.constant 2 : index
      %c0_26 = arith.constant 0 : index
      %c0_27 = arith.constant 0 : index
      %45 = vector.load %arg2[%c2, %c0_26, %c0_27] : memref<9x1x64xbf16, #tpu.memory_space<vmem>>, vector<1x1x64xbf16>
      %46 = vector.shape_cast %45 : vector<1x1x64xbf16> to vector<1x64xbf16>
      %c0_28 = arith.constant 0 : index
      %47 = arith.index_cast %7 : i32 to index
      %c2_29 = arith.constant 2 : index
      %c0_30 = arith.constant 0 : index
      %48 = vector.load %arg1[%c0_28, %47, %c2_29, %c0_30] : memref<1x34x10x1xf32, #tpu.memory_space<vmem>>, vector<1x1x8x1xf32>
      %49 = vector.shape_cast %48 : vector<1x1x8x1xf32> to vector<8x1xf32>
      %c0_31 = arith.constant 0 : index
      %50 = arith.index_cast %10 : i32 to index
      %c2_32 = arith.constant 2 : index
      %c0_33 = arith.constant 0 : index
      %51 = vector.load %arg1[%c0_31, %50, %c2_32, %c0_33] : memref<1x34x10x1xf32, #tpu.memory_space<vmem>>, vector<1x1x8x1xf32>
      %52 = vector.shape_cast %51 : vector<1x1x8x1xf32> to vector<8x1xf32>
      %53 = arith.extf %46 : vector<1x64xbf16> to vector<1x64xf32>
      %54 = vector.broadcast %49 : vector<8x1xf32> to vector<8x64xf32>
      %55 = vector.broadcast %53 : vector<1x64xf32> to vector<8x64xf32>
      %56 = arith.mulf %54, %55 : vector<8x64xf32>
      %57 = arith.addf %40, %56 : vector<8x64xf32>
      %58 = vector.broadcast %52 : vector<8x1xf32> to vector<8x64xf32>
      %59 = vector.broadcast %53 : vector<1x64xf32> to vector<8x64xf32>
      %60 = arith.mulf %58, %59 : vector<8x64xf32>
      %61 = arith.addf %44, %60 : vector<8x64xf32>
      %c2_i32_34 = arith.constant 2 : i32
      %62 = arith.muli %c2_i32_34, %3 : i32
      %c1_i32_35 = arith.constant 1 : i32
      %63 = arith.addi %62, %c1_i32_35 : i32
      %c2_i32_36 = arith.constant 2 : i32
      %64 = arith.muli %c2_i32_36, %3 : i32
      %c1_i32_37 = arith.constant 1 : i32
      %65 = arith.addi %64, %c1_i32_37 : i32
      %c1_i32_38 = arith.constant 1 : i32
      %66 = arith.addi %65, %c1_i32_38 : i32
      %c3 = arith.constant 3 : index
      %c0_39 = arith.constant 0 : index
      %c0_40 = arith.constant 0 : index
      %67 = vector.load %arg2[%c3, %c0_39, %c0_40] : memref<9x1x64xbf16, #tpu.memory_space<vmem>>, vector<1x1x64xbf16>
      %68 = vector.shape_cast %67 : vector<1x1x64xbf16> to vector<1x64xbf16>
      %c0_41 = arith.constant 0 : index
      %69 = arith.index_cast %63 : i32 to index
      %c0_42 = arith.constant 0 : index
      %c0_43 = arith.constant 0 : index
      %70 = vector.load %arg1[%c0_41, %69, %c0_42, %c0_43] : memref<1x34x10x1xf32, #tpu.memory_space<vmem>>, vector<1x1x8x1xf32>
      %71 = vector.shape_cast %70 : vector<1x1x8x1xf32> to vector<8x1xf32>
      %c0_44 = arith.constant 0 : index
      %72 = arith.index_cast %66 : i32 to index
      %c0_45 = arith.constant 0 : index
      %c0_46 = arith.constant 0 : index
      %73 = vector.load %arg1[%c0_44, %72, %c0_45, %c0_46] : memref<1x34x10x1xf32, #tpu.memory_space<vmem>>, vector<1x1x8x1xf32>
      %74 = vector.shape_cast %73 : vector<1x1x8x1xf32> to vector<8x1xf32>
      %75 = arith.extf %68 : vector<1x64xbf16> to vector<1x64xf32>
      %76 = vector.broadcast %71 : vector<8x1xf32> to vector<8x64xf32>
      %77 = vector.broadcast %75 : vector<1x64xf32> to vector<8x64xf32>
      %78 = arith.mulf %76, %77 : vector<8x64xf32>
      %79 = arith.addf %57, %78 : vector<8x64xf32>
      %80 = vector.broadcast %74 : vector<8x1xf32> to vector<8x64xf32>
      %81 = vector.broadcast %75 : vector<1x64xf32> to vector<8x64xf32>
      %82 = arith.mulf %80, %81 : vector<8x64xf32>
      %83 = arith.addf %61, %82 : vector<8x64xf32>
      %c4 = arith.constant 4 : index
      %c0_47 = arith.constant 0 : index
      %c0_48 = arith.constant 0 : index
      %84 = vector.load %arg2[%c4, %c0_47, %c0_48] : memref<9x1x64xbf16, #tpu.memory_space<vmem>>, vector<1x1x64xbf16>
      %85 = vector.shape_cast %84 : vector<1x1x64xbf16> to vector<1x64xbf16>
      %c0_49 = arith.constant 0 : index
      %86 = arith.index_cast %63 : i32 to index
      %c1_50 = arith.constant 1 : index
      %c0_51 = arith.constant 0 : index
      %87 = vector.load %arg1[%c0_49, %86, %c1_50, %c0_51] : memref<1x34x10x1xf32, #tpu.memory_space<vmem>>, vector<1x1x8x1xf32>
      %88 = vector.shape_cast %87 : vector<1x1x8x1xf32> to vector<8x1xf32>
      %c0_52 = arith.constant 0 : index
      %89 = arith.index_cast %66 : i32 to index
      %c1_53 = arith.constant 1 : index
      %c0_54 = arith.constant 0 : index
      %90 = vector.load %arg1[%c0_52, %89, %c1_53, %c0_54] : memref<1x34x10x1xf32, #tpu.memory_space<vmem>>, vector<1x1x8x1xf32>
      %91 = vector.shape_cast %90 : vector<1x1x8x1xf32> to vector<8x1xf32>
      %92 = arith.extf %85 : vector<1x64xbf16> to vector<1x64xf32>
      %93 = vector.broadcast %88 : vector<8x1xf32> to vector<8x64xf32>
      %94 = vector.broadcast %92 : vector<1x64xf32> to vector<8x64xf32>
      %95 = arith.mulf %93, %94 : vector<8x64xf32>
      %96 = arith.addf %79, %95 : vector<8x64xf32>
      %97 = vector.broadcast %91 : vector<8x1xf32> to vector<8x64xf32>
      %98 = vector.broadcast %92 : vector<1x64xf32> to vector<8x64xf32>
      %99 = arith.mulf %97, %98 : vector<8x64xf32>
      %100 = arith.addf %83, %99 : vector<8x64xf32>
      %c5 = arith.constant 5 : index
      %c0_55 = arith.constant 0 : index
      %c0_56 = arith.constant 0 : index
      %101 = vector.load %arg2[%c5, %c0_55, %c0_56] : memref<9x1x64xbf16, #tpu.memory_space<vmem>>, vector<1x1x64xbf16>
      %102 = vector.shape_cast %101 : vector<1x1x64xbf16> to vector<1x64xbf16>
      %c0_57 = arith.constant 0 : index
      %103 = arith.index_cast %63 : i32 to index
      %c2_58 = arith.constant 2 : index
      %c0_59 = arith.constant 0 : index
      %104 = vector.load %arg1[%c0_57, %103, %c2_58, %c0_59] : memref<1x34x10x1xf32, #tpu.memory_space<vmem>>, vector<1x1x8x1xf32>
      %105 = vector.shape_cast %104 : vector<1x1x8x1xf32> to vector<8x1xf32>
      %c0_60 = arith.constant 0 : index
      %106 = arith.index_cast %66 : i32 to index
      %c2_61 = arith.constant 2 : index
      %c0_62 = arith.constant 0 : index
      %107 = vector.load %arg1[%c0_60, %106, %c2_61, %c0_62] : memref<1x34x10x1xf32, #tpu.memory_space<vmem>>, vector<1x1x8x1xf32>
      %108 = vector.shape_cast %107 : vector<1x1x8x1xf32> to vector<8x1xf32>
      %109 = arith.extf %102 : vector<1x64xbf16> to vector<1x64xf32>
      %110 = vector.broadcast %105 : vector<8x1xf32> to vector<8x64xf32>
      %111 = vector.broadcast %109 : vector<1x64xf32> to vector<8x64xf32>
      %112 = arith.mulf %110, %111 : vector<8x64xf32>
      %113 = arith.addf %96, %112 : vector<8x64xf32>
      %114 = vector.broadcast %108 : vector<8x1xf32> to vector<8x64xf32>
      %115 = vector.broadcast %109 : vector<1x64xf32> to vector<8x64xf32>
      %116 = arith.mulf %114, %115 : vector<8x64xf32>
      %117 = arith.addf %100, %116 : vector<8x64xf32>
      %c2_i32_63 = arith.constant 2 : i32
      %118 = arith.muli %c2_i32_63, %3 : i32
      %c2_i32_64 = arith.constant 2 : i32
      %119 = arith.addi %118, %c2_i32_64 : i32
      %c2_i32_65 = arith.constant 2 : i32
      %120 = arith.muli %c2_i32_65, %3 : i32
      %c1_i32_66 = arith.constant 1 : i32
      %121 = arith.addi %120, %c1_i32_66 : i32
      %c2_i32_67 = arith.constant 2 : i32
      %122 = arith.addi %121, %c2_i32_67 : i32
      %c6 = arith.constant 6 : index
      %c0_68 = arith.constant 0 : index
      %c0_69 = arith.constant 0 : index
      %123 = vector.load %arg2[%c6, %c0_68, %c0_69] : memref<9x1x64xbf16, #tpu.memory_space<vmem>>, vector<1x1x64xbf16>
      %124 = vector.shape_cast %123 : vector<1x1x64xbf16> to vector<1x64xbf16>
      %c0_70 = arith.constant 0 : index
      %125 = arith.index_cast %119 : i32 to index
      %c0_71 = arith.constant 0 : index
      %c0_72 = arith.constant 0 : index
      %126 = vector.load %arg1[%c0_70, %125, %c0_71, %c0_72] : memref<1x34x10x1xf32, #tpu.memory_space<vmem>>, vector<1x1x8x1xf32>
      %127 = vector.shape_cast %126 : vector<1x1x8x1xf32> to vector<8x1xf32>
      %c0_73 = arith.constant 0 : index
      %128 = arith.index_cast %122 : i32 to index
      %c0_74 = arith.constant 0 : index
      %c0_75 = arith.constant 0 : index
      %129 = vector.load %arg1[%c0_73, %128, %c0_74, %c0_75] : memref<1x34x10x1xf32, #tpu.memory_space<vmem>>, vector<1x1x8x1xf32>
      %130 = vector.shape_cast %129 : vector<1x1x8x1xf32> to vector<8x1xf32>
      %131 = arith.extf %124 : vector<1x64xbf16> to vector<1x64xf32>
      %132 = vector.broadcast %127 : vector<8x1xf32> to vector<8x64xf32>
      %133 = vector.broadcast %131 : vector<1x64xf32> to vector<8x64xf32>
      %134 = arith.mulf %132, %133 : vector<8x64xf32>
      %135 = arith.addf %113, %134 : vector<8x64xf32>
      %136 = vector.broadcast %130 : vector<8x1xf32> to vector<8x64xf32>
      %137 = vector.broadcast %131 : vector<1x64xf32> to vector<8x64xf32>
      %138 = arith.mulf %136, %137 : vector<8x64xf32>
      %139 = arith.addf %117, %138 : vector<8x64xf32>
      %c7 = arith.constant 7 : index
      %c0_76 = arith.constant 0 : index
      %c0_77 = arith.constant 0 : index
      %140 = vector.load %arg2[%c7, %c0_76, %c0_77] : memref<9x1x64xbf16, #tpu.memory_space<vmem>>, vector<1x1x64xbf16>
      %141 = vector.shape_cast %140 : vector<1x1x64xbf16> to vector<1x64xbf16>
      %c0_78 = arith.constant 0 : index
      %142 = arith.index_cast %119 : i32 to index
      %c1_79 = arith.constant 1 : index
      %c0_80 = arith.constant 0 : index
      %143 = vector.load %arg1[%c0_78, %142, %c1_79, %c0_80] : memref<1x34x10x1xf32, #tpu.memory_space<vmem>>, vector<1x1x8x1xf32>
      %144 = vector.shape_cast %143 : vector<1x1x8x1xf32> to vector<8x1xf32>
      %c0_81 = arith.constant 0 : index
      %145 = arith.index_cast %122 : i32 to index
      %c1_82 = arith.constant 1 : index
      %c0_83 = arith.constant 0 : index
      %146 = vector.load %arg1[%c0_81, %145, %c1_82, %c0_83] : memref<1x34x10x1xf32, #tpu.memory_space<vmem>>, vector<1x1x8x1xf32>
      %147 = vector.shape_cast %146 : vector<1x1x8x1xf32> to vector<8x1xf32>
      %148 = arith.extf %141 : vector<1x64xbf16> to vector<1x64xf32>
      %149 = vector.broadcast %144 : vector<8x1xf32> to vector<8x64xf32>
      %150 = vector.broadcast %148 : vector<1x64xf32> to vector<8x64xf32>
      %151 = arith.mulf %149, %150 : vector<8x64xf32>
      %152 = arith.addf %135, %151 : vector<8x64xf32>
      %153 = vector.broadcast %147 : vector<8x1xf32> to vector<8x64xf32>
      %154 = vector.broadcast %148 : vector<1x64xf32> to vector<8x64xf32>
      %155 = arith.mulf %153, %154 : vector<8x64xf32>
      %156 = arith.addf %139, %155 : vector<8x64xf32>
      %c8 = arith.constant 8 : index
      %c0_84 = arith.constant 0 : index
      %c0_85 = arith.constant 0 : index
      %157 = vector.load %arg2[%c8, %c0_84, %c0_85] : memref<9x1x64xbf16, #tpu.memory_space<vmem>>, vector<1x1x64xbf16>
      %158 = vector.shape_cast %157 : vector<1x1x64xbf16> to vector<1x64xbf16>
      %c0_86 = arith.constant 0 : index
      %159 = arith.index_cast %119 : i32 to index
      %c2_87 = arith.constant 2 : index
      %c0_88 = arith.constant 0 : index
      %160 = vector.load %arg1[%c0_86, %159, %c2_87, %c0_88] : memref<1x34x10x1xf32, #tpu.memory_space<vmem>>, vector<1x1x8x1xf32>
      %161 = vector.shape_cast %160 : vector<1x1x8x1xf32> to vector<8x1xf32>
      %c0_89 = arith.constant 0 : index
      %162 = arith.index_cast %122 : i32 to index
      %c2_90 = arith.constant 2 : index
      %c0_91 = arith.constant 0 : index
      %163 = vector.load %arg1[%c0_89, %162, %c2_90, %c0_91] : memref<1x34x10x1xf32, #tpu.memory_space<vmem>>, vector<1x1x8x1xf32>
      %164 = vector.shape_cast %163 : vector<1x1x8x1xf32> to vector<8x1xf32>
      %165 = arith.extf %158 : vector<1x64xbf16> to vector<1x64xf32>
      %166 = vector.broadcast %161 : vector<8x1xf32> to vector<8x64xf32>
      %167 = vector.broadcast %165 : vector<1x64xf32> to vector<8x64xf32>
      %168 = arith.mulf %166, %167 : vector<8x64xf32>
      %169 = arith.addf %152, %168 : vector<8x64xf32>
      %170 = vector.broadcast %164 : vector<8x1xf32> to vector<8x64xf32>
      %171 = vector.broadcast %165 : vector<1x64xf32> to vector<8x64xf32>
      %172 = arith.mulf %170, %171 : vector<8x64xf32>
      %173 = arith.addf %156, %172 : vector<8x64xf32>
      %174 = vector.broadcast %0 : vector<1x64xf32> to vector<8x64xf32>
      %175 = arith.addf %169, %174 : vector<8x64xf32>
      %cst_92 = arith.constant 0.000000e+00 : f32
      %176 = vector.broadcast %cst_92 : f32 to vector<8x64xf32>
      %177 = arith.maximumf %175, %176 : vector<8x64xf32>
      %178 = vector.broadcast %0 : vector<1x64xf32> to vector<8x64xf32>
      %179 = arith.addf %173, %178 : vector<8x64xf32>
      %cst_93 = arith.constant 0.000000e+00 : f32
      %180 = vector.broadcast %cst_93 : f32 to vector<8x64xf32>
      %181 = arith.maximumf %179, %180 : vector<8x64xf32>
      %182 = arith.maximumf %177, %181 : vector<8x64xf32>
      %c0_94 = arith.constant 0 : index
      %183 = arith.index_cast %3 : i32 to index
      %c0_95 = arith.constant 0 : index
      %c0_96 = arith.constant 0 : index
      %184 = vector.load %arg4[%c0_94, %183, %c0_95, %c0_96] : memref<1x16x8x64xf32, #tpu.memory_space<vmem>>, vector<1x1x8x64xf32>
      %185 = vector.shape_cast %184 : vector<1x1x8x64xf32> to vector<8x64xf32>
      %186 = vector.shape_cast %182 : vector<8x64xf32> to vector<1x1x8x64xf32>
      tpu.vector_store %arg4[%c0_94, %183, %c0_95, %c0_96], %186 {strides = array<i32>} : memref<1x16x8x64xf32, #tpu.memory_space<vmem>>, vector<1x1x8x64xf32>,
    }
    %c16_i32_1 = arith.constant 16 : i32
    return
  }
  func.func @transform_0(%arg0: i32) -> (i32, i32, i32, i32) {
    %c0_i32 = arith.constant 0 : i32
    %c0_i32_0 = arith.constant 0 : i32
    %c0_i32_1 = arith.constant 0 : i32
    %c0_i32_2 = arith.constant 0 : i32
    return %arg0, %c0_i32, %c0_i32_0, %c0_i32_1 : i32, i32, i32, i32
  }
  func.func @transform_1(%arg0: i32) -> (i32, i32, i32) {
    %c0_i32 = arith.constant 0 : i32
    %c0_i32_0 = arith.constant 0 : i32
    %c0_i32_1 = arith.constant 0 : i32
    %c0_i32_2 = arith.constant 0 : i32
    return %c0_i32, %c0_i32_0, %c0_i32_1 : i32, i32, i32
  }
  func.func @transform_2(%arg0: i32) -> (i32, i32) {
    %c0_i32 = arith.constant 0 : i32
    %c0_i32_0 = arith.constant 0 : i32
    %c0_i32_1 = arith.constant 0 : i32
    return %c0_i32, %c0_i32_0 : i32, i32
  }
  func.func @transform_3(%arg0: i32) -> (i32, i32, i32, i32) {
    %c0_i32 = arith.constant 0 : i32
    %c0_i32_0 = arith.constant 0 : i32
    %c0_i32_1 = arith.constant 0 : i32
    %c0_i32_2 = arith.constant 0 : i32
    return %arg0, %c0_i32, %c0_i32_0, %c0_i32_1 : i32, i32, i32, i32
  }
}

module attributes {stable_mosaic.version = 11 : i64} {
  func.func @_conv_block_kernel(%arg0: i32, %arg1: memref<1x18x10x64xf32, #tpu.memory_space<vmem>>, %arg2: memref<9x64x128xbf16, #tpu.memory_space<vmem>>, %arg3: memref<1x128xf32, #tpu.memory_space<vmem>>, %arg4: memref<1x8x8x128xf32, #tpu.memory_space<vmem>>) attributes {dimension_semantics = [#tpu.dimension_semantics<parallel>], iteration_bounds = array<i64: 2>, scalar_prefetch = 0 : i64, scratch_operands = 0 : i64, tpu.core_type = #tpu.core_type<tc>, window_params = [{transform_indices = @transform_0, window_bounds = array<i64: 1, 18, 10, 64>}, {pipeline_mode = #tpu.pipeline_mode<synchronous>, transform_indices = @transform_1, window_bounds = array<i64: 9, 64, 128>}, {pipeline_mode = #tpu.pipeline_mode<synchronous>, transform_indices = @transform_2, window_bounds = array<i64: 1, 128>}, {transform_indices = @transform_3, window_bounds = array<i64: 1, 8, 8, 128>}]} {
    %c0 = arith.constant 0 : index
    %c0_0 = arith.constant 0 : index
    %0 = vector.load %arg3[%c0, %c0_0] : memref<1x128xf32, #tpu.memory_space<vmem>>, vector<1x128xf32>
    %c0_i32 = arith.constant 0 : i32
    %c8_i32 = arith.constant 8 : i32
    %1 = arith.addi %c0_i32, %c8_i32 : i32
    %c1_i32 = arith.constant 1 : i32
    scf.for %arg5 = %c0_i32 to %1 step %c1_i32  : i32 {
      %c1_i32_2 = arith.constant 1 : i32
      %2 = arith.muli %arg5, %c1_i32_2 : i32
      %c0_i32_3 = arith.constant 0 : i32
      %3 = arith.addi %c0_i32_3, %2 : i32
      %cst = arith.constant 0.000000e+00 : f32
      %4 = vector.broadcast %cst : f32 to vector<8x128xf32>
      %cst_4 = arith.constant 0.000000e+00 : f32
      %5 = vector.broadcast %cst_4 : f32 to vector<8x128xf32>
      %c2_i32 = arith.constant 2 : i32
      %6 = arith.muli %c2_i32, %3 : i32
      %c0_i32_5 = arith.constant 0 : i32
      %7 = arith.addi %6, %c0_i32_5 : i32
      %c2_i32_6 = arith.constant 2 : i32
      %8 = arith.muli %c2_i32_6, %3 : i32
      %c1_i32_7 = arith.constant 1 : i32
      %9 = arith.addi %8, %c1_i32_7 : i32
      %c0_i32_8 = arith.constant 0 : i32
      %10 = arith.addi %9, %c0_i32_8 : i32
      %c0_9 = arith.constant 0 : index
      %c0_10 = arith.constant 0 : index
      %c0_11 = arith.constant 0 : index
      %11 = vector.load %arg2[%c0_9, %c0_10, %c0_11] : memref<9x64x128xbf16, #tpu.memory_space<vmem>>, vector<1x64x128xbf16>
      %12 = vector.shape_cast %11 : vector<1x64x128xbf16> to vector<64x128xbf16>
      %c0_12 = arith.constant 0 : index
      %13 = arith.index_cast %7 : i32 to index
      %c0_13 = arith.constant 0 : index
      %c0_14 = arith.constant 0 : index
      %14 = vector.load %arg1[%c0_12, %13, %c0_13, %c0_14] : memref<1x18x10x64xf32, #tpu.memory_space<vmem>>, vector<1x1x8x64xf32>
      %15 = vector.shape_cast %14 : vector<1x1x8x64xf32> to vector<8x64xf32>
      %c0_15 = arith.constant 0 : index
      %16 = arith.index_cast %10 : i32 to index
      %c0_16 = arith.constant 0 : index
      %c0_17 = arith.constant 0 : index
      %17 = vector.load %arg1[%c0_15, %16, %c0_16, %c0_17] : memref<1x18x10x64xf32, #tpu.memory_space<vmem>>, vector<1x1x8x64xf32>
      %18 = vector.shape_cast %17 : vector<1x1x8x64xf32> to vector<8x64xf32>
      %19 = arith.truncf %15 : vector<8x64xf32> to vector<8x64xbf16>
      %cst_18 = arith.constant dense<0.000000e+00> : vector<8x128xf32>
      %20 = tpu.matmul %19, %12, %cst_18 {dimension_numbers = #tpu.dot_dimension_numbers<[1], [0], [0], [1], [0, 0, 1, 1], [], []>} : vector<8x64xbf16>, vector<64x128xbf16>, vector<8x128xf32> -> vector<8x128xf32>
      %21 = arith.addf %4, %20 : vector<8x128xf32>
      %22 = arith.truncf %18 : vector<8x64xf32> to vector<8x64xbf16>
      %cst_19 = arith.constant dense<0.000000e+00> : vector<8x128xf32>
      %23 = tpu.matmul %22, %12, %cst_19 {dimension_numbers = #tpu.dot_dimension_numbers<[1], [0], [0], [1], [0, 0, 1, 1], [], []>} : vector<8x64xbf16>, vector<64x128xbf16>, vector<8x128xf32> -> vector<8x128xf32>
      %24 = arith.addf %5, %23 : vector<8x128xf32>
      %c1 = arith.constant 1 : index
      %c0_20 = arith.constant 0 : index
      %c0_21 = arith.constant 0 : index
      %25 = vector.load %arg2[%c1, %c0_20, %c0_21] : memref<9x64x128xbf16, #tpu.memory_space<vmem>>, vector<1x64x128xbf16>
      %26 = vector.shape_cast %25 : vector<1x64x128xbf16> to vector<64x128xbf16>
      %c0_22 = arith.constant 0 : index
      %27 = arith.index_cast %7 : i32 to index
      %c1_23 = arith.constant 1 : index
      %c0_24 = arith.constant 0 : index
      %28 = vector.load %arg1[%c0_22, %27, %c1_23, %c0_24] : memref<1x18x10x64xf32, #tpu.memory_space<vmem>>, vector<1x1x8x64xf32>
      %29 = vector.shape_cast %28 : vector<1x1x8x64xf32> to vector<8x64xf32>
      %c0_25 = arith.constant 0 : index
      %30 = arith.index_cast %10 : i32 to index
      %c1_26 = arith.constant 1 : index
      %c0_27 = arith.constant 0 : index
      %31 = vector.load %arg1[%c0_25, %30, %c1_26, %c0_27] : memref<1x18x10x64xf32, #tpu.memory_space<vmem>>, vector<1x1x8x64xf32>
      %32 = vector.shape_cast %31 : vector<1x1x8x64xf32> to vector<8x64xf32>
      %33 = arith.truncf %29 : vector<8x64xf32> to vector<8x64xbf16>
      %cst_28 = arith.constant dense<0.000000e+00> : vector<8x128xf32>
      %34 = tpu.matmul %33, %26, %cst_28 {dimension_numbers = #tpu.dot_dimension_numbers<[1], [0], [0], [1], [0, 0, 1, 1], [], []>} : vector<8x64xbf16>, vector<64x128xbf16>, vector<8x128xf32> -> vector<8x128xf32>
      %35 = arith.addf %21, %34 : vector<8x128xf32>
      %36 = arith.truncf %32 : vector<8x64xf32> to vector<8x64xbf16>
      %cst_29 = arith.constant dense<0.000000e+00> : vector<8x128xf32>
      %37 = tpu.matmul %36, %26, %cst_29 {dimension_numbers = #tpu.dot_dimension_numbers<[1], [0], [0], [1], [0, 0, 1, 1], [], []>} : vector<8x64xbf16>, vector<64x128xbf16>, vector<8x128xf32> -> vector<8x128xf32>
      %38 = arith.addf %24, %37 : vector<8x128xf32>
      %c2 = arith.constant 2 : index
      %c0_30 = arith.constant 0 : index
      %c0_31 = arith.constant 0 : index
      %39 = vector.load %arg2[%c2, %c0_30, %c0_31] : memref<9x64x128xbf16, #tpu.memory_space<vmem>>, vector<1x64x128xbf16>
      %40 = vector.shape_cast %39 : vector<1x64x128xbf16> to vector<64x128xbf16>
      %c0_32 = arith.constant 0 : index
      %41 = arith.index_cast %7 : i32 to index
      %c2_33 = arith.constant 2 : index
      %c0_34 = arith.constant 0 : index
      %42 = vector.load %arg1[%c0_32, %41, %c2_33, %c0_34] : memref<1x18x10x64xf32, #tpu.memory_space<vmem>>, vector<1x1x8x64xf32>
      %43 = vector.shape_cast %42 : vector<1x1x8x64xf32> to vector<8x64xf32>
      %c0_35 = arith.constant 0 : index
      %44 = arith.index_cast %10 : i32 to index
      %c2_36 = arith.constant 2 : index
      %c0_37 = arith.constant 0 : index
      %45 = vector.load %arg1[%c0_35, %44, %c2_36, %c0_37] : memref<1x18x10x64xf32, #tpu.memory_space<vmem>>, vector<1x1x8x64xf32>
      %46 = vector.shape_cast %45 : vector<1x1x8x64xf32> to vector<8x64xf32>
      %47 = arith.truncf %43 : vector<8x64xf32> to vector<8x64xbf16>
      %cst_38 = arith.constant dense<0.000000e+00> : vector<8x128xf32>
      %48 = tpu.matmul %47, %40, %cst_38 {dimension_numbers = #tpu.dot_dimension_numbers<[1], [0], [0], [1], [0, 0, 1, 1], [], []>} : vector<8x64xbf16>, vector<64x128xbf16>, vector<8x128xf32> -> vector<8x128xf32>
      %49 = arith.addf %35, %48 : vector<8x128xf32>
      %50 = arith.truncf %46 : vector<8x64xf32> to vector<8x64xbf16>
      %cst_39 = arith.constant dense<0.000000e+00> : vector<8x128xf32>
      %51 = tpu.matmul %50, %40, %cst_39 {dimension_numbers = #tpu.dot_dimension_numbers<[1], [0], [0], [1], [0, 0, 1, 1], [], []>} : vector<8x64xbf16>, vector<64x128xbf16>, vector<8x128xf32> -> vector<8x128xf32>
      %52 = arith.addf %38, %51 : vector<8x128xf32>
      %c2_i32_40 = arith.constant 2 : i32
      %53 = arith.muli %c2_i32_40, %3 : i32
      %c1_i32_41 = arith.constant 1 : i32
      %54 = arith.addi %53, %c1_i32_41 : i32
      %c2_i32_42 = arith.constant 2 : i32
      %55 = arith.muli %c2_i32_42, %3 : i32
      %c1_i32_43 = arith.constant 1 : i32
      %56 = arith.addi %55, %c1_i32_43 : i32
      %c1_i32_44 = arith.constant 1 : i32
      %57 = arith.addi %56, %c1_i32_44 : i32
      %c3 = arith.constant 3 : index
      %c0_45 = arith.constant 0 : index
      %c0_46 = arith.constant 0 : index
      %58 = vector.load %arg2[%c3, %c0_45, %c0_46] : memref<9x64x128xbf16, #tpu.memory_space<vmem>>, vector<1x64x128xbf16>
      %59 = vector.shape_cast %58 : vector<1x64x128xbf16> to vector<64x128xbf16>
      %c0_47 = arith.constant 0 : index
      %60 = arith.index_cast %54 : i32 to index
      %c0_48 = arith.constant 0 : index
      %c0_49 = arith.constant 0 : index
      %61 = vector.load %arg1[%c0_47, %60, %c0_48, %c0_49] : memref<1x18x10x64xf32, #tpu.memory_space<vmem>>, vector<1x1x8x64xf32>
      %62 = vector.shape_cast %61 : vector<1x1x8x64xf32> to vector<8x64xf32>
      %c0_50 = arith.constant 0 : index
      %63 = arith.index_cast %57 : i32 to index
      %c0_51 = arith.constant 0 : index
      %c0_52 = arith.constant 0 : index
      %64 = vector.load %arg1[%c0_50, %63, %c0_51, %c0_52] : memref<1x18x10x64xf32, #tpu.memory_space<vmem>>, vector<1x1x8x64xf32>
      %65 = vector.shape_cast %64 : vector<1x1x8x64xf32> to vector<8x64xf32>
      %66 = arith.truncf %62 : vector<8x64xf32> to vector<8x64xbf16>
      %cst_53 = arith.constant dense<0.000000e+00> : vector<8x128xf32>
      %67 = tpu.matmul %66, %59, %cst_53 {dimension_numbers = #tpu.dot_dimension_numbers<[1], [0], [0], [1], [0, 0, 1, 1], [], []>} : vector<8x64xbf16>, vector<64x128xbf16>, vector<8x128xf32> -> vector<8x128xf32>
      %68 = arith.addf %49, %67 : vector<8x128xf32>
      %69 = arith.truncf %65 : vector<8x64xf32> to vector<8x64xbf16>
      %cst_54 = arith.constant dense<0.000000e+00> : vector<8x128xf32>
      %70 = tpu.matmul %69, %59, %cst_54 {dimension_numbers = #tpu.dot_dimension_numbers<[1], [0], [0], [1], [0, 0, 1, 1], [], []>} : vector<8x64xbf16>, vector<64x128xbf16>, vector<8x128xf32> -> vector<8x128xf32>
      %71 = arith.addf %52, %70 : vector<8x128xf32>
      %c4 = arith.constant 4 : index
      %c0_55 = arith.constant 0 : index
      %c0_56 = arith.constant 0 : index
      %72 = vector.load %arg2[%c4, %c0_55, %c0_56] : memref<9x64x128xbf16, #tpu.memory_space<vmem>>, vector<1x64x128xbf16>
      %73 = vector.shape_cast %72 : vector<1x64x128xbf16> to vector<64x128xbf16>
      %c0_57 = arith.constant 0 : index
      %74 = arith.index_cast %54 : i32 to index
      %c1_58 = arith.constant 1 : index
      %c0_59 = arith.constant 0 : index
      %75 = vector.load %arg1[%c0_57, %74, %c1_58, %c0_59] : memref<1x18x10x64xf32, #tpu.memory_space<vmem>>, vector<1x1x8x64xf32>
      %76 = vector.shape_cast %75 : vector<1x1x8x64xf32> to vector<8x64xf32>
      %c0_60 = arith.constant 0 : index
      %77 = arith.index_cast %57 : i32 to index
      %c1_61 = arith.constant 1 : index
      %c0_62 = arith.constant 0 : index
      %78 = vector.load %arg1[%c0_60, %77, %c1_61, %c0_62] : memref<1x18x10x64xf32, #tpu.memory_space<vmem>>, vector<1x1x8x64xf32>
      %79 = vector.shape_cast %78 : vector<1x1x8x64xf32> to vector<8x64xf32>
      %80 = arith.truncf %76 : vector<8x64xf32> to vector<8x64xbf16>
      %cst_63 = arith.constant dense<0.000000e+00> : vector<8x128xf32>
      %81 = tpu.matmul %80, %73, %cst_63 {dimension_numbers = #tpu.dot_dimension_numbers<[1], [0], [0], [1], [0, 0, 1, 1], [], []>} : vector<8x64xbf16>, vector<64x128xbf16>, vector<8x128xf32> -> vector<8x128xf32>
      %82 = arith.addf %68, %81 : vector<8x128xf32>
      %83 = arith.truncf %79 : vector<8x64xf32> to vector<8x64xbf16>
      %cst_64 = arith.constant dense<0.000000e+00> : vector<8x128xf32>
      %84 = tpu.matmul %83, %73, %cst_64 {dimension_numbers = #tpu.dot_dimension_numbers<[1], [0], [0], [1], [0, 0, 1, 1], [], []>} : vector<8x64xbf16>, vector<64x128xbf16>, vector<8x128xf32> -> vector<8x128xf32>
      %85 = arith.addf %71, %84 : vector<8x128xf32>
      %c5 = arith.constant 5 : index
      %c0_65 = arith.constant 0 : index
      %c0_66 = arith.constant 0 : index
      %86 = vector.load %arg2[%c5, %c0_65, %c0_66] : memref<9x64x128xbf16, #tpu.memory_space<vmem>>, vector<1x64x128xbf16>
      %87 = vector.shape_cast %86 : vector<1x64x128xbf16> to vector<64x128xbf16>
      %c0_67 = arith.constant 0 : index
      %88 = arith.index_cast %54 : i32 to index
      %c2_68 = arith.constant 2 : index
      %c0_69 = arith.constant 0 : index
      %89 = vector.load %arg1[%c0_67, %88, %c2_68, %c0_69] : memref<1x18x10x64xf32, #tpu.memory_space<vmem>>, vector<1x1x8x64xf32>
      %90 = vector.shape_cast %89 : vector<1x1x8x64xf32> to vector<8x64xf32>
      %c0_70 = arith.constant 0 : index
      %91 = arith.index_cast %57 : i32 to index
      %c2_71 = arith.constant 2 : index
      %c0_72 = arith.constant 0 : index
      %92 = vector.load %arg1[%c0_70, %91, %c2_71, %c0_72] : memref<1x18x10x64xf32, #tpu.memory_space<vmem>>, vector<1x1x8x64xf32>
      %93 = vector.shape_cast %92 : vector<1x1x8x64xf32> to vector<8x64xf32>
      %94 = arith.truncf %90 : vector<8x64xf32> to vector<8x64xbf16>
      %cst_73 = arith.constant dense<0.000000e+00> : vector<8x128xf32>
      %95 = tpu.matmul %94, %87, %cst_73 {dimension_numbers = #tpu.dot_dimension_numbers<[1], [0], [0], [1], [0, 0, 1, 1], [], []>} : vector<8x64xbf16>, vector<64x128xbf16>, vector<8x128xf32> -> vector<8x128xf32>
      %96 = arith.addf %82, %95 : vector<8x128xf32>
      %97 = arith.truncf %93 : vector<8x64xf32> to vector<8x64xbf16>
      %cst_74 = arith.constant dense<0.000000e+00> : vector<8x128xf32>
      %98 = tpu.matmul %97, %87, %cst_74 {dimension_numbers = #tpu.dot_dimension_numbers<[1], [0], [0], [1], [0, 0, 1, 1], [], []>} : vector<8x64xbf16>, vector<64x128xbf16>, vector<8x128xf32> -> vector<8x128xf32>
      %99 = arith.addf %85, %98 : vector<8x128xf32>
      %c2_i32_75 = arith.constant 2 : i32
      %100 = arith.muli %c2_i32_75, %3 : i32
      %c2_i32_76 = arith.constant 2 : i32
      %101 = arith.addi %100, %c2_i32_76 : i32
      %c2_i32_77 = arith.constant 2 : i32
      %102 = arith.muli %c2_i32_77, %3 : i32
      %c1_i32_78 = arith.constant 1 : i32
      %103 = arith.addi %102, %c1_i32_78 : i32
      %c2_i32_79 = arith.constant 2 : i32
      %104 = arith.addi %103, %c2_i32_79 : i32
      %c6 = arith.constant 6 : index
      %c0_80 = arith.constant 0 : index
      %c0_81 = arith.constant 0 : index
      %105 = vector.load %arg2[%c6, %c0_80, %c0_81] : memref<9x64x128xbf16, #tpu.memory_space<vmem>>, vector<1x64x128xbf16>
      %106 = vector.shape_cast %105 : vector<1x64x128xbf16> to vector<64x128xbf16>
      %c0_82 = arith.constant 0 : index
      %107 = arith.index_cast %101 : i32 to index
      %c0_83 = arith.constant 0 : index
      %c0_84 = arith.constant 0 : index
      %108 = vector.load %arg1[%c0_82, %107, %c0_83, %c0_84] : memref<1x18x10x64xf32, #tpu.memory_space<vmem>>, vector<1x1x8x64xf32>
      %109 = vector.shape_cast %108 : vector<1x1x8x64xf32> to vector<8x64xf32>
      %c0_85 = arith.constant 0 : index
      %110 = arith.index_cast %104 : i32 to index
      %c0_86 = arith.constant 0 : index
      %c0_87 = arith.constant 0 : index
      %111 = vector.load %arg1[%c0_85, %110, %c0_86, %c0_87] : memref<1x18x10x64xf32, #tpu.memory_space<vmem>>, vector<1x1x8x64xf32>
      %112 = vector.shape_cast %111 : vector<1x1x8x64xf32> to vector<8x64xf32>
      %113 = arith.truncf %109 : vector<8x64xf32> to vector<8x64xbf16>
      %cst_88 = arith.constant dense<0.000000e+00> : vector<8x128xf32>
      %114 = tpu.matmul %113, %106, %cst_88 {dimension_numbers = #tpu.dot_dimension_numbers<[1], [0], [0], [1], [0, 0, 1, 1], [], []>} : vector<8x64xbf16>, vector<64x128xbf16>, vector<8x128xf32> -> vector<8x128xf32>
      %115 = arith.addf %96, %114 : vector<8x128xf32>
      %116 = arith.truncf %112 : vector<8x64xf32> to vector<8x64xbf16>
      %cst_89 = arith.constant dense<0.000000e+00> : vector<8x128xf32>
      %117 = tpu.matmul %116, %106, %cst_89 {dimension_numbers = #tpu.dot_dimension_numbers<[1], [0], [0], [1], [0, 0, 1, 1], [], []>} : vector<8x64xbf16>, vector<64x128xbf16>, vector<8x128xf32> -> vector<8x128xf32>
      %118 = arith.addf %99, %117 : vector<8x128xf32>
      %c7 = arith.constant 7 : index
      %c0_90 = arith.constant 0 : index
      %c0_91 = arith.constant 0 : index
      %119 = vector.load %arg2[%c7, %c0_90, %c0_91] : memref<9x64x128xbf16, #tpu.memory_space<vmem>>, vector<1x64x128xbf16>
      %120 = vector.shape_cast %119 : vector<1x64x128xbf16> to vector<64x128xbf16>
      %c0_92 = arith.constant 0 : index
      %121 = arith.index_cast %101 : i32 to index
      %c1_93 = arith.constant 1 : index
      %c0_94 = arith.constant 0 : index
      %122 = vector.load %arg1[%c0_92, %121, %c1_93, %c0_94] : memref<1x18x10x64xf32, #tpu.memory_space<vmem>>, vector<1x1x8x64xf32>
      %123 = vector.shape_cast %122 : vector<1x1x8x64xf32> to vector<8x64xf32>
      %c0_95 = arith.constant 0 : index
      %124 = arith.index_cast %104 : i32 to index
      %c1_96 = arith.constant 1 : index
      %c0_97 = arith.constant 0 : index
      %125 = vector.load %arg1[%c0_95, %124, %c1_96, %c0_97] : memref<1x18x10x64xf32, #tpu.memory_space<vmem>>, vector<1x1x8x64xf32>
      %126 = vector.shape_cast %125 : vector<1x1x8x64xf32> to vector<8x64xf32>
      %127 = arith.truncf %123 : vector<8x64xf32> to vector<8x64xbf16>
      %cst_98 = arith.constant dense<0.000000e+00> : vector<8x128xf32>
      %128 = tpu.matmul %127, %120, %cst_98 {dimension_numbers = #tpu.dot_dimension_numbers<[1], [0], [0], [1], [0, 0, 1, 1], [], []>} : vector<8x64xbf16>, vector<64x128xbf16>, vector<8x128xf32> -> vector<8x128xf32>
      %129 = arith.addf %115, %128 : vector<8x128xf32>
      %130 = arith.truncf %126 : vector<8x64xf32> to vector<8x64xbf16>
      %cst_99 = arith.constant dense<0.000000e+00> : vector<8x128xf32>
      %131 = tpu.matmul %130, %120, %cst_99 {dimension_numbers = #tpu.dot_dimension_numbers<[1], [0], [0], [1], [0, 0, 1, 1], [], []>} : vector<8x64xbf16>, vector<64x128xbf16>, vector<8x128xf32> -> vector<8x128xf32>
      %132 = arith.addf %118, %131 : vector<8x128xf32>
      %c8 = arith.constant 8 : index
      %c0_100 = arith.constant 0 : index
      %c0_101 = arith.constant 0 : index
      %133 = vector.load %arg2[%c8, %c0_100, %c0_101] : memref<9x64x128xbf16, #tpu.memory_space<vmem>>, vector<1x64x128xbf16>
      %134 = vector.shape_cast %133 : vector<1x64x128xbf16> to vector<64x128xbf16>
      %c0_102 = arith.constant 0 : index
      %135 = arith.index_cast %101 : i32 to index
      %c2_103 = arith.constant 2 : index
      %c0_104 = arith.constant 0 : index
      %136 = vector.load %arg1[%c0_102, %135, %c2_103, %c0_104] : memref<1x18x10x64xf32, #tpu.memory_space<vmem>>, vector<1x1x8x64xf32>
      %137 = vector.shape_cast %136 : vector<1x1x8x64xf32> to vector<8x64xf32>
      %c0_105 = arith.constant 0 : index
      %138 = arith.index_cast %104 : i32 to index
      %c2_106 = arith.constant 2 : index
      %c0_107 = arith.constant 0 : index
      %139 = vector.load %arg1[%c0_105, %138, %c2_106, %c0_107] : memref<1x18x10x64xf32, #tpu.memory_space<vmem>>, vector<1x1x8x64xf32>
      %140 = vector.shape_cast %139 : vector<1x1x8x64xf32> to vector<8x64xf32>
      %141 = arith.truncf %137 : vector<8x64xf32> to vector<8x64xbf16>
      %cst_108 = arith.constant dense<0.000000e+00> : vector<8x128xf32>
      %142 = tpu.matmul %141, %134, %cst_108 {dimension_numbers = #tpu.dot_dimension_numbers<[1], [0], [0], [1], [0, 0, 1, 1], [], []>} : vector<8x64xbf16>, vector<64x128xbf16>, vector<8x128xf32> -> vector<8x128xf32>
      %143 = arith.addf %129, %142 : vector<8x128xf32>
      %144 = arith.truncf %140 : vector<8x64xf32> to vector<8x64xbf16>
      %cst_109 = arith.constant dense<0.000000e+00> : vector<8x128xf32>
      %145 = tpu.matmul %144, %134, %cst_109 {dimension_numbers = #tpu.dot_dimension_numbers<[1], [0], [0], [1], [0, 0, 1, 1], [], []>} : vector<8x64xbf16>, vector<64x128xbf16>, vector<8x128xf32> -> vector<8x128xf32>
      %146 = arith.addf %132, %145 : vector<8x128xf32>
      %147 = vector.broadcast %0 : vector<1x128xf32> to vector<8x128xf32>
      %148 = arith.addf %143, %147 : vector<8x128xf32>
      %cst_110 = arith.constant 0.000000e+00 : f32
      %149 = vector.broadcast %cst_110 : f32 to vector<8x128xf32>
      %150 = arith.maximumf %148, %149 : vector<8x128xf32>
      %151 = vector.broadcast %0 : vector<1x128xf32> to vector<8x128xf32>
      %152 = arith.addf %146, %151 : vector<8x128xf32>
      %cst_111 = arith.constant 0.000000e+00 : f32
      %153 = vector.broadcast %cst_111 : f32 to vector<8x128xf32>
      %154 = arith.maximumf %152, %153 : vector<8x128xf32>
      %155 = arith.maximumf %150, %154 : vector<8x128xf32>
      %c0_112 = arith.constant 0 : index
      %156 = arith.index_cast %3 : i32 to index
      %c0_113 = arith.constant 0 : index
      %c0_114 = arith.constant 0 : index
      %157 = vector.load %arg4[%c0_112, %156, %c0_113, %c0_114] : memref<1x8x8x128xf32, #tpu.memory_space<vmem>>, vector<1x1x8x128xf32>
      %158 = vector.shape_cast %157 : vector<1x1x8x128xf32> to vector<8x128xf32>
      %159 = vector.shape_cast %155 : vector<8x128xf32> to vector<1x1x8x128xf32>
      tpu.vector_store %arg4[%c0_112, %156, %c0_113, %c0_114], %159 {strides = array<i32>} : memref<1x8x8x128xf32, #tpu.memory_space<vmem>>, vector<1x1x8x128xf32>,
    }
    %c8_i32_1 = arith.constant 8 : i32
    return
  }
  func.func @transform_0(%arg0: i32) -> (i32, i32, i32, i32) {
    %c0_i32 = arith.constant 0 : i32
    %c0_i32_0 = arith.constant 0 : i32
    %c0_i32_1 = arith.constant 0 : i32
    %c0_i32_2 = arith.constant 0 : i32
    return %arg0, %c0_i32, %c0_i32_0, %c0_i32_1 : i32, i32, i32, i32
  }
  func.func @transform_1(%arg0: i32) -> (i32, i32, i32) {
    %c0_i32 = arith.constant 0 : i32
    %c0_i32_0 = arith.constant 0 : i32
    %c0_i32_1 = arith.constant 0 : i32
    %c0_i32_2 = arith.constant 0 : i32
    return %c0_i32, %c0_i32_0, %c0_i32_1 : i32, i32, i32
  }
  func.func @transform_2(%arg0: i32) -> (i32, i32) {
    %c0_i32 = arith.constant 0 : i32
    %c0_i32_0 = arith.constant 0 : i32
    %c0_i32_1 = arith.constant 0 : i32
    return %c0_i32, %c0_i32_0 : i32, i32
  }
  func.func @transform_3(%arg0: i32) -> (i32, i32, i32, i32) {
    %c0_i32 = arith.constant 0 : i32
    %c0_i32_0 = arith.constant 0 : i32
    %c0_i32_1 = arith.constant 0 : i32
    %c0_i32_2 = arith.constant 0 : i32
    return %arg0, %c0_i32, %c0_i32_0, %c0_i32_1 : i32, i32, i32, i32
  }
}

module attributes {stable_mosaic.version = 11 : i64} {
  func.func @_conv_block_kernel(%arg0: i32, %arg1: memref<1x10x10x128xf32, #tpu.memory_space<vmem>>, %arg2: memref<9x128x256xbf16, #tpu.memory_space<vmem>>, %arg3: memref<1x256xf32, #tpu.memory_space<vmem>>, %arg4: memref<1x4x8x256xf32, #tpu.memory_space<vmem>>) attributes {dimension_semantics = [#tpu.dimension_semantics<parallel>], iteration_bounds = array<i64: 2>, scalar_prefetch = 0 : i64, scratch_operands = 0 : i64, tpu.core_type = #tpu.core_type<tc>, window_params = [{transform_indices = @transform_0, window_bounds = array<i64: 1, 10, 10, 128>}, {pipeline_mode = #tpu.pipeline_mode<synchronous>, transform_indices = @transform_1, window_bounds = array<i64: 9, 128, 256>}, {pipeline_mode = #tpu.pipeline_mode<synchronous>, transform_indices = @transform_2, window_bounds = array<i64: 1, 256>}, {transform_indices = @transform_3, window_bounds = array<i64: 1, 4, 8, 256>}]} {
    %c0 = arith.constant 0 : index
    %c0_0 = arith.constant 0 : index
    %0 = vector.load %arg3[%c0, %c0_0] : memref<1x256xf32, #tpu.memory_space<vmem>>, vector<1x256xf32>
    %c0_i32 = arith.constant 0 : i32
    %c4_i32 = arith.constant 4 : i32
    %1 = arith.addi %c0_i32, %c4_i32 : i32
    %c1_i32 = arith.constant 1 : i32
    scf.for %arg5 = %c0_i32 to %1 step %c1_i32  : i32 {
      %c1_i32_2 = arith.constant 1 : i32
      %2 = arith.muli %arg5, %c1_i32_2 : i32
      %c0_i32_3 = arith.constant 0 : i32
      %3 = arith.addi %c0_i32_3, %2 : i32
      %cst = arith.constant 0.000000e+00 : f32
      %4 = vector.broadcast %cst : f32 to vector<8x256xf32>
      %cst_4 = arith.constant 0.000000e+00 : f32
      %5 = vector.broadcast %cst_4 : f32 to vector<8x256xf32>
      %c2_i32 = arith.constant 2 : i32
      %6 = arith.muli %c2_i32, %3 : i32
      %c0_i32_5 = arith.constant 0 : i32
      %7 = arith.addi %6, %c0_i32_5 : i32
      %c2_i32_6 = arith.constant 2 : i32
      %8 = arith.muli %c2_i32_6, %3 : i32
      %c1_i32_7 = arith.constant 1 : i32
      %9 = arith.addi %8, %c1_i32_7 : i32
      %c0_i32_8 = arith.constant 0 : i32
      %10 = arith.addi %9, %c0_i32_8 : i32
      %c0_9 = arith.constant 0 : index
      %c0_10 = arith.constant 0 : index
      %c0_11 = arith.constant 0 : index
      %11 = vector.load %arg2[%c0_9, %c0_10, %c0_11] : memref<9x128x256xbf16, #tpu.memory_space<vmem>>, vector<1x128x256xbf16>
      %12 = vector.shape_cast %11 : vector<1x128x256xbf16> to vector<128x256xbf16>
      %c0_12 = arith.constant 0 : index
      %13 = arith.index_cast %7 : i32 to index
      %c0_13 = arith.constant 0 : index
      %c0_14 = arith.constant 0 : index
      %14 = vector.load %arg1[%c0_12, %13, %c0_13, %c0_14] : memref<1x10x10x128xf32, #tpu.memory_space<vmem>>, vector<1x1x8x128xf32>
      %15 = vector.shape_cast %14 : vector<1x1x8x128xf32> to vector<8x128xf32>
      %c0_15 = arith.constant 0 : index
      %16 = arith.index_cast %10 : i32 to index
      %c0_16 = arith.constant 0 : index
      %c0_17 = arith.constant 0 : index
      %17 = vector.load %arg1[%c0_15, %16, %c0_16, %c0_17] : memref<1x10x10x128xf32, #tpu.memory_space<vmem>>, vector<1x1x8x128xf32>
      %18 = vector.shape_cast %17 : vector<1x1x8x128xf32> to vector<8x128xf32>
      %19 = arith.truncf %15 : vector<8x128xf32> to vector<8x128xbf16>
      %cst_18 = arith.constant dense<0.000000e+00> : vector<8x256xf32>
      %20 = tpu.matmul %19, %12, %cst_18 {dimension_numbers = #tpu.dot_dimension_numbers<[1], [0], [0], [1], [0, 0, 1, 1], [], []>} : vector<8x128xbf16>, vector<128x256xbf16>, vector<8x256xf32> -> vector<8x256xf32>
      %21 = arith.addf %4, %20 : vector<8x256xf32>
      %22 = arith.truncf %18 : vector<8x128xf32> to vector<8x128xbf16>
      %cst_19 = arith.constant dense<0.000000e+00> : vector<8x256xf32>
      %23 = tpu.matmul %22, %12, %cst_19 {dimension_numbers = #tpu.dot_dimension_numbers<[1], [0], [0], [1], [0, 0, 1, 1], [], []>} : vector<8x128xbf16>, vector<128x256xbf16>, vector<8x256xf32> -> vector<8x256xf32>
      %24 = arith.addf %5, %23 : vector<8x256xf32>
      %c1 = arith.constant 1 : index
      %c0_20 = arith.constant 0 : index
      %c0_21 = arith.constant 0 : index
      %25 = vector.load %arg2[%c1, %c0_20, %c0_21] : memref<9x128x256xbf16, #tpu.memory_space<vmem>>, vector<1x128x256xbf16>
      %26 = vector.shape_cast %25 : vector<1x128x256xbf16> to vector<128x256xbf16>
      %c0_22 = arith.constant 0 : index
      %27 = arith.index_cast %7 : i32 to index
      %c1_23 = arith.constant 1 : index
      %c0_24 = arith.constant 0 : index
      %28 = vector.load %arg1[%c0_22, %27, %c1_23, %c0_24] : memref<1x10x10x128xf32, #tpu.memory_space<vmem>>, vector<1x1x8x128xf32>
      %29 = vector.shape_cast %28 : vector<1x1x8x128xf32> to vector<8x128xf32>
      %c0_25 = arith.constant 0 : index
      %30 = arith.index_cast %10 : i32 to index
      %c1_26 = arith.constant 1 : index
      %c0_27 = arith.constant 0 : index
      %31 = vector.load %arg1[%c0_25, %30, %c1_26, %c0_27] : memref<1x10x10x128xf32, #tpu.memory_space<vmem>>, vector<1x1x8x128xf32>
      %32 = vector.shape_cast %31 : vector<1x1x8x128xf32> to vector<8x128xf32>
      %33 = arith.truncf %29 : vector<8x128xf32> to vector<8x128xbf16>
      %cst_28 = arith.constant dense<0.000000e+00> : vector<8x256xf32>
      %34 = tpu.matmul %33, %26, %cst_28 {dimension_numbers = #tpu.dot_dimension_numbers<[1], [0], [0], [1], [0, 0, 1, 1], [], []>} : vector<8x128xbf16>, vector<128x256xbf16>, vector<8x256xf32> -> vector<8x256xf32>
      %35 = arith.addf %21, %34 : vector<8x256xf32>
      %36 = arith.truncf %32 : vector<8x128xf32> to vector<8x128xbf16>
      %cst_29 = arith.constant dense<0.000000e+00> : vector<8x256xf32>
      %37 = tpu.matmul %36, %26, %cst_29 {dimension_numbers = #tpu.dot_dimension_numbers<[1], [0], [0], [1], [0, 0, 1, 1], [], []>} : vector<8x128xbf16>, vector<128x256xbf16>, vector<8x256xf32> -> vector<8x256xf32>
      %38 = arith.addf %24, %37 : vector<8x256xf32>
      %c2 = arith.constant 2 : index
      %c0_30 = arith.constant 0 : index
      %c0_31 = arith.constant 0 : index
      %39 = vector.load %arg2[%c2, %c0_30, %c0_31] : memref<9x128x256xbf16, #tpu.memory_space<vmem>>, vector<1x128x256xbf16>
      %40 = vector.shape_cast %39 : vector<1x128x256xbf16> to vector<128x256xbf16>
      %c0_32 = arith.constant 0 : index
      %41 = arith.index_cast %7 : i32 to index
      %c2_33 = arith.constant 2 : index
      %c0_34 = arith.constant 0 : index
      %42 = vector.load %arg1[%c0_32, %41, %c2_33, %c0_34] : memref<1x10x10x128xf32, #tpu.memory_space<vmem>>, vector<1x1x8x128xf32>
      %43 = vector.shape_cast %42 : vector<1x1x8x128xf32> to vector<8x128xf32>
      %c0_35 = arith.constant 0 : index
      %44 = arith.index_cast %10 : i32 to index
      %c2_36 = arith.constant 2 : index
      %c0_37 = arith.constant 0 : index
      %45 = vector.load %arg1[%c0_35, %44, %c2_36, %c0_37] : memref<1x10x10x128xf32, #tpu.memory_space<vmem>>, vector<1x1x8x128xf32>
      %46 = vector.shape_cast %45 : vector<1x1x8x128xf32> to vector<8x128xf32>
      %47 = arith.truncf %43 : vector<8x128xf32> to vector<8x128xbf16>
      %cst_38 = arith.constant dense<0.000000e+00> : vector<8x256xf32>
      %48 = tpu.matmul %47, %40, %cst_38 {dimension_numbers = #tpu.dot_dimension_numbers<[1], [0], [0], [1], [0, 0, 1, 1], [], []>} : vector<8x128xbf16>, vector<128x256xbf16>, vector<8x256xf32> -> vector<8x256xf32>
      %49 = arith.addf %35, %48 : vector<8x256xf32>
      %50 = arith.truncf %46 : vector<8x128xf32> to vector<8x128xbf16>
      %cst_39 = arith.constant dense<0.000000e+00> : vector<8x256xf32>
      %51 = tpu.matmul %50, %40, %cst_39 {dimension_numbers = #tpu.dot_dimension_numbers<[1], [0], [0], [1], [0, 0, 1, 1], [], []>} : vector<8x128xbf16>, vector<128x256xbf16>, vector<8x256xf32> -> vector<8x256xf32>
      %52 = arith.addf %38, %51 : vector<8x256xf32>
      %c2_i32_40 = arith.constant 2 : i32
      %53 = arith.muli %c2_i32_40, %3 : i32
      %c1_i32_41 = arith.constant 1 : i32
      %54 = arith.addi %53, %c1_i32_41 : i32
      %c2_i32_42 = arith.constant 2 : i32
      %55 = arith.muli %c2_i32_42, %3 : i32
      %c1_i32_43 = arith.constant 1 : i32
      %56 = arith.addi %55, %c1_i32_43 : i32
      %c1_i32_44 = arith.constant 1 : i32
      %57 = arith.addi %56, %c1_i32_44 : i32
      %c3 = arith.constant 3 : index
      %c0_45 = arith.constant 0 : index
      %c0_46 = arith.constant 0 : index
      %58 = vector.load %arg2[%c3, %c0_45, %c0_46] : memref<9x128x256xbf16, #tpu.memory_space<vmem>>, vector<1x128x256xbf16>
      %59 = vector.shape_cast %58 : vector<1x128x256xbf16> to vector<128x256xbf16>
      %c0_47 = arith.constant 0 : index
      %60 = arith.index_cast %54 : i32 to index
      %c0_48 = arith.constant 0 : index
      %c0_49 = arith.constant 0 : index
      %61 = vector.load %arg1[%c0_47, %60, %c0_48, %c0_49] : memref<1x10x10x128xf32, #tpu.memory_space<vmem>>, vector<1x1x8x128xf32>
      %62 = vector.shape_cast %61 : vector<1x1x8x128xf32> to vector<8x128xf32>
      %c0_50 = arith.constant 0 : index
      %63 = arith.index_cast %57 : i32 to index
      %c0_51 = arith.constant 0 : index
      %c0_52 = arith.constant 0 : index
      %64 = vector.load %arg1[%c0_50, %63, %c0_51, %c0_52] : memref<1x10x10x128xf32, #tpu.memory_space<vmem>>, vector<1x1x8x128xf32>
      %65 = vector.shape_cast %64 : vector<1x1x8x128xf32> to vector<8x128xf32>
      %66 = arith.truncf %62 : vector<8x128xf32> to vector<8x128xbf16>
      %cst_53 = arith.constant dense<0.000000e+00> : vector<8x256xf32>
      %67 = tpu.matmul %66, %59, %cst_53 {dimension_numbers = #tpu.dot_dimension_numbers<[1], [0], [0], [1], [0, 0, 1, 1], [], []>} : vector<8x128xbf16>, vector<128x256xbf16>, vector<8x256xf32> -> vector<8x256xf32>
      %68 = arith.addf %49, %67 : vector<8x256xf32>
      %69 = arith.truncf %65 : vector<8x128xf32> to vector<8x128xbf16>
      %cst_54 = arith.constant dense<0.000000e+00> : vector<8x256xf32>
      %70 = tpu.matmul %69, %59, %cst_54 {dimension_numbers = #tpu.dot_dimension_numbers<[1], [0], [0], [1], [0, 0, 1, 1], [], []>} : vector<8x128xbf16>, vector<128x256xbf16>, vector<8x256xf32> -> vector<8x256xf32>
      %71 = arith.addf %52, %70 : vector<8x256xf32>
      %c4 = arith.constant 4 : index
      %c0_55 = arith.constant 0 : index
      %c0_56 = arith.constant 0 : index
      %72 = vector.load %arg2[%c4, %c0_55, %c0_56] : memref<9x128x256xbf16, #tpu.memory_space<vmem>>, vector<1x128x256xbf16>
      %73 = vector.shape_cast %72 : vector<1x128x256xbf16> to vector<128x256xbf16>
      %c0_57 = arith.constant 0 : index
      %74 = arith.index_cast %54 : i32 to index
      %c1_58 = arith.constant 1 : index
      %c0_59 = arith.constant 0 : index
      %75 = vector.load %arg1[%c0_57, %74, %c1_58, %c0_59] : memref<1x10x10x128xf32, #tpu.memory_space<vmem>>, vector<1x1x8x128xf32>
      %76 = vector.shape_cast %75 : vector<1x1x8x128xf32> to vector<8x128xf32>
      %c0_60 = arith.constant 0 : index
      %77 = arith.index_cast %57 : i32 to index
      %c1_61 = arith.constant 1 : index
      %c0_62 = arith.constant 0 : index
      %78 = vector.load %arg1[%c0_60, %77, %c1_61, %c0_62] : memref<1x10x10x128xf32, #tpu.memory_space<vmem>>, vector<1x1x8x128xf32>
      %79 = vector.shape_cast %78 : vector<1x1x8x128xf32> to vector<8x128xf32>
      %80 = arith.truncf %76 : vector<8x128xf32> to vector<8x128xbf16>
      %cst_63 = arith.constant dense<0.000000e+00> : vector<8x256xf32>
      %81 = tpu.matmul %80, %73, %cst_63 {dimension_numbers = #tpu.dot_dimension_numbers<[1], [0], [0], [1], [0, 0, 1, 1], [], []>} : vector<8x128xbf16>, vector<128x256xbf16>, vector<8x256xf32> -> vector<8x256xf32>
      %82 = arith.addf %68, %81 : vector<8x256xf32>
      %83 = arith.truncf %79 : vector<8x128xf32> to vector<8x128xbf16>
      %cst_64 = arith.constant dense<0.000000e+00> : vector<8x256xf32>
      %84 = tpu.matmul %83, %73, %cst_64 {dimension_numbers = #tpu.dot_dimension_numbers<[1], [0], [0], [1], [0, 0, 1, 1], [], []>} : vector<8x128xbf16>, vector<128x256xbf16>, vector<8x256xf32> -> vector<8x256xf32>
      %85 = arith.addf %71, %84 : vector<8x256xf32>
      %c5 = arith.constant 5 : index
      %c0_65 = arith.constant 0 : index
      %c0_66 = arith.constant 0 : index
      %86 = vector.load %arg2[%c5, %c0_65, %c0_66] : memref<9x128x256xbf16, #tpu.memory_space<vmem>>, vector<1x128x256xbf16>
      %87 = vector.shape_cast %86 : vector<1x128x256xbf16> to vector<128x256xbf16>
      %c0_67 = arith.constant 0 : index
      %88 = arith.index_cast %54 : i32 to index
      %c2_68 = arith.constant 2 : index
      %c0_69 = arith.constant 0 : index
      %89 = vector.load %arg1[%c0_67, %88, %c2_68, %c0_69] : memref<1x10x10x128xf32, #tpu.memory_space<vmem>>, vector<1x1x8x128xf32>
      %90 = vector.shape_cast %89 : vector<1x1x8x128xf32> to vector<8x128xf32>
      %c0_70 = arith.constant 0 : index
      %91 = arith.index_cast %57 : i32 to index
      %c2_71 = arith.constant 2 : index
      %c0_72 = arith.constant 0 : index
      %92 = vector.load %arg1[%c0_70, %91, %c2_71, %c0_72] : memref<1x10x10x128xf32, #tpu.memory_space<vmem>>, vector<1x1x8x128xf32>
      %93 = vector.shape_cast %92 : vector<1x1x8x128xf32> to vector<8x128xf32>
      %94 = arith.truncf %90 : vector<8x128xf32> to vector<8x128xbf16>
      %cst_73 = arith.constant dense<0.000000e+00> : vector<8x256xf32>
      %95 = tpu.matmul %94, %87, %cst_73 {dimension_numbers = #tpu.dot_dimension_numbers<[1], [0], [0], [1], [0, 0, 1, 1], [], []>} : vector<8x128xbf16>, vector<128x256xbf16>, vector<8x256xf32> -> vector<8x256xf32>
      %96 = arith.addf %82, %95 : vector<8x256xf32>
      %97 = arith.truncf %93 : vector<8x128xf32> to vector<8x128xbf16>
      %cst_74 = arith.constant dense<0.000000e+00> : vector<8x256xf32>
      %98 = tpu.matmul %97, %87, %cst_74 {dimension_numbers = #tpu.dot_dimension_numbers<[1], [0], [0], [1], [0, 0, 1, 1], [], []>} : vector<8x128xbf16>, vector<128x256xbf16>, vector<8x256xf32> -> vector<8x256xf32>
      %99 = arith.addf %85, %98 : vector<8x256xf32>
      %c2_i32_75 = arith.constant 2 : i32
      %100 = arith.muli %c2_i32_75, %3 : i32
      %c2_i32_76 = arith.constant 2 : i32
      %101 = arith.addi %100, %c2_i32_76 : i32
      %c2_i32_77 = arith.constant 2 : i32
      %102 = arith.muli %c2_i32_77, %3 : i32
      %c1_i32_78 = arith.constant 1 : i32
      %103 = arith.addi %102, %c1_i32_78 : i32
      %c2_i32_79 = arith.constant 2 : i32
      %104 = arith.addi %103, %c2_i32_79 : i32
      %c6 = arith.constant 6 : index
      %c0_80 = arith.constant 0 : index
      %c0_81 = arith.constant 0 : index
      %105 = vector.load %arg2[%c6, %c0_80, %c0_81] : memref<9x128x256xbf16, #tpu.memory_space<vmem>>, vector<1x128x256xbf16>
      %106 = vector.shape_cast %105 : vector<1x128x256xbf16> to vector<128x256xbf16>
      %c0_82 = arith.constant 0 : index
      %107 = arith.index_cast %101 : i32 to index
      %c0_83 = arith.constant 0 : index
      %c0_84 = arith.constant 0 : index
      %108 = vector.load %arg1[%c0_82, %107, %c0_83, %c0_84] : memref<1x10x10x128xf32, #tpu.memory_space<vmem>>, vector<1x1x8x128xf32>
      %109 = vector.shape_cast %108 : vector<1x1x8x128xf32> to vector<8x128xf32>
      %c0_85 = arith.constant 0 : index
      %110 = arith.index_cast %104 : i32 to index
      %c0_86 = arith.constant 0 : index
      %c0_87 = arith.constant 0 : index
      %111 = vector.load %arg1[%c0_85, %110, %c0_86, %c0_87] : memref<1x10x10x128xf32, #tpu.memory_space<vmem>>, vector<1x1x8x128xf32>
      %112 = vector.shape_cast %111 : vector<1x1x8x128xf32> to vector<8x128xf32>
      %113 = arith.truncf %109 : vector<8x128xf32> to vector<8x128xbf16>
      %cst_88 = arith.constant dense<0.000000e+00> : vector<8x256xf32>
      %114 = tpu.matmul %113, %106, %cst_88 {dimension_numbers = #tpu.dot_dimension_numbers<[1], [0], [0], [1], [0, 0, 1, 1], [], []>} : vector<8x128xbf16>, vector<128x256xbf16>, vector<8x256xf32> -> vector<8x256xf32>
      %115 = arith.addf %96, %114 : vector<8x256xf32>
      %116 = arith.truncf %112 : vector<8x128xf32> to vector<8x128xbf16>
      %cst_89 = arith.constant dense<0.000000e+00> : vector<8x256xf32>
      %117 = tpu.matmul %116, %106, %cst_89 {dimension_numbers = #tpu.dot_dimension_numbers<[1], [0], [0], [1], [0, 0, 1, 1], [], []>} : vector<8x128xbf16>, vector<128x256xbf16>, vector<8x256xf32> -> vector<8x256xf32>
      %118 = arith.addf %99, %117 : vector<8x256xf32>
      %c7 = arith.constant 7 : index
      %c0_90 = arith.constant 0 : index
      %c0_91 = arith.constant 0 : index
      %119 = vector.load %arg2[%c7, %c0_90, %c0_91] : memref<9x128x256xbf16, #tpu.memory_space<vmem>>, vector<1x128x256xbf16>
      %120 = vector.shape_cast %119 : vector<1x128x256xbf16> to vector<128x256xbf16>
      %c0_92 = arith.constant 0 : index
      %121 = arith.index_cast %101 : i32 to index
      %c1_93 = arith.constant 1 : index
      %c0_94 = arith.constant 0 : index
      %122 = vector.load %arg1[%c0_92, %121, %c1_93, %c0_94] : memref<1x10x10x128xf32, #tpu.memory_space<vmem>>, vector<1x1x8x128xf32>
      %123 = vector.shape_cast %122 : vector<1x1x8x128xf32> to vector<8x128xf32>
      %c0_95 = arith.constant 0 : index
      %124 = arith.index_cast %104 : i32 to index
      %c1_96 = arith.constant 1 : index
      %c0_97 = arith.constant 0 : index
      %125 = vector.load %arg1[%c0_95, %124, %c1_96, %c0_97] : memref<1x10x10x128xf32, #tpu.memory_space<vmem>>, vector<1x1x8x128xf32>
      %126 = vector.shape_cast %125 : vector<1x1x8x128xf32> to vector<8x128xf32>
      %127 = arith.truncf %123 : vector<8x128xf32> to vector<8x128xbf16>
      %cst_98 = arith.constant dense<0.000000e+00> : vector<8x256xf32>
      %128 = tpu.matmul %127, %120, %cst_98 {dimension_numbers = #tpu.dot_dimension_numbers<[1], [0], [0], [1], [0, 0, 1, 1], [], []>} : vector<8x128xbf16>, vector<128x256xbf16>, vector<8x256xf32> -> vector<8x256xf32>
      %129 = arith.addf %115, %128 : vector<8x256xf32>
      %130 = arith.truncf %126 : vector<8x128xf32> to vector<8x128xbf16>
      %cst_99 = arith.constant dense<0.000000e+00> : vector<8x256xf32>
      %131 = tpu.matmul %130, %120, %cst_99 {dimension_numbers = #tpu.dot_dimension_numbers<[1], [0], [0], [1], [0, 0, 1, 1], [], []>} : vector<8x128xbf16>, vector<128x256xbf16>, vector<8x256xf32> -> vector<8x256xf32>
      %132 = arith.addf %118, %131 : vector<8x256xf32>
      %c8 = arith.constant 8 : index
      %c0_100 = arith.constant 0 : index
      %c0_101 = arith.constant 0 : index
      %133 = vector.load %arg2[%c8, %c0_100, %c0_101] : memref<9x128x256xbf16, #tpu.memory_space<vmem>>, vector<1x128x256xbf16>
      %134 = vector.shape_cast %133 : vector<1x128x256xbf16> to vector<128x256xbf16>
      %c0_102 = arith.constant 0 : index
      %135 = arith.index_cast %101 : i32 to index
      %c2_103 = arith.constant 2 : index
      %c0_104 = arith.constant 0 : index
      %136 = vector.load %arg1[%c0_102, %135, %c2_103, %c0_104] : memref<1x10x10x128xf32, #tpu.memory_space<vmem>>, vector<1x1x8x128xf32>
      %137 = vector.shape_cast %136 : vector<1x1x8x128xf32> to vector<8x128xf32>
      %c0_105 = arith.constant 0 : index
      %138 = arith.index_cast %104 : i32 to index
      %c2_106 = arith.constant 2 : index
      %c0_107 = arith.constant 0 : index
      %139 = vector.load %arg1[%c0_105, %138, %c2_106, %c0_107] : memref<1x10x10x128xf32, #tpu.memory_space<vmem>>, vector<1x1x8x128xf32>
      %140 = vector.shape_cast %139 : vector<1x1x8x128xf32> to vector<8x128xf32>
      %141 = arith.truncf %137 : vector<8x128xf32> to vector<8x128xbf16>
      %cst_108 = arith.constant dense<0.000000e+00> : vector<8x256xf32>
      %142 = tpu.matmul %141, %134, %cst_108 {dimension_numbers = #tpu.dot_dimension_numbers<[1], [0], [0], [1], [0, 0, 1, 1], [], []>} : vector<8x128xbf16>, vector<128x256xbf16>, vector<8x256xf32> -> vector<8x256xf32>
      %143 = arith.addf %129, %142 : vector<8x256xf32>
      %144 = arith.truncf %140 : vector<8x128xf32> to vector<8x128xbf16>
      %cst_109 = arith.constant dense<0.000000e+00> : vector<8x256xf32>
      %145 = tpu.matmul %144, %134, %cst_109 {dimension_numbers = #tpu.dot_dimension_numbers<[1], [0], [0], [1], [0, 0, 1, 1], [], []>} : vector<8x128xbf16>, vector<128x256xbf16>, vector<8x256xf32> -> vector<8x256xf32>
      %146 = arith.addf %132, %145 : vector<8x256xf32>
      %147 = vector.broadcast %0 : vector<1x256xf32> to vector<8x256xf32>
      %148 = arith.addf %143, %147 : vector<8x256xf32>
      %cst_110 = arith.constant 0.000000e+00 : f32
      %149 = vector.broadcast %cst_110 : f32 to vector<8x256xf32>
      %150 = arith.maximumf %148, %149 : vector<8x256xf32>
      %151 = vector.broadcast %0 : vector<1x256xf32> to vector<8x256xf32>
      %152 = arith.addf %146, %151 : vector<8x256xf32>
      %cst_111 = arith.constant 0.000000e+00 : f32
      %153 = vector.broadcast %cst_111 : f32 to vector<8x256xf32>
      %154 = arith.maximumf %152, %153 : vector<8x256xf32>
      %155 = arith.maximumf %150, %154 : vector<8x256xf32>
      %c0_112 = arith.constant 0 : index
      %156 = arith.index_cast %3 : i32 to index
      %c0_113 = arith.constant 0 : index
      %c0_114 = arith.constant 0 : index
      %157 = vector.load %arg4[%c0_112, %156, %c0_113, %c0_114] : memref<1x4x8x256xf32, #tpu.memory_space<vmem>>, vector<1x1x8x256xf32>
      %158 = vector.shape_cast %157 : vector<1x1x8x256xf32> to vector<8x256xf32>
      %159 = vector.shape_cast %155 : vector<8x256xf32> to vector<1x1x8x256xf32>
      tpu.vector_store %arg4[%c0_112, %156, %c0_113, %c0_114], %159 {strides = array<i32>} : memref<1x4x8x256xf32, #tpu.memory_space<vmem>>, vector<1x1x8x256xf32>,
    }
    %c4_i32_1 = arith.constant 4 : i32
    return
  }
  func.func @transform_0(%arg0: i32) -> (i32, i32, i32, i32) {
    %c0_i32 = arith.constant 0 : i32
    %c0_i32_0 = arith.constant 0 : i32
    %c0_i32_1 = arith.constant 0 : i32
    %c0_i32_2 = arith.constant 0 : i32
    return %arg0, %c0_i32, %c0_i32_0, %c0_i32_1 : i32, i32, i32, i32
  }
  func.func @transform_1(%arg0: i32) -> (i32, i32, i32) {
    %c0_i32 = arith.constant 0 : i32
    %c0_i32_0 = arith.constant 0 : i32
    %c0_i32_1 = arith.constant 0 : i32
    %c0_i32_2 = arith.constant 0 : i32
    return %c0_i32, %c0_i32_0, %c0_i32_1 : i32, i32, i32
  }
  func.func @transform_2(%arg0: i32) -> (i32, i32) {
    %c0_i32 = arith.constant 0 : i32
    %c0_i32_0 = arith.constant 0 : i32
    %c0_i32_1 = arith.constant 0 : i32
    return %c0_i32, %c0_i32_0 : i32, i32
  }
  func.func @transform_3(%arg0: i32) -> (i32, i32, i32, i32) {
    %c0_i32 = arith.constant 0 : i32
    %c0_i32_0 = arith.constant 0 : i32
    %c0_i32_1 = arith.constant 0 : i32
    %c0_i32_2 = arith.constant 0 : i32
    return %arg0, %c0_i32, %c0_i32_0, %c0_i32_1 : i32, i32, i32, i32
  }
}

module attributes {stable_mosaic.version = 11 : i64} {
  func.func @_conv_block_kernel(%arg0: i32, %arg1: memref<1x6x10x256xf32, #tpu.memory_space<vmem>>, %arg2: memref<9x256x512xbf16, #tpu.memory_space<vmem>>, %arg3: memref<1x512xf32, #tpu.memory_space<vmem>>, %arg4: memref<1x2x8x512xf32, #tpu.memory_space<vmem>>) attributes {dimension_semantics = [#tpu.dimension_semantics<parallel>], iteration_bounds = array<i64: 2>, scalar_prefetch = 0 : i64, scratch_operands = 0 : i64, tpu.core_type = #tpu.core_type<tc>, window_params = [{transform_indices = @transform_0, window_bounds = array<i64: 1, 6, 10, 256>}, {pipeline_mode = #tpu.pipeline_mode<synchronous>, transform_indices = @transform_1, window_bounds = array<i64: 9, 256, 512>}, {pipeline_mode = #tpu.pipeline_mode<synchronous>, transform_indices = @transform_2, window_bounds = array<i64: 1, 512>}, {transform_indices = @transform_3, window_bounds = array<i64: 1, 2, 8, 512>}]} {
    %c0 = arith.constant 0 : index
    %c0_0 = arith.constant 0 : index
    %0 = vector.load %arg3[%c0, %c0_0] : memref<1x512xf32, #tpu.memory_space<vmem>>, vector<1x512xf32>
    %c0_i32 = arith.constant 0 : i32
    %c2_i32 = arith.constant 2 : i32
    %1 = arith.addi %c0_i32, %c2_i32 : i32
    %c1_i32 = arith.constant 1 : i32
    scf.for %arg5 = %c0_i32 to %1 step %c1_i32  : i32 {
      %c1_i32_2 = arith.constant 1 : i32
      %2 = arith.muli %arg5, %c1_i32_2 : i32
      %c0_i32_3 = arith.constant 0 : i32
      %3 = arith.addi %c0_i32_3, %2 : i32
      %cst = arith.constant 0.000000e+00 : f32
      %4 = vector.broadcast %cst : f32 to vector<8x512xf32>
      %cst_4 = arith.constant 0.000000e+00 : f32
      %5 = vector.broadcast %cst_4 : f32 to vector<8x512xf32>
      %c2_i32_5 = arith.constant 2 : i32
      %6 = arith.muli %c2_i32_5, %3 : i32
      %c0_i32_6 = arith.constant 0 : i32
      %7 = arith.addi %6, %c0_i32_6 : i32
      %c2_i32_7 = arith.constant 2 : i32
      %8 = arith.muli %c2_i32_7, %3 : i32
      %c1_i32_8 = arith.constant 1 : i32
      %9 = arith.addi %8, %c1_i32_8 : i32
      %c0_i32_9 = arith.constant 0 : i32
      %10 = arith.addi %9, %c0_i32_9 : i32
      %c0_10 = arith.constant 0 : index
      %c0_11 = arith.constant 0 : index
      %c0_12 = arith.constant 0 : index
      %11 = vector.load %arg2[%c0_10, %c0_11, %c0_12] : memref<9x256x512xbf16, #tpu.memory_space<vmem>>, vector<1x256x512xbf16>
      %12 = vector.shape_cast %11 : vector<1x256x512xbf16> to vector<256x512xbf16>
      %c0_13 = arith.constant 0 : index
      %13 = arith.index_cast %7 : i32 to index
      %c0_14 = arith.constant 0 : index
      %c0_15 = arith.constant 0 : index
      %14 = vector.load %arg1[%c0_13, %13, %c0_14, %c0_15] : memref<1x6x10x256xf32, #tpu.memory_space<vmem>>, vector<1x1x8x256xf32>
      %15 = vector.shape_cast %14 : vector<1x1x8x256xf32> to vector<8x256xf32>
      %c0_16 = arith.constant 0 : index
      %16 = arith.index_cast %10 : i32 to index
      %c0_17 = arith.constant 0 : index
      %c0_18 = arith.constant 0 : index
      %17 = vector.load %arg1[%c0_16, %16, %c0_17, %c0_18] : memref<1x6x10x256xf32, #tpu.memory_space<vmem>>, vector<1x1x8x256xf32>
      %18 = vector.shape_cast %17 : vector<1x1x8x256xf32> to vector<8x256xf32>
      %19 = arith.truncf %15 : vector<8x256xf32> to vector<8x256xbf16>
      %cst_19 = arith.constant dense<0.000000e+00> : vector<8x512xf32>
      %20 = tpu.matmul %19, %12, %cst_19 {dimension_numbers = #tpu.dot_dimension_numbers<[1], [0], [0], [1], [0, 0, 1, 1], [], []>} : vector<8x256xbf16>, vector<256x512xbf16>, vector<8x512xf32> -> vector<8x512xf32>
      %21 = arith.addf %4, %20 : vector<8x512xf32>
      %22 = arith.truncf %18 : vector<8x256xf32> to vector<8x256xbf16>
      %cst_20 = arith.constant dense<0.000000e+00> : vector<8x512xf32>
      %23 = tpu.matmul %22, %12, %cst_20 {dimension_numbers = #tpu.dot_dimension_numbers<[1], [0], [0], [1], [0, 0, 1, 1], [], []>} : vector<8x256xbf16>, vector<256x512xbf16>, vector<8x512xf32> -> vector<8x512xf32>
      %24 = arith.addf %5, %23 : vector<8x512xf32>
      %c1 = arith.constant 1 : index
      %c0_21 = arith.constant 0 : index
      %c0_22 = arith.constant 0 : index
      %25 = vector.load %arg2[%c1, %c0_21, %c0_22] : memref<9x256x512xbf16, #tpu.memory_space<vmem>>, vector<1x256x512xbf16>
      %26 = vector.shape_cast %25 : vector<1x256x512xbf16> to vector<256x512xbf16>
      %c0_23 = arith.constant 0 : index
      %27 = arith.index_cast %7 : i32 to index
      %c1_24 = arith.constant 1 : index
      %c0_25 = arith.constant 0 : index
      %28 = vector.load %arg1[%c0_23, %27, %c1_24, %c0_25] : memref<1x6x10x256xf32, #tpu.memory_space<vmem>>, vector<1x1x8x256xf32>
      %29 = vector.shape_cast %28 : vector<1x1x8x256xf32> to vector<8x256xf32>
      %c0_26 = arith.constant 0 : index
      %30 = arith.index_cast %10 : i32 to index
      %c1_27 = arith.constant 1 : index
      %c0_28 = arith.constant 0 : index
      %31 = vector.load %arg1[%c0_26, %30, %c1_27, %c0_28] : memref<1x6x10x256xf32, #tpu.memory_space<vmem>>, vector<1x1x8x256xf32>
      %32 = vector.shape_cast %31 : vector<1x1x8x256xf32> to vector<8x256xf32>
      %33 = arith.truncf %29 : vector<8x256xf32> to vector<8x256xbf16>
      %cst_29 = arith.constant dense<0.000000e+00> : vector<8x512xf32>
      %34 = tpu.matmul %33, %26, %cst_29 {dimension_numbers = #tpu.dot_dimension_numbers<[1], [0], [0], [1], [0, 0, 1, 1], [], []>} : vector<8x256xbf16>, vector<256x512xbf16>, vector<8x512xf32> -> vector<8x512xf32>
      %35 = arith.addf %21, %34 : vector<8x512xf32>
      %36 = arith.truncf %32 : vector<8x256xf32> to vector<8x256xbf16>
      %cst_30 = arith.constant dense<0.000000e+00> : vector<8x512xf32>
      %37 = tpu.matmul %36, %26, %cst_30 {dimension_numbers = #tpu.dot_dimension_numbers<[1], [0], [0], [1], [0, 0, 1, 1], [], []>} : vector<8x256xbf16>, vector<256x512xbf16>, vector<8x512xf32> -> vector<8x512xf32>
      %38 = arith.addf %24, %37 : vector<8x512xf32>
      %c2 = arith.constant 2 : index
      %c0_31 = arith.constant 0 : index
      %c0_32 = arith.constant 0 : index
      %39 = vector.load %arg2[%c2, %c0_31, %c0_32] : memref<9x256x512xbf16, #tpu.memory_space<vmem>>, vector<1x256x512xbf16>
      %40 = vector.shape_cast %39 : vector<1x256x512xbf16> to vector<256x512xbf16>
      %c0_33 = arith.constant 0 : index
      %41 = arith.index_cast %7 : i32 to index
      %c2_34 = arith.constant 2 : index
      %c0_35 = arith.constant 0 : index
      %42 = vector.load %arg1[%c0_33, %41, %c2_34, %c0_35] : memref<1x6x10x256xf32, #tpu.memory_space<vmem>>, vector<1x1x8x256xf32>
      %43 = vector.shape_cast %42 : vector<1x1x8x256xf32> to vector<8x256xf32>
      %c0_36 = arith.constant 0 : index
      %44 = arith.index_cast %10 : i32 to index
      %c2_37 = arith.constant 2 : index
      %c0_38 = arith.constant 0 : index
      %45 = vector.load %arg1[%c0_36, %44, %c2_37, %c0_38] : memref<1x6x10x256xf32, #tpu.memory_space<vmem>>, vector<1x1x8x256xf32>
      %46 = vector.shape_cast %45 : vector<1x1x8x256xf32> to vector<8x256xf32>
      %47 = arith.truncf %43 : vector<8x256xf32> to vector<8x256xbf16>
      %cst_39 = arith.constant dense<0.000000e+00> : vector<8x512xf32>
      %48 = tpu.matmul %47, %40, %cst_39 {dimension_numbers = #tpu.dot_dimension_numbers<[1], [0], [0], [1], [0, 0, 1, 1], [], []>} : vector<8x256xbf16>, vector<256x512xbf16>, vector<8x512xf32> -> vector<8x512xf32>
      %49 = arith.addf %35, %48 : vector<8x512xf32>
      %50 = arith.truncf %46 : vector<8x256xf32> to vector<8x256xbf16>
      %cst_40 = arith.constant dense<0.000000e+00> : vector<8x512xf32>
      %51 = tpu.matmul %50, %40, %cst_40 {dimension_numbers = #tpu.dot_dimension_numbers<[1], [0], [0], [1], [0, 0, 1, 1], [], []>} : vector<8x256xbf16>, vector<256x512xbf16>, vector<8x512xf32> -> vector<8x512xf32>
      %52 = arith.addf %38, %51 : vector<8x512xf32>
      %c2_i32_41 = arith.constant 2 : i32
      %53 = arith.muli %c2_i32_41, %3 : i32
      %c1_i32_42 = arith.constant 1 : i32
      %54 = arith.addi %53, %c1_i32_42 : i32
      %c2_i32_43 = arith.constant 2 : i32
      %55 = arith.muli %c2_i32_43, %3 : i32
      %c1_i32_44 = arith.constant 1 : i32
      %56 = arith.addi %55, %c1_i32_44 : i32
      %c1_i32_45 = arith.constant 1 : i32
      %57 = arith.addi %56, %c1_i32_45 : i32
      %c3 = arith.constant 3 : index
      %c0_46 = arith.constant 0 : index
      %c0_47 = arith.constant 0 : index
      %58 = vector.load %arg2[%c3, %c0_46, %c0_47] : memref<9x256x512xbf16, #tpu.memory_space<vmem>>, vector<1x256x512xbf16>
      %59 = vector.shape_cast %58 : vector<1x256x512xbf16> to vector<256x512xbf16>
      %c0_48 = arith.constant 0 : index
      %60 = arith.index_cast %54 : i32 to index
      %c0_49 = arith.constant 0 : index
      %c0_50 = arith.constant 0 : index
      %61 = vector.load %arg1[%c0_48, %60, %c0_49, %c0_50] : memref<1x6x10x256xf32, #tpu.memory_space<vmem>>, vector<1x1x8x256xf32>
      %62 = vector.shape_cast %61 : vector<1x1x8x256xf32> to vector<8x256xf32>
      %c0_51 = arith.constant 0 : index
      %63 = arith.index_cast %57 : i32 to index
      %c0_52 = arith.constant 0 : index
      %c0_53 = arith.constant 0 : index
      %64 = vector.load %arg1[%c0_51, %63, %c0_52, %c0_53] : memref<1x6x10x256xf32, #tpu.memory_space<vmem>>, vector<1x1x8x256xf32>
      %65 = vector.shape_cast %64 : vector<1x1x8x256xf32> to vector<8x256xf32>
      %66 = arith.truncf %62 : vector<8x256xf32> to vector<8x256xbf16>
      %cst_54 = arith.constant dense<0.000000e+00> : vector<8x512xf32>
      %67 = tpu.matmul %66, %59, %cst_54 {dimension_numbers = #tpu.dot_dimension_numbers<[1], [0], [0], [1], [0, 0, 1, 1], [], []>} : vector<8x256xbf16>, vector<256x512xbf16>, vector<8x512xf32> -> vector<8x512xf32>
      %68 = arith.addf %49, %67 : vector<8x512xf32>
      %69 = arith.truncf %65 : vector<8x256xf32> to vector<8x256xbf16>
      %cst_55 = arith.constant dense<0.000000e+00> : vector<8x512xf32>
      %70 = tpu.matmul %69, %59, %cst_55 {dimension_numbers = #tpu.dot_dimension_numbers<[1], [0], [0], [1], [0, 0, 1, 1], [], []>} : vector<8x256xbf16>, vector<256x512xbf16>, vector<8x512xf32> -> vector<8x512xf32>
      %71 = arith.addf %52, %70 : vector<8x512xf32>
      %c4 = arith.constant 4 : index
      %c0_56 = arith.constant 0 : index
      %c0_57 = arith.constant 0 : index
      %72 = vector.load %arg2[%c4, %c0_56, %c0_57] : memref<9x256x512xbf16, #tpu.memory_space<vmem>>, vector<1x256x512xbf16>
      %73 = vector.shape_cast %72 : vector<1x256x512xbf16> to vector<256x512xbf16>
      %c0_58 = arith.constant 0 : index
      %74 = arith.index_cast %54 : i32 to index
      %c1_59 = arith.constant 1 : index
      %c0_60 = arith.constant 0 : index
      %75 = vector.load %arg1[%c0_58, %74, %c1_59, %c0_60] : memref<1x6x10x256xf32, #tpu.memory_space<vmem>>, vector<1x1x8x256xf32>
      %76 = vector.shape_cast %75 : vector<1x1x8x256xf32> to vector<8x256xf32>
      %c0_61 = arith.constant 0 : index
      %77 = arith.index_cast %57 : i32 to index
      %c1_62 = arith.constant 1 : index
      %c0_63 = arith.constant 0 : index
      %78 = vector.load %arg1[%c0_61, %77, %c1_62, %c0_63] : memref<1x6x10x256xf32, #tpu.memory_space<vmem>>, vector<1x1x8x256xf32>
      %79 = vector.shape_cast %78 : vector<1x1x8x256xf32> to vector<8x256xf32>
      %80 = arith.truncf %76 : vector<8x256xf32> to vector<8x256xbf16>
      %cst_64 = arith.constant dense<0.000000e+00> : vector<8x512xf32>
      %81 = tpu.matmul %80, %73, %cst_64 {dimension_numbers = #tpu.dot_dimension_numbers<[1], [0], [0], [1], [0, 0, 1, 1], [], []>} : vector<8x256xbf16>, vector<256x512xbf16>, vector<8x512xf32> -> vector<8x512xf32>
      %82 = arith.addf %68, %81 : vector<8x512xf32>
      %83 = arith.truncf %79 : vector<8x256xf32> to vector<8x256xbf16>
      %cst_65 = arith.constant dense<0.000000e+00> : vector<8x512xf32>
      %84 = tpu.matmul %83, %73, %cst_65 {dimension_numbers = #tpu.dot_dimension_numbers<[1], [0], [0], [1], [0, 0, 1, 1], [], []>} : vector<8x256xbf16>, vector<256x512xbf16>, vector<8x512xf32> -> vector<8x512xf32>
      %85 = arith.addf %71, %84 : vector<8x512xf32>
      %c5 = arith.constant 5 : index
      %c0_66 = arith.constant 0 : index
      %c0_67 = arith.constant 0 : index
      %86 = vector.load %arg2[%c5, %c0_66, %c0_67] : memref<9x256x512xbf16, #tpu.memory_space<vmem>>, vector<1x256x512xbf16>
      %87 = vector.shape_cast %86 : vector<1x256x512xbf16> to vector<256x512xbf16>
      %c0_68 = arith.constant 0 : index
      %88 = arith.index_cast %54 : i32 to index
      %c2_69 = arith.constant 2 : index
      %c0_70 = arith.constant 0 : index
      %89 = vector.load %arg1[%c0_68, %88, %c2_69, %c0_70] : memref<1x6x10x256xf32, #tpu.memory_space<vmem>>, vector<1x1x8x256xf32>
      %90 = vector.shape_cast %89 : vector<1x1x8x256xf32> to vector<8x256xf32>
      %c0_71 = arith.constant 0 : index
      %91 = arith.index_cast %57 : i32 to index
      %c2_72 = arith.constant 2 : index
      %c0_73 = arith.constant 0 : index
      %92 = vector.load %arg1[%c0_71, %91, %c2_72, %c0_73] : memref<1x6x10x256xf32, #tpu.memory_space<vmem>>, vector<1x1x8x256xf32>
      %93 = vector.shape_cast %92 : vector<1x1x8x256xf32> to vector<8x256xf32>
      %94 = arith.truncf %90 : vector<8x256xf32> to vector<8x256xbf16>
      %cst_74 = arith.constant dense<0.000000e+00> : vector<8x512xf32>
      %95 = tpu.matmul %94, %87, %cst_74 {dimension_numbers = #tpu.dot_dimension_numbers<[1], [0], [0], [1], [0, 0, 1, 1], [], []>} : vector<8x256xbf16>, vector<256x512xbf16>, vector<8x512xf32> -> vector<8x512xf32>
      %96 = arith.addf %82, %95 : vector<8x512xf32>
      %97 = arith.truncf %93 : vector<8x256xf32> to vector<8x256xbf16>
      %cst_75 = arith.constant dense<0.000000e+00> : vector<8x512xf32>
      %98 = tpu.matmul %97, %87, %cst_75 {dimension_numbers = #tpu.dot_dimension_numbers<[1], [0], [0], [1], [0, 0, 1, 1], [], []>} : vector<8x256xbf16>, vector<256x512xbf16>, vector<8x512xf32> -> vector<8x512xf32>
      %99 = arith.addf %85, %98 : vector<8x512xf32>
      %c2_i32_76 = arith.constant 2 : i32
      %100 = arith.muli %c2_i32_76, %3 : i32
      %c2_i32_77 = arith.constant 2 : i32
      %101 = arith.addi %100, %c2_i32_77 : i32
      %c2_i32_78 = arith.constant 2 : i32
      %102 = arith.muli %c2_i32_78, %3 : i32
      %c1_i32_79 = arith.constant 1 : i32
      %103 = arith.addi %102, %c1_i32_79 : i32
      %c2_i32_80 = arith.constant 2 : i32
      %104 = arith.addi %103, %c2_i32_80 : i32
      %c6 = arith.constant 6 : index
      %c0_81 = arith.constant 0 : index
      %c0_82 = arith.constant 0 : index
      %105 = vector.load %arg2[%c6, %c0_81, %c0_82] : memref<9x256x512xbf16, #tpu.memory_space<vmem>>, vector<1x256x512xbf16>
      %106 = vector.shape_cast %105 : vector<1x256x512xbf16> to vector<256x512xbf16>
      %c0_83 = arith.constant 0 : index
      %107 = arith.index_cast %101 : i32 to index
      %c0_84 = arith.constant 0 : index
      %c0_85 = arith.constant 0 : index
      %108 = vector.load %arg1[%c0_83, %107, %c0_84, %c0_85] : memref<1x6x10x256xf32, #tpu.memory_space<vmem>>, vector<1x1x8x256xf32>
      %109 = vector.shape_cast %108 : vector<1x1x8x256xf32> to vector<8x256xf32>
      %c0_86 = arith.constant 0 : index
      %110 = arith.index_cast %104 : i32 to index
      %c0_87 = arith.constant 0 : index
      %c0_88 = arith.constant 0 : index
      %111 = vector.load %arg1[%c0_86, %110, %c0_87, %c0_88] : memref<1x6x10x256xf32, #tpu.memory_space<vmem>>, vector<1x1x8x256xf32>
      %112 = vector.shape_cast %111 : vector<1x1x8x256xf32> to vector<8x256xf32>
      %113 = arith.truncf %109 : vector<8x256xf32> to vector<8x256xbf16>
      %cst_89 = arith.constant dense<0.000000e+00> : vector<8x512xf32>
      %114 = tpu.matmul %113, %106, %cst_89 {dimension_numbers = #tpu.dot_dimension_numbers<[1], [0], [0], [1], [0, 0, 1, 1], [], []>} : vector<8x256xbf16>, vector<256x512xbf16>, vector<8x512xf32> -> vector<8x512xf32>
      %115 = arith.addf %96, %114 : vector<8x512xf32>
      %116 = arith.truncf %112 : vector<8x256xf32> to vector<8x256xbf16>
      %cst_90 = arith.constant dense<0.000000e+00> : vector<8x512xf32>
      %117 = tpu.matmul %116, %106, %cst_90 {dimension_numbers = #tpu.dot_dimension_numbers<[1], [0], [0], [1], [0, 0, 1, 1], [], []>} : vector<8x256xbf16>, vector<256x512xbf16>, vector<8x512xf32> -> vector<8x512xf32>
      %118 = arith.addf %99, %117 : vector<8x512xf32>
      %c7 = arith.constant 7 : index
      %c0_91 = arith.constant 0 : index
      %c0_92 = arith.constant 0 : index
      %119 = vector.load %arg2[%c7, %c0_91, %c0_92] : memref<9x256x512xbf16, #tpu.memory_space<vmem>>, vector<1x256x512xbf16>
      %120 = vector.shape_cast %119 : vector<1x256x512xbf16> to vector<256x512xbf16>
      %c0_93 = arith.constant 0 : index
      %121 = arith.index_cast %101 : i32 to index
      %c1_94 = arith.constant 1 : index
      %c0_95 = arith.constant 0 : index
      %122 = vector.load %arg1[%c0_93, %121, %c1_94, %c0_95] : memref<1x6x10x256xf32, #tpu.memory_space<vmem>>, vector<1x1x8x256xf32>
      %123 = vector.shape_cast %122 : vector<1x1x8x256xf32> to vector<8x256xf32>
      %c0_96 = arith.constant 0 : index
      %124 = arith.index_cast %104 : i32 to index
      %c1_97 = arith.constant 1 : index
      %c0_98 = arith.constant 0 : index
      %125 = vector.load %arg1[%c0_96, %124, %c1_97, %c0_98] : memref<1x6x10x256xf32, #tpu.memory_space<vmem>>, vector<1x1x8x256xf32>
      %126 = vector.shape_cast %125 : vector<1x1x8x256xf32> to vector<8x256xf32>
      %127 = arith.truncf %123 : vector<8x256xf32> to vector<8x256xbf16>
      %cst_99 = arith.constant dense<0.000000e+00> : vector<8x512xf32>
      %128 = tpu.matmul %127, %120, %cst_99 {dimension_numbers = #tpu.dot_dimension_numbers<[1], [0], [0], [1], [0, 0, 1, 1], [], []>} : vector<8x256xbf16>, vector<256x512xbf16>, vector<8x512xf32> -> vector<8x512xf32>
      %129 = arith.addf %115, %128 : vector<8x512xf32>
      %130 = arith.truncf %126 : vector<8x256xf32> to vector<8x256xbf16>
      %cst_100 = arith.constant dense<0.000000e+00> : vector<8x512xf32>
      %131 = tpu.matmul %130, %120, %cst_100 {dimension_numbers = #tpu.dot_dimension_numbers<[1], [0], [0], [1], [0, 0, 1, 1], [], []>} : vector<8x256xbf16>, vector<256x512xbf16>, vector<8x512xf32> -> vector<8x512xf32>
      %132 = arith.addf %118, %131 : vector<8x512xf32>
      %c8 = arith.constant 8 : index
      %c0_101 = arith.constant 0 : index
      %c0_102 = arith.constant 0 : index
      %133 = vector.load %arg2[%c8, %c0_101, %c0_102] : memref<9x256x512xbf16, #tpu.memory_space<vmem>>, vector<1x256x512xbf16>
      %134 = vector.shape_cast %133 : vector<1x256x512xbf16> to vector<256x512xbf16>
      %c0_103 = arith.constant 0 : index
      %135 = arith.index_cast %101 : i32 to index
      %c2_104 = arith.constant 2 : index
      %c0_105 = arith.constant 0 : index
      %136 = vector.load %arg1[%c0_103, %135, %c2_104, %c0_105] : memref<1x6x10x256xf32, #tpu.memory_space<vmem>>, vector<1x1x8x256xf32>
      %137 = vector.shape_cast %136 : vector<1x1x8x256xf32> to vector<8x256xf32>
      %c0_106 = arith.constant 0 : index
      %138 = arith.index_cast %104 : i32 to index
      %c2_107 = arith.constant 2 : index
      %c0_108 = arith.constant 0 : index
      %139 = vector.load %arg1[%c0_106, %138, %c2_107, %c0_108] : memref<1x6x10x256xf32, #tpu.memory_space<vmem>>, vector<1x1x8x256xf32>
      %140 = vector.shape_cast %139 : vector<1x1x8x256xf32> to vector<8x256xf32>
      %141 = arith.truncf %137 : vector<8x256xf32> to vector<8x256xbf16>
      %cst_109 = arith.constant dense<0.000000e+00> : vector<8x512xf32>
      %142 = tpu.matmul %141, %134, %cst_109 {dimension_numbers = #tpu.dot_dimension_numbers<[1], [0], [0], [1], [0, 0, 1, 1], [], []>} : vector<8x256xbf16>, vector<256x512xbf16>, vector<8x512xf32> -> vector<8x512xf32>
      %143 = arith.addf %129, %142 : vector<8x512xf32>
      %144 = arith.truncf %140 : vector<8x256xf32> to vector<8x256xbf16>
      %cst_110 = arith.constant dense<0.000000e+00> : vector<8x512xf32>
      %145 = tpu.matmul %144, %134, %cst_110 {dimension_numbers = #tpu.dot_dimension_numbers<[1], [0], [0], [1], [0, 0, 1, 1], [], []>} : vector<8x256xbf16>, vector<256x512xbf16>, vector<8x512xf32> -> vector<8x512xf32>
      %146 = arith.addf %132, %145 : vector<8x512xf32>
      %147 = vector.broadcast %0 : vector<1x512xf32> to vector<8x512xf32>
      %148 = arith.addf %143, %147 : vector<8x512xf32>
      %cst_111 = arith.constant 0.000000e+00 : f32
      %149 = vector.broadcast %cst_111 : f32 to vector<8x512xf32>
      %150 = arith.maximumf %148, %149 : vector<8x512xf32>
      %151 = vector.broadcast %0 : vector<1x512xf32> to vector<8x512xf32>
      %152 = arith.addf %146, %151 : vector<8x512xf32>
      %cst_112 = arith.constant 0.000000e+00 : f32
      %153 = vector.broadcast %cst_112 : f32 to vector<8x512xf32>
      %154 = arith.maximumf %152, %153 : vector<8x512xf32>
      %155 = arith.maximumf %150, %154 : vector<8x512xf32>
      %c0_113 = arith.constant 0 : index
      %156 = arith.index_cast %3 : i32 to index
      %c0_114 = arith.constant 0 : index
      %c0_115 = arith.constant 0 : index
      %157 = vector.load %arg4[%c0_113, %156, %c0_114, %c0_115] : memref<1x2x8x512xf32, #tpu.memory_space<vmem>>, vector<1x1x8x512xf32>
      %158 = vector.shape_cast %157 : vector<1x1x8x512xf32> to vector<8x512xf32>
      %159 = vector.shape_cast %155 : vector<8x512xf32> to vector<1x1x8x512xf32>
      tpu.vector_store %arg4[%c0_113, %156, %c0_114, %c0_115], %159 {strides = array<i32>} : memref<1x2x8x512xf32, #tpu.memory_space<vmem>>, vector<1x1x8x512xf32>,
    }
    %c2_i32_1 = arith.constant 2 : i32
    return
  }
  func.func @transform_0(%arg0: i32) -> (i32, i32, i32, i32) {
    %c0_i32 = arith.constant 0 : i32
    %c0_i32_0 = arith.constant 0 : i32
    %c0_i32_1 = arith.constant 0 : i32
    %c0_i32_2 = arith.constant 0 : i32
    return %arg0, %c0_i32, %c0_i32_0, %c0_i32_1 : i32, i32, i32, i32
  }
  func.func @transform_1(%arg0: i32) -> (i32, i32, i32) {
    %c0_i32 = arith.constant 0 : i32
    %c0_i32_0 = arith.constant 0 : i32
    %c0_i32_1 = arith.constant 0 : i32
    %c0_i32_2 = arith.constant 0 : i32
    return %c0_i32, %c0_i32_0, %c0_i32_1 : i32, i32, i32
  }
  func.func @transform_2(%arg0: i32) -> (i32, i32) {
    %c0_i32 = arith.constant 0 : i32
    %c0_i32_0 = arith.constant 0 : i32
    %c0_i32_1 = arith.constant 0 : i32
    return %c0_i32, %c0_i32_0 : i32, i32
  }
  func.func @transform_3(%arg0: i32) -> (i32, i32, i32, i32) {
    %c0_i32 = arith.constant 0 : i32
    %c0_i32_0 = arith.constant 0 : i32
    %c0_i32_1 = arith.constant 0 : i32
    %c0_i32_2 = arith.constant 0 : i32
    return %arg0, %c0_i32, %c0_i32_0, %c0_i32_1 : i32, i32, i32, i32
  }
}

module attributes {stable_mosaic.version = 11 : i64} {
  func.func @_matmul_bias_kernel(%arg0: i32, %arg1: memref<16x1024xbf16, #tpu.memory_space<vmem>>, %arg2: memref<1024x128xbf16, #tpu.memory_space<vmem>>, %arg3: memref<1x128xf32, #tpu.memory_space<vmem>>, %arg4: memref<16x128xf32, #tpu.memory_space<vmem>>) attributes {dimension_semantics = [#tpu.dimension_semantics<parallel>], iteration_bounds = array<i64: 1>, scalar_prefetch = 0 : i64, scratch_operands = 0 : i64, tpu.core_type = #tpu.core_type<tc>, window_params = [{transform_indices = @transform_0, window_bounds = array<i64: 16, 1024>}, {pipeline_mode = #tpu.pipeline_mode<synchronous>, transform_indices = @transform_1, window_bounds = array<i64: 1024, 128>}, {pipeline_mode = #tpu.pipeline_mode<synchronous>, transform_indices = @transform_2, window_bounds = array<i64: 1, 128>}, {transform_indices = @transform_3, window_bounds = array<i64: 16, 128>}]} {
    %c0 = arith.constant 0 : index
    %c0_0 = arith.constant 0 : index
    %0 = vector.load %arg1[%c0, %c0_0] : memref<16x1024xbf16, #tpu.memory_space<vmem>>, vector<16x1024xbf16>
    %c0_1 = arith.constant 0 : index
    %c0_2 = arith.constant 0 : index
    %1 = vector.load %arg2[%c0_1, %c0_2] : memref<1024x128xbf16, #tpu.memory_space<vmem>>, vector<1024x128xbf16>
    %cst = arith.constant dense<0.000000e+00> : vector<16x128xf32>
    %2 = tpu.matmul %0, %1, %cst {dimension_numbers = #tpu.dot_dimension_numbers<[1], [0], [0], [1], [0, 0, 1, 1], [], []>} : vector<16x1024xbf16>, vector<1024x128xbf16>, vector<16x128xf32> -> vector<16x128xf32>
    %c0_3 = arith.constant 0 : index
    %c0_4 = arith.constant 0 : index
    %3 = vector.load %arg3[%c0_3, %c0_4] : memref<1x128xf32, #tpu.memory_space<vmem>>, vector<1x128xf32>
    %4 = vector.broadcast %3 : vector<1x128xf32> to vector<16x128xf32>
    %5 = arith.addf %2, %4 : vector<16x128xf32>
    %c0_5 = arith.constant 0 : index
    %c0_6 = arith.constant 0 : index
    %6 = vector.load %arg4[%c0_5, %c0_6] : memref<16x128xf32, #tpu.memory_space<vmem>>, vector<16x128xf32>
    tpu.vector_store %arg4[%c0_5, %c0_6], %5 {strides = array<i32>} : memref<16x128xf32, #tpu.memory_space<vmem>>, vector<16x128xf32>,
    return
  }
  func.func @transform_0(%arg0: i32) -> (i32, i32) {
    %c0_i32 = arith.constant 0 : i32
    %c0_i32_0 = arith.constant 0 : i32
    return %arg0, %c0_i32 : i32, i32
  }
  func.func @transform_1(%arg0: i32) -> (i32, i32) {
    %c0_i32 = arith.constant 0 : i32
    %c0_i32_0 = arith.constant 0 : i32
    %c0_i32_1 = arith.constant 0 : i32
    return %c0_i32, %c0_i32_0 : i32, i32
  }
  func.func @transform_2(%arg0: i32) -> (i32, i32) {
    %c0_i32 = arith.constant 0 : i32
    %c0_i32_0 = arith.constant 0 : i32
    %c0_i32_1 = arith.constant 0 : i32
    return %c0_i32, %c0_i32_0 : i32, i32
  }
  func.func @transform_3(%arg0: i32) -> (i32, i32) {
    %c0_i32 = arith.constant 0 : i32
    %c0_i32_0 = arith.constant 0 : i32
    return %arg0, %c0_i32 : i32, i32
  }
}

module attributes {stable_mosaic.version = 11 : i64} {
  func.func @_bilstm_kernel(%arg0: i32, %arg1: memref<8x2x128xf32, #tpu.memory_space<vmem>>, %arg2: memref<8x2x128xf32, #tpu.memory_space<vmem>>, %arg3: memref<32x128xbf16, #tpu.memory_space<vmem>>, %arg4: memref<32x128xbf16, #tpu.memory_space<vmem>>, %arg5: memref<8x2x32xf32, #tpu.memory_space<vmem>>, %arg6: memref<8x2x32xf32, #tpu.memory_space<vmem>>, %arg7: memref<2x32xf32, #tpu.memory_space<vmem>>, %arg8: memref<2x32xf32, #tpu.memory_space<vmem>>, %arg9: memref<2x32xf32, #tpu.memory_space<vmem>>, %arg10: memref<2x32xf32, #tpu.memory_space<vmem>>) attributes {dimension_semantics = [#tpu.dimension_semantics<arbitrary>], iteration_bounds = array<i64: 1>, scalar_prefetch = 0 : i64, scratch_operands = 4 : i64, tpu.core_type = #tpu.core_type<tc>, window_params = [{pipeline_mode = #tpu.pipeline_mode<synchronous>, transform_indices = @transform_0, window_bounds = array<i64: 8, 2, 128>}, {pipeline_mode = #tpu.pipeline_mode<synchronous>, transform_indices = @transform_1, window_bounds = array<i64: 8, 2, 128>}, {pipeline_mode = #tpu.pipeline_mode<synchronous>, transform_indices = @transform_2, window_bounds = array<i64: 32, 128>}, {pipeline_mode = #tpu.pipeline_mode<synchronous>, transform_indices = @transform_3, window_bounds = array<i64: 32, 128>}, {pipeline_mode = #tpu.pipeline_mode<synchronous>, transform_indices = @transform_4, window_bounds = array<i64: 8, 2, 32>}, {pipeline_mode = #tpu.pipeline_mode<synchronous>, transform_indices = @transform_5, window_bounds = array<i64: 8, 2, 32>}]} {
    %cst = arith.constant 0.000000e+00 : f32
    %0 = vector.broadcast %cst : f32 to vector<2x32xf32>
    %c0 = arith.constant 0 : index
    %c0_0 = arith.constant 0 : index
    %1 = vector.load %arg7[%c0, %c0_0] : memref<2x32xf32, #tpu.memory_space<vmem>>, vector<2x32xf32>
    tpu.vector_store %arg7[%c0, %c0_0], %0 {strides = array<i32>} : memref<2x32xf32, #tpu.memory_space<vmem>>, vector<2x32xf32>,
    %cst_1 = arith.constant 0.000000e+00 : f32
    %2 = vector.broadcast %cst_1 : f32 to vector<2x32xf32>
    %c0_2 = arith.constant 0 : index
    %c0_3 = arith.constant 0 : index
    %3 = vector.load %arg8[%c0_2, %c0_3] : memref<2x32xf32, #tpu.memory_space<vmem>>, vector<2x32xf32>
    tpu.vector_store %arg8[%c0_2, %c0_3], %2 {strides = array<i32>} : memref<2x32xf32, #tpu.memory_space<vmem>>, vector<2x32xf32>,
    %cst_4 = arith.constant 0.000000e+00 : f32
    %4 = vector.broadcast %cst_4 : f32 to vector<2x32xf32>
    %c0_5 = arith.constant 0 : index
    %c0_6 = arith.constant 0 : index
    %5 = vector.load %arg9[%c0_5, %c0_6] : memref<2x32xf32, #tpu.memory_space<vmem>>, vector<2x32xf32>
    tpu.vector_store %arg9[%c0_5, %c0_6], %4 {strides = array<i32>} : memref<2x32xf32, #tpu.memory_space<vmem>>, vector<2x32xf32>,
    %cst_7 = arith.constant 0.000000e+00 : f32
    %6 = vector.broadcast %cst_7 : f32 to vector<2x32xf32>
    %c0_8 = arith.constant 0 : index
    %c0_9 = arith.constant 0 : index
    %7 = vector.load %arg10[%c0_8, %c0_9] : memref<2x32xf32, #tpu.memory_space<vmem>>, vector<2x32xf32>
    tpu.vector_store %arg10[%c0_8, %c0_9], %6 {strides = array<i32>} : memref<2x32xf32, #tpu.memory_space<vmem>>, vector<2x32xf32>,
    %c0_10 = arith.constant 0 : index
    %c0_11 = arith.constant 0 : index
    %8 = vector.load %arg3[%c0_10, %c0_11] : memref<32x128xbf16, #tpu.memory_space<vmem>>, vector<32x128xbf16>
    %c0_12 = arith.constant 0 : index
    %c0_13 = arith.constant 0 : index
    %9 = vector.load %arg4[%c0_12, %c0_13] : memref<32x128xbf16, #tpu.memory_space<vmem>>, vector<32x128xbf16>
    %c0_i32 = arith.constant 0 : i32
    %c8_i32 = arith.constant 8 : i32
    %10 = arith.addi %c0_i32, %c8_i32 : i32
    %c1_i32 = arith.constant 1 : i32
    scf.for %arg11 = %c0_i32 to %10 step %c1_i32  : i32 {
      %c1_i32_15 = arith.constant 1 : i32
      %11 = arith.muli %arg11, %c1_i32_15 : i32
      %c0_i32_16 = arith.constant 0 : i32
      %12 = arith.addi %c0_i32_16, %11 : i32
      %13 = arith.index_cast %12 : i32 to index
      %c0_17 = arith.constant 0 : index
      %c0_18 = arith.constant 0 : index
      %14 = vector.load %arg1[%13, %c0_17, %c0_18] : memref<8x2x128xf32, #tpu.memory_space<vmem>>, vector<1x2x128xf32>
      %15 = vector.shape_cast %14 : vector<1x2x128xf32> to vector<2x128xf32>
      %c0_19 = arith.constant 0 : index
      %c0_20 = arith.constant 0 : index
      %16 = vector.load %arg7[%c0_19, %c0_20] : memref<2x32xf32, #tpu.memory_space<vmem>>, vector<2x32xf32>
      %c0_21 = arith.constant 0 : index
      %c0_22 = arith.constant 0 : index
      %17 = vector.load %arg8[%c0_21, %c0_22] : memref<2x32xf32, #tpu.memory_space<vmem>>, vector<2x32xf32>
      %18 = arith.truncf %16 : vector<2x32xf32> to vector<2x32xbf16>
      %cst_23 = arith.constant dense<0.000000e+00> : vector<2x128xf32>
      %19 = tpu.matmul %18, %8, %cst_23 {dimension_numbers = #tpu.dot_dimension_numbers<[1], [0], [0], [1], [0, 0, 1, 1], [], []>} : vector<2x32xbf16>, vector<32x128xbf16>, vector<2x128xf32> -> vector<2x128xf32>
      %20 = arith.addf %15, %19 : vector<2x128xf32>
      %21 = vector.extract_strided_slice %20 {offsets = [0, 0], sizes = [2, 32], strides = [1, 1]} : vector<2x128xf32> to vector<2x32xf32>
      %22 = arith.negf %21 : vector<2x32xf32>
      %23 = math.exp %22 : vector<2x32xf32>
      %cst_24 = arith.constant 1.000000e+00 : f32
      %24 = vector.broadcast %cst_24 : f32 to vector<2x32xf32>
      %25 = arith.addf %24, %23 : vector<2x32xf32>
      %26 = arith.divf %24, %25 : vector<2x32xf32>
      %27 = vector.extract_strided_slice %20 {offsets = [0, 32], sizes = [2, 32], strides = [1, 1]} : vector<2x128xf32> to vector<2x32xf32>
      %28 = arith.negf %27 : vector<2x32xf32>
      %29 = math.exp %28 : vector<2x32xf32>
      %cst_25 = arith.constant 1.000000e+00 : f32
      %30 = vector.broadcast %cst_25 : f32 to vector<2x32xf32>
      %31 = arith.addf %30, %29 : vector<2x32xf32>
      %32 = arith.divf %30, %31 : vector<2x32xf32>
      %33 = vector.extract_strided_slice %20 {offsets = [0, 64], sizes = [2, 32], strides = [1, 1]} : vector<2x128xf32> to vector<2x32xf32>
      %34 = math.tanh %33 : vector<2x32xf32>
      %35 = vector.extract_strided_slice %20 {offsets = [0, 96], sizes = [2, 32], strides = [1, 1]} : vector<2x128xf32> to vector<2x32xf32>
      %36 = arith.negf %35 : vector<2x32xf32>
      %37 = math.exp %36 : vector<2x32xf32>
      %cst_26 = arith.constant 1.000000e+00 : f32
      %38 = vector.broadcast %cst_26 : f32 to vector<2x32xf32>
      %39 = arith.addf %38, %37 : vector<2x32xf32>
      %40 = arith.divf %38, %39 : vector<2x32xf32>
      %41 = arith.mulf %32, %17 : vector<2x32xf32>
      %42 = arith.mulf %26, %34 : vector<2x32xf32>
      %43 = arith.addf %41, %42 : vector<2x32xf32>
      %44 = math.tanh %43 : vector<2x32xf32>
      %45 = arith.mulf %40, %44 : vector<2x32xf32>
      %c0_27 = arith.constant 0 : index
      %c0_28 = arith.constant 0 : index
      %46 = vector.load %arg7[%c0_27, %c0_28] : memref<2x32xf32, #tpu.memory_space<vmem>>, vector<2x32xf32>
      tpu.vector_store %arg7[%c0_27, %c0_28], %45 {strides = array<i32>} : memref<2x32xf32, #tpu.memory_space<vmem>>, vector<2x32xf32>,
      %c0_29 = arith.constant 0 : index
      %c0_30 = arith.constant 0 : index
      %47 = vector.load %arg8[%c0_29, %c0_30] : memref<2x32xf32, #tpu.memory_space<vmem>>, vector<2x32xf32>
      tpu.vector_store %arg8[%c0_29, %c0_30], %43 {strides = array<i32>} : memref<2x32xf32, #tpu.memory_space<vmem>>, vector<2x32xf32>,
      %48 = arith.index_cast %12 : i32 to index
      %c0_31 = arith.constant 0 : index
      %c0_32 = arith.constant 0 : index
      %49 = vector.load %arg5[%48, %c0_31, %c0_32] : memref<8x2x32xf32, #tpu.memory_space<vmem>>, vector<1x2x32xf32>
      %50 = vector.shape_cast %49 : vector<1x2x32xf32> to vector<2x32xf32>
      %51 = vector.shape_cast %45 : vector<2x32xf32> to vector<1x2x32xf32>
      tpu.vector_store %arg5[%48, %c0_31, %c0_32], %51 {strides = array<i32>} : memref<8x2x32xf32, #tpu.memory_space<vmem>>, vector<1x2x32xf32>,
      %c7_i32 = arith.constant 7 : i32
      %52 = arith.subi %c7_i32, %12 : i32
      %53 = arith.index_cast %52 : i32 to index
      %c0_33 = arith.constant 0 : index
      %c0_34 = arith.constant 0 : index
      %54 = vector.load %arg2[%53, %c0_33, %c0_34] : memref<8x2x128xf32, #tpu.memory_space<vmem>>, vector<1x2x128xf32>
      %55 = vector.shape_cast %54 : vector<1x2x128xf32> to vector<2x128xf32>
      %c0_35 = arith.constant 0 : index
      %c0_36 = arith.constant 0 : index
      %56 = vector.load %arg9[%c0_35, %c0_36] : memref<2x32xf32, #tpu.memory_space<vmem>>, vector<2x32xf32>
      %c0_37 = arith.constant 0 : index
      %c0_38 = arith.constant 0 : index
      %57 = vector.load %arg10[%c0_37, %c0_38] : memref<2x32xf32, #tpu.memory_space<vmem>>, vector<2x32xf32>
      %58 = arith.truncf %56 : vector<2x32xf32> to vector<2x32xbf16>
      %cst_39 = arith.constant dense<0.000000e+00> : vector<2x128xf32>
      %59 = tpu.matmul %58, %9, %cst_39 {dimension_numbers = #tpu.dot_dimension_numbers<[1], [0], [0], [1], [0, 0, 1, 1], [], []>} : vector<2x32xbf16>, vector<32x128xbf16>, vector<2x128xf32> -> vector<2x128xf32>
      %60 = arith.addf %55, %59 : vector<2x128xf32>
      %61 = vector.extract_strided_slice %60 {offsets = [0, 0], sizes = [2, 32], strides = [1, 1]} : vector<2x128xf32> to vector<2x32xf32>
      %62 = arith.negf %61 : vector<2x32xf32>
      %63 = math.exp %62 : vector<2x32xf32>
      %cst_40 = arith.constant 1.000000e+00 : f32
      %64 = vector.broadcast %cst_40 : f32 to vector<2x32xf32>
      %65 = arith.addf %64, %63 : vector<2x32xf32>
      %66 = arith.divf %64, %65 : vector<2x32xf32>
      %67 = vector.extract_strided_slice %60 {offsets = [0, 32], sizes = [2, 32], strides = [1, 1]} : vector<2x128xf32> to vector<2x32xf32>
      %68 = arith.negf %67 : vector<2x32xf32>
      %69 = math.exp %68 : vector<2x32xf32>
      %cst_41 = arith.constant 1.000000e+00 : f32
      %70 = vector.broadcast %cst_41 : f32 to vector<2x32xf32>
      %71 = arith.addf %70, %69 : vector<2x32xf32>
      %72 = arith.divf %70, %71 : vector<2x32xf32>
      %73 = vector.extract_strided_slice %60 {offsets = [0, 64], sizes = [2, 32], strides = [1, 1]} : vector<2x128xf32> to vector<2x32xf32>
      %74 = math.tanh %73 : vector<2x32xf32>
      %75 = vector.extract_strided_slice %60 {offsets = [0, 96], sizes = [2, 32], strides = [1, 1]} : vector<2x128xf32> to vector<2x32xf32>
      %76 = arith.negf %75 : vector<2x32xf32>
      %77 = math.exp %76 : vector<2x32xf32>
      %cst_42 = arith.constant 1.000000e+00 : f32
      %78 = vector.broadcast %cst_42 : f32 to vector<2x32xf32>
      %79 = arith.addf %78, %77 : vector<2x32xf32>
      %80 = arith.divf %78, %79 : vector<2x32xf32>
      %81 = arith.mulf %72, %57 : vector<2x32xf32>
      %82 = arith.mulf %66, %74 : vector<2x32xf32>
      %83 = arith.addf %81, %82 : vector<2x32xf32>
      %84 = math.tanh %83 : vector<2x32xf32>
      %85 = arith.mulf %80, %84 : vector<2x32xf32>
      %c0_43 = arith.constant 0 : index
      %c0_44 = arith.constant 0 : index
      %86 = vector.load %arg9[%c0_43, %c0_44] : memref<2x32xf32, #tpu.memory_space<vmem>>, vector<2x32xf32>
      tpu.vector_store %arg9[%c0_43, %c0_44], %85 {strides = array<i32>} : memref<2x32xf32, #tpu.memory_space<vmem>>, vector<2x32xf32>,
      %c0_45 = arith.constant 0 : index
      %c0_46 = arith.constant 0 : index
      %87 = vector.load %arg10[%c0_45, %c0_46] : memref<2x32xf32, #tpu.memory_space<vmem>>, vector<2x32xf32>
      tpu.vector_store %arg10[%c0_45, %c0_46], %83 {strides = array<i32>} : memref<2x32xf32, #tpu.memory_space<vmem>>, vector<2x32xf32>,
      %88 = arith.index_cast %52 : i32 to index
      %c0_47 = arith.constant 0 : index
      %c0_48 = arith.constant 0 : index
      %89 = vector.load %arg6[%88, %c0_47, %c0_48] : memref<8x2x32xf32, #tpu.memory_space<vmem>>, vector<1x2x32xf32>
      %90 = vector.shape_cast %89 : vector<1x2x32xf32> to vector<2x32xf32>
      %91 = vector.shape_cast %85 : vector<2x32xf32> to vector<1x2x32xf32>
      tpu.vector_store %arg6[%88, %c0_47, %c0_48], %91 {strides = array<i32>} : memref<8x2x32xf32, #tpu.memory_space<vmem>>, vector<1x2x32xf32>,
    }
    %c8_i32_14 = arith.constant 8 : i32
    return
  }
  func.func @transform_0(%arg0: i32) -> (i32, i32, i32) {
    %c0_i32 = arith.constant 0 : i32
    %c0_i32_0 = arith.constant 0 : i32
    %c0_i32_1 = arith.constant 0 : i32
    %c0_i32_2 = arith.constant 0 : i32
    return %c0_i32, %c0_i32_0, %c0_i32_1 : i32, i32, i32
  }
  func.func @transform_1(%arg0: i32) -> (i32, i32, i32) {
    %c0_i32 = arith.constant 0 : i32
    %c0_i32_0 = arith.constant 0 : i32
    %c0_i32_1 = arith.constant 0 : i32
    %c0_i32_2 = arith.constant 0 : i32
    return %c0_i32, %c0_i32_0, %c0_i32_1 : i32, i32, i32
  }
  func.func @transform_2(%arg0: i32) -> (i32, i32) {
    %c0_i32 = arith.constant 0 : i32
    %c0_i32_0 = arith.constant 0 : i32
    %c0_i32_1 = arith.constant 0 : i32
    return %c0_i32, %c0_i32_0 : i32, i32
  }
  func.func @transform_3(%arg0: i32) -> (i32, i32) {
    %c0_i32 = arith.constant 0 : i32
    %c0_i32_0 = arith.constant 0 : i32
    %c0_i32_1 = arith.constant 0 : i32
    return %c0_i32, %c0_i32_0 : i32, i32
  }
  func.func @transform_4(%arg0: i32) -> (i32, i32, i32) {
    %c0_i32 = arith.constant 0 : i32
    %c0_i32_0 = arith.constant 0 : i32
    %c0_i32_1 = arith.constant 0 : i32
    %c0_i32_2 = arith.constant 0 : i32
    return %c0_i32, %c0_i32_0, %c0_i32_1 : i32, i32, i32
  }
  func.func @transform_5(%arg0: i32) -> (i32, i32, i32) {
    %c0_i32 = arith.constant 0 : i32
    %c0_i32_0 = arith.constant 0 : i32
    %c0_i32_1 = arith.constant 0 : i32
    %c0_i32_2 = arith.constant 0 : i32
    return %c0_i32, %c0_i32_0, %c0_i32_1 : i32, i32, i32
  }
}

module attributes {stable_mosaic.version = 11 : i64} {
  func.func @_matmul_bias_kernel(%arg0: i32, %arg1: memref<16x64xbf16, #tpu.memory_space<vmem>>, %arg2: memref<64x128xbf16, #tpu.memory_space<vmem>>, %arg3: memref<1x128xf32, #tpu.memory_space<vmem>>, %arg4: memref<16x128xf32, #tpu.memory_space<vmem>>) attributes {dimension_semantics = [#tpu.dimension_semantics<parallel>], iteration_bounds = array<i64: 1>, scalar_prefetch = 0 : i64, scratch_operands = 0 : i64, tpu.core_type = #tpu.core_type<tc>, window_params = [{transform_indices = @transform_0, window_bounds = array<i64: 16, 64>}, {pipeline_mode = #tpu.pipeline_mode<synchronous>, transform_indices = @transform_1, window_bounds = array<i64: 64, 128>}, {pipeline_mode = #tpu.pipeline_mode<synchronous>, transform_indices = @transform_2, window_bounds = array<i64: 1, 128>}, {transform_indices = @transform_3, window_bounds = array<i64: 16, 128>}]} {
    %c0 = arith.constant 0 : index
    %c0_0 = arith.constant 0 : index
    %0 = vector.load %arg1[%c0, %c0_0] : memref<16x64xbf16, #tpu.memory_space<vmem>>, vector<16x64xbf16>
    %c0_1 = arith.constant 0 : index
    %c0_2 = arith.constant 0 : index
    %1 = vector.load %arg2[%c0_1, %c0_2] : memref<64x128xbf16, #tpu.memory_space<vmem>>, vector<64x128xbf16>
    %cst = arith.constant dense<0.000000e+00> : vector<16x128xf32>
    %2 = tpu.matmul %0, %1, %cst {dimension_numbers = #tpu.dot_dimension_numbers<[1], [0], [0], [1], [0, 0, 1, 1], [], []>} : vector<16x64xbf16>, vector<64x128xbf16>, vector<16x128xf32> -> vector<16x128xf32>
    %c0_3 = arith.constant 0 : index
    %c0_4 = arith.constant 0 : index
    %3 = vector.load %arg3[%c0_3, %c0_4] : memref<1x128xf32, #tpu.memory_space<vmem>>, vector<1x128xf32>
    %4 = vector.broadcast %3 : vector<1x128xf32> to vector<16x128xf32>
    %5 = arith.addf %2, %4 : vector<16x128xf32>
    %c0_5 = arith.constant 0 : index
    %c0_6 = arith.constant 0 : index
    %6 = vector.load %arg4[%c0_5, %c0_6] : memref<16x128xf32, #tpu.memory_space<vmem>>, vector<16x128xf32>
    tpu.vector_store %arg4[%c0_5, %c0_6], %5 {strides = array<i32>} : memref<16x128xf32, #tpu.memory_space<vmem>>, vector<16x128xf32>,
    return
  }
  func.func @transform_0(%arg0: i32) -> (i32, i32) {
    %c0_i32 = arith.constant 0 : i32
    %c0_i32_0 = arith.constant 0 : i32
    return %arg0, %c0_i32 : i32, i32
  }
  func.func @transform_1(%arg0: i32) -> (i32, i32) {
    %c0_i32 = arith.constant 0 : i32
    %c0_i32_0 = arith.constant 0 : i32
    %c0_i32_1 = arith.constant 0 : i32
    return %c0_i32, %c0_i32_0 : i32, i32
  }
  func.func @transform_2(%arg0: i32) -> (i32, i32) {
    %c0_i32 = arith.constant 0 : i32
    %c0_i32_0 = arith.constant 0 : i32
    %c0_i32_1 = arith.constant 0 : i32
    return %c0_i32, %c0_i32_0 : i32, i32
  }
  func.func @transform_3(%arg0: i32) -> (i32, i32) {
    %c0_i32 = arith.constant 0 : i32
    %c0_i32_0 = arith.constant 0 : i32
    return %arg0, %c0_i32 : i32, i32
  }
}

module attributes {stable_mosaic.version = 11 : i64} {
  func.func @_pool_proj_kernel(%arg0: i32, %arg1: memref<8x2x64xf32, #tpu.memory_space<vmem>>, %arg2: memref<64x32xbf16, #tpu.memory_space<vmem>>, %arg3: memref<1x32xf32, #tpu.memory_space<vmem>>, %arg4: memref<32x32xbf16, #tpu.memory_space<vmem>>, %arg5: memref<1x32xf32, #tpu.memory_space<vmem>>, %arg6: memref<2x32xf32, #tpu.memory_space<vmem>>, %arg7: memref<2x64xf32, #tpu.memory_space<vmem>>) attributes {dimension_semantics = [#tpu.dimension_semantics<arbitrary>], iteration_bounds = array<i64: 1>, scalar_prefetch = 0 : i64, scratch_operands = 1 : i64, tpu.core_type = #tpu.core_type<tc>, window_params = [{transform_indices = @transform_0, window_bounds = array<i64: 8, 2, 64>}, {pipeline_mode = #tpu.pipeline_mode<synchronous>, transform_indices = @transform_1, window_bounds = array<i64: 64, 32>}, {pipeline_mode = #tpu.pipeline_mode<synchronous>, transform_indices = @transform_2, window_bounds = array<i64: 1, 32>}, {pipeline_mode = #tpu.pipeline_mode<synchronous>, transform_indices = @transform_3, window_bounds = array<i64: 32, 32>}, {pipeline_mode = #tpu.pipeline_mode<synchronous>, transform_indices = @transform_4, window_bounds = array<i64: 1, 32>}, {pipeline_mode = #tpu.pipeline_mode<synchronous>, transform_indices = @transform_5, window_bounds = array<i64: 2, 32>}]} {
    %c0_i32 = arith.constant 0 : i32
    %0 = arith.cmpi eq, %arg0, %c0_i32 : i32
    %1 = arith.extui %0 : i1 to i32
    %c0_i32_0 = arith.constant 0 : i32
    %2 = arith.cmpi ne, %1, %c0_i32_0 : i32
    scf.if %2 {
      %cst_9 = arith.constant 0.000000e+00 : f32
      %11 = vector.broadcast %cst_9 : f32 to vector<2x64xf32>
      %c0_10 = arith.constant 0 : index
      %c0_11 = arith.constant 0 : index
      %12 = vector.load %arg7[%c0_10, %c0_11] : memref<2x64xf32, #tpu.memory_space<vmem>>, vector<2x64xf32>
      tpu.vector_store %arg7[%c0_10, %c0_11], %11 {strides = array<i32>} : memref<2x64xf32, #tpu.memory_space<vmem>>, vector<2x64xf32>,
    } else {
    }
    %c0 = arith.constant 0 : index
    %c0_1 = arith.constant 0 : index
    %3 = vector.load %arg7[%c0, %c0_1] : memref<2x64xf32, #tpu.memory_space<vmem>>, vector<2x64xf32>
    %c0_2 = arith.constant 0 : index
    %c0_3 = arith.constant 0 : index
    %c0_4 = arith.constant 0 : index
    %4 = vector.load %arg1[%c0_2, %c0_3, %c0_4] : memref<8x2x64xf32, #tpu.memory_space<vmem>>, vector<8x2x64xf32>
    %cst = arith.constant dense<0.000000e+00> : vector<2x64xf32>
    %5 = vector.multi_reduction <add>, %4, %cst [0] : vector<8x2x64xf32> to vector<2x64xf32>
    %6 = arith.addf %3, %5 : vector<2x64xf32>
    %c0_5 = arith.constant 0 : index
    %c0_6 = arith.constant 0 : index
    %7 = vector.load %arg7[%c0_5, %c0_6] : memref<2x64xf32, #tpu.memory_space<vmem>>, vector<2x64xf32>
    tpu.vector_store %arg7[%c0_5, %c0_6], %6 {strides = array<i32>} : memref<2x64xf32, #tpu.memory_space<vmem>>, vector<2x64xf32>,
    %c0_i32_7 = arith.constant 0 : i32
    %8 = arith.cmpi eq, %arg0, %c0_i32_7 : i32
    %9 = arith.extui %8 : i1 to i32
    %c0_i32_8 = arith.constant 0 : i32
    %10 = arith.cmpi ne, %9, %c0_i32_8 : i32
    scf.if %10 {
      %c0_9 = arith.constant 0 : index
      %c0_10 = arith.constant 0 : index
      %11 = vector.load %arg7[%c0_9, %c0_10] : memref<2x64xf32, #tpu.memory_space<vmem>>, vector<2x64xf32>
      %cst_11 = arith.constant 1.250000e-01 : f32
      %12 = vector.broadcast %cst_11 : f32 to vector<2x64xf32>
      %13 = arith.mulf %11, %12 : vector<2x64xf32>
      %14 = arith.truncf %13 : vector<2x64xf32> to vector<2x64xbf16>
      %c0_12 = arith.constant 0 : index
      %c0_13 = arith.constant 0 : index
      %15 = vector.load %arg2[%c0_12, %c0_13] : memref<64x32xbf16, #tpu.memory_space<vmem>>, vector<64x32xbf16>
      %cst_14 = arith.constant dense<0.000000e+00> : vector<2x32xf32>
      %16 = tpu.matmul %14, %15, %cst_14 {dimension_numbers = #tpu.dot_dimension_numbers<[1], [0], [0], [1], [0, 0, 1, 1], [], []>} : vector<2x64xbf16>, vector<64x32xbf16>, vector<2x32xf32> -> vector<2x32xf32>
      %c0_15 = arith.constant 0 : index
      %c0_16 = arith.constant 0 : index
      %17 = vector.load %arg3[%c0_15, %c0_16] : memref<1x32xf32, #tpu.memory_space<vmem>>, vector<1x32xf32>
      %18 = vector.broadcast %17 : vector<1x32xf32> to vector<2x32xf32>
      %19 = arith.addf %16, %18 : vector<2x32xf32>
      %cst_17 = arith.constant 0.000000e+00 : f32
      %20 = vector.broadcast %cst_17 : f32 to vector<2x32xf32>
      %21 = arith.maximumf %19, %20 : vector<2x32xf32>
      %22 = arith.truncf %21 : vector<2x32xf32> to vector<2x32xbf16>
      %c0_18 = arith.constant 0 : index
      %c0_19 = arith.constant 0 : index
      %23 = vector.load %arg4[%c0_18, %c0_19] : memref<32x32xbf16, #tpu.memory_space<vmem>>, vector<32x32xbf16>
      %cst_20 = arith.constant dense<0.000000e+00> : vector<2x32xf32>
      %24 = tpu.matmul %22, %23, %cst_20 {dimension_numbers = #tpu.dot_dimension_numbers<[1], [0], [0], [1], [0, 0, 1, 1], [], []>} : vector<2x32xbf16>, vector<32x32xbf16>, vector<2x32xf32> -> vector<2x32xf32>
      %c0_21 = arith.constant 0 : index
      %c0_22 = arith.constant 0 : index
      %25 = vector.load %arg5[%c0_21, %c0_22] : memref<1x32xf32, #tpu.memory_space<vmem>>, vector<1x32xf32>
      %26 = vector.broadcast %25 : vector<1x32xf32> to vector<2x32xf32>
      %27 = arith.addf %24, %26 : vector<2x32xf32>
      %c0_23 = arith.constant 0 : index
      %c0_24 = arith.constant 0 : index
      %28 = vector.load %arg6[%c0_23, %c0_24] : memref<2x32xf32, #tpu.memory_space<vmem>>, vector<2x32xf32>
      tpu.vector_store %arg6[%c0_23, %c0_24], %27 {strides = array<i32>} : memref<2x32xf32, #tpu.memory_space<vmem>>, vector<2x32xf32>,
    } else {
    }
    return
  }
  func.func @transform_0(%arg0: i32) -> (i32, i32, i32) {
    %c0_i32 = arith.constant 0 : i32
    %c0_i32_0 = arith.constant 0 : i32
    %c0_i32_1 = arith.constant 0 : i32
    return %arg0, %c0_i32, %c0_i32_0 : i32, i32, i32
  }
  func.func @transform_1(%arg0: i32) -> (i32, i32) {
    %c0_i32 = arith.constant 0 : i32
    %c0_i32_0 = arith.constant 0 : i32
    %c0_i32_1 = arith.constant 0 : i32
    return %c0_i32, %c0_i32_0 : i32, i32
  }
  func.func @transform_2(%arg0: i32) -> (i32, i32) {
    %c0_i32 = arith.constant 0 : i32
    %c0_i32_0 = arith.constant 0 : i32
    %c0_i32_1 = arith.constant 0 : i32
    return %c0_i32, %c0_i32_0 : i32, i32
  }
  func.func @transform_3(%arg0: i32) -> (i32, i32) {
    %c0_i32 = arith.constant 0 : i32
    %c0_i32_0 = arith.constant 0 : i32
    %c0_i32_1 = arith.constant 0 : i32
    return %c0_i32, %c0_i32_0 : i32, i32
  }
  func.func @transform_4(%arg0: i32) -> (i32, i32) {
    %c0_i32 = arith.constant 0 : i32
    %c0_i32_0 = arith.constant 0 : i32
    %c0_i32_1 = arith.constant 0 : i32
    return %c0_i32, %c0_i32_0 : i32, i32
  }
  func.func @transform_5(%arg0: i32) -> (i32, i32) {
    %c0_i32 = arith.constant 0 : i32
    %c0_i32_0 = arith.constant 0 : i32
    %c0_i32_1 = arith.constant 0 : i32
    return %c0_i32, %c0_i32_0 : i32, i32
  }
}

</mosaic_0001>

<bundles_post_ra>
// kernel: multiscale_crnn_forward.11
= control target key start
LH: loop header
LB: loop body
LE: loop exit
PB: predicated region body
PF: predicated region fallthrough
CT: control target
= control target key end

     0   :  { %s550_s12 = smov 0   ;;  %s617_s0 = inlined_call_operand.vmem [shape: f32[2,34,10,1], index: 0, kind: input, shape index: {}]   ;;  %s618_s1 = inlined_call_operand.vmem [shape: bf16[9,1,64], index: 1, kind: input, shape index: {}]   ;;  %s619_s2 = inlined_call_operand.vmem [shape: f32[1,64], index: 2, kind: input, shape index: {}]   ;;  %s620_s3 = inlined_call_operand.vmem [shape: f32[2,16,8,64], index: 3, kind: output, shape index: {}]  }
   0x1 LB: > { %s451_s13 = sadd.s32 4294967295, %s523_s12   ;;  %p455_p0 = scmp.ge.s32.totalorder %s523_s12, 1  ;;  %s523_s12 = sphi %s550_s12, %s13_s12  }
   0x2   : > { %p137_p1 = scmp.lt.s32.totalorder %s523_s12, 3 }
   0x4   : > { %p138_p2 = pnand %p455_p0, %p137_p1 }
   0x5   : > { %p161_p3 = scmp.lt.s32.totalorder (!%p138_p2), %s451_s13, 1  ;;  %s573_s24 = smov (!%p138_p2), 0  }
   0x6   : > { %141 = sbr.rel (%p138_p2) target bundleno = 176 (0xb0), region = 32 }
   0xb   : > { %v561_v0 = vld [vmem:[%s619_s2] ss:$0 sm:$0xff]  ;;  %s622_s13 = smov (!%p161_p3, %s451_s13), 1 }
   0xc   : > { %s493_s16 = smul.u32 544, %s622_s13  ;;  %s488_s17 = sshll.u32 %s622_s13, 7 }
   0xd   : > { %s566_s20 = scalar_lea.vmem %s620_s3, %s488_s17 }
   0xe   : > { %s571_s23 = scalar_lea.vmem %s617_s0, %s493_s16 }
   0xf LB: >> { %v529_v1 = vmov 0   ;;  %s489_s25 = sshll.u32 %s527_s24, 5  ;;  %v193_v14 = vlaneseq  ;;  %v464_v16 = vld [vmem:[%s618_s1 + $0x1] sm:$0x1]  ;;  %v180_v17 = vld [vmem:[%s618_s1] sm:$0x1]  ;;  %s527_s24 = sphi %s573_s24, %s177_s24  }
  0x10   : >> { %512 = vset.pattern.permute.xlu1 %v529_v1  ;;  %511 = vset.pattern.permute.xlu0 %v529_v1  ;;  %s182_s26 = scalar_lea.vmem %s571_s23, %s489_s25  ;;  %v210_v19 = vunpack.c.l.bf16 %v464_v16  ;;  %v187_v20 = vunpack.c.l.bf16 %v180_v17  ;;  %v466_v21 = vld [vmem:[%s618_s1 + $0x2] sm:$0x1]  ;;  %v468_v24 = vld [vmem:[%s618_s1 + $0x3] sm:$0x1]  ;;  %v472_v28 = vld [vmem:[%s618_s1 + $0x4] sm:$0x1] }
  0x11   : >> { %v208_v2 = vld [vmem:[%s182_s26 + $0x1] sm:$0xff]  ;;  %v465_v4 = vld [vmem:[%s182_s26 + $0x11] sm:$0xff]  ;;  %v194_v15 = vshrl.u32 %v193_v14, 7  ;;  %v233_v27 = vunpack.c.l.bf16 %v466_v21  ;;  %v258_v29 = vunpack.c.l.bf16 %v468_v24  ;;  %v275_v35 = vunpack.c.l.bf16 %v472_v28  ;;  %s485_s19 = sshll.u32 %s527_s24, 3  ;;  %s177_s24 = sadd.s32 1, %s527_s24  }
  0x12   : >> { %v183_v3 = vld [vmem:[%s182_s26] sm:$0xff]  ;;  %213 = vperm.xlu1 %512, %v208_v2   ;;  %v463_v5 = vld [vmem:[%s182_s26 + $0x10] sm:$0xff]  ;;  %v482_v50 = vld [vmem:[%s618_s1 + $0x8] sm:$0x1]  ;;  %s372_s21 = scalar_lea.vmem %s566_s20, %s485_s19  ;;  %vm373_vm0 = vcmask 523264   ;;  %p174_p4 = scmp.ge.s32.totalorder %s177_s24, 16  }
  0x13   : >> { %190 = vperm.xlu0 %511, %v183_v3   ;;  %v467_v6 = vld [vmem:[%s182_s26 + $0x12] sm:$0xff]  ;;  %v231_v7 = vld [vmem:[%s182_s26 + $0x2] sm:$0xff]  ;;  %v195_v18 = vsub.s32 0, %v194_v15  ;;  %v346_v59 = vunpack.c.l.bf16 %v482_v50 }
  0x14   : >> { %v473_v8 = vld [vmem:[%s182_s26 + $0x21] sm:$0xff]  ;;  %v479_v10 = vld [vmem:[%s182_s26 + $0x30] sm:$0xff] }
  0x15   : >> { %v471_v9 = vld [vmem:[%s182_s26 + $0x20] sm:$0xff]  ;;  %v483_v12 = vld [vmem:[%s182_s26 + $0x32] sm:$0xff]  ;;  %v219_v25 = vrot.slane %v210_v19, %v195_v18  ;;  %v196_v26 = vrot.slane %v187_v20, %v195_v18  ;;  %v242_v36 = vrot.slane %v233_v27, %v195_v18  ;;  %v262_v39 = vrot.slane %v258_v29, %v195_v18 }
  0x16   : >> { %224 = vperm.xlu1 %512, %v465_v4   ;;  %v475_v11 = vld [vmem:[%s182_s26 + $0x22] sm:$0xff]  ;;  %v481_v13 = vld [vmem:[%s182_s26 + $0x31] sm:$0xff]  ;;  %v279_v47 = vrot.slane %v275_v35, %v195_v18 }
  0x17   : >> { %201 = vperm.xlu0 %511, %v463_v5   ;;  %v474_v32 = vld [vmem:[%s618_s1 + $0x5] sm:$0x1]  ;;  %v476_v37 = vld [vmem:[%s618_s1 + $0x6] sm:$0x1]  ;;  %v480_v42 = vld [vmem:[%s618_s1 + $0x7] sm:$0x1] }
  0x18   : >> { %v292_v41 = vunpack.c.l.bf16 %v474_v32  ;;  %v312_v45 = vunpack.c.l.bf16 %v476_v37  ;;  %v329_v51 = vunpack.c.l.bf16 %v480_v42 }
  0x1a   : >> { %247 = vperm.xlu1 %512, %v467_v6   ;;  %v296_v54 = vrot.slane %v292_v41, %v195_v18  ;;  %v316_v57 = vrot.slane %v312_v45, %v195_v18  ;;  %v333_v1 = vrot.slane %v329_v51, %v195_v18 }
  0x1b   : >> { %236 = vperm.xlu0 %511, %v231_v7   ;;  %v350_v7 = vrot.slane %v346_v59, %v195_v18 }
  0x1e   : >> { %284 = vperm.xlu1 %512, %v473_v8  }
  0x1f   : >> { %267 = vperm.xlu0 %511, %v471_v9  }
  0x22   : >> { %321 = vperm.xlu1 %512, %v479_v10  }
  0x23   : >> { %301 = vperm.xlu0 %511, %v475_v11  }
  0x26   : >> { %355 = vperm.xlu1 %512, %v483_v12  }
  0x27   : >> { %338 = vperm.xlu0 %511, %v481_v13  }
  0x8d   : >> { %v214_v22 = vpop.permute.xlu1 %213 }
  0x8e   : >> { %v191_v23 = vpop.permute.xlu0 %190  ;;  %v220_v33 = vmul.f32 %v219_v25, %v214_v22 }
  0x8f   : >> { %v197_v34 = vmul.f32 %v196_v26, %v191_v23 }
  0x91   : >> { %v225_v30 = vpop.permute.xlu1 %224  ;;  %v221_v46 = vadd.f32 %v220_v33, %v197_v34 }
  0x92   : >> { %v202_v31 = vpop.permute.xlu0 %201  ;;  %v227_v38 = vmul.f32 %v225_v30, %v219_v25  ;;  %v280_v60 = vmul.f32 %v279_v47, %v225_v30 }
  0x93   : >> { %v204_v40 = vmul.f32 %v202_v31, %v196_v26  ;;  %v263_v53 = vmul.f32 %v262_v39, %v202_v31 }
  0x95   : >> { %v248_v43 = vpop.permute.xlu1 %247  ;;  %v228_v52 = vadd.f32 %v227_v38, %v204_v40 }
  0x96   : >> { %v237_v44 = vpop.permute.xlu0 %236  ;;  %v250_v48 = vmul.f32 %v248_v43, %v242_v36  ;;  %v297_v2 = vmul.f32 %v296_v54, %v248_v43 }
  0x97   : >> { %v243_v49 = vmul.f32 %v242_v36, %v237_v44 }
  0x98   : >> { %v251_v61 = vadd.f32 %v250_v48, %v228_v52 }
  0x99   : >> { %v244_v55 = vadd.f32 %v243_v49, %v221_v46  ;;  %v285_v56 = vpop.permute.xlu1 %284 }
  0x9a   : >> { %v268_v58 = vpop.permute.xlu0 %267  ;;  %v287_v4 = vmul.f32 %v285_v56, %v279_v47  ;;  %v334_v13 = vmul.f32 %v333_v1, %v285_v56 }
  0x9b   : >> { %v264_v62 = vadd.f32 %v263_v53, %v244_v55  ;;  %v270_v63 = vmul.f32 %v268_v58, %v262_v39  ;;  %v317_v10 = vmul.f32 %v316_v57, %v268_v58 }
  0x9d   : >> { %v281_v3 = vadd.f32 %v280_v60, %v264_v62  ;;  %v271_v5 = vadd.f32 %v270_v63, %v251_v61  ;;  %v322_v6 = vpop.permute.xlu1 %321 }
  0x9e   : >> { %v302_v8 = vpop.permute.xlu0 %301  ;;  %v324_v15 = vmul.f32 %v322_v6, %v316_v57 }
  0x9f   : >> { %v298_v9 = vadd.f32 %v297_v2, %v281_v3  ;;  %v288_v11 = vadd.f32 %v287_v4, %v271_v5  ;;  %v304_v12 = vmul.f32 %v302_v8, %v296_v54  ;;  %v351_v21 = vmul.f32 %v350_v7, %v302_v8 }
  0xa1   : >> { %v318_v14 = vadd.f32 %v317_v10, %v298_v9  ;;  %v305_v16 = vadd.f32 %v304_v12, %v288_v11  ;;  %v356_v17 = vpop.permute.xlu1 %355 }
  0xa2   : >> { %v339_v19 = vpop.permute.xlu0 %338  ;;  %v358_v25 = vmul.f32 %v356_v17, %v350_v7 }
  0xa3   : >> { %v335_v20 = vadd.f32 %v334_v13, %v318_v14  ;;  %v325_v22 = vadd.f32 %v324_v15, %v305_v16  ;;  %v341_v23 = vmul.f32 %v339_v19, %v333_v1 }
  0xa5   : >> { %v352_v24 = vadd.f32 %v351_v21, %v335_v20  ;;  %v342_v18 = vadd.f32 %v341_v23, %v325_v22 }
  0xa7   : >> { %v366_v26 = vadd.f32 %v561_v0, %v352_v24  ;;  %v359_v27 = vadd.f32 %v358_v25, %v342_v18 }
  0xa9   : >> { %v368_v28 = vadd.f32 %v561_v0, %v359_v27  ;;  %v367_v29 = vmax.f32 %v366_v26, 0.0 }
  0xab   : >> { %v369_v30 = vmax.f32 %v368_v28, 0.0  ;;  %176 = sbr.rel (!%p174_p4) target bundleno = 15 (0xf), region = 82 }
  0xad   : >> { %v370_v31 = vmax.f32 %v367_v29, %v369_v30 }
  0xaf   : >> { %374 = vst.msk [vmem:[%s372_s21] sm:$0xff] %vm373_vm0, %v370_v31 }
  0xb0 PF: > { %s13_s12 = sadd.s32 1, %s523_s12  }
  0xb1   : > { %p10_p5 = scmp.ge.s32.totalorder %s13_s12, 4  }
  0xb3   :  { %12 = sbr.rel (!%p10_p5) target bundleno = 1 (0x1), region = 93 }

// kernel: multiscale_crnn_forward.12
= control target key start
LH: loop header
LB: loop body
LE: loop exit
PB: predicated region body
PF: predicated region fallthrough
CT: control target
= control target key end

     0   :  { %s1923_s12 = smov 0   ;;  %s2231_s0 = inlined_call_operand.vmem [shape: f32[2,18,10,64], index: 0, kind: input, shape index: {}]   ;;  %s2232_s1 = inlined_call_operand.vmem [shape: bf16[9,64,128], index: 1, kind: input, shape index: {}]   ;;  %s2233_s2 = inlined_call_operand.vmem [shape: f32[1,128], index: 2, kind: input, shape index: {}]   ;;  %s2234_s3 = inlined_call_operand.vmem [shape: f32[2,8,8,128], index: 3, kind: output, shape index: {}]  }
   0x1 LB: > { %s1372_s13 = sadd.s32 4294967295, %s1895_s12   ;;  %p1376_p0 = scmp.ge.s32.totalorder %s1895_s12, 1  ;;  %s1895_s12 = sphi %s1923_s12, %s13_s12  }
   0x2   : > { %p137_p1 = scmp.lt.s32.totalorder %s1895_s12, 3 }
   0x4   : > { %p138_p2 = pnand %p1376_p0, %p137_p1 }
   0x5   : > { %p161_p3 = scmp.lt.s32.totalorder (!%p138_p2), %s1372_s13, 1  ;;  %s1946_s24 = smov (!%p138_p2), 0  }
   0x6   : > { %141 = sbr.rel (%p138_p2) target bundleno = 363 (0x16b), region = 32 }
   0xb   : > { %v1934_v0 = vld [vmem:[%s2233_s2] ss:$0 sm:$0xff]  ;;  %s2236_s13 = smov (!%p161_p3, %s1372_s13), 1 }
   0xc   : > { %s1830_s16 = smul.u32 288, %s2236_s13  ;;  %s1519_s17 = sshll.u32 %s2236_s13, 6 }
   0xd   : > { %s1939_s20 = scalar_lea.vmem %s2234_s3, %s1519_s17 }
   0xe   : > { %s1944_s23 = scalar_lea.vmem %s2231_s0, %s1830_s16 }
   0xf LB: >> { %v1849_v1 = vld [vmem:[%s2232_s1 + $0x38] sm:$0xff]   ;;  %v1901_v2 = vmov 0.0   ;;  %v1851_v4 = vld [vmem:[%s2232_s1 + $0x30] sm:$0xff]   ;;  %vm1902_vm0 = vmmov 0   ;;  %s1520_s6 = sshll.u32 %s1899_s24, 5  ;;  %v1853_v6 = vld [vmem:[%s2232_s1 + $0x28] sm:$0xff]   ;;  %s1899_s24 = sphi %s1946_s24, %s178_s24  }
  0x10   : >> { %1614 = vmatprep.subr.bf16.mxu0 %v1901_v2  ;;  %1626 = vmatprep.subr.bf16.mxu1 %v1901_v2  ;;  %v1850_v3 = vld [vmem:[%s2232_s1 + $0x18] sm:$0xff]   ;;  %v1852_v5 = vld [vmem:[%s2232_s1 + $0x10] sm:$0xff]   ;;  %v1854_v7 = vld [vmem:[%s2232_s1 + $0x8] sm:$0xff]   ;;  %s1980_s11 = scalar_lea.vmem %s1944_s23, %s1520_s6  ;;  %vm233_vm1 = vcmask 523264  }
  0x11   : >> { %1615 = vmatpush3.bf16.msra.mxu0 %v1849_v1  ;;  %1622 = vmatprep.mubr.msk.bf16.mxu0 %vm1902_vm0, %v1901_v2  ;;  %v1855_v8 = vld [vmem:[%s2232_s1 + $0x20] sm:$0xff]   ;;  %v1393_v14 = vld [vmem:[%s1980_s11 + $0x11] sm:$0xff]  ;;  %v1859_v20 = vld [vmem:[%s2232_s1 + $0x48] sm:$0xff]  }
  0x12   : >> { %1627 = vmatpush3.bf16.msra.mxu1 %v1850_v3  ;;  %1616 = vmatprep.subr.bf16.mxu0 %v1901_v2  ;;  %v1856_v9 = vld [vmem:[%s2232_s1] sm:$0xff]   ;;  %v1384_v15 = vld [vmem:[%s1980_s11 + $0x10] sm:$0xff]  ;;  %v2009_v16 = vpack.c.bf16 %v1393_v14, %v1393_v14  ;;  %v1857_v18 = vld [vmem:[%s2232_s1 + $0x58] sm:$0xff]  }
  0x13   : >> { %1628 = vmatprep.subr.bf16.mxu1 %v1901_v2  ;;  %1634 = vmatprep.mubr.msk.bf16.mxu1 %vm1902_vm0, %v1901_v2  ;;  %v206_v10 = vld [vmem:[%s1980_s11 + $0x1] sm:$0xff]  ;;  %v196_v17 = vpack.c.bf16 %v1384_v15, %v1384_v15  ;;  %v1858_v19 = vld [vmem:[%s2232_s1 + $0x50] sm:$0xff]   ;;  %v1861_v26 = vld [vmem:[%s2232_s1 + $0x78] sm:$0xff]  }
  0x14   : >> { %v191_v11 = vld [vmem:[%s1980_s11] sm:$0xff]  ;;  %v208_v12 = vpack.c.bf16 %v206_v10, %v206_v10  ;;  %v1414_v23 = vld [vmem:[%s1980_s11 + $0x12] sm:$0xff]  ;;  %v1863_v28 = vld [vmem:[%s2232_s1 + $0x68] sm:$0xff]  }
  0x15   : >> { %1617 = vmatpush3.bf16.msra.mxu0 %v1851_v4  ;;  %v195_v13 = vpack.c.bf16 %v191_v11, %v191_v11  ;;  %v1860_v21 = vld [vmem:[%s2232_s1 + $0x40] sm:$0xff]   ;;  %v2040_v25 = vpack.c.bf16 %v1414_v23, %v1414_v23  ;;  %v1862_v27 = vld [vmem:[%s2232_s1 + $0x70] sm:$0xff]   ;;  %v1865_v32 = vld [vmem:[%s2232_s1 + $0x98] sm:$0xff]  }
  0x16   : >> { %1629 = vmatpush3.bf16.msra.mxu1 %v1852_v5  ;;  %1618 = vmatprep.subr.bf16.mxu0 %v1901_v2  ;;  %v440_v22 = vld [vmem:[%s1980_s11 + $0x2] sm:$0xff]  ;;  %v1866_v33 = vld [vmem:[%s2232_s1 + $0x90] sm:$0xff]   ;;  %v1869_v38 = vld [vmem:[%s2232_s1 + $0xb8] sm:$0xff]  }
  0x17   : >> { %1630 = vmatprep.subr.bf16.mxu1 %v1901_v2  ;;  %v442_v24 = vpack.c.bf16 %v440_v22, %v440_v22  ;;  %v1864_v29 = vld [vmem:[%s2232_s1 + $0x60] sm:$0xff]   ;;  %v1867_v34 = vld [vmem:[%s2232_s1 + $0x88] sm:$0xff]   ;;  %v1870_v39 = vld [vmem:[%s2232_s1 + $0xb0] sm:$0xff]  }
  0x18   : >> { %v1431_v30 = vld [vmem:[%s1980_s11 + $0x20] sm:$0xff]  ;;  %v1871_v40 = vld [vmem:[%s2232_s1 + $0xa8] sm:$0xff]   ;;  %v1873_v44 = vld [vmem:[%s2232_s1 + $0xd8] sm:$0xff]  }
  0x19   : >> { %1619 = vmatpush3.bf16.msra.mxu0 %v1853_v6  ;;  %v2070_v31 = vpack.c.bf16 %v1431_v30, %v1431_v30  ;;  %v1868_v35 = vld [vmem:[%s2232_s1 + $0x80] sm:$0xff]   ;;  %v1874_v45 = vld [vmem:[%s2232_s1 + $0xd0] sm:$0xff]   ;;  %v1875_v46 = vld [vmem:[%s2232_s1 + $0xc8] sm:$0xff]  }
  0x1a   : >> { %1631 = vmatpush3.bf16.msra.mxu1 %v1854_v7  ;;  %1620 = vmatprep.subr.bf16.mxu0 %v1901_v2  ;;  %v1446_v36 = vld [vmem:[%s1980_s11 + $0x21] sm:$0xff]  ;;  %v1478_v48 = vld [vmem:[%s1980_s11 + $0x30] sm:$0xff]  ;;  %v1877_v50 = vld [vmem:[%s2232_s1 + $0xf8] sm:$0xff]  }
  0x1b   : >> { %1632 = vmatprep.subr.bf16.mxu1 %v1901_v2  ;;  %v2100_v37 = vpack.c.bf16 %v1446_v36, %v1446_v36  ;;  %v1872_v41 = vld [vmem:[%s2232_s1 + $0xa0] sm:$0xff]   ;;  %v997_v49 = vpack.c.bf16 %v1478_v48, %v1478_v48  ;;  %v1878_v51 = vld [vmem:[%s2232_s1 + $0xf0] sm:$0xff]   ;;  %v1879_v52 = vld [vmem:[%s2232_s1 + $0xe8] sm:$0xff]  }
  0x1c   : >> { %v1461_v42 = vld [vmem:[%s1980_s11 + $0x22] sm:$0xff]  ;;  %v1493_v54 = vld [vmem:[%s1980_s11 + $0x31] sm:$0xff] }
  0x1d   : >> { %1621 = vmatpush3.bf16.msra.mxu0 %v1855_v8  ;;  %v2131_v43 = vpack.c.bf16 %v1461_v42, %v1461_v42  ;;  %v1876_v47 = vld [vmem:[%s2232_s1 + $0xc0] sm:$0xff]   ;;  %v1117_v55 = vpack.c.bf16 %v1493_v54, %v1493_v54  ;;  %v1881_v56 = vld [vmem:[%s2232_s1 + $0x118] sm:$0xff]   ;;  %v1882_v57 = vld [vmem:[%s2232_s1 + $0x110] sm:$0xff]  }
  0x1e   : >> { %1633 = vmatpush3.bf16.msra.mxu1 %v1856_v9  ;;  %1638 = vmatprep.subr.bf16.mxu0 %v1901_v2  ;;  %v1880_v53 = vld [vmem:[%s2232_s1 + $0xe0] sm:$0xff]   ;;  %v1883_v58 = vld [vmem:[%s2232_s1 + $0x108] sm:$0xff]   ;;  %v1508_v60 = vld [vmem:[%s1980_s11 + $0x32] sm:$0xff]  ;;  %s1516_s11 = sshll.u32 %s1899_s24, 3  ;;  %s178_s24 = sadd.s32 1, %s1899_s24  }
  0x1f   : >> { %1650 = vmatprep.subr.bf16.mxu1 %v1901_v2  ;;  %v1884_v59 = vld [vmem:[%s2232_s1 + $0x100] sm:$0xff]   ;;  %v1237_v61 = vpack.c.bf16 %v1508_v60, %v1508_v60  ;;  %s1294_s5 = scalar_lea.vmem %s1939_s20, %s1516_s11  ;;  %p175_p4 = scmp.ge.s32.totalorder %s178_s24, 8  }
  0x20   : >> { %1623 = vmatmul.mubr.msk.bf16.vlgmr.msra.gmra.mxu0 %vm233_vm1, %v208_v12 }
  0x21   : >> { %1635 = vmatmul.mubr.msk.bf16.vlgmr.msra.gmra.mxu1 %vm233_vm1, %v195_v13  ;;  %1639 = vmatpush3.bf16.msra.mxu0 %v1849_v1 }
  0x22   : >> { %1651 = vmatpush3.bf16.msra.mxu1 %v1850_v3  ;;  %1640 = vmatprep.subr.bf16.mxu0 %v1901_v2 }
  0x23   : >> { %1652 = vmatprep.subr.bf16.mxu1 %v1901_v2  ;;  %1646 = vmatprep.mubr.msk.bf16.mxu0 %vm1902_vm0, %v1901_v2 }
  0x24   : >> { %1658 = vmatprep.mubr.msk.bf16.mxu1 %vm1902_vm0, %v1901_v2 }
  0x25   : >> { %1641 = vmatpush3.bf16.msra.mxu0 %v1851_v4 }
  0x26   : >> { %1653 = vmatpush3.bf16.msra.mxu1 %v1852_v5  ;;  %1642 = vmatprep.subr.bf16.mxu0 %v1901_v2 }
  0x27   : >> { %1654 = vmatprep.subr.bf16.mxu1 %v1901_v2 }
  0x29   : >> { %1643 = vmatpush3.bf16.msra.mxu0 %v1853_v6 }
  0x2a   : >> { %1655 = vmatpush3.bf16.msra.mxu1 %v1854_v7  ;;  %1644 = vmatprep.subr.bf16.mxu0 %v1901_v2 }
  0x2b   : >> { %1656 = vmatprep.subr.bf16.mxu1 %v1901_v2 }
  0x2d   : >> { %1645 = vmatpush3.bf16.msra.mxu0 %v1855_v8 }
  0x2e   : >> { %1657 = vmatpush3.bf16.msra.mxu1 %v1856_v9  ;;  %1662 = vmatprep.subr.bf16.mxu0 %v1901_v2 }
  0x2f   : >> { %1674 = vmatprep.subr.bf16.mxu1 %v1901_v2 }
  0x30   : >> { %1647 = vmatmul.mubr.msk.bf16.vlgmr.msra.gmra.mxu0 %vm233_vm1, %v2009_v16 }
  0x31   : >> { %1659 = vmatmul.mubr.msk.bf16.vlgmr.msra.gmra.mxu1 %vm233_vm1, %v196_v17  ;;  %1663 = vmatpush3.bf16.msra.mxu0 %v1857_v18 }
  0x32   : >> { %1675 = vmatpush3.bf16.msra.mxu1 %v1857_v18  ;;  %1664 = vmatprep.subr.bf16.mxu0 %v1901_v2 }
  0x33   : >> { %1676 = vmatprep.subr.bf16.mxu1 %v1901_v2  ;;  %1670 = vmatprep.mubr.msk.bf16.mxu0 %vm1902_vm0, %v1901_v2 }
  0x34   : >> { %1682 = vmatprep.mubr.msk.bf16.mxu1 %vm1902_vm0, %v1901_v2 }
  0x35   : >> { %1665 = vmatpush3.bf16.msra.mxu0 %v1858_v19 }
  0x36   : >> { %1677 = vmatpush3.bf16.msra.mxu1 %v1858_v19  ;;  %1666 = vmatprep.subr.bf16.mxu0 %v1901_v2 }
  0x37   : >> { %1678 = vmatprep.subr.bf16.mxu1 %v1901_v2 }
  0x39   : >> { %1667 = vmatpush3.bf16.msra.mxu0 %v1859_v20 }
  0x3a   : >> { %1679 = vmatpush3.bf16.msra.mxu1 %v1859_v20  ;;  %1668 = vmatprep.subr.bf16.mxu0 %v1901_v2 }
  0x3b   : >> { %1680 = vmatprep.subr.bf16.mxu1 %v1901_v2 }
  0x3d   : >> { %1669 = vmatpush3.bf16.msra.mxu0 %v1860_v21 }
  0x3e   : >> { %1681 = vmatpush3.bf16.msra.mxu1 %v1860_v21  ;;  %1686 = vmatprep.subr.bf16.mxu0 %v1901_v2 }
  0x3f   : >> { %1698 = vmatprep.subr.bf16.mxu1 %v1901_v2 }
  0x40   : >> { %1671 = vmatmul.mubr.msk.bf16.vlgmr.msra.gmra.mxu0 %vm233_vm1, %v442_v24 }
  0x41   : >> { %1683 = vmatmul.mubr.msk.bf16.vlgmr.msra.gmra.mxu1 %vm233_vm1, %v2040_v25  ;;  %1687 = vmatpush3.bf16.msra.mxu0 %v1861_v26 }
  0x42   : >> { %1699 = vmatpush3.bf16.msra.mxu1 %v1861_v26  ;;  %1688 = vmatprep.subr.bf16.mxu0 %v1901_v2 }
  0x43   : >> { %1700 = vmatprep.subr.bf16.mxu1 %v1901_v2  ;;  %1694 = vmatprep.mubr.msk.bf16.mxu0 %vm1902_vm0, %v1901_v2 }
  0x44   : >> { %1706 = vmatprep.mubr.msk.bf16.mxu1 %vm1902_vm0, %v1901_v2 }
  0x45   : >> { %1689 = vmatpush3.bf16.msra.mxu0 %v1862_v27 }
  0x46   : >> { %1701 = vmatpush3.bf16.msra.mxu1 %v1862_v27  ;;  %1690 = vmatprep.subr.bf16.mxu0 %v1901_v2 }
  0x47   : >> { %1702 = vmatprep.subr.bf16.mxu1 %v1901_v2 }
  0x49   : >> { %1691 = vmatpush3.bf16.msra.mxu0 %v1863_v28 }
  0x4a   : >> { %1703 = vmatpush3.bf16.msra.mxu1 %v1863_v28  ;;  %1692 = vmatprep.subr.bf16.mxu0 %v1901_v2 }
  0x4b   : >> { %1704 = vmatprep.subr.bf16.mxu1 %v1901_v2 }
  0x4d   : >> { %1693 = vmatpush3.bf16.msra.mxu0 %v1864_v29 }
  0x4e   : >> { %1705 = vmatpush3.bf16.msra.mxu1 %v1864_v29  ;;  %1710 = vmatprep.subr.bf16.mxu0 %v1901_v2 }
  0x4f   : >> { %1722 = vmatprep.subr.bf16.mxu1 %v1901_v2 }
  0x50   : >> { %1695 = vmatmul.mubr.msk.bf16.vlgmr.msra.gmra.mxu0 %vm233_vm1, %v196_v17 }
  0x51   : >> { %1707 = vmatmul.mubr.msk.bf16.vlgmr.msra.gmra.mxu1 %vm233_vm1, %v2070_v31  ;;  %1711 = vmatpush3.bf16.msra.mxu0 %v1865_v32 }
  0x52   : >> { %1723 = vmatpush3.bf16.msra.mxu1 %v1865_v32  ;;  %1712 = vmatprep.subr.bf16.mxu0 %v1901_v2 }
  0x53   : >> { %1724 = vmatprep.subr.bf16.mxu1 %v1901_v2  ;;  %1718 = vmatprep.mubr.msk.bf16.mxu0 %vm1902_vm0, %v1901_v2 }
  0x54   : >> { %1730 = vmatprep.mubr.msk.bf16.mxu1 %vm1902_vm0, %v1901_v2 }
  0x55   : >> { %1713 = vmatpush3.bf16.msra.mxu0 %v1866_v33 }
  0x56   : >> { %1725 = vmatpush3.bf16.msra.mxu1 %v1866_v33  ;;  %1714 = vmatprep.subr.bf16.mxu0 %v1901_v2 }
  0x57   : >> { %1726 = vmatprep.subr.bf16.mxu1 %v1901_v2 }
  0x59   : >> { %1715 = vmatpush3.bf16.msra.mxu0 %v1867_v34 }
  0x5a   : >> { %1727 = vmatpush3.bf16.msra.mxu1 %v1867_v34  ;;  %1716 = vmatprep.subr.bf16.mxu0 %v1901_v2 }
  0x5b   : >> { %1728 = vmatprep.subr.bf16.mxu1 %v1901_v2 }
  0x5d   : >> { %1717 = vmatpush3.bf16.msra.mxu0 %v1868_v35 }
  0x5e   : >> { %1729 = vmatpush3.bf16.msra.mxu1 %v1868_v35  ;;  %1734 = vmatprep.subr.bf16.mxu0 %v1901_v2 }
  0x5f   : >> { %1746 = vmatprep.subr.bf16.mxu1 %v1901_v2 }
  0x60   : >> { %1719 = vmatmul.mubr.msk.bf16.vlgmr.msra.gmra.mxu0 %vm233_vm1, %v2009_v16 }
  0x61   : >> { %1731 = vmatmul.mubr.msk.bf16.vlgmr.msra.gmra.mxu1 %vm233_vm1, %v2100_v37  ;;  %1735 = vmatpush3.bf16.msra.mxu0 %v1869_v38 }
  0x62   : >> { %1747 = vmatpush3.bf16.msra.mxu1 %v1869_v38  ;;  %1736 = vmatprep.subr.bf16.mxu0 %v1901_v2 }
  0x63   : >> { %1748 = vmatprep.subr.bf16.mxu1 %v1901_v2  ;;  %1742 = vmatprep.mubr.msk.bf16.mxu0 %vm1902_vm0, %v1901_v2 }
  0x64   : >> { %1754 = vmatprep.mubr.msk.bf16.mxu1 %vm1902_vm0, %v1901_v2 }
  0x65   : >> { %1737 = vmatpush3.bf16.msra.mxu0 %v1870_v39 }
  0x66   : >> { %1749 = vmatpush3.bf16.msra.mxu1 %v1870_v39  ;;  %1738 = vmatprep.subr.bf16.mxu0 %v1901_v2 }
  0x67   : >> { %1750 = vmatprep.subr.bf16.mxu1 %v1901_v2 }
  0x69   : >> { %1739 = vmatpush3.bf16.msra.mxu0 %v1871_v40 }
  0x6a   : >> { %1751 = vmatpush3.bf16.msra.mxu1 %v1871_v40  ;;  %1740 = vmatprep.subr.bf16.mxu0 %v1901_v2 }
  0x6b   : >> { %1752 = vmatprep.subr.bf16.mxu1 %v1901_v2 }
  0x6d   : >> { %1741 = vmatpush3.bf16.msra.mxu0 %v1872_v41 }
  0x6e   : >> { %1753 = vmatpush3.bf16.msra.mxu1 %v1872_v41  ;;  %1758 = vmatprep.subr.bf16.mxu0 %v1901_v2 }
  0x6f   : >> { %1770 = vmatprep.subr.bf16.mxu1 %v1901_v2 }
  0x70   : >> { %1743 = vmatmul.mubr.msk.bf16.vlgmr.msra.gmra.mxu0 %vm233_vm1, %v2040_v25 }
  0x71   : >> { %1755 = vmatmul.mubr.msk.bf16.vlgmr.msra.gmra.mxu1 %vm233_vm1, %v2131_v43  ;;  %1759 = vmatpush3.bf16.msra.mxu0 %v1873_v44 }
  0x72   : >> { %1771 = vmatpush3.bf16.msra.mxu1 %v1873_v44  ;;  %1760 = vmatprep.subr.bf16.mxu0 %v1901_v2 }
  0x73   : >> { %1772 = vmatprep.subr.bf16.mxu1 %v1901_v2  ;;  %1766 = vmatprep.mubr.msk.bf16.mxu0 %vm1902_vm0, %v1901_v2 }
  0x74   : >> { %1778 = vmatprep.mubr.msk.bf16.mxu1 %vm1902_vm0, %v1901_v2 }
  0x75   : >> { %1761 = vmatpush3.bf16.msra.mxu0 %v1874_v45 }
  0x76   : >> { %1773 = vmatpush3.bf16.msra.mxu1 %v1874_v45  ;;  %1762 = vmatprep.subr.bf16.mxu0 %v1901_v2 }
  0x77   : >> { %1774 = vmatprep.subr.bf16.mxu1 %v1901_v2 }
  0x79   : >> { %1763 = vmatpush3.bf16.msra.mxu0 %v1875_v46 }
  0x7a   : >> { %1775 = vmatpush3.bf16.msra.mxu1 %v1875_v46  ;;  %1764 = vmatprep.subr.bf16.mxu0 %v1901_v2 }
  0x7b   : >> { %1776 = vmatprep.subr.bf16.mxu1 %v1901_v2 }
  0x7d   : >> { %1765 = vmatpush3.bf16.msra.mxu0 %v1876_v47 }
  0x7e   : >> { %1777 = vmatpush3.bf16.msra.mxu1 %v1876_v47  ;;  %1782 = vmatprep.subr.bf16.mxu0 %v1901_v2 }
  0x7f   : >> { %1794 = vmatprep.subr.bf16.mxu1 %v1901_v2 }
  0x80   : >> { %1767 = vmatmul.mubr.msk.bf16.vlgmr.msra.gmra.mxu0 %vm233_vm1, %v2070_v31 }
  0x81   : >> { %1779 = vmatmul.mubr.msk.bf16.vlgmr.msra.gmra.mxu1 %vm233_vm1, %v997_v49  ;;  %1783 = vmatpush3.bf16.msra.mxu0 %v1877_v50 }
  0x82   : >> { %1795 = vmatpush3.bf16.msra.mxu1 %v1877_v50  ;;  %1784 = vmatprep.subr.bf16.mxu0 %v1901_v2 }
  0x83   : >> { %1796 = vmatprep.subr.bf16.mxu1 %v1901_v2  ;;  %1790 = vmatprep.mubr.msk.bf16.mxu0 %vm1902_vm0, %v1901_v2 }
  0x84   : >> { %1802 = vmatprep.mubr.msk.bf16.mxu1 %vm1902_vm0, %v1901_v2 }
  0x85   : >> { %1785 = vmatpush3.bf16.msra.mxu0 %v1878_v51 }
  0x86   : >> { %1797 = vmatpush3.bf16.msra.mxu1 %v1878_v51  ;;  %1786 = vmatprep.subr.bf16.mxu0 %v1901_v2 }
  0x87   : >> { %1798 = vmatprep.subr.bf16.mxu1 %v1901_v2 }
  0x89   : >> { %1787 = vmatpush3.bf16.msra.mxu0 %v1879_v52 }
  0x8a   : >> { %1799 = vmatpush3.bf16.msra.mxu1 %v1879_v52  ;;  %1788 = vmatprep.subr.bf16.mxu0 %v1901_v2 }
  0x8b   : >> { %1800 = vmatprep.subr.bf16.mxu1 %v1901_v2 }
  0x8d   : >> { %1789 = vmatpush3.bf16.msra.mxu0 %v1880_v53 }
  0x8e   : >> { %1801 = vmatpush3.bf16.msra.mxu1 %v1880_v53  ;;  %1806 = vmatprep.subr.bf16.mxu0 %v1901_v2 }
  0x8f   : >> { %1818 = vmatprep.subr.bf16.mxu1 %v1901_v2 }
  0x90   : >> { %1791 = vmatmul.mubr.msk.bf16.vlgmr.msra.gmra.mxu0 %vm233_vm1, %v2100_v37 }
  0x91   : >> { %1803 = vmatmul.mubr.msk.bf16.vlgmr.msra.gmra.mxu1 %vm233_vm1, %v1117_v55  ;;  %1807 = vmatpush3.bf16.msra.mxu0 %v1881_v56 }
  0x92   : >> { %1819 = vmatpush3.bf16.msra.mxu1 %v1881_v56  ;;  %1808 = vmatprep.subr.bf16.mxu0 %v1901_v2 }
  0x93   : >> { %1820 = vmatprep.subr.bf16.mxu1 %v1901_v2  ;;  %1814 = vmatprep.mubr.msk.bf16.mxu0 %vm1902_vm0, %v1901_v2 }
  0x94   : >> { %1826 = vmatprep.mubr.msk.bf16.mxu1 %vm1902_vm0, %v1901_v2 }
  0x95   : >> { %1809 = vmatpush3.bf16.msra.mxu0 %v1882_v57 }
  0x96   : >> { %1821 = vmatpush3.bf16.msra.mxu1 %v1882_v57  ;;  %1810 = vmatprep.subr.bf16.mxu0 %v1901_v2 }
  0x97   : >> { %1822 = vmatprep.subr.bf16.mxu1 %v1901_v2 }
  0x99   : >> { %1811 = vmatpush3.bf16.msra.mxu0 %v1883_v58 }
  0x9a   : >> { %1823 = vmatpush3.bf16.msra.mxu1 %v1883_v58  ;;  %1812 = vmatprep.subr.bf16.mxu0 %v1901_v2 }
  0x9b   : >> { %1824 = vmatprep.subr.bf16.mxu1 %v1901_v2 }
  0x9d   : >> { %1813 = vmatpush3.bf16.msra.mxu0 %v1884_v59 }
  0x9e   : >> { %1825 = vmatpush3.bf16.msra.mxu1 %v1884_v59 }
  0xa0   : >> { %1815 = vmatmul.mubr.msk.bf16.vlgmr.msra.gmra.mxu0 %vm233_vm1, %v2131_v43 }
  0xa1   : >> { %1827 = vmatmul.mubr.msk.bf16.vlgmr.msra.gmra.mxu1 %vm233_vm1, %v1237_v61 }
  0xe0   : >> { %v271_v62 = vpop.f32.mrf.mxu0 }
  0xe1   : >> { %v338_v63 = vpop.f32.mrf.mxu1 }
  0xe2   : >> { %v339_v1 = vadd.f32 %v338_v63, %v271_v62  ;;  %v1624_v3 = vpop.f32.mrf.mxu0 }
  0xe3   : >> { %v1636_v4 = vpop.f32.mrf.mxu1 }
  0xe4   : >> { %v274_v5 = vpop.f32.mrf.mxu0 }
  0xe5   : >> { %v341_v6 = vpop.f32.mrf.mxu1 }
  0xe6   : >> { %v1625_v7 = vpop.f32.mrf.mxu0 }
  0xe7   : >> { %v1637_v8 = vpop.f32.mrf.mxu1 }
  0xf0   : >> { %v382_v9 = vpop.f32.mrf.mxu0 }
  0xf1   : >> { %v425_v10 = vpop.f32.mrf.mxu1 }
  0xf2   : >> { %v426_v2 = vadd.f32 %v425_v10, %v382_v9  ;;  %v1648_v11 = vpop.f32.mrf.mxu0 }
  0xf3   : >> { %v1660_v12 = vpop.f32.mrf.mxu1 }
  0xf4   : >> { %v385_v13 = vpop.f32.mrf.mxu0 }
  0xf5   : >> { %v428_v14 = vpop.f32.mrf.mxu1 }
  0xf6   : >> { %v1649_v15 = vpop.f32.mrf.mxu0 }
  0xf7   : >> { %v1661_v16 = vpop.f32.mrf.mxu1 }
 0x100   : >> { %v504_v17 = vpop.f32.mrf.mxu0 }
 0x101   : >> { %v510_v18 = vadd.f32 %v504_v17, %v339_v1  ;;  %v549_v19 = vpop.f32.mrf.mxu1 }
 0x102   : >> { %v555_v20 = vadd.f32 %v549_v19, %v426_v2  ;;  %v1672_v21 = vpop.f32.mrf.mxu0 }
 0x103   : >> { %v1684_v22 = vpop.f32.mrf.mxu1 }
 0x104   : >> { %v507_v23 = vpop.f32.mrf.mxu0 }
 0x105   : >> { %v552_v24 = vpop.f32.mrf.mxu1 }
 0x106   : >> { %v1673_v25 = vpop.f32.mrf.mxu0 }
 0x107   : >> { %v1685_v26 = vpop.f32.mrf.mxu1 }
 0x110   : >> { %v627_v27 = vpop.f32.mrf.mxu0 }
 0x111   : >> { %v633_v28 = vadd.f32 %v627_v27, %v510_v18  ;;  %v672_v29 = vpop.f32.mrf.mxu1 }
 0x112   : >> { %v678_v30 = vadd.f32 %v672_v29, %v555_v20  ;;  %v1696_v31 = vpop.f32.mrf.mxu0 }
 0x113   : >> { %v1708_v32 = vpop.f32.mrf.mxu1 }
 0x114   : >> { %v630_v33 = vpop.f32.mrf.mxu0 }
 0x115   : >> { %v675_v34 = vpop.f32.mrf.mxu1 }
 0x116   : >> { %v1697_v35 = vpop.f32.mrf.mxu0 }
 0x117   : >> { %v1709_v36 = vpop.f32.mrf.mxu1 }
 0x120   : >> { %v747_v37 = vpop.f32.mrf.mxu0 }
 0x121   : >> { %v792_v38 = vpop.f32.mrf.mxu1  ;;  %v753_v7 = vadd.f32 %v747_v37, %v633_v28 }
 0x122   : >> { %v1720_v39 = vpop.f32.mrf.mxu0  ;;  %v798_v8 = vadd.f32 %v792_v38, %v678_v30 }
 0x123   : >> { %v1732_v40 = vpop.f32.mrf.mxu1 }
 0x124   : >> { %v750_v41 = vpop.f32.mrf.mxu0 }
 0x125   : >> { %v795_v42 = vpop.f32.mrf.mxu1 }
 0x126   : >> { %v1721_v43 = vpop.f32.mrf.mxu0 }
 0x127   : >> { %v1733_v44 = vpop.f32.mrf.mxu1 }
 0x130   : >> { %v867_v45 = vpop.f32.mrf.mxu0 }
 0x131   : >> { %v912_v46 = vpop.f32.mrf.mxu1  ;;  %v873_v9 = vadd.f32 %v867_v45, %v753_v7 }
 0x132   : >> { %v1744_v47 = vpop.f32.mrf.mxu0  ;;  %v918_v10 = vadd.f32 %v912_v46, %v798_v8 }
 0x133   : >> { %v1756_v48 = vpop.f32.mrf.mxu1 }
 0x134   : >> { %v870_v49 = vpop.f32.mrf.mxu0 }
 0x135   : >> { %v915_v50 = vpop.f32.mrf.mxu1 }
 0x136   : >> { %v1745_v51 = vpop.f32.mrf.mxu0 }
 0x137   : >> { %v1757_v52 = vpop.f32.mrf.mxu1 }
 0x140   : >> { %v990_v53 = vpop.f32.mrf.mxu0 }
 0x141   : >> { %v1035_v54 = vpop.f32.mrf.mxu1  ;;  %v996_v2 = vadd.f32 %v990_v53, %v873_v9 }
 0x142   : >> { %v1768_v55 = vpop.f32.mrf.mxu0  ;;  %v1041_v11 = vadd.f32 %v1035_v54, %v918_v10 }
 0x143   : >> { %v1780_v56 = vpop.f32.mrf.mxu1 }
 0x144   : >> { %v993_v57 = vpop.f32.mrf.mxu0 }
 0x145   : >> { %v1038_v58 = vpop.f32.mrf.mxu1 }
 0x146   : >> { %v1769_v59 = vpop.f32.mrf.mxu0 }
 0x147   : >> { %v1781_v60 = vpop.f32.mrf.mxu1 }
 0x150   : >> { %v1110_v61 = vpop.f32.mrf.mxu0 }
 0x151   : >> { %v1155_v62 = vpop.f32.mrf.mxu1  ;;  %v1116_v12 = vadd.f32 %v1110_v61, %v996_v2 }
 0x152   : >> { %v1792_v63 = vpop.f32.mrf.mxu0  ;;  %v1161_v13 = vadd.f32 %v1155_v62, %v1041_v11 }
 0x153   : >> { %v1804_v1 = vpop.f32.mrf.mxu1 }
 0x154   : >> { %v1113_v3 = vpop.f32.mrf.mxu0 }
 0x155   : >> { %v1158_v4 = vpop.f32.mrf.mxu1 }
 0x156   : >> { %v1793_v5 = vpop.f32.mrf.mxu0 }
 0x157   : >> { %v1805_v6 = vpop.f32.mrf.mxu1 }
 0x160   : >> { %v1230_v14 = vpop.f32.mrf.mxu0 }
 0x161   : >> { %v1236_v15 = vadd.f32 %v1230_v14, %v1116_v12  ;;  %v1275_v16 = vpop.f32.mrf.mxu1 }
 0x162   : >> { %v1281_v17 = vadd.f32 %v1275_v16, %v1161_v13  ;;  %v1816_v18 = vpop.f32.mrf.mxu0 }
 0x163   : >> { %v1288_v19 = vadd.f32 %v1934_v0, %v1236_v15  ;;  %v1828_v20 = vpop.f32.mrf.mxu1 }
 0x164   : >> { %v1290_v21 = vadd.f32 %v1934_v0, %v1281_v17  ;;  %v1233_v22 = vpop.f32.mrf.mxu0 }
 0x165   : >> { %v1289_v23 = vmax.f32 %v1288_v19, 0.0  ;;  %v1278_v24 = vpop.f32.mrf.mxu1 }
 0x166   : >> { %v1291_v25 = vmax.f32 %v1290_v21, 0.0  ;;  %v1817_v26 = vpop.f32.mrf.mxu0  ;;  %177 = sbr.rel (!%p175_p4) target bundleno = 15 (0xf), region = 82 }
 0x167   : >> { %v1829_v27 = vpop.f32.mrf.mxu1 }
 0x168   : >> { %v1292_v28 = vmax.f32 %v1289_v23, %v1291_v25 }
 0x16a   : >> { %1295 = vst [vmem:[%s1294_s5] sm:$0xff] %v1292_v28 }
 0x16b PF: > { %s13_s12 = sadd.s32 1, %s1895_s12  }
 0x16c   : > { %p10_p5 = scmp.ge.s32.totalorder %s13_s12, 4  }
 0x16e   :  { %12 = sbr.rel (!%p10_p5) target bundleno = 1 (0x1), region = 93 }

// kernel: multiscale_crnn_forward.13
= control target key start
LH: loop header
LB: loop body
LE: loop exit
PB: predicated region body
PF: predicated region fallthrough
CT: control target
= control target key end

     0   :  { %s2531_s12 = smov 0   ;;  %s3125_s0 = inlined_call_operand.vmem [shape: f32[2,10,10,128], index: 0, kind: input, shape index: {}]   ;;  %s3126_s1 = inlined_call_operand.vmem [shape: bf16[9,128,256], index: 1, kind: input, shape index: {}]   ;;  %s3127_s2 = inlined_call_operand.vmem [shape: f32[1,256], index: 2, kind: input, shape index: {}]   ;;  %s3128_s3 = inlined_call_operand.vmem [shape: f32[2,4,8,256], index: 3, kind: output, shape index: {}]  }
   0x1 LB: > { %s1954_s13 = sadd.s32 4294967295, %s2504_s12   ;;  %p1958_p0 = scmp.ge.s32.totalorder %s2504_s12, 1  ;;  %s2504_s12 = sphi %s2531_s12, %s13_s12  }
   0x2   : > { %p137_p1 = scmp.lt.s32.totalorder %s2504_s12, 3 }
   0x4   : > { %p138_p2 = pnand %p1958_p0, %p137_p1 }
   0x5   : > { %p161_p3 = scmp.lt.s32.totalorder (!%p138_p2), %s1954_s13, 1  ;;  %s2554_s24 = smov (!%p138_p2), 0  }
   0x6   : > { %141 = sbr.rel (%p138_p2) target bundleno = 509 (0x1fd), region = 32 }
   0xb   : > { %v2542_v0 = vld [vmem:[%s3127_s2] sm:$0x3]  ;;  %s3130_s13 = smov (!%p161_p3, %s1954_s13), 1 }
   0xc   : > { %s2260_s16 = smul.u32 160, %s3130_s13  ;;  %s2254_s17 = sshll.u32 %s3130_s13, 6 }
   0xd   : > { %s2547_s20 = scalar_lea.vmem %s3128_s3, %s2254_s17 }
   0xe   : > { %s2552_s23 = scalar_lea.vmem %s3125_s0, %s2260_s16 }
   0xf LB: >> { %v2562_v1 = vld [vmem:[%s3126_s1 + $0xf4] ss:$8 sps:$4 sm:$0xff]   ;;  %v2510_v3 = vmov 0   ;;  %v2575_v4 = vld [vmem:[%s3126_s1 + $0xf0] ss:$8 sps:$4 sm:$0xff]   ;;  %s2255_s4 = sshll.u32 %s2508_s24, 5  ;;  %s2508_s24 = sphi %s2554_s24, %s178_s24  }
  0x10   : >> { %v2567_v2 = vld [vmem:[%s3126_s1 + $0x74] ss:$8 sps:$4 sm:$0xff]   ;;  %337 = vmatprep.mubr.bf16.mxu0 %v2510_v3  ;;  %458 = vmatprep.mubr.bf16.mxu1 %v2510_v3  ;;  %v2580_v5 = vld [vmem:[%s3126_s1 + $0x70] ss:$8 sps:$4 sm:$0xff]   ;;  %v2586_v6 = vld [vmem:[%s3126_s1 + $0xe4] ss:$8 sps:$4 sm:$0xff]   ;;  %s2695_s11 = scalar_lea.vmem %s2552_s23, %s2255_s4 }
  0x11   : >> { %305 = vmatprep.subr.bf16.mxu0 %v2562_v1  ;;  %426 = vmatprep.subr.bf16.mxu1 %v2567_v2  ;;  %v2593_v7 = vld [vmem:[%s3126_s1 + $0x64] ss:$8 sps:$4 sm:$0xff]   ;;  %v2598_v8 = vld [vmem:[%s3126_s1 + $0xe0] ss:$8 sps:$4 sm:$0xff]   ;;  %v2610_v10 = vld [vmem:[%s3126_s1 + $0xd4] ss:$8 sps:$4 sm:$0xff]  }
  0x12   : >> { %306 = vmatpush1.bf16.msra.mxu0 %v2575_v4  ;;  %427 = vmatpush1.bf16.msra.mxu1 %v2580_v5  ;;  %v2604_v9 = vld [vmem:[%s3126_s1 + $0x60] ss:$8 sps:$4 sm:$0xff]   ;;  %v2615_v11 = vld [vmem:[%s3126_s1 + $0x54] ss:$8 sps:$4 sm:$0xff]   ;;  %v2620_v12 = vld [vmem:[%s3126_s1 + $0xd0] ss:$8 sps:$4 sm:$0xff]  }
  0x13   : >> { %307 = vmatprep.subr.bf16.mxu0 %v2586_v6  ;;  %428 = vmatprep.subr.bf16.mxu1 %v2593_v7  ;;  %v2625_v13 = vld [vmem:[%s3126_s1 + $0x50] ss:$8 sps:$4 sm:$0xff]   ;;  %v2632_v14 = vld [vmem:[%s3126_s1 + $0xc4] ss:$8 sps:$4 sm:$0xff]   ;;  %v2644_v16 = vld [vmem:[%s3126_s1 + $0xc0] ss:$8 sps:$4 sm:$0xff]  }
  0x14   : >> { %v2639_v15 = vld [vmem:[%s3126_s1 + $0x44] ss:$8 sps:$4 sm:$0xff]   ;;  %v2301_v17 = vld [vmem:[%s3126_s1 + $0x40] ss:$8 sps:$4 sm:$0xff]   ;;  %v2302_v18 = vld [vmem:[%s3126_s1 + $0xb4] ss:$8 sps:$4 sm:$0xff]  }
  0x15   : >> { %v2304_v19 = vld [vmem:[%s3126_s1 + $0x34] ss:$8 sps:$4 sm:$0xff]   ;;  %v2306_v20 = vld [vmem:[%s3126_s1 + $0xb0] ss:$8 sps:$4 sm:$0xff]   ;;  %v2308_v22 = vld [vmem:[%s3126_s1 + $0xa4] ss:$8 sps:$4 sm:$0xff]  }
  0x16   : >> { %308 = vmatpush1.bf16.msra.mxu0 %v2598_v8  ;;  %429 = vmatpush1.bf16.msra.mxu1 %v2604_v9  ;;  %v2307_v21 = vld [vmem:[%s3126_s1 + $0x30] ss:$8 sps:$4 sm:$0xff]   ;;  %v2310_v23 = vld [vmem:[%s3126_s1 + $0x24] ss:$8 sps:$4 sm:$0xff]   ;;  %v2312_v24 = vld [vmem:[%s3126_s1 + $0xa0] ss:$8 sps:$4 sm:$0xff]  }
  0x17   : >> { %309 = vmatprep.subr.bf16.mxu0 %v2610_v10  ;;  %430 = vmatprep.subr.bf16.mxu1 %v2615_v11  ;;  %v2313_v25 = vld [vmem:[%s3126_s1 + $0x20] ss:$8 sps:$4 sm:$0xff]   ;;  %v2314_v26 = vld [vmem:[%s3126_s1 + $0x94] ss:$8 sps:$4 sm:$0xff]   ;;  %v2318_v28 = vld [vmem:[%s3126_s1 + $0x90] ss:$8 sps:$4 sm:$0xff]  }
  0x18   : >> { %v2316_v27 = vld [vmem:[%s3126_s1 + $0x14] ss:$8 sps:$4 sm:$0xff]   ;;  %v2319_v29 = vld [vmem:[%s3126_s1 + $0x10] ss:$8 sps:$4 sm:$0xff]   ;;  %v2320_v30 = vld [vmem:[%s3126_s1 + $0x84] ss:$8 sps:$4 sm:$0xff]  }
  0x19   : >> { %v2322_v31 = vld [vmem:[%s3126_s1 + $0x4] ss:$8 sps:$4 sm:$0xff]   ;;  %v2324_v32 = vld [vmem:[%s3126_s1 + $0x80] ss:$8 sps:$4 sm:$0xff]   ;;  %v1983_v38 = vld [vmem:[%s2695_s11 + $0x11] sm:$0xff] }
  0x1a   : >> { %310 = vmatpush1.bf16.msra.mxu0 %v2620_v12  ;;  %431 = vmatpush1.bf16.msra.mxu1 %v2625_v13  ;;  %v2325_v33 = vld [vmem:[%s3126_s1] ss:$8 sps:$4 sm:$0xff]   ;;  %v1966_v39 = vld [vmem:[%s2695_s11 + $0x10] sm:$0xff]  ;;  %v2730_v41 = vpack.c.bf16 %v1983_v38, %v1983_v38  ;;  %v2331_v44 = vld [vmem:[%s3126_s1 + $0x164] ss:$8 sps:$4 sm:$0xff]  }
  0x1b   : >> { %311 = vmatprep.subr.bf16.mxu0 %v2632_v14  ;;  %432 = vmatprep.subr.bf16.mxu1 %v2639_v15  ;;  %v222_v34 = vld [vmem:[%s2695_s11 + $0x1] sm:$0xff]  ;;  %v2328_v40 = vld [vmem:[%s3126_s1 + $0x174] ss:$8 sps:$4 sm:$0xff]   ;;  %v2732_v42 = vpack.c.bf16 %v1966_v39, %v1966_v39  ;;  %v2326_v43 = vld [vmem:[%s3126_s1 + $0x170] ss:$8 sps:$4 sm:$0xff]  }
  0x1c   : >> { %v199_v35 = vld [vmem:[%s2695_s11] sm:$0xff]  ;;  %v224_v36 = vpack.c.bf16 %v222_v34, %v222_v34  ;;  %v2334_v46 = vld [vmem:[%s3126_s1 + $0x154] ss:$8 sps:$4 sm:$0xff]   ;;  %v2332_v47 = vld [vmem:[%s3126_s1 + $0x150] ss:$8 sps:$4 sm:$0xff]  }
  0x1d   : >> { %v203_v37 = vpack.c.bf16 %v199_v35, %v199_v35  ;;  %v2329_v45 = vld [vmem:[%s3126_s1 + $0x160] ss:$8 sps:$4 sm:$0xff]   ;;  %v2337_v48 = vld [vmem:[%s3126_s1 + $0x144] ss:$8 sps:$4 sm:$0xff]   ;;  %v2340_v50 = vld [vmem:[%s3126_s1 + $0x134] ss:$8 sps:$4 sm:$0xff]  }
  0x1e   : >> { %312 = vmatpush1.bf16.msra.mxu0 %v2644_v16  ;;  %433 = vmatpush1.bf16.msra.mxu1 %v2301_v17  ;;  %v2335_v49 = vld [vmem:[%s3126_s1 + $0x140] ss:$8 sps:$4 sm:$0xff]   ;;  %v2338_v51 = vld [vmem:[%s3126_s1 + $0x130] ss:$8 sps:$4 sm:$0xff]   ;;  %v2343_v52 = vld [vmem:[%s3126_s1 + $0x124] ss:$8 sps:$4 sm:$0xff]  }
  0x1f   : >> { %313 = vmatprep.subr.bf16.mxu0 %v2302_v18  ;;  %434 = vmatprep.subr.bf16.mxu1 %v2304_v19  ;;  %v2341_v53 = vld [vmem:[%s3126_s1 + $0x120] ss:$8 sps:$4 sm:$0xff]   ;;  %v2346_v54 = vld [vmem:[%s3126_s1 + $0x114] ss:$8 sps:$4 sm:$0xff]   ;;  %v2344_v55 = vld [vmem:[%s3126_s1 + $0x110] ss:$8 sps:$4 sm:$0xff]  }
  0x20   : >> { %v2349_v56 = vld [vmem:[%s3126_s1 + $0x104] ss:$8 sps:$4 sm:$0xff]   ;;  %v2347_v57 = vld [vmem:[%s3126_s1 + $0x100] ss:$8 sps:$4 sm:$0xff]   ;;  %v2032_v59 = vld [vmem:[%s2695_s11 + $0x12] sm:$0xff] }
  0x21   : >> { %v567_v58 = vld [vmem:[%s2695_s11 + $0x2] sm:$0xff]  ;;  %v2352_v60 = vld [vmem:[%s3126_s1 + $0x1f4] ss:$8 sps:$4 sm:$0xff]   ;;  %v2788_v62 = vpack.c.bf16 %v2032_v59, %v2032_v59  ;;  %v2350_v63 = vld [vmem:[%s3126_s1 + $0x1f0] ss:$8 sps:$4 sm:$0xff]  }
  0x22   : >> { %314 = vmatpush1.bf16.msra.mxu0 %v2306_v20  ;;  %435 = vmatpush1.bf16.msra.mxu1 %v2307_v21  ;;  %v569_v61 = vpack.c.bf16 %v567_v58, %v567_v58  ;;  %v2100_v34 = vld [vmem:[%s2695_s11 + $0x21] sm:$0xff]  ;;  %v2400_v35 = vld [vmem:[%s3126_s1 + $0x2f4] ss:$8 sps:$4 sm:$0xff]   ;;  %v2428_v59 = vld [vmem:[%s3126_s1 + $0x350] ss:$8 sps:$4 sm:$0xff]  }
  0x23   : >> { %315 = vmatprep.subr.bf16.mxu0 %v2308_v22  ;;  %436 = vmatprep.subr.bf16.mxu1 %v2310_v23  ;;  %v2403_v38 = vld [vmem:[%s3126_s1 + $0x2e4] ss:$8 sps:$4 sm:$0xff]   ;;  %v2401_v39 = vld [vmem:[%s3126_s1 + $0x2e0] ss:$8 sps:$4 sm:$0xff]   ;;  %v2430_v58 = vld [vmem:[%s3126_s1 + $0x354] ss:$8 sps:$4 sm:$0xff]  }
  0x26   : >> { %316 = vmatpush1.bf16.msra.mxu0 %v2312_v24  ;;  %437 = vmatpush1.bf16.msra.mxu1 %v2313_v25 }
  0x27   : >> { %317 = vmatprep.subr.bf16.mxu0 %v2314_v26  ;;  %438 = vmatprep.subr.bf16.mxu1 %v2316_v27 }
  0x2a   : >> { %318 = vmatpush1.bf16.msra.mxu0 %v2318_v28  ;;  %439 = vmatpush1.bf16.msra.mxu1 %v2319_v29 }
  0x2b   : >> { %319 = vmatprep.subr.bf16.mxu0 %v2320_v30  ;;  %440 = vmatprep.subr.bf16.mxu1 %v2322_v31 }
  0x2e   : >> { %320 = vmatpush1.bf16.msra.mxu0 %v2324_v32  ;;  %441 = vmatpush1.bf16.msra.mxu1 %v2325_v33 }
  0x2f   : >> { %468 = vmatprep.subr.bf16.mxu0 %v2562_v1  ;;  %509 = vmatprep.subr.bf16.mxu1 %v2567_v2  ;;  %v2355_v1 = vld [vmem:[%s3126_s1 + $0x1e4] ss:$8 sps:$4 sm:$0xff]   ;;  %v2353_v2 = vld [vmem:[%s3126_s1 + $0x1e0] ss:$8 sps:$4 sm:$0xff]  }
  0x31   : >> { %338 = vmatmul.mubr.bf16.vlgmr.msra.gmra.mxu0 %v224_v36  ;;  %459 = vmatmul.mubr.bf16.vlgmr.msra.gmra.mxu1 %v203_v37  ;;  %v2897_v36 = vpack.c.bf16 %v2100_v34, %v2100_v34  ;;  %v2398_v37 = vld [vmem:[%s3126_s1 + $0x2f0] ss:$8 sps:$4 sm:$0xff]   ;;  %v2469_v34 = vld [vmem:[%s3126_s1 + $0x384] ss:$8 sps:$4 sm:$0xff]  }
  0x32   : >> { %469 = vmatpush1.bf16.msra.mxu0 %v2575_v4  ;;  %510 = vmatpush1.bf16.msra.mxu1 %v2580_v5  ;;  %v2358_v4 = vld [vmem:[%s3126_s1 + $0x1d4] ss:$8 sps:$4 sm:$0xff]   ;;  %v2356_v5 = vld [vmem:[%s3126_s1 + $0x1d0] ss:$8 sps:$4 sm:$0xff]  }
  0x33   : >> { %470 = vmatprep.subr.bf16.mxu0 %v2586_v6  ;;  %511 = vmatprep.subr.bf16.mxu1 %v2593_v7  ;;  %v2361_v6 = vld [vmem:[%s3126_s1 + $0x1c4] ss:$8 sps:$4 sm:$0xff]   ;;  %v2359_v7 = vld [vmem:[%s3126_s1 + $0x1c0] ss:$8 sps:$4 sm:$0xff]  }
  0x34   : >> { %500 = vmatprep.mubr.bf16.mxu0 %v2510_v3  ;;  %541 = vmatprep.mubr.bf16.mxu1 %v2510_v3 }
  0x36   : >> { %471 = vmatpush1.bf16.msra.mxu0 %v2598_v8  ;;  %512 = vmatpush1.bf16.msra.mxu1 %v2604_v9  ;;  %v2364_v8 = vld [vmem:[%s3126_s1 + $0x1b4] ss:$8 sps:$4 sm:$0xff]   ;;  %v2362_v9 = vld [vmem:[%s3126_s1 + $0x1b0] ss:$8 sps:$4 sm:$0xff]  }
  0x37   : >> { %472 = vmatprep.subr.bf16.mxu0 %v2610_v10  ;;  %513 = vmatprep.subr.bf16.mxu1 %v2615_v11  ;;  %v2367_v10 = vld [vmem:[%s3126_s1 + $0x1a4] ss:$8 sps:$4 sm:$0xff]   ;;  %v2365_v11 = vld [vmem:[%s3126_s1 + $0x1a0] ss:$8 sps:$4 sm:$0xff]  }
  0x3a   : >> { %473 = vmatpush1.bf16.msra.mxu0 %v2620_v12  ;;  %514 = vmatpush1.bf16.msra.mxu1 %v2625_v13  ;;  %v2370_v12 = vld [vmem:[%s3126_s1 + $0x194] ss:$8 sps:$4 sm:$0xff]   ;;  %v2368_v13 = vld [vmem:[%s3126_s1 + $0x190] ss:$8 sps:$4 sm:$0xff]  }
  0x3b   : >> { %474 = vmatprep.subr.bf16.mxu0 %v2632_v14  ;;  %515 = vmatprep.subr.bf16.mxu1 %v2639_v15  ;;  %v2373_v14 = vld [vmem:[%s3126_s1 + $0x184] ss:$8 sps:$4 sm:$0xff]   ;;  %v2371_v15 = vld [vmem:[%s3126_s1 + $0x180] ss:$8 sps:$4 sm:$0xff]  }
  0x3e   : >> { %475 = vmatpush1.bf16.msra.mxu0 %v2644_v16  ;;  %516 = vmatpush1.bf16.msra.mxu1 %v2301_v17  ;;  %v2067_v16 = vld [vmem:[%s2695_s11 + $0x20] sm:$0xff]  ;;  %v2376_v17 = vld [vmem:[%s3126_s1 + $0x274] ss:$8 sps:$4 sm:$0xff]  }
  0x3f   : >> { %476 = vmatprep.subr.bf16.mxu0 %v2302_v18  ;;  %517 = vmatprep.subr.bf16.mxu1 %v2304_v19  ;;  %v2842_v18 = vpack.c.bf16 %v2067_v16, %v2067_v16  ;;  %v2374_v19 = vld [vmem:[%s3126_s1 + $0x270] ss:$8 sps:$4 sm:$0xff]   ;;  %v2449_v16 = vld [vmem:[%s3126_s1 + $0x3e0] ss:$8 sps:$4 sm:$0xff]  }
  0x42   : >> { %477 = vmatpush1.bf16.msra.mxu0 %v2306_v20  ;;  %518 = vmatpush1.bf16.msra.mxu1 %v2307_v21  ;;  %v2379_v20 = vld [vmem:[%s3126_s1 + $0x264] ss:$8 sps:$4 sm:$0xff]   ;;  %v2377_v21 = vld [vmem:[%s3126_s1 + $0x260] ss:$8 sps:$4 sm:$0xff]  }
  0x43   : >> { %478 = vmatprep.subr.bf16.mxu0 %v2308_v22  ;;  %519 = vmatprep.subr.bf16.mxu1 %v2310_v23  ;;  %v2382_v22 = vld [vmem:[%s3126_s1 + $0x254] ss:$8 sps:$4 sm:$0xff]   ;;  %v2380_v23 = vld [vmem:[%s3126_s1 + $0x250] ss:$8 sps:$4 sm:$0xff]  }
  0x46   : >> { %479 = vmatpush1.bf16.msra.mxu0 %v2312_v24  ;;  %520 = vmatpush1.bf16.msra.mxu1 %v2313_v25  ;;  %v2385_v24 = vld [vmem:[%s3126_s1 + $0x244] ss:$8 sps:$4 sm:$0xff]   ;;  %v2383_v25 = vld [vmem:[%s3126_s1 + $0x240] ss:$8 sps:$4 sm:$0xff]  }
  0x47   : >> { %480 = vmatprep.subr.bf16.mxu0 %v2314_v26  ;;  %521 = vmatprep.subr.bf16.mxu1 %v2316_v27  ;;  %v2388_v26 = vld [vmem:[%s3126_s1 + $0x234] ss:$8 sps:$4 sm:$0xff]   ;;  %v2386_v27 = vld [vmem:[%s3126_s1 + $0x230] ss:$8 sps:$4 sm:$0xff]  }
  0x4a   : >> { %481 = vmatpush1.bf16.msra.mxu0 %v2318_v28  ;;  %522 = vmatpush1.bf16.msra.mxu1 %v2319_v29  ;;  %v2391_v28 = vld [vmem:[%s3126_s1 + $0x224] ss:$8 sps:$4 sm:$0xff]   ;;  %v2389_v29 = vld [vmem:[%s3126_s1 + $0x220] ss:$8 sps:$4 sm:$0xff]  }
  0x4b   : >> { %482 = vmatprep.subr.bf16.mxu0 %v2320_v30  ;;  %523 = vmatprep.subr.bf16.mxu1 %v2322_v31  ;;  %v2394_v30 = vld [vmem:[%s3126_s1 + $0x214] ss:$8 sps:$4 sm:$0xff]   ;;  %v2392_v31 = vld [vmem:[%s3126_s1 + $0x210] ss:$8 sps:$4 sm:$0xff]  }
  0x4e   : >> { %483 = vmatpush1.bf16.msra.mxu0 %v2324_v32  ;;  %524 = vmatpush1.bf16.msra.mxu1 %v2325_v33  ;;  %v2397_v32 = vld [vmem:[%s3126_s1 + $0x204] ss:$8 sps:$4 sm:$0xff]   ;;  %v2395_v33 = vld [vmem:[%s3126_s1 + $0x200] ss:$8 sps:$4 sm:$0xff]  }
  0x4f   : >> { %650 = vmatprep.subr.bf16.mxu0 %v2328_v40  ;;  %694 = vmatprep.subr.bf16.mxu1 %v2328_v40  ;;  %v2406_v40 = vld [vmem:[%s3126_s1 + $0x2d4] ss:$8 sps:$4 sm:$0xff]  }
  0x51   : >> { %501 = vmatmul.mubr.bf16.vlgmr.msra.gmra.mxu0 %v2730_v41  ;;  %542 = vmatmul.mubr.bf16.vlgmr.msra.gmra.mxu1 %v2732_v42 }
  0x52   : >> { %651 = vmatpush1.bf16.msra.mxu0 %v2326_v43  ;;  %695 = vmatpush1.bf16.msra.mxu1 %v2326_v43  ;;  %v2407_v43 = vld [vmem:[%s3126_s1 + $0x2c0] ss:$8 sps:$4 sm:$0xff]  }
  0x53   : >> { %652 = vmatprep.subr.bf16.mxu0 %v2331_v44  ;;  %696 = vmatprep.subr.bf16.mxu1 %v2331_v44  ;;  %v2412_v44 = vld [vmem:[%s3126_s1 + $0x2b4] ss:$8 sps:$4 sm:$0xff]  }
  0x54   : >> { %682 = vmatprep.mubr.bf16.mxu0 %v2510_v3  ;;  %726 = vmatprep.mubr.bf16.mxu1 %v2510_v3 }
  0x56   : >> { %653 = vmatpush1.bf16.msra.mxu0 %v2329_v45  ;;  %697 = vmatpush1.bf16.msra.mxu1 %v2329_v45  ;;  %v2410_v45 = vld [vmem:[%s3126_s1 + $0x2b0] ss:$8 sps:$4 sm:$0xff]  }
  0x57   : >> { %654 = vmatprep.subr.bf16.mxu0 %v2334_v46  ;;  %698 = vmatprep.subr.bf16.mxu1 %v2334_v46  ;;  %v2415_v46 = vld [vmem:[%s3126_s1 + $0x2a4] ss:$8 sps:$4 sm:$0xff]  }
  0x5a   : >> { %655 = vmatpush1.bf16.msra.mxu0 %v2332_v47  ;;  %699 = vmatpush1.bf16.msra.mxu1 %v2332_v47  ;;  %v2413_v47 = vld [vmem:[%s3126_s1 + $0x2a0] ss:$8 sps:$4 sm:$0xff]  }
  0x5b   : >> { %656 = vmatprep.subr.bf16.mxu0 %v2337_v48  ;;  %700 = vmatprep.subr.bf16.mxu1 %v2337_v48  ;;  %v2418_v48 = vld [vmem:[%s3126_s1 + $0x294] ss:$8 sps:$4 sm:$0xff]  }
  0x5e   : >> { %657 = vmatpush1.bf16.msra.mxu0 %v2335_v49  ;;  %701 = vmatpush1.bf16.msra.mxu1 %v2335_v49  ;;  %v2416_v49 = vld [vmem:[%s3126_s1 + $0x290] ss:$8 sps:$4 sm:$0xff]  }
  0x5f   : >> { %658 = vmatprep.subr.bf16.mxu0 %v2340_v50  ;;  %702 = vmatprep.subr.bf16.mxu1 %v2340_v50  ;;  %v2421_v50 = vld [vmem:[%s3126_s1 + $0x284] ss:$8 sps:$4 sm:$0xff]  }
  0x62   : >> { %659 = vmatpush1.bf16.msra.mxu0 %v2338_v51  ;;  %703 = vmatpush1.bf16.msra.mxu1 %v2338_v51  ;;  %v2419_v51 = vld [vmem:[%s3126_s1 + $0x280] ss:$8 sps:$4 sm:$0xff]  }
  0x63   : >> { %660 = vmatprep.subr.bf16.mxu0 %v2343_v52  ;;  %704 = vmatprep.subr.bf16.mxu1 %v2343_v52  ;;  %v2133_v52 = vld [vmem:[%s2695_s11 + $0x22] sm:$0xff] }
  0x66   : >> { %661 = vmatpush1.bf16.msra.mxu0 %v2341_v53  ;;  %705 = vmatpush1.bf16.msra.mxu1 %v2341_v53  ;;  %v2424_v53 = vld [vmem:[%s3126_s1 + $0x374] ss:$8 sps:$4 sm:$0xff]  }
  0x67   : >> { %662 = vmatprep.subr.bf16.mxu0 %v2346_v54  ;;  %706 = vmatprep.subr.bf16.mxu1 %v2346_v54  ;;  %v2952_v54 = vpack.c.bf16 %v2133_v52, %v2133_v52 }
  0x6a   : >> { %663 = vmatpush1.bf16.msra.mxu0 %v2344_v55  ;;  %707 = vmatpush1.bf16.msra.mxu1 %v2344_v55  ;;  %v2422_v55 = vld [vmem:[%s3126_s1 + $0x370] ss:$8 sps:$4 sm:$0xff]  }
  0x6b   : >> { %664 = vmatprep.subr.bf16.mxu0 %v2349_v56  ;;  %708 = vmatprep.subr.bf16.mxu1 %v2349_v56  ;;  %v2427_v56 = vld [vmem:[%s3126_s1 + $0x364] ss:$8 sps:$4 sm:$0xff]  }
  0x6e   : >> { %665 = vmatpush1.bf16.msra.mxu0 %v2347_v57  ;;  %709 = vmatpush1.bf16.msra.mxu1 %v2347_v57  ;;  %v2425_v57 = vld [vmem:[%s3126_s1 + $0x360] ss:$8 sps:$4 sm:$0xff]  }
  0x6f   : >> { %838 = vmatprep.subr.bf16.mxu0 %v2352_v60  ;;  %882 = vmatprep.subr.bf16.mxu1 %v2352_v60  ;;  %v2433_v60 = vld [vmem:[%s3126_s1 + $0x344] ss:$8 sps:$4 sm:$0xff]  }
  0x71   : >> { %683 = vmatmul.mubr.bf16.vlgmr.msra.gmra.mxu0 %v569_v61  ;;  %727 = vmatmul.mubr.bf16.vlgmr.msra.gmra.mxu1 %v2788_v62  ;;  %v2431_v61 = vld [vmem:[%s3126_s1 + $0x340] ss:$8 sps:$4 sm:$0xff]  }
  0x72   : >> { %839 = vmatpush1.bf16.msra.mxu0 %v2350_v63  ;;  %883 = vmatpush1.bf16.msra.mxu1 %v2350_v63  ;;  %v2434_v63 = vld [vmem:[%s3126_s1 + $0x330] ss:$8 sps:$4 sm:$0xff]  }
  0x73   : >> { %840 = vmatprep.subr.bf16.mxu0 %v2355_v1  ;;  %884 = vmatprep.subr.bf16.mxu1 %v2355_v1  ;;  %v2439_v1 = vld [vmem:[%s3126_s1 + $0x324] ss:$8 sps:$4 sm:$0xff]  }
  0x74   : >> { %870 = vmatprep.mubr.bf16.mxu0 %v2510_v3  ;;  %914 = vmatprep.mubr.bf16.mxu1 %v2510_v3 }
  0x76   : >> { %841 = vmatpush1.bf16.msra.mxu0 %v2353_v2  ;;  %885 = vmatpush1.bf16.msra.mxu1 %v2353_v2  ;;  %v2437_v2 = vld [vmem:[%s3126_s1 + $0x320] ss:$8 sps:$4 sm:$0xff]  }
  0x77   : >> { %842 = vmatprep.subr.bf16.mxu0 %v2358_v4  ;;  %886 = vmatprep.subr.bf16.mxu1 %v2358_v4  ;;  %v2442_v4 = vld [vmem:[%s3126_s1 + $0x314] ss:$8 sps:$4 sm:$0xff]  }
  0x7a   : >> { %843 = vmatpush1.bf16.msra.mxu0 %v2356_v5  ;;  %887 = vmatpush1.bf16.msra.mxu1 %v2356_v5  ;;  %v2440_v5 = vld [vmem:[%s3126_s1 + $0x310] ss:$8 sps:$4 sm:$0xff]  }
  0x7b   : >> { %844 = vmatprep.subr.bf16.mxu0 %v2361_v6  ;;  %888 = vmatprep.subr.bf16.mxu1 %v2361_v6  ;;  %v2445_v6 = vld [vmem:[%s3126_s1 + $0x304] ss:$8 sps:$4 sm:$0xff]  }
  0x7e   : >> { %845 = vmatpush1.bf16.msra.mxu0 %v2359_v7  ;;  %889 = vmatpush1.bf16.msra.mxu1 %v2359_v7  ;;  %v2443_v7 = vld [vmem:[%s3126_s1 + $0x300] ss:$8 sps:$4 sm:$0xff]  }
  0x7f   : >> { %846 = vmatprep.subr.bf16.mxu0 %v2364_v8  ;;  %890 = vmatprep.subr.bf16.mxu1 %v2364_v8  ;;  %v2168_v8 = vld [vmem:[%s2695_s11 + $0x30] sm:$0xff] }
  0x82   : >> { %847 = vmatpush1.bf16.msra.mxu0 %v2362_v9  ;;  %891 = vmatpush1.bf16.msra.mxu1 %v2362_v9  ;;  %v2448_v9 = vld [vmem:[%s3126_s1 + $0x3f4] ss:$8 sps:$4 sm:$0xff]  }
  0x83   : >> { %848 = vmatprep.subr.bf16.mxu0 %v2367_v10  ;;  %892 = vmatprep.subr.bf16.mxu1 %v2367_v10  ;;  %v1439_v10 = vpack.c.bf16 %v2168_v8, %v2168_v8 }
  0x86   : >> { %849 = vmatpush1.bf16.msra.mxu0 %v2365_v11  ;;  %893 = vmatpush1.bf16.msra.mxu1 %v2365_v11  ;;  %v2446_v11 = vld [vmem:[%s3126_s1 + $0x3f0] ss:$8 sps:$4 sm:$0xff]  }
  0x87   : >> { %850 = vmatprep.subr.bf16.mxu0 %v2370_v12  ;;  %894 = vmatprep.subr.bf16.mxu1 %v2370_v12  ;;  %v2451_v12 = vld [vmem:[%s3126_s1 + $0x3e4] ss:$8 sps:$4 sm:$0xff]  }
  0x8a   : >> { %851 = vmatpush1.bf16.msra.mxu0 %v2368_v13  ;;  %895 = vmatpush1.bf16.msra.mxu1 %v2368_v13 }
  0x8b   : >> { %852 = vmatprep.subr.bf16.mxu0 %v2373_v14  ;;  %896 = vmatprep.subr.bf16.mxu1 %v2373_v14 }
  0x8e   : >> { %853 = vmatpush1.bf16.msra.mxu0 %v2371_v15  ;;  %897 = vmatpush1.bf16.msra.mxu1 %v2371_v15 }
  0x8f   : >> { %1023 = vmatprep.subr.bf16.mxu0 %v2376_v17  ;;  %1067 = vmatprep.subr.bf16.mxu1 %v2376_v17 }
  0x91   : >> { %871 = vmatmul.mubr.bf16.vlgmr.msra.gmra.mxu0 %v2732_v42  ;;  %915 = vmatmul.mubr.bf16.vlgmr.msra.gmra.mxu1 %v2842_v18  ;;  %v2409_v42 = vld [vmem:[%s3126_s1 + $0x2c4] ss:$8 sps:$4 sm:$0xff]  }
  0x92   : >> { %1024 = vmatpush1.bf16.msra.mxu0 %v2374_v19  ;;  %1068 = vmatpush1.bf16.msra.mxu1 %v2374_v19 }
  0x93   : >> { %1025 = vmatprep.subr.bf16.mxu0 %v2379_v20  ;;  %1069 = vmatprep.subr.bf16.mxu1 %v2379_v20  ;;  %v2454_v20 = vld [vmem:[%s3126_s1 + $0x3d4] ss:$8 sps:$4 sm:$0xff]  }
  0x94   : >> { %1055 = vmatprep.mubr.bf16.mxu0 %v2510_v3  ;;  %1099 = vmatprep.mubr.bf16.mxu1 %v2510_v3 }
  0x96   : >> { %1026 = vmatpush1.bf16.msra.mxu0 %v2377_v21  ;;  %1070 = vmatpush1.bf16.msra.mxu1 %v2377_v21 }
  0x97   : >> { %1027 = vmatprep.subr.bf16.mxu0 %v2382_v22  ;;  %1071 = vmatprep.subr.bf16.mxu1 %v2382_v22 }
  0x9a   : >> { %1028 = vmatpush1.bf16.msra.mxu0 %v2380_v23  ;;  %1072 = vmatpush1.bf16.msra.mxu1 %v2380_v23  ;;  %v2452_v23 = vld [vmem:[%s3126_s1 + $0x3d0] ss:$8 sps:$4 sm:$0xff]  }
  0x9b   : >> { %1029 = vmatprep.subr.bf16.mxu0 %v2385_v24  ;;  %1073 = vmatprep.subr.bf16.mxu1 %v2385_v24 }
  0x9e   : >> { %1030 = vmatpush1.bf16.msra.mxu0 %v2383_v25  ;;  %1074 = vmatpush1.bf16.msra.mxu1 %v2383_v25 }
  0x9f   : >> { %1031 = vmatprep.subr.bf16.mxu0 %v2388_v26  ;;  %1075 = vmatprep.subr.bf16.mxu1 %v2388_v26  ;;  %v2457_v26 = vld [vmem:[%s3126_s1 + $0x3c4] ss:$8 sps:$4 sm:$0xff]  }
  0xa2   : >> { %1032 = vmatpush1.bf16.msra.mxu0 %v2386_v27  ;;  %1076 = vmatpush1.bf16.msra.mxu1 %v2386_v27  ;;  %v2455_v27 = vld [vmem:[%s3126_s1 + $0x3c0] ss:$8 sps:$4 sm:$0xff]  }
  0xa3   : >> { %1033 = vmatprep.subr.bf16.mxu0 %v2391_v28  ;;  %1077 = vmatprep.subr.bf16.mxu1 %v2391_v28  ;;  %v2460_v28 = vld [vmem:[%s3126_s1 + $0x3b4] ss:$8 sps:$4 sm:$0xff]  }
  0xa6   : >> { %1034 = vmatpush1.bf16.msra.mxu0 %v2389_v29  ;;  %1078 = vmatpush1.bf16.msra.mxu1 %v2389_v29  ;;  %v2458_v29 = vld [vmem:[%s3126_s1 + $0x3b0] ss:$8 sps:$4 sm:$0xff]  }
  0xa7   : >> { %1035 = vmatprep.subr.bf16.mxu0 %v2394_v30  ;;  %1079 = vmatprep.subr.bf16.mxu1 %v2394_v30  ;;  %v2463_v30 = vld [vmem:[%s3126_s1 + $0x3a4] ss:$8 sps:$4 sm:$0xff]  }
  0xaa   : >> { %1036 = vmatpush1.bf16.msra.mxu0 %v2392_v31  ;;  %1080 = vmatpush1.bf16.msra.mxu1 %v2392_v31  ;;  %v2461_v31 = vld [vmem:[%s3126_s1 + $0x3a0] ss:$8 sps:$4 sm:$0xff]  }
  0xab   : >> { %1037 = vmatprep.subr.bf16.mxu0 %v2397_v32  ;;  %1081 = vmatprep.subr.bf16.mxu1 %v2397_v32  ;;  %v2466_v32 = vld [vmem:[%s3126_s1 + $0x394] ss:$8 sps:$4 sm:$0xff]  }
  0xae   : >> { %1038 = vmatpush1.bf16.msra.mxu0 %v2395_v33  ;;  %1082 = vmatpush1.bf16.msra.mxu1 %v2395_v33  ;;  %v2464_v33 = vld [vmem:[%s3126_s1 + $0x390] ss:$8 sps:$4 sm:$0xff]  }
  0xaf   : >> { %1208 = vmatprep.subr.bf16.mxu0 %v2400_v35  ;;  %1252 = vmatprep.subr.bf16.mxu1 %v2400_v35  ;;  %v2467_v35 = vld [vmem:[%s3126_s1 + $0x380] ss:$8 sps:$4 sm:$0xff]  }
  0xb1   : >> { %1056 = vmatmul.mubr.bf16.vlgmr.msra.gmra.mxu0 %v2730_v41  ;;  %1100 = vmatmul.mubr.bf16.vlgmr.msra.gmra.mxu1 %v2897_v36  ;;  %v2404_v41 = vld [vmem:[%s3126_s1 + $0x2d0] ss:$8 sps:$4 sm:$0xff]  }
  0xb2   : >> { %1209 = vmatpush1.bf16.msra.mxu0 %v2398_v37  ;;  %1253 = vmatpush1.bf16.msra.mxu1 %v2398_v37  ;;  %v2201_v37 = vld [vmem:[%s2695_s11 + $0x31] sm:$0xff] }
  0xb3   : >> { %1210 = vmatprep.subr.bf16.mxu0 %v2403_v38  ;;  %1254 = vmatprep.subr.bf16.mxu1 %v2403_v38  ;;  %v2472_v38 = vld [vmem:[%s3126_s1 + $0x474] ss:$8 sps:$4 sm:$0xff]  }
  0xb4   : >> { %1240 = vmatprep.mubr.bf16.mxu0 %v2510_v3  ;;  %1284 = vmatprep.mubr.bf16.mxu1 %v2510_v3 }
  0xb6   : >> { %1211 = vmatpush1.bf16.msra.mxu0 %v2401_v39  ;;  %1255 = vmatpush1.bf16.msra.mxu1 %v2401_v39  ;;  %v1624_v39 = vpack.c.bf16 %v2201_v37, %v2201_v37 }
  0xb7   : >> { %1212 = vmatprep.subr.bf16.mxu0 %v2406_v40  ;;  %1256 = vmatprep.subr.bf16.mxu1 %v2406_v40  ;;  %v2470_v40 = vld [vmem:[%s3126_s1 + $0x470] ss:$8 sps:$4 sm:$0xff]  }
  0xba   : >> { %1213 = vmatpush1.bf16.msra.mxu0 %v2404_v41  ;;  %1257 = vmatpush1.bf16.msra.mxu1 %v2404_v41  ;;  %v2475_v41 = vld [vmem:[%s3126_s1 + $0x464] ss:$8 sps:$4 sm:$0xff]  }
  0xbb   : >> { %1214 = vmatprep.subr.bf16.mxu0 %v2409_v42  ;;  %1258 = vmatprep.subr.bf16.mxu1 %v2409_v42 }
  0xbe   : >> { %1215 = vmatpush1.bf16.msra.mxu0 %v2407_v43  ;;  %1259 = vmatpush1.bf16.msra.mxu1 %v2407_v43 }
  0xbf   : >> { %1216 = vmatprep.subr.bf16.mxu0 %v2412_v44  ;;  %1260 = vmatprep.subr.bf16.mxu1 %v2412_v44 }
  0xc2   : >> { %1217 = vmatpush1.bf16.msra.mxu0 %v2410_v45  ;;  %1261 = vmatpush1.bf16.msra.mxu1 %v2410_v45  ;;  %v2473_v45 = vld [vmem:[%s3126_s1 + $0x460] ss:$8 sps:$4 sm:$0xff]  }
  0xc3   : >> { %1218 = vmatprep.subr.bf16.mxu0 %v2415_v46  ;;  %1262 = vmatprep.subr.bf16.mxu1 %v2415_v46 }
  0xc6   : >> { %1219 = vmatpush1.bf16.msra.mxu0 %v2413_v47  ;;  %1263 = vmatpush1.bf16.msra.mxu1 %v2413_v47 }
  0xc7   : >> { %1220 = vmatprep.subr.bf16.mxu0 %v2418_v48  ;;  %1264 = vmatprep.subr.bf16.mxu1 %v2418_v48  ;;  %v2478_v48 = vld [vmem:[%s3126_s1 + $0x454] ss:$8 sps:$4 sm:$0xff]  }
  0xca   : >> { %1221 = vmatpush1.bf16.msra.mxu0 %v2416_v49  ;;  %1265 = vmatpush1.bf16.msra.mxu1 %v2416_v49 }
  0xcb   : >> { %1222 = vmatprep.subr.bf16.mxu0 %v2421_v50  ;;  %1266 = vmatprep.subr.bf16.mxu1 %v2421_v50 }
  0xce   : >> { %1223 = vmatpush1.bf16.msra.mxu0 %v2419_v51  ;;  %1267 = vmatpush1.bf16.msra.mxu1 %v2419_v51  ;;  %v2476_v51 = vld [vmem:[%s3126_s1 + $0x450] ss:$8 sps:$4 sm:$0xff]  }
  0xcf   : >> { %1396 = vmatprep.subr.bf16.mxu0 %v2424_v53  ;;  %1440 = vmatprep.subr.bf16.mxu1 %v2424_v53 }
  0xd1   : >> { %1241 = vmatmul.mubr.bf16.vlgmr.msra.gmra.mxu0 %v2788_v62  ;;  %1285 = vmatmul.mubr.bf16.vlgmr.msra.gmra.mxu1 %v2952_v54  ;;  %v2436_v62 = vld [vmem:[%s3126_s1 + $0x334] ss:$8 sps:$4 sm:$0xff]  }
  0xd2   : >> { %1397 = vmatpush1.bf16.msra.mxu0 %v2422_v55  ;;  %1441 = vmatpush1.bf16.msra.mxu1 %v2422_v55  ;;  %v2481_v55 = vld [vmem:[%s3126_s1 + $0x444] ss:$8 sps:$4 sm:$0xff]  }
  0xd3   : >> { %1398 = vmatprep.subr.bf16.mxu0 %v2427_v56  ;;  %1442 = vmatprep.subr.bf16.mxu1 %v2427_v56  ;;  %v2484_v56 = vld [vmem:[%s3126_s1 + $0x434] ss:$8 sps:$4 sm:$0xff]  }
  0xd4   : >> { %1428 = vmatprep.mubr.bf16.mxu0 %v2510_v3  ;;  %1472 = vmatprep.mubr.bf16.mxu1 %v2510_v3 }
  0xd6   : >> { %1399 = vmatpush1.bf16.msra.mxu0 %v2425_v57  ;;  %1443 = vmatpush1.bf16.msra.mxu1 %v2425_v57  ;;  %v2482_v57 = vld [vmem:[%s3126_s1 + $0x430] ss:$8 sps:$4 sm:$0xff]  }
  0xd7   : >> { %1400 = vmatprep.subr.bf16.mxu0 %v2430_v58  ;;  %1444 = vmatprep.subr.bf16.mxu1 %v2430_v58  ;;  %v2487_v58 = vld [vmem:[%s3126_s1 + $0x424] ss:$8 sps:$4 sm:$0xff]  }
  0xda   : >> { %1401 = vmatpush1.bf16.msra.mxu0 %v2428_v59  ;;  %1445 = vmatpush1.bf16.msra.mxu1 %v2428_v59  ;;  %v2485_v59 = vld [vmem:[%s3126_s1 + $0x420] ss:$8 sps:$4 sm:$0xff]  }
  0xdb   : >> { %1402 = vmatprep.subr.bf16.mxu0 %v2433_v60  ;;  %1446 = vmatprep.subr.bf16.mxu1 %v2433_v60  ;;  %v2490_v60 = vld [vmem:[%s3126_s1 + $0x414] ss:$8 sps:$4 sm:$0xff]  }
  0xde   : >> { %1403 = vmatpush1.bf16.msra.mxu0 %v2431_v61  ;;  %1447 = vmatpush1.bf16.msra.mxu1 %v2431_v61  ;;  %v2488_v61 = vld [vmem:[%s3126_s1 + $0x410] ss:$8 sps:$4 sm:$0xff]  }
  0xdf   : >> { %1404 = vmatprep.subr.bf16.mxu0 %v2436_v62  ;;  %1448 = vmatprep.subr.bf16.mxu1 %v2436_v62  ;;  %v2493_v62 = vld [vmem:[%s3126_s1 + $0x404] ss:$8 sps:$4 sm:$0xff]  }
  0xe2   : >> { %1405 = vmatpush1.bf16.msra.mxu0 %v2434_v63  ;;  %1449 = vmatpush1.bf16.msra.mxu1 %v2434_v63  ;;  %v2491_v63 = vld [vmem:[%s3126_s1 + $0x400] ss:$8 sps:$4 sm:$0xff]  }
  0xe3   : >> { %1406 = vmatprep.subr.bf16.mxu0 %v2439_v1  ;;  %1450 = vmatprep.subr.bf16.mxu1 %v2439_v1  ;;  %v2234_v1 = vld [vmem:[%s2695_s11 + $0x32] sm:$0xff]  ;;  %s2259_s11 = sshll.u32 %s2508_s24, 4  ;;  %s178_s24 = sadd.s32 1, %s2508_s24  }
  0xe4   : >> { %s1875_s26 = scalar_lea.vmem %s2547_s20, %s2259_s11  ;;  %p175_p4 = scmp.ge.s32.totalorder %s178_s24, 4  }
  0xe6   : >> { %1407 = vmatpush1.bf16.msra.mxu0 %v2437_v2  ;;  %1451 = vmatpush1.bf16.msra.mxu1 %v2437_v2  ;;  %v1809_v2 = vpack.c.bf16 %v2234_v1, %v2234_v1 }
  0xe7   : >> { %1408 = vmatprep.subr.bf16.mxu0 %v2442_v4  ;;  %1452 = vmatprep.subr.bf16.mxu1 %v2442_v4 }
  0xea   : >> { %1409 = vmatpush1.bf16.msra.mxu0 %v2440_v5  ;;  %1453 = vmatpush1.bf16.msra.mxu1 %v2440_v5 }
  0xeb   : >> { %1410 = vmatprep.subr.bf16.mxu0 %v2445_v6  ;;  %1454 = vmatprep.subr.bf16.mxu1 %v2445_v6 }
  0xee   : >> { %1411 = vmatpush1.bf16.msra.mxu0 %v2443_v7  ;;  %1455 = vmatpush1.bf16.msra.mxu1 %v2443_v7 }
  0xef   : >> { %1581 = vmatprep.subr.bf16.mxu0 %v2448_v9  ;;  %1625 = vmatprep.subr.bf16.mxu1 %v2448_v9 }
  0xf1   : >> { %v339_v13 = vpop.f32.mrf.mxu0  ;;  %v460_v14 = vpop.f32.mrf.mxu1  ;;  %1429 = vmatmul.mubr.bf16.vlgmr.msra.gmra.mxu0 %v2842_v18  ;;  %1473 = vmatmul.mubr.bf16.vlgmr.msra.gmra.mxu1 %v1439_v10 }
  0xf2   : >> { %v3014_v15 = vadd.f32 %v460_v14, %v339_v13  ;;  %1582 = vmatpush1.bf16.msra.mxu0 %v2446_v11  ;;  %1626 = vmatpush1.bf16.msra.mxu1 %v2446_v11 }
  0xf3   : >> { %v341_v17 = vpop.f32.mrf.mxu0  ;;  %v462_v19 = vpop.f32.mrf.mxu1  ;;  %1583 = vmatprep.subr.bf16.mxu0 %v2451_v12  ;;  %1627 = vmatprep.subr.bf16.mxu1 %v2451_v12 }
  0xf4   : >> { %v3022_v21 = vadd.f32 %v462_v19, %v341_v17  ;;  %1613 = vmatprep.mubr.bf16.mxu0 %v2510_v3  ;;  %1657 = vmatprep.mubr.bf16.mxu1 %v2510_v3 }
  0xf5   : >> { %v343_v18 = vpop.f32.mrf.mxu0  ;;  %v464_v22 = vpop.f32.mrf.mxu1 }
  0xf6   : >> { %1584 = vmatpush1.bf16.msra.mxu0 %v2449_v16  ;;  %1628 = vmatpush1.bf16.msra.mxu1 %v2449_v16 }
  0xf7   : >> { %v344_v24 = vpop.f32.mrf.mxu0  ;;  %v465_v25 = vpop.f32.mrf.mxu1  ;;  %1585 = vmatprep.subr.bf16.mxu0 %v2454_v20  ;;  %1629 = vmatprep.subr.bf16.mxu1 %v2454_v20 }
  0xfa   : >> { %1586 = vmatpush1.bf16.msra.mxu0 %v2452_v23  ;;  %1630 = vmatpush1.bf16.msra.mxu1 %v2452_v23 }
  0xfb   : >> { %1587 = vmatprep.subr.bf16.mxu0 %v2457_v26  ;;  %1631 = vmatprep.subr.bf16.mxu1 %v2457_v26 }
  0xfe   : >> { %1588 = vmatpush1.bf16.msra.mxu0 %v2455_v27  ;;  %1632 = vmatpush1.bf16.msra.mxu1 %v2455_v27 }
  0xff   : >> { %1589 = vmatprep.subr.bf16.mxu0 %v2460_v28  ;;  %1633 = vmatprep.subr.bf16.mxu1 %v2460_v28 }
 0x102   : >> { %1590 = vmatpush1.bf16.msra.mxu0 %v2458_v29  ;;  %1634 = vmatpush1.bf16.msra.mxu1 %v2458_v29 }
 0x103   : >> { %1591 = vmatprep.subr.bf16.mxu0 %v2463_v30  ;;  %1635 = vmatprep.subr.bf16.mxu1 %v2463_v30 }
 0x106   : >> { %1592 = vmatpush1.bf16.msra.mxu0 %v2461_v31  ;;  %1636 = vmatpush1.bf16.msra.mxu1 %v2461_v31 }
 0x107   : >> { %1593 = vmatprep.subr.bf16.mxu0 %v2466_v32  ;;  %1637 = vmatprep.subr.bf16.mxu1 %v2466_v32 }
 0x10a   : >> { %1594 = vmatpush1.bf16.msra.mxu0 %v2464_v33  ;;  %1638 = vmatpush1.bf16.msra.mxu1 %v2464_v33 }
 0x10b   : >> { %1595 = vmatprep.subr.bf16.mxu0 %v2469_v34  ;;  %1639 = vmatprep.subr.bf16.mxu1 %v2469_v34 }
 0x10e   : >> { %1596 = vmatpush1.bf16.msra.mxu0 %v2467_v35  ;;  %1640 = vmatpush1.bf16.msra.mxu1 %v2467_v35 }
 0x10f   : >> { %1766 = vmatprep.subr.bf16.mxu0 %v2472_v38  ;;  %1810 = vmatprep.subr.bf16.mxu1 %v2472_v38 }
 0x111   : >> { %v502_v42 = vpop.f32.mrf.mxu0  ;;  %v543_v43 = vpop.f32.mrf.mxu1  ;;  %1614 = vmatmul.mubr.bf16.vlgmr.msra.gmra.mxu0 %v2897_v36  ;;  %1658 = vmatmul.mubr.bf16.vlgmr.msra.gmra.mxu1 %v1624_v39 }
 0x112   : >> { %v544_v44 = vadd.f32 %v543_v43, %v502_v42  ;;  %1767 = vmatpush1.bf16.msra.mxu0 %v2470_v40  ;;  %1811 = vmatpush1.bf16.msra.mxu1 %v2470_v40 }
 0x113   : >> { %v504_v46 = vpop.f32.mrf.mxu0  ;;  %v545_v47 = vpop.f32.mrf.mxu1  ;;  %1768 = vmatprep.subr.bf16.mxu0 %v2475_v41  ;;  %1812 = vmatprep.subr.bf16.mxu1 %v2475_v41 }
 0x114   : >> { %v546_v49 = vadd.f32 %v545_v47, %v504_v46  ;;  %1798 = vmatprep.mubr.bf16.mxu0 %v2510_v3  ;;  %1842 = vmatprep.mubr.bf16.mxu1 %v2510_v3  ;;  %v2479_v3 = vld [vmem:[%s3126_s1 + $0x440] ss:$8 sps:$4 sm:$0xff]  }
 0x115   : >> { %v506_v36 = vpop.f32.mrf.mxu0  ;;  %v547_v50 = vpop.f32.mrf.mxu1 }
 0x116   : >> { %1769 = vmatpush1.bf16.msra.mxu0 %v2473_v45  ;;  %1813 = vmatpush1.bf16.msra.mxu1 %v2473_v45 }
 0x117   : >> { %v507_v52 = vpop.f32.mrf.mxu0  ;;  %v548_v53 = vpop.f32.mrf.mxu1  ;;  %1770 = vmatprep.subr.bf16.mxu0 %v2478_v48  ;;  %1814 = vmatprep.subr.bf16.mxu1 %v2478_v48 }
 0x11a   : >> { %1771 = vmatpush1.bf16.msra.mxu0 %v2476_v51  ;;  %1815 = vmatpush1.bf16.msra.mxu1 %v2476_v51 }
 0x11b   : >> { %1772 = vmatprep.subr.bf16.mxu0 %v2481_v55  ;;  %1816 = vmatprep.subr.bf16.mxu1 %v2481_v55 }
 0x11e   : >> { %1773 = vmatpush1.bf16.msra.mxu0 %v2479_v3  ;;  %1817 = vmatpush1.bf16.msra.mxu1 %v2479_v3 }
 0x11f   : >> { %1774 = vmatprep.subr.bf16.mxu0 %v2484_v56  ;;  %1818 = vmatprep.subr.bf16.mxu1 %v2484_v56 }
 0x122   : >> { %1775 = vmatpush1.bf16.msra.mxu0 %v2482_v57  ;;  %1819 = vmatpush1.bf16.msra.mxu1 %v2482_v57 }
 0x123   : >> { %1776 = vmatprep.subr.bf16.mxu0 %v2487_v58  ;;  %1820 = vmatprep.subr.bf16.mxu1 %v2487_v58 }
 0x126   : >> { %1777 = vmatpush1.bf16.msra.mxu0 %v2485_v59  ;;  %1821 = vmatpush1.bf16.msra.mxu1 %v2485_v59 }
 0x127   : >> { %1778 = vmatprep.subr.bf16.mxu0 %v2490_v60  ;;  %1822 = vmatprep.subr.bf16.mxu1 %v2490_v60 }
 0x12a   : >> { %1779 = vmatpush1.bf16.msra.mxu0 %v2488_v61  ;;  %1823 = vmatpush1.bf16.msra.mxu1 %v2488_v61 }
 0x12b   : >> { %1780 = vmatprep.subr.bf16.mxu0 %v2493_v62  ;;  %1824 = vmatprep.subr.bf16.mxu1 %v2493_v62 }
 0x12e   : >> { %1781 = vmatpush1.bf16.msra.mxu0 %v2491_v63  ;;  %1825 = vmatpush1.bf16.msra.mxu1 %v2491_v63 }
 0x131   : >> { %v684_v4 = vpop.f32.mrf.mxu0  ;;  %v728_v5 = vpop.f32.mrf.mxu1  ;;  %1799 = vmatmul.mubr.bf16.vlgmr.msra.gmra.mxu0 %v2952_v54  ;;  %1843 = vmatmul.mubr.bf16.vlgmr.msra.gmra.mxu1 %v1809_v2 }
 0x132   : >> { %v691_v6 = vadd.f32 %v684_v4, %v3014_v15  ;;  %v735_v7 = vadd.f32 %v728_v5, %v544_v44  ;;  %v1854_v5 = vlaneseq }
 0x133   : >> { %v686_v8 = vpop.f32.mrf.mxu0  ;;  %v730_v9 = vpop.f32.mrf.mxu1 }
 0x134   : >> { %v692_v10 = vadd.f32 %v686_v8, %v3022_v21  ;;  %v736_v11 = vadd.f32 %v730_v9, %v546_v49 }
 0x135   : >> { %v688_v12 = vpop.f32.mrf.mxu0  ;;  %v732_v13 = vpop.f32.mrf.mxu1 }
 0x137   : >> { %v689_v14 = vpop.f32.mrf.mxu0  ;;  %v733_v16 = vpop.f32.mrf.mxu1 }
 0x151   : >> { %v872_v17 = vpop.f32.mrf.mxu0  ;;  %v916_v19 = vpop.f32.mrf.mxu1 }
 0x152   : >> { %v879_v20 = vadd.f32 %v872_v17, %v691_v6  ;;  %v923_v18 = vadd.f32 %v916_v19, %v735_v7  ;;  %v1855_v6 = vshrl.u32 %v1854_v5, 7 }
 0x153   : >> { %v874_v22 = vpop.f32.mrf.mxu0  ;;  %v918_v23 = vpop.f32.mrf.mxu1 }
 0x154   : >> { %v880_v54 = vadd.f32 %v874_v22, %v692_v10  ;;  %v924_v24 = vadd.f32 %v918_v23, %v736_v11  ;;  %v1856_v7 = vsub.s32 0, %v1855_v6  ;;  %v1860_v8 = vsub.s32 1, %v1855_v6 }
 0x155   : >> { %v876_v25 = vpop.f32.mrf.mxu0  ;;  %v920_v15 = vpop.f32.mrf.mxu1 }
 0x156   : >> { %v1857_v11 = vrot.slane %v2542_v0, %v1856_v7 }
 0x157   : >> { %v877_v26 = vpop.f32.mrf.mxu0  ;;  %v921_v27 = vpop.f32.mrf.mxu1 }
 0x171   : >> { %v1057_v28 = vpop.f32.mrf.mxu0  ;;  %v1101_v29 = vpop.f32.mrf.mxu1 }
 0x172   : >> { %v1064_v21 = vadd.f32 %v1057_v28, %v879_v20  ;;  %v1108_v30 = vadd.f32 %v1101_v29, %v923_v18  ;;  %v1861_v20 = vrot.slane %v2542_v0, %v1860_v8 }
 0x173   : >> { %v1059_v31 = vpop.f32.mrf.mxu0  ;;  %v1103_v32 = vpop.f32.mrf.mxu1 }
 0x174   : >> { %v1065_v33 = vadd.f32 %v1059_v31, %v880_v54  ;;  %v1109_v34 = vadd.f32 %v1103_v32, %v924_v24 }
 0x175   : >> { %v1061_v35 = vpop.f32.mrf.mxu0  ;;  %v1105_v37 = vpop.f32.mrf.mxu1 }
 0x177   : >> { %v1062_v38 = vpop.f32.mrf.mxu0  ;;  %v1106_v39 = vpop.f32.mrf.mxu1 }
 0x191   : >> { %v1242_v40 = vpop.f32.mrf.mxu0  ;;  %v1286_v41 = vpop.f32.mrf.mxu1 }
 0x192   : >> { %v1249_v42 = vadd.f32 %v1242_v40, %v1064_v21  ;;  %v1293_v43 = vadd.f32 %v1286_v41, %v1108_v30 }
 0x193   : >> { %v1244_v44 = vpop.f32.mrf.mxu0  ;;  %v1288_v45 = vpop.f32.mrf.mxu1 }
 0x194   : >> { %v1250_v46 = vadd.f32 %v1244_v44, %v1065_v33  ;;  %v1294_v47 = vadd.f32 %v1288_v45, %v1109_v34 }
 0x195   : >> { %v1246_v48 = vpop.f32.mrf.mxu0  ;;  %v1290_v49 = vpop.f32.mrf.mxu1 }
 0x197   : >> { %v1247_v36 = vpop.f32.mrf.mxu0  ;;  %v1291_v50 = vpop.f32.mrf.mxu1 }
 0x1b1   : >> { %v1430_v51 = vpop.f32.mrf.mxu0  ;;  %v1474_v52 = vpop.f32.mrf.mxu1 }
 0x1b2   : >> { %v1437_v9 = vadd.f32 %v1430_v51, %v1249_v42  ;;  %v1481_v10 = vadd.f32 %v1474_v52, %v1293_v43 }
 0x1b3   : >> { %v1432_v53 = vpop.f32.mrf.mxu0  ;;  %v1476_v55 = vpop.f32.mrf.mxu1 }
 0x1b4   : >> { %v1438_v12 = vadd.f32 %v1432_v53, %v1250_v46  ;;  %v1482_v13 = vadd.f32 %v1476_v55, %v1294_v47 }
 0x1b5   : >> { %v1434_v3 = vpop.f32.mrf.mxu0  ;;  %v1478_v56 = vpop.f32.mrf.mxu1 }
 0x1b7   : >> { %v1435_v57 = vpop.f32.mrf.mxu0  ;;  %v1479_v58 = vpop.f32.mrf.mxu1 }
 0x1d1   : >> { %v1615_v59 = vpop.f32.mrf.mxu0  ;;  %v1659_v60 = vpop.f32.mrf.mxu1 }
 0x1d2   : >> { %v1622_v14 = vadd.f32 %v1615_v59, %v1437_v9  ;;  %v1666_v16 = vadd.f32 %v1659_v60, %v1481_v10 }
 0x1d3   : >> { %v1617_v61 = vpop.f32.mrf.mxu0  ;;  %v1661_v62 = vpop.f32.mrf.mxu1 }
 0x1d4   : >> { %v1623_v18 = vadd.f32 %v1617_v61, %v1438_v12  ;;  %v1667_v22 = vadd.f32 %v1661_v62, %v1482_v13 }
 0x1d5   : >> { %v1619_v63 = vpop.f32.mrf.mxu0  ;;  %v1663_v1 = vpop.f32.mrf.mxu1 }
 0x1d7   : >> { %v1620_v2 = vpop.f32.mrf.mxu0  ;;  %v1664_v4 = vpop.f32.mrf.mxu1 }
 0x1f1   : >> { %v1800_v17 = vpop.f32.mrf.mxu0  ;;  %v1844_v19 = vpop.f32.mrf.mxu1 }
 0x1f2   : >> { %v1807_v23 = vadd.f32 %v1800_v17, %v1622_v14  ;;  %v1851_v54 = vadd.f32 %v1844_v19, %v1666_v16 }
 0x1f3   : >> { %v1802_v24 = vpop.f32.mrf.mxu0  ;;  %v1846_v25 = vpop.f32.mrf.mxu1 }
 0x1f4   : >> { %v1864_v15 = vadd.f32 %v1857_v11, %v1807_v23  ;;  %v1868_v26 = vadd.f32 %v1857_v11, %v1851_v54  ;;  %v1808_v27 = vadd.f32 %v1802_v24, %v1623_v18  ;;  %v1852_v28 = vadd.f32 %v1846_v25, %v1667_v22 }
 0x1f5   : >> { %v1804_v29 = vpop.f32.mrf.mxu0  ;;  %v1848_v21 = vpop.f32.mrf.mxu1 }
 0x1f6   : >> { %v1866_v30 = vmax.f32 %v1864_v15, 0.0  ;;  %v1870_v31 = vmax.f32 %v1868_v26, 0.0  ;;  %v1865_v32 = vadd.f32 %v1861_v20, %v1808_v27  ;;  %v1869_v33 = vadd.f32 %v1861_v20, %v1852_v28 }
 0x1f7   : >> { %v1805_v34 = vpop.f32.mrf.mxu0  ;;  %v1849_v35 = vpop.f32.mrf.mxu1 }
 0x1f8   : >> { %v1872_v37 = vmax.f32 %v1866_v30, %v1870_v31  ;;  %v1867_v38 = vmax.f32 %v1865_v32, 0.0  ;;  %v1871_v39 = vmax.f32 %v1869_v33, 0.0  ;;  %177 = sbr.rel (!%p175_p4) target bundleno = 15 (0xf), region = 82 }
 0x1fa   : >> { %1876 = vst [vmem:[%s1875_s26] sm:$0xff] %v1872_v37  ;;  %v1873_v40 = vmax.f32 %v1867_v38, %v1871_v39 }
 0x1fc   : >> { %1877 = vst [vmem:[%s1875_s26 + $0x8] sm:$0xff] %v1873_v40 }
 0x1fd PF: > { %s13_s12 = sadd.s32 1, %s2504_s12  }
 0x1fe   : > { %p10_p5 = scmp.ge.s32.totalorder %s13_s12, 4  }
 0x200   :  { %12 = sbr.rel (!%p10_p5) target bundleno = 1 (0x1), region = 93 }

// kernel: multiscale_crnn_forward.15
= control target key start
LH: loop header
LB: loop body
LE: loop exit
PB: predicated region body
PF: predicated region fallthrough
CT: control target
= control target key end

     0   :  { %s1222_s1 = inlined_call_operand.vmem [shape: bf16[1024,128], index: 1, kind: input, shape index: {}]   ;;  %s1223_s0 = inlined_call_operand.vmem [shape: bf16[16,1024], index: 0, kind: input, shape index: {}]   ;;  %s1224_s2 = inlined_call_operand.vmem [shape: f32[1,128], index: 2, kind: input, shape index: {}]   ;;  %s1225_s3 = inlined_call_operand.vmem [shape: f32[16,128], index: 3, kind: output, shape index: {}]  }
   0x1   :  { %v913_v0 = vld [vmem:[%s1222_s1 + $0x78] sm:$0xff]   ;;  %v917_v4 = vld [vmem:[%s1222_s1 + $0x70] sm:$0xff]   ;;  %v921_v8 = vld [vmem:[%s1222_s1 + $0x68] sm:$0xff]  }
   0x2   :  { %v914_v1 = vld [vmem:[%s1222_s1 + $0xf8] sm:$0xff]   ;;  %825 = vmatprep.subr.bf16.mxu0 %v913_v0  ;;  %v918_v5 = vld [vmem:[%s1222_s1 + $0xf0] sm:$0xff]   ;;  %v922_v9 = vld [vmem:[%s1222_s1 + $0xe8] sm:$0xff]  }
   0x3   :  { %v915_v2 = vld [vmem:[%s1222_s1 + $0x38] sm:$0xff]   ;;  %847 = vmatprep.subr.bf16.mxu1 %v914_v1  ;;  %v919_v6 = vld [vmem:[%s1222_s1 + $0x30] sm:$0xff]   ;;  %v923_v10 = vld [vmem:[%s1222_s1 + $0x28] sm:$0xff]  }
   0x4   :  { %v916_v3 = vld [vmem:[%s1222_s1 + $0xb8] sm:$0xff]   ;;  %826 = vmatpush3.bf16.msra.mxu0 %v915_v2  ;;  %v920_v7 = vld [vmem:[%s1222_s1 + $0xb0] sm:$0xff]   ;;  %v924_v11 = vld [vmem:[%s1222_s1 + $0xa8] sm:$0xff]  }
   0x5   :  { %848 = vmatpush3.bf16.msra.mxu1 %v916_v3  ;;  %827 = vmatprep.subr.bf16.mxu0 %v917_v4  ;;  %v925_v12 = vld [vmem:[%s1222_s1 + $0x60] sm:$0xff]   ;;  %v929_v16 = vld [vmem:[%s1222_s1 + $0x58] sm:$0xff]   ;;  %v933_v20 = vld [vmem:[%s1222_s1 + $0x50] sm:$0xff]  }
   0x6   :  { %849 = vmatprep.subr.bf16.mxu1 %v918_v5  ;;  %v926_v13 = vld [vmem:[%s1222_s1 + $0xe0] sm:$0xff]   ;;  %v930_v17 = vld [vmem:[%s1222_s1 + $0xd8] sm:$0xff]   ;;  %v934_v21 = vld [vmem:[%s1222_s1 + $0xd0] sm:$0xff]  }
   0x7   :  { %v927_v14 = vld [vmem:[%s1222_s1 + $0x20] sm:$0xff]   ;;  %v931_v18 = vld [vmem:[%s1222_s1 + $0x18] sm:$0xff]   ;;  %v935_v22 = vld [vmem:[%s1222_s1 + $0x10] sm:$0xff]  }
   0x8   :  { %828 = vmatpush3.bf16.msra.mxu0 %v919_v6  ;;  %v928_v15 = vld [vmem:[%s1222_s1 + $0xa0] sm:$0xff]   ;;  %v932_v19 = vld [vmem:[%s1222_s1 + $0x98] sm:$0xff]   ;;  %v936_v23 = vld [vmem:[%s1222_s1 + $0x90] sm:$0xff]  }
   0x9   :  { %850 = vmatpush3.bf16.msra.mxu1 %v920_v7  ;;  %829 = vmatprep.subr.bf16.mxu0 %v921_v8  ;;  %v937_v24 = vld [vmem:[%s1222_s1 + $0x48] sm:$0xff]   ;;  %v941_v28 = vld [vmem:[%s1222_s1 + $0x40] sm:$0xff]   ;;  %v945_v40 = vld [vmem:[%s1222_s1 + $0x178] sm:$0xff]  }
   0xa   :  { %851 = vmatprep.subr.bf16.mxu1 %v922_v9  ;;  %v938_v25 = vld [vmem:[%s1222_s1 + $0xc8] sm:$0xff]   ;;  %v942_v29 = vld [vmem:[%s1222_s1 + $0xc0] sm:$0xff]   ;;  %v946_v41 = vld [vmem:[%s1222_s1 + $0x1f8] sm:$0xff]  }
   0xb   :  { %v939_v26 = vld [vmem:[%s1222_s1 + $0x8] sm:$0xff]   ;;  %v943_v30 = vld [vmem:[%s1222_s1] sm:$0xff]   ;;  %v947_v42 = vld [vmem:[%s1222_s1 + $0x138] sm:$0xff]  }
   0xc   :  { %830 = vmatpush3.bf16.msra.mxu0 %v923_v10  ;;  %v940_v27 = vld [vmem:[%s1222_s1 + $0x88] sm:$0xff]   ;;  %v944_v31 = vld [vmem:[%s1222_s1 + $0x80] sm:$0xff]   ;;  %v948_v43 = vld [vmem:[%s1222_s1 + $0x1b8] sm:$0xff]  }
   0xd   :  { %852 = vmatpush3.bf16.msra.mxu1 %v924_v11  ;;  %831 = vmatprep.subr.bf16.mxu0 %v925_v12  ;;  %v15_v32 = vld [vmem:[%s1223_s0] sm:$0xff]  ;;  %v16_v34 = vld [vmem:[%s1223_s0 + $0x8] sm:$0xff]  ;;  %v949_v44 = vld [vmem:[%s1222_s1 + $0x170] sm:$0xff]  }
   0xe   :  { %853 = vmatprep.subr.bf16.mxu1 %v926_v13  ;;  %v19_v33 = vld [vmem:[%s1223_s0 + $0x20] sm:$0xff]  ;;  %v20_v37 = vld [vmem:[%s1223_s0 + $0x28] sm:$0xff]  ;;  %v950_v45 = vld [vmem:[%s1222_s1 + $0x1f0] sm:$0xff]  }
   0xf   :  { %v753_v35 = vcombine.low %v15_v32, %v19_v33  ;;  %v754_v36 = vcombine.high %v15_v32, %v19_v33  ;;  %v755_v38 = vcombine.low %v16_v34, %v20_v37  ;;  %v756_v39 = vcombine.high %v16_v34, %v20_v37  ;;  %v951_v46 = vld [vmem:[%s1222_s1 + $0x130] sm:$0xff]   ;;  %v953_v48 = vld [vmem:[%s1222_s1 + $0x168] sm:$0xff]   ;;  %v957_v52 = vld [vmem:[%s1222_s1 + $0x160] sm:$0xff]  }
  0x10   :  { %832 = vmatpush3.bf16.msra.mxu0 %v927_v14  ;;  %v952_v47 = vld [vmem:[%s1222_s1 + $0x1b0] sm:$0xff]   ;;  %v954_v49 = vld [vmem:[%s1222_s1 + $0x1e8] sm:$0xff]   ;;  %v958_v53 = vld [vmem:[%s1222_s1 + $0x1e0] sm:$0xff]  }
  0x11   :  { %854 = vmatpush3.bf16.msra.mxu1 %v928_v15  ;;  %833 = vmatprep.subr.bf16.mxu0 %v929_v16  ;;  %v955_v50 = vld [vmem:[%s1222_s1 + $0x128] sm:$0xff]   ;;  %v959_v54 = vld [vmem:[%s1222_s1 + $0x120] sm:$0xff]   ;;  %v961_v56 = vld [vmem:[%s1222_s1 + $0x158] sm:$0xff]  }
  0x12   :  { %855 = vmatprep.subr.bf16.mxu1 %v930_v17  ;;  %614 = vmatprep.mubr.bf16.mxu0 %v754_v36  ;;  %v956_v51 = vld [vmem:[%s1222_s1 + $0x1a8] sm:$0xff]   ;;  %v960_v55 = vld [vmem:[%s1222_s1 + $0x1a0] sm:$0xff]   ;;  %v962_v57 = vld [vmem:[%s1222_s1 + $0x1d8] sm:$0xff]  }
  0x13   :  { %655 = vmatprep.mubr.bf16.mxu1 %v756_v39  ;;  %v963_v58 = vld [vmem:[%s1222_s1 + $0x118] sm:$0xff]   ;;  %v965_v60 = vld [vmem:[%s1222_s1 + $0x150] sm:$0xff]   ;;  %v969_v0 = vld [vmem:[%s1222_s1 + $0x148] sm:$0xff]  }
  0x14   :  { %834 = vmatpush3.bf16.msra.mxu0 %v931_v18  ;;  %v964_v59 = vld [vmem:[%s1222_s1 + $0x198] sm:$0xff]   ;;  %v966_v61 = vld [vmem:[%s1222_s1 + $0x1d0] sm:$0xff]   ;;  %v970_v1 = vld [vmem:[%s1222_s1 + $0x1c8] sm:$0xff]  }
  0x15   :  { %856 = vmatpush3.bf16.msra.mxu1 %v932_v19  ;;  %835 = vmatprep.subr.bf16.mxu0 %v933_v20  ;;  %v967_v62 = vld [vmem:[%s1222_s1 + $0x110] sm:$0xff]   ;;  %v971_v2 = vld [vmem:[%s1222_s1 + $0x108] sm:$0xff]   ;;  %v973_v4 = vld [vmem:[%s1222_s1 + $0x140] sm:$0xff]  }
  0x16   :  { %857 = vmatprep.subr.bf16.mxu1 %v934_v21  ;;  %v968_v63 = vld [vmem:[%s1222_s1 + $0x190] sm:$0xff]   ;;  %v972_v3 = vld [vmem:[%s1222_s1 + $0x188] sm:$0xff]   ;;  %v974_v5 = vld [vmem:[%s1222_s1 + $0x1c0] sm:$0xff]  }
  0x17   :  { %v975_v6 = vld [vmem:[%s1222_s1 + $0x100] sm:$0xff]   ;;  %v17_v8 = vld [vmem:[%s1223_s0 + $0x10] sm:$0xff]  ;;  %v18_v12 = vld [vmem:[%s1223_s0 + $0x18] sm:$0xff] }
  0x18   :  { %836 = vmatpush3.bf16.msra.mxu0 %v935_v22  ;;  %v976_v7 = vld [vmem:[%s1222_s1 + $0x180] sm:$0xff]   ;;  %v21_v9 = vld [vmem:[%s1223_s0 + $0x30] sm:$0xff]  ;;  %v22_v13 = vld [vmem:[%s1223_s0 + $0x38] sm:$0xff] }
  0x19   :  { %858 = vmatpush3.bf16.msra.mxu1 %v936_v23  ;;  %837 = vmatprep.subr.bf16.mxu0 %v937_v24  ;;  %v757_v10 = vcombine.low %v17_v8, %v21_v9  ;;  %v758_v11 = vcombine.high %v17_v8, %v21_v9  ;;  %v759_v14 = vcombine.low %v18_v12, %v22_v13  ;;  %v752_v23 = vld [vmem:[%s1224_s2] ss:$0 sm:$0xff] }
  0x1a   :  { %859 = vmatprep.subr.bf16.mxu1 %v938_v25  ;;  %v760_v15 = vcombine.high %v18_v12, %v22_v13 }
  0x1c   :  { %838 = vmatpush3.bf16.msra.mxu0 %v939_v26 }
  0x1d   :  { %860 = vmatpush3.bf16.msra.mxu1 %v940_v27  ;;  %839 = vmatprep.subr.bf16.mxu0 %v941_v28 }
  0x1e   :  { %861 = vmatprep.subr.bf16.mxu1 %v942_v29 }
  0x20   :  { %840 = vmatpush3.bf16.msra.mxu0 %v943_v30 }
  0x21   :  { %862 = vmatpush3.bf16.msra.mxu1 %v944_v31  ;;  %869 = vmatprep.subr.bf16.mxu0 %v945_v40 }
  0x22   :  { %891 = vmatprep.subr.bf16.mxu1 %v946_v41 }
  0x23   :  { %615 = vmatmul.mubr.bf16.vlgmr.msra.gmra.mxu0 %v753_v35 }
  0x24   :  { %656 = vmatmul.mubr.bf16.vlgmr.msra.gmra.mxu1 %v755_v38  ;;  %870 = vmatpush3.bf16.msra.mxu0 %v947_v42 }
  0x25   :  { %892 = vmatpush3.bf16.msra.mxu1 %v948_v43  ;;  %871 = vmatprep.subr.bf16.mxu0 %v949_v44 }
  0x26   :  { %893 = vmatprep.subr.bf16.mxu1 %v950_v45  ;;  %696 = vmatprep.mubr.bf16.mxu0 %v758_v11 }
  0x27   :  { %737 = vmatprep.mubr.bf16.mxu1 %v760_v15 }
  0x28   :  { %872 = vmatpush3.bf16.msra.mxu0 %v951_v46 }
  0x29   :  { %894 = vmatpush3.bf16.msra.mxu1 %v952_v47  ;;  %873 = vmatprep.subr.bf16.mxu0 %v953_v48 }
  0x2a   :  { %895 = vmatprep.subr.bf16.mxu1 %v954_v49 }
  0x2c   :  { %874 = vmatpush3.bf16.msra.mxu0 %v955_v50 }
  0x2d   :  { %896 = vmatpush3.bf16.msra.mxu1 %v956_v51  ;;  %875 = vmatprep.subr.bf16.mxu0 %v957_v52 }
  0x2e   :  { %897 = vmatprep.subr.bf16.mxu1 %v958_v53 }
  0x30   :  { %876 = vmatpush3.bf16.msra.mxu0 %v959_v54 }
  0x31   :  { %898 = vmatpush3.bf16.msra.mxu1 %v960_v55  ;;  %877 = vmatprep.subr.bf16.mxu0 %v961_v56 }
  0x32   :  { %899 = vmatprep.subr.bf16.mxu1 %v962_v57 }
  0x34   :  { %878 = vmatpush3.bf16.msra.mxu0 %v963_v58 }
  0x35   :  { %900 = vmatpush3.bf16.msra.mxu1 %v964_v59  ;;  %879 = vmatprep.subr.bf16.mxu0 %v965_v60 }
  0x36   :  { %901 = vmatprep.subr.bf16.mxu1 %v966_v61 }
  0x38   :  { %880 = vmatpush3.bf16.msra.mxu0 %v967_v62 }
  0x39   :  { %902 = vmatpush3.bf16.msra.mxu1 %v968_v63  ;;  %881 = vmatprep.subr.bf16.mxu0 %v969_v0 }
  0x3a   :  { %903 = vmatprep.subr.bf16.mxu1 %v970_v1 }
  0x3c   :  { %882 = vmatpush3.bf16.msra.mxu0 %v971_v2 }
  0x3d   :  { %904 = vmatpush3.bf16.msra.mxu1 %v972_v3  ;;  %883 = vmatprep.subr.bf16.mxu0 %v973_v4 }
  0x3e   :  { %905 = vmatprep.subr.bf16.mxu1 %v974_v5 }
  0x40   :  { %884 = vmatpush3.bf16.msra.mxu0 %v975_v6 }
  0x41   :  { %906 = vmatpush3.bf16.msra.mxu1 %v976_v7 }
  0x43   :  { %697 = vmatmul.mubr.bf16.vlgmr.msra.gmra.mxu0 %v757_v10 }
  0x44   :  { %738 = vmatmul.mubr.bf16.vlgmr.msra.gmra.mxu1 %v759_v14 }
  0xe3   :  { %v841_v16 = vpop.f32.mrf.mxu0 }
  0xe4   :  { %v863_v17 = vpop.f32.mrf.mxu1 }
  0xe5   :  { %v842_v18 = vpop.f32.mrf.mxu0 }
  0xe6   :  { %v864_v19 = vpop.f32.mrf.mxu1  ;;  %v843_v21 = vadd.f32 %v842_v18, %v841_v16 }
  0xe7   :  { %v844_v20 = vpop.f32.mrf.mxu0  ;;  %v865_v26 = vadd.f32 %v864_v19, %v863_v17 }
  0xe8   :  { %v866_v22 = vpop.f32.mrf.mxu1  ;;  %v617_v25 = vadd.f32 %v843_v21, %v752_v23 }
  0xe9   :  { %v845_v24 = vpop.f32.mrf.mxu0 }
  0xea   :  { %v846_v27 = vadd.f32 %v845_v24, %v844_v20  ;;  %v867_v28 = vpop.f32.mrf.mxu1  ;;  %v658_v32 = vadd.f32 %v865_v26, %v617_v25 }
  0xeb   :  { %v868_v37 = vadd.f32 %v867_v28, %v866_v22 }
  0xec   :  { %v620_v33 = vadd.f32 %v846_v27, %v752_v23 }
  0xee   :  { %v661_v42 = vadd.f32 %v868_v37, %v620_v33 }
 0x103   :  { %v885_v29 = vpop.f32.mrf.mxu0 }
 0x104   :  { %v907_v30 = vpop.f32.mrf.mxu1 }
 0x105   :  { %v886_v31 = vpop.f32.mrf.mxu0 }
 0x106   :  { %v887_v34 = vadd.f32 %v886_v31, %v885_v29  ;;  %v908_v35 = vpop.f32.mrf.mxu1 }
 0x107   :  { %v888_v36 = vpop.f32.mrf.mxu0  ;;  %v909_v39 = vadd.f32 %v908_v35, %v907_v30 }
 0x108   :  { %v699_v38 = vadd.f32 %v887_v34, %v658_v32  ;;  %v910_v40 = vpop.f32.mrf.mxu1 }
 0x109   :  { %v889_v41 = vpop.f32.mrf.mxu0 }
 0x10a   :  { %v740_v43 = vadd.f32 %v909_v39, %v699_v38  ;;  %v890_v44 = vadd.f32 %v889_v41, %v888_v36  ;;  %v911_v45 = vpop.f32.mrf.mxu1 }
 0x10b   :  { %v912_v47 = vadd.f32 %v911_v45, %v910_v40 }
 0x10c   :  { %746 = vst [vmem:[%s1225_s3] sm:$0xff] %v740_v43  ;;  %v702_v46 = vadd.f32 %v890_v44, %v661_v42 }
 0x10e   :  { %v743_v48 = vadd.f32 %v912_v47, %v702_v46 }
 0x110   :  { %747 = vst [vmem:[%s1225_s3 + $0x8] sm:$0xff] %v743_v48 }

// kernel: multiscale_crnn_forward.14
= control target key start
LH: loop header
LB: loop body
LE: loop exit
PB: predicated region body
PF: predicated region fallthrough
CT: control target
= control target key end

     0   :  { %s7620_s12 = smov 0   ;;  %s11885_s0 = inlined_call_operand.vmem [shape: f32[2,6,10,256], index: 0, kind: input, shape index: {}]   ;;  %s11886_s1 = inlined_call_operand.vmem [shape: bf16[9,256,512], index: 1, kind: input, shape index: {}]   ;;  %s11887_s2 = inlined_call_operand.vmem [shape: f32[1,512], index: 2, kind: input, shape index: {}]   ;;  %s11888_s3 = inlined_call_operand.vmem [shape: f32[2,2,8,512], index: 3, kind: output, shape index: {}]  }
   0x1 LB: > { %s5466_s13 = sadd.s32 4294967295, %s7594_s12   ;;  %p5470_p0 = scmp.ge.s32.totalorder %s7594_s12, 1  ;;  %s7594_s12 = sphi %s7620_s12, %s13_s12  }
   0x2   : > { %p137_p1 = scmp.lt.s32.totalorder %s7594_s12, 3 }
   0x4   : > { %p138_p2 = pnand %p5470_p0, %p137_p1 }
   0x5   : > { %p161_p3 = scmp.lt.s32.totalorder (!%p138_p2), %s5466_s13, 1  ;;  %s7643_s24 = smov (!%p138_p2), 0  }
   0x6   : > { %141 = sbr.rel (%p138_p2) target bundleno = 1372 (0x55c), region = 32 }
   0xb   : > { %v7631_v0 = vld [vmem:[%s11887_s2] sm:$0xf]  ;;  %s12247_s13 = smov (!%p161_p3, %s5466_s13), 1 }
   0xc   : > { %12000 = vst [vmem:[#allocation2_spill] sm:$0xff] %v7631_v0  ;;  %s6612_s16 = smul.u32 192, %s12247_s13  ;;  %s6605_s17 = sshll.u32 %s12247_s13, 6 }
   0xd   : > { %s7636_s20 = scalar_lea.vmem %s11888_s3, %s6605_s17 }
   0xe   : > { %s7641_s23 = scalar_lea.vmem %s11885_s0, %s6612_s16 }
   0xf LB: >> { %v6629_v1 = vld [vmem:[%s11886_s1 + $0x2e4] ss:$16 sps:$4 sm:$0xff]   ;;  %v6631_v2 = vld [vmem:[%s11886_s1 + $0x2ec] ss:$16 sps:$4 sm:$0xff]   ;;  %v6633_v3 = vld [vmem:[%s11886_s1 + $0x2e0] ss:$16 sps:$4 sm:$0xff]   ;;  %s7598_s24 = sphi %s7643_s24, %s177_s24  }
  0x10   : >> { %669 = vmatprep.subr.bf16.mxu0 %v6629_v1  ;;  %v6634_v4 = vld [vmem:[%s11886_s1 + $0x2e8] ss:$16 sps:$4 sm:$0xff]   ;;  %710 = vmatprep.subr.bf16.mxu1 %v6631_v2  ;;  %v6635_v5 = vld [vmem:[%s11886_s1 + $0x2c4] ss:$16 sps:$4 sm:$0xff]   ;;  %v6637_v6 = vld [vmem:[%s11886_s1 + $0x2cc] ss:$16 sps:$4 sm:$0xff]  }
  0x11   : >> { %670 = vmatpush1.bf16.msra.mxu0 %v6633_v3  ;;  %711 = vmatpush1.bf16.msra.mxu1 %v6634_v4  ;;  %v6639_v7 = vld [vmem:[%s11886_s1 + $0x2c0] ss:$16 sps:$4 sm:$0xff]   ;;  %v6640_v8 = vld [vmem:[%s11886_s1 + $0x2c8] ss:$16 sps:$4 sm:$0xff]   ;;  %v6641_v9 = vld [vmem:[%s11886_s1 + $0x2a4] ss:$16 sps:$4 sm:$0xff]  }
  0x12   : >> { %671 = vmatprep.subr.bf16.mxu0 %v6635_v5  ;;  %712 = vmatprep.subr.bf16.mxu1 %v6637_v6  ;;  %v6643_v10 = vld [vmem:[%s11886_s1 + $0x2ac] ss:$16 sps:$4 sm:$0xff]   ;;  %v6645_v11 = vld [vmem:[%s11886_s1 + $0x2a0] ss:$16 sps:$4 sm:$0xff]   ;;  %v6646_v12 = vld [vmem:[%s11886_s1 + $0x2a8] ss:$16 sps:$4 sm:$0xff]  }
  0x13   : >> { %v6647_v13 = vld [vmem:[%s11886_s1 + $0x284] ss:$16 sps:$4 sm:$0xff]   ;;  %v6649_v14 = vld [vmem:[%s11886_s1 + $0x28c] ss:$16 sps:$4 sm:$0xff]   ;;  %v6651_v15 = vld [vmem:[%s11886_s1 + $0x280] ss:$16 sps:$4 sm:$0xff]  }
  0x14   : >> { %v6652_v16 = vld [vmem:[%s11886_s1 + $0x288] ss:$16 sps:$4 sm:$0xff]   ;;  %v6653_v17 = vld [vmem:[%s11886_s1 + $0x264] ss:$16 sps:$4 sm:$0xff]   ;;  %v6655_v18 = vld [vmem:[%s11886_s1 + $0x26c] ss:$16 sps:$4 sm:$0xff]  }
  0x15   : >> { %672 = vmatpush1.bf16.msra.mxu0 %v6639_v7  ;;  %713 = vmatpush1.bf16.msra.mxu1 %v6640_v8  ;;  %v6657_v19 = vld [vmem:[%s11886_s1 + $0x260] ss:$16 sps:$4 sm:$0xff]   ;;  %v6658_v20 = vld [vmem:[%s11886_s1 + $0x268] ss:$16 sps:$4 sm:$0xff]   ;;  %v6659_v21 = vld [vmem:[%s11886_s1 + $0x244] ss:$16 sps:$4 sm:$0xff]  }
  0x16   : >> { %673 = vmatprep.subr.bf16.mxu0 %v6641_v9  ;;  %714 = vmatprep.subr.bf16.mxu1 %v6643_v10  ;;  %v6661_v22 = vld [vmem:[%s11886_s1 + $0x24c] ss:$16 sps:$4 sm:$0xff]   ;;  %v6663_v23 = vld [vmem:[%s11886_s1 + $0x240] ss:$16 sps:$4 sm:$0xff]   ;;  %v6664_v24 = vld [vmem:[%s11886_s1 + $0x248] ss:$16 sps:$4 sm:$0xff]  }
  0x17   : >> { %v6665_v25 = vld [vmem:[%s11886_s1 + $0x224] ss:$16 sps:$4 sm:$0xff]   ;;  %v6667_v26 = vld [vmem:[%s11886_s1 + $0x22c] ss:$16 sps:$4 sm:$0xff]   ;;  %v6669_v27 = vld [vmem:[%s11886_s1 + $0x220] ss:$16 sps:$4 sm:$0xff]  }
  0x18   : >> { %v6670_v28 = vld [vmem:[%s11886_s1 + $0x228] ss:$16 sps:$4 sm:$0xff]   ;;  %v6671_v29 = vld [vmem:[%s11886_s1 + $0x204] ss:$16 sps:$4 sm:$0xff]   ;;  %v6673_v30 = vld [vmem:[%s11886_s1 + $0x20c] ss:$16 sps:$4 sm:$0xff]  }
  0x19   : >> { %674 = vmatpush1.bf16.msra.mxu0 %v6645_v11  ;;  %715 = vmatpush1.bf16.msra.mxu1 %v6646_v12  ;;  %v6675_v31 = vld [vmem:[%s11886_s1 + $0x200] ss:$16 sps:$4 sm:$0xff]   ;;  %v6676_v32 = vld [vmem:[%s11886_s1 + $0x208] ss:$16 sps:$4 sm:$0xff]   ;;  %v6677_v33 = vld [vmem:[%s11886_s1 + $0x3e4] ss:$16 sps:$4 sm:$0xff]  }
  0x1a   : >> { %675 = vmatprep.subr.bf16.mxu0 %v6647_v13  ;;  %716 = vmatprep.subr.bf16.mxu1 %v6649_v14  ;;  %v6679_v34 = vld [vmem:[%s11886_s1 + $0x3ec] ss:$16 sps:$4 sm:$0xff]   ;;  %v6681_v35 = vld [vmem:[%s11886_s1 + $0x3e0] ss:$16 sps:$4 sm:$0xff]   ;;  %v6682_v36 = vld [vmem:[%s11886_s1 + $0x3e8] ss:$16 sps:$4 sm:$0xff]  }
  0x1b   : >> { %v6683_v37 = vld [vmem:[%s11886_s1 + $0x3c4] ss:$16 sps:$4 sm:$0xff]   ;;  %v6685_v38 = vld [vmem:[%s11886_s1 + $0x3cc] ss:$16 sps:$4 sm:$0xff]   ;;  %v6687_v39 = vld [vmem:[%s11886_s1 + $0x3c0] ss:$16 sps:$4 sm:$0xff]  }
  0x1c   : >> { %v6688_v40 = vld [vmem:[%s11886_s1 + $0x3c8] ss:$16 sps:$4 sm:$0xff]   ;;  %v6689_v41 = vld [vmem:[%s11886_s1 + $0x3a4] ss:$16 sps:$4 sm:$0xff]   ;;  %s6607_s11 = sshll.u32 %s7598_s24, 6 }
  0x1d   : >> { %676 = vmatpush1.bf16.msra.mxu0 %v6651_v15  ;;  %717 = vmatpush1.bf16.msra.mxu1 %v6652_v16  ;;  %v6691_v42 = vld [vmem:[%s11886_s1 + $0x3ac] ss:$16 sps:$4 sm:$0xff]   ;;  %v6693_v43 = vld [vmem:[%s11886_s1 + $0x3a0] ss:$16 sps:$4 sm:$0xff]   ;;  %v6694_v44 = vld [vmem:[%s11886_s1 + $0x3a8] ss:$16 sps:$4 sm:$0xff]   ;;  %s7782_s19 = scalar_lea.vmem %s7641_s23, %s6607_s11 }
  0x1e   : >> { %677 = vmatprep.subr.bf16.mxu0 %v6653_v17  ;;  %718 = vmatprep.subr.bf16.mxu1 %v6655_v18  ;;  %v6695_v45 = vld [vmem:[%s11886_s1 + $0x384] ss:$16 sps:$4 sm:$0xff]   ;;  %v6697_v46 = vld [vmem:[%s11886_s1 + $0x38c] ss:$16 sps:$4 sm:$0xff]   ;;  %v6699_v48 = vld [vmem:[%s11886_s1 + $0x380] ss:$16 sps:$4 sm:$0xff]  }
  0x1f   : >> { %v324_v47 = vld [vmem:[%s7782_s19 + $0x8] sm:$0xfe]  ;;  %v326_v50 = vld [vmem:[%s7782_s19 + $0x18] sm:$0x1]  ;;  %v6701_v51 = vld [vmem:[%s11886_s1 + $0x364] ss:$16 sps:$4 sm:$0xff]  }
  0x20   : >> { %v6700_v49 = vld [vmem:[%s11886_s1 + $0x388] ss:$16 sps:$4 sm:$0xff]   ;;  %v332_v52 = vpack.c.bf16 %v326_v50, %v324_v47  ;;  %v6703_v53 = vld [vmem:[%s11886_s1 + $0x36c] ss:$16 sps:$4 sm:$0xff]   ;;  %v6705_v54 = vld [vmem:[%s11886_s1 + $0x360] ss:$16 sps:$4 sm:$0xff]  }
  0x21   : >> { %678 = vmatpush1.bf16.msra.mxu0 %v6657_v19  ;;  %719 = vmatpush1.bf16.msra.mxu1 %v6658_v20  ;;  %v6706_v55 = vld [vmem:[%s11886_s1 + $0x368] ss:$16 sps:$4 sm:$0xff]   ;;  %v6707_v58 = vld [vmem:[%s11886_s1 + $0x344] ss:$16 sps:$4 sm:$0xff]   ;;  %v325_v61 = vld [vmem:[%s7782_s19 + $0x10] sm:$0x1] }
  0x22   : >> { %679 = vmatprep.subr.bf16.mxu0 %v6659_v21  ;;  %720 = vmatprep.subr.bf16.mxu1 %v6661_v22  ;;  %v341_v56 = vshrl.u32 %v332_v52, 16  ;;  %v343_v57 = vshll.u32 %v332_v52, 16  ;;  %v323_v60 = vld [vmem:[%s7782_s19] sm:$0xfe]  ;;  %v6709_v62 = vld [vmem:[%s11886_s1 + $0x34c] ss:$16 sps:$4 sm:$0xff]  }
  0x23   : >> { %v6711_v1 = vld [vmem:[%s11886_s1 + $0x340] ss:$16 sps:$4 sm:$0xff]   ;;  %v331_v2 = vpack.c.bf16 %v325_v61, %v323_v60  ;;  %v7824_v3 = vld [vmem:[%s11886_s1 + $0x348] ss:$16 sps:$4 sm:$0xff]   ;;  %v6713_v4 = vld [vmem:[%s11886_s1 + $0x324] ss:$16 sps:$4 sm:$0xff]  }
  0x24   : >> { %v345_v59 = vrot.slane %v343_v57, 1  ;;  %v7832_v5 = vld [vmem:[%s11886_s1 + $0x32c] ss:$16 sps:$4 sm:$0xff]   ;;  %v6717_v6 = vld [vmem:[%s11886_s1 + $0x320] ss:$16 sps:$4 sm:$0xff]  }
  0x25   : >> { %680 = vmatpush1.bf16.msra.mxu0 %v6663_v23  ;;  %721 = vmatpush1.bf16.msra.mxu1 %v6664_v24  ;;  %v336_v7 = vshll.u32 %v331_v2, 16  ;;  %v7841_v8 = vld [vmem:[%s11886_s1 + $0x328] ss:$16 sps:$4 sm:$0xff]   ;;  %v7846_v9 = vld [vmem:[%s11886_s1 + $0x304] ss:$16 sps:$4 sm:$0xff]   ;;  %v334_v12 = vshrl.u32 %v331_v2, 16 }
  0x26   : >> { %681 = vmatprep.subr.bf16.mxu0 %v6665_v25  ;;  %722 = vmatprep.subr.bf16.mxu1 %v6667_v26  ;;  %v346_v63 = vor.u32 %v345_v59, %v341_v56  ;;  %v7852_v10 = vld [vmem:[%s11886_s1 + $0x30c] ss:$16 sps:$4 sm:$0xff]   ;;  %v7857_v11 = vld [vmem:[%s11886_s1 + $0x300] ss:$16 sps:$4 sm:$0xff]   ;;  %v7863_v14 = vld [vmem:[%s11886_s1 + $0x308] ss:$16 sps:$4 sm:$0xff]  }
  0x27   : >> { %v338_v13 = vrot.slane %v336_v7, 1  ;;  %v7868_v15 = vld [vmem:[%s11886_s1 + $0xe4] ss:$16 sps:$4 sm:$0xff]   ;;  %v7875_v16 = vld [vmem:[%s11886_s1 + $0xec] ss:$16 sps:$4 sm:$0xff]  }
  0x28   : >> { %701 = vmatprep.mubr.bf16.mxu0 %v346_v63  ;;  %742 = vmatprep.mubr.bf16.mxu1 %v346_v63  ;;  %v7880_v18 = vld [vmem:[%s11886_s1 + $0xe0] ss:$16 sps:$4 sm:$0xff]   ;;  %v7887_v19 = vld [vmem:[%s11886_s1 + $0xe8] ss:$16 sps:$4 sm:$0xff]   ;;  %v7892_v20 = vld [vmem:[%s11886_s1 + $0xc4] ss:$16 sps:$4 sm:$0xff]  }
  0x29   : >> { %682 = vmatpush1.bf16.msra.mxu0 %v6669_v27  ;;  %723 = vmatpush1.bf16.msra.mxu1 %v6670_v28  ;;  %v339_v17 = vor.u32 %v338_v13, %v334_v12  ;;  %v7899_v21 = vld [vmem:[%s11886_s1 + $0xcc] ss:$16 sps:$4 sm:$0xff]   ;;  %v7904_v22 = vld [vmem:[%s11886_s1 + $0xc0] ss:$16 sps:$4 sm:$0xff]   ;;  %v7911_v23 = vld [vmem:[%s11886_s1 + $0xc8] ss:$16 sps:$4 sm:$0xff]  }
  0x2a   : >> { %683 = vmatprep.subr.bf16.mxu0 %v6671_v29  ;;  %724 = vmatprep.subr.bf16.mxu1 %v6673_v30  ;;  %v7916_v24 = vld [vmem:[%s11886_s1 + $0xa4] ss:$16 sps:$4 sm:$0xff]   ;;  %v7923_v25 = vld [vmem:[%s11886_s1 + $0xac] ss:$16 sps:$4 sm:$0xff]   ;;  %v6737_v26 = vld [vmem:[%s11886_s1 + $0xa0] ss:$16 sps:$4 sm:$0xff]  }
  0x2b   : >> { %v7933_v27 = vld [vmem:[%s11886_s1 + $0xa8] ss:$16 sps:$4 sm:$0xff]   ;;  %v6745_v28 = vld [vmem:[%s11886_s1 + $0x84] ss:$16 sps:$4 sm:$0xff]   ;;  %v7943_v29 = vld [vmem:[%s11886_s1 + $0x8c] ss:$16 sps:$4 sm:$0xff]  }
  0x2c   : >> { %v6743_v30 = vld [vmem:[%s11886_s1 + $0x80] ss:$16 sps:$4 sm:$0xff]   ;;  %v6772_v47 = vld [vmem:[%s11886_s1 + $0xc] ss:$16 sps:$4 sm:$0xff]   ;;  %v6775_v50 = vld [vmem:[%s11886_s1 + $0x1e4] ss:$16 sps:$4 sm:$0xff]  }
  0x2d   : >> { %684 = vmatpush1.bf16.msra.mxu0 %v6675_v31  ;;  %725 = vmatpush1.bf16.msra.mxu1 %v6676_v32  ;;  %v6746_v31 = vld [vmem:[%s11886_s1 + $0x88] ss:$16 sps:$4 sm:$0xff]   ;;  %v6751_v32 = vld [vmem:[%s11886_s1 + $0x64] ss:$16 sps:$4 sm:$0xff]   ;;  %v6773_v52 = vld [vmem:[%s11886_s1 + $0x1e0] ss:$16 sps:$4 sm:$0xff]  }
  0x2e   : >> { %685 = vmatprep.subr.bf16.mxu0 %v6677_v33  ;;  %726 = vmatprep.subr.bf16.mxu1 %v6679_v34  ;;  %v6754_v33 = vld [vmem:[%s11886_s1 + $0x6c] ss:$16 sps:$4 sm:$0xff]   ;;  %v6749_v34 = vld [vmem:[%s11886_s1 + $0x60] ss:$16 sps:$4 sm:$0xff]   ;;  %v6782_v57 = vld [vmem:[%s11886_s1 + $0x1c8] ss:$16 sps:$4 sm:$0xff]  }
  0x2f   : >> { %v6779_v56 = vld [vmem:[%s11886_s1 + $0x1c0] ss:$16 sps:$4 sm:$0xff]   ;;  %v6790_v59 = vld [vmem:[%s11886_s1 + $0x1ac] ss:$16 sps:$4 sm:$0xff]   ;;  %v6788_v61 = vld [vmem:[%s11886_s1 + $0x1a8] ss:$16 sps:$4 sm:$0xff]  }
  0x30   : >> { %v6785_v60 = vld [vmem:[%s11886_s1 + $0x1a0] ss:$16 sps:$4 sm:$0xff]   ;;  %v6796_v63 = vld [vmem:[%s11886_s1 + $0x18c] ss:$16 sps:$4 sm:$0xff]   ;;  %v8052_v2 = vld [vmem:[%s11886_s1 + $0x188] ss:$16 sps:$4 sm:$0xff]  }
  0x31   : >> { %686 = vmatpush2.bf16.msra.mxu0 %v6681_v35  ;;  %727 = vmatpush2.bf16.msra.mxu1 %v6682_v36  ;;  %v6752_v35 = vld [vmem:[%s11886_s1 + $0x68] ss:$16 sps:$4 sm:$0xff]   ;;  %v6757_v36 = vld [vmem:[%s11886_s1 + $0x44] ss:$16 sps:$4 sm:$0xff]   ;;  %v8067_v7 = vld [vmem:[%s11886_s1 + $0x160] ss:$16 sps:$4 sm:$0xff]  }
  0x32   : >> { %687 = vmatprep.subr.bf16.mxu0 %v6683_v37  ;;  %728 = vmatprep.subr.bf16.mxu1 %v6685_v38  ;;  %v6760_v37 = vld [vmem:[%s11886_s1 + $0x4c] ss:$16 sps:$4 sm:$0xff]   ;;  %v6755_v38 = vld [vmem:[%s11886_s1 + $0x40] ss:$16 sps:$4 sm:$0xff]   ;;  %v8072_v12 = vld [vmem:[%s11886_s1 + $0x168] ss:$16 sps:$4 sm:$0xff]  }
  0x33   : >> { %v8077_v13 = vld [vmem:[%s11886_s1 + $0x144] ss:$16 sps:$4 sm:$0xff]   ;;  %v8825_v0 = vld [vmem:[%s11886_s1 + $0x548] ss:$16 sps:$4 sm:$0xff]  }
  0x34   : >> { %12012 = vst [vmem:[#allocation14_spill] sm:$0xff] %v8825_v0 }
  0x35   : >> { %688 = vmatpush2.bf16.msra.mxu0 %v6687_v39  ;;  %729 = vmatpush2.bf16.msra.mxu1 %v6688_v40  ;;  %v6758_v39 = vld [vmem:[%s11886_s1 + $0x48] ss:$16 sps:$4 sm:$0xff]   ;;  %v6763_v40 = vld [vmem:[%s11886_s1 + $0x24] ss:$16 sps:$4 sm:$0xff]  }
  0x36   : >> { %689 = vmatprep.subr.bf16.mxu0 %v6689_v41  ;;  %730 = vmatprep.subr.bf16.mxu1 %v6691_v42  ;;  %v6766_v41 = vld [vmem:[%s11886_s1 + $0x2c] ss:$16 sps:$4 sm:$0xff]  }
  0x37   : >> { %v248_v42 = vld [vmem:[%s7782_s19 + $0x8] sm:$0xff] }
  0x39   : >> { %690 = vmatpush2.bf16.msra.mxu0 %v6693_v43  ;;  %731 = vmatpush2.bf16.msra.mxu1 %v6694_v44  ;;  %v6761_v43 = vld [vmem:[%s11886_s1 + $0x20] ss:$16 sps:$4 sm:$0xff]   ;;  %v6764_v44 = vld [vmem:[%s11886_s1 + $0x28] ss:$16 sps:$4 sm:$0xff]  }
  0x3a   : >> { %691 = vmatprep.subr.bf16.mxu0 %v6695_v45  ;;  %732 = vmatprep.subr.bf16.mxu1 %v6697_v46  ;;  %v255_v45 = vpack.c.bf16 %v248_v42, %v248_v42  ;;  %v6769_v46 = vld [vmem:[%s11886_s1 + $0x4] ss:$16 sps:$4 sm:$0xff]  }
  0x3d   : >> { %692 = vmatpush2.bf16.msra.mxu0 %v6699_v48  ;;  %733 = vmatpush2.bf16.msra.mxu1 %v6700_v49  ;;  %v6767_v48 = vld [vmem:[%s11886_s1] ss:$16 sps:$4 sm:$0xff]   ;;  %v6770_v49 = vld [vmem:[%s11886_s1 + $0x8] ss:$16 sps:$4 sm:$0xff]  }
  0x3e   : >> { %693 = vmatprep.subr.bf16.mxu0 %v6701_v51  ;;  %734 = vmatprep.subr.bf16.mxu1 %v6703_v53  ;;  %v6778_v51 = vld [vmem:[%s11886_s1 + $0x1ec] ss:$16 sps:$4 sm:$0xff]   ;;  %v6776_v53 = vld [vmem:[%s11886_s1 + $0x1e8] ss:$16 sps:$4 sm:$0xff]  }
  0x41   : >> { %694 = vmatpush2.bf16.msra.mxu0 %v6705_v54  ;;  %735 = vmatpush2.bf16.msra.mxu1 %v6706_v55  ;;  %v6781_v54 = vld [vmem:[%s11886_s1 + $0x1c4] ss:$16 sps:$4 sm:$0xff]   ;;  %v6784_v55 = vld [vmem:[%s11886_s1 + $0x1cc] ss:$16 sps:$4 sm:$0xff]  }
  0x42   : >> { %695 = vmatprep.subr.bf16.mxu0 %v6707_v58  ;;  %736 = vmatprep.subr.bf16.mxu1 %v6709_v62  ;;  %v6787_v58 = vld [vmem:[%s11886_s1 + $0x1a4] ss:$16 sps:$4 sm:$0xff]  }
  0x43   : >> { %v6793_v62 = vld [vmem:[%s11886_s1 + $0x184] ss:$16 sps:$4 sm:$0xff]  }
  0x45   : >> { %696 = vmatpush2.bf16.msra.mxu0 %v6711_v1  ;;  %737 = vmatpush2.bf16.msra.mxu1 %v7824_v3  ;;  %v8047_v1 = vld [vmem:[%s11886_s1 + $0x180] ss:$16 sps:$4 sm:$0xff]  }
  0x46   : >> { %697 = vmatprep.subr.bf16.mxu0 %v6713_v4  ;;  %738 = vmatprep.subr.bf16.mxu1 %v7832_v5  ;;  %v8057_v4 = vld [vmem:[%s11886_s1 + $0x164] ss:$16 sps:$4 sm:$0xff]  }
  0x49   : >> { %698 = vmatpush2.bf16.msra.mxu0 %v6717_v6  ;;  %739 = vmatpush2.bf16.msra.mxu1 %v7841_v8  ;;  %v8062_v6 = vld [vmem:[%s11886_s1 + $0x16c] ss:$16 sps:$4 sm:$0xff]  }
  0x4a   : >> { %699 = vmatprep.subr.bf16.mxu0 %v7846_v9  ;;  %740 = vmatprep.subr.bf16.mxu1 %v7852_v10 }
  0x4d   : >> { %700 = vmatpush2.bf16.msra.mxu0 %v7857_v11  ;;  %741 = vmatpush2.bf16.msra.mxu1 %v7863_v14 }
  0x4e   : >> { %1071 = vmatprep.subr.bf16.mxu0 %v7868_v15  ;;  %1112 = vmatprep.subr.bf16.mxu1 %v7875_v16 }
  0x50   : >> { %702 = vmatmul.mubr.bf16.vlgmr.msra.gmra.mxu0 %v339_v17  ;;  %743 = vmatmul.mubr.bf16.vlgmr.msra.gmra.mxu1 %v339_v17  ;;  %v8082_v17 = vld [vmem:[%s11886_s1 + $0x14c] ss:$16 sps:$4 sm:$0xff]  }
  0x51   : >> { %1072 = vmatpush1.bf16.msra.mxu0 %v7880_v18  ;;  %1113 = vmatpush1.bf16.msra.mxu1 %v7887_v19 }
  0x52   : >> { %1073 = vmatprep.subr.bf16.mxu0 %v7892_v20  ;;  %1114 = vmatprep.subr.bf16.mxu1 %v7899_v21 }
  0x53   : >> { %1103 = vmatprep.mubr.bf16.mxu0 %v255_v45  ;;  %1144 = vmatprep.mubr.bf16.mxu1 %v255_v45 }
  0x55   : >> { %1074 = vmatpush1.bf16.msra.mxu0 %v7904_v22  ;;  %1115 = vmatpush1.bf16.msra.mxu1 %v7911_v23 }
  0x56   : >> { %1075 = vmatprep.subr.bf16.mxu0 %v7916_v24  ;;  %1116 = vmatprep.subr.bf16.mxu1 %v7923_v25 }
  0x59   : >> { %1076 = vmatpush1.bf16.msra.mxu0 %v6737_v26  ;;  %1117 = vmatpush1.bf16.msra.mxu1 %v7933_v27  ;;  %v5546_v26 = vld [vmem:[%s7782_s19 + $0x28] sm:$0xfe] }
  0x5a   : >> { %1077 = vmatprep.subr.bf16.mxu0 %v6745_v28  ;;  %1118 = vmatprep.subr.bf16.mxu1 %v7943_v29  ;;  %v5548_v28 = vld [vmem:[%s7782_s19 + $0x38] sm:$0x1] }
  0x5d   : >> { %1078 = vmatpush1.bf16.msra.mxu0 %v6743_v30  ;;  %1119 = vmatpush1.bf16.msra.mxu1 %v6746_v31  ;;  %v8093_v30 = vld [vmem:[%s11886_s1 + $0x140] ss:$16 sps:$4 sm:$0xff]   ;;  %v8098_v31 = vld [vmem:[%s11886_s1 + $0x148] ss:$16 sps:$4 sm:$0xff]  }
  0x5e   : >> { %1079 = vmatprep.subr.bf16.mxu0 %v6751_v32  ;;  %1120 = vmatprep.subr.bf16.mxu1 %v6754_v33  ;;  %v8103_v32 = vld [vmem:[%s11886_s1 + $0x124] ss:$16 sps:$4 sm:$0xff]   ;;  %v8108_v33 = vld [vmem:[%s11886_s1 + $0x12c] ss:$16 sps:$4 sm:$0xff]  }
  0x61   : >> { %1080 = vmatpush1.bf16.msra.mxu0 %v6749_v34  ;;  %1121 = vmatpush1.bf16.msra.mxu1 %v6752_v35  ;;  %v8117_v34 = vld [vmem:[%s11886_s1 + $0x120] ss:$16 sps:$4 sm:$0xff]   ;;  %v8122_v35 = vld [vmem:[%s11886_s1 + $0x128] ss:$16 sps:$4 sm:$0xff]  }
  0x62   : >> { %1081 = vmatprep.subr.bf16.mxu0 %v6757_v36  ;;  %1122 = vmatprep.subr.bf16.mxu1 %v6760_v37  ;;  %v1154_v36 = vpack.c.bf16 %v5548_v28, %v5546_v26  ;;  %v8127_v37 = vld [vmem:[%s11886_s1 + $0x104] ss:$16 sps:$4 sm:$0xff]   ;;  %v7510_v26 = vld [vmem:[%s11886_s1 + $0x26c] ss:$16 sps:$4 sm:$0xff]   ;;  %v7511_v28 = vld [vmem:[%s11886_s1 + $0x260] ss:$16 sps:$4 sm:$0xff]  }
  0x64   : >> { %v1165_v42 = vshll.u32 %v1154_v36, 16 }
  0x65   : >> { %1082 = vmatpush1.bf16.msra.mxu0 %v6755_v38  ;;  %1123 = vmatpush1.bf16.msra.mxu1 %v6758_v39  ;;  %v8132_v38 = vld [vmem:[%s11886_s1 + $0x10c] ss:$16 sps:$4 sm:$0xff]   ;;  %v8141_v39 = vld [vmem:[%s11886_s1 + $0x100] ss:$16 sps:$4 sm:$0xff]  }
  0x66   : >> { %1083 = vmatprep.subr.bf16.mxu0 %v6763_v40  ;;  %1124 = vmatprep.subr.bf16.mxu1 %v6766_v41  ;;  %v8146_v40 = vld [vmem:[%s11886_s1 + $0x108] ss:$16 sps:$4 sm:$0xff]   ;;  %v247_v41 = vld [vmem:[%s7782_s19] sm:$0xff] }
  0x67   : >> { %v254_v45 = vpack.c.bf16 %v247_v41, %v247_v41  ;;  %v7513_v41 = vld [vmem:[%s11886_s1 + $0x244] ss:$16 sps:$4 sm:$0xff]  }
  0x69   : >> { %1084 = vmatpush1.bf16.msra.mxu0 %v6761_v43  ;;  %1125 = vmatpush1.bf16.msra.mxu1 %v6764_v44  ;;  %v1163_v43 = vshrl.u32 %v1154_v36, 16  ;;  %v1167_v44 = vrot.slane %v1165_v42, 1  ;;  %v7512_v36 = vld [vmem:[%s11886_s1 + $0x268] ss:$16 sps:$4 sm:$0xff]   ;;  %v7514_v42 = vld [vmem:[%s11886_s1 + $0x24c] ss:$16 sps:$4 sm:$0xff]  }
  0x6a   : >> { %1085 = vmatprep.subr.bf16.mxu0 %v6769_v46  ;;  %1126 = vmatprep.subr.bf16.mxu1 %v6772_v47  ;;  %v7493_v46 = vld [vmem:[%s11886_s1 + $0x2e4] ss:$16 sps:$4 sm:$0xff]   ;;  %v7494_v47 = vld [vmem:[%s11886_s1 + $0x2ec] ss:$16 sps:$4 sm:$0xff]  }
  0x6d   : >> { %1086 = vmatpush1.bf16.msra.mxu0 %v6767_v48  ;;  %1127 = vmatpush1.bf16.msra.mxu1 %v6770_v49  ;;  %v8161_v48 = vor.u32 %v1167_v44, %v1163_v43  ;;  %v7495_v49 = vld [vmem:[%s11886_s1 + $0x2e0] ss:$16 sps:$4 sm:$0xff]   ;;  %v7516_v44 = vld [vmem:[%s11886_s1 + $0x248] ss:$16 sps:$4 sm:$0xff]  }
  0x6e   : >> { %1087 = vmatprep.subr.bf16.mxu0 %v6775_v50  ;;  %1128 = vmatprep.subr.bf16.mxu1 %v6778_v51  ;;  %v7496_v50 = vld [vmem:[%s11886_s1 + $0x2e8] ss:$16 sps:$4 sm:$0xff]   ;;  %v7497_v51 = vld [vmem:[%s11886_s1 + $0x2c4] ss:$16 sps:$4 sm:$0xff]   ;;  %v7515_v43 = vld [vmem:[%s11886_s1 + $0x240] ss:$16 sps:$4 sm:$0xff]  }
  0x6f   : >> { %12001 = vst [vmem:[#allocation3_spill] sm:$0xff] %v8161_v48 }
  0x71   : >> { %1088 = vmatpush2.bf16.msra.mxu0 %v6773_v52  ;;  %1129 = vmatpush2.bf16.msra.mxu1 %v6776_v53  ;;  %v7498_v52 = vld [vmem:[%s11886_s1 + $0x2cc] ss:$16 sps:$4 sm:$0xff]   ;;  %v7499_v53 = vld [vmem:[%s11886_s1 + $0x2c0] ss:$16 sps:$4 sm:$0xff]  }
  0x72   : >> { %1089 = vmatprep.subr.bf16.mxu0 %v6781_v54  ;;  %1130 = vmatprep.subr.bf16.mxu1 %v6784_v55  ;;  %v7500_v54 = vld [vmem:[%s11886_s1 + $0x2c8] ss:$16 sps:$4 sm:$0xff]   ;;  %v7501_v55 = vld [vmem:[%s11886_s1 + $0x2a4] ss:$16 sps:$4 sm:$0xff]  }
  0x75   : >> { %1090 = vmatpush2.bf16.msra.mxu0 %v6779_v56  ;;  %1131 = vmatpush2.bf16.msra.mxu1 %v6782_v57  ;;  %v7502_v56 = vld [vmem:[%s11886_s1 + $0x2ac] ss:$16 sps:$4 sm:$0xff]   ;;  %v7503_v57 = vld [vmem:[%s11886_s1 + $0x2a0] ss:$16 sps:$4 sm:$0xff]  }
  0x76   : >> { %1091 = vmatprep.subr.bf16.mxu0 %v6787_v58  ;;  %1132 = vmatprep.subr.bf16.mxu1 %v6790_v59  ;;  %v7504_v58 = vld [vmem:[%s11886_s1 + $0x2a8] ss:$16 sps:$4 sm:$0xff]   ;;  %v7505_v59 = vld [vmem:[%s11886_s1 + $0x284] ss:$16 sps:$4 sm:$0xff]  }
  0x79   : >> { %1092 = vmatpush2.bf16.msra.mxu0 %v6785_v60  ;;  %1133 = vmatpush2.bf16.msra.mxu1 %v6788_v61  ;;  %v7506_v60 = vld [vmem:[%s11886_s1 + $0x28c] ss:$16 sps:$4 sm:$0xff]   ;;  %v7507_v61 = vld [vmem:[%s11886_s1 + $0x280] ss:$16 sps:$4 sm:$0xff]  }
  0x7a   : >> { %1093 = vmatprep.subr.bf16.mxu0 %v6793_v62  ;;  %1134 = vmatprep.subr.bf16.mxu1 %v6796_v63  ;;  %v7508_v62 = vld [vmem:[%s11886_s1 + $0x288] ss:$16 sps:$4 sm:$0xff]   ;;  %v7509_v63 = vld [vmem:[%s11886_s1 + $0x264] ss:$16 sps:$4 sm:$0xff]  }
  0x7d   : >> { %1094 = vmatpush2.bf16.msra.mxu0 %v8047_v1  ;;  %1135 = vmatpush2.bf16.msra.mxu1 %v8052_v2 }
  0x7e   : >> { %1095 = vmatprep.subr.bf16.mxu0 %v8057_v4  ;;  %1136 = vmatprep.subr.bf16.mxu1 %v8062_v6 }
  0x81   : >> { %1096 = vmatpush2.bf16.msra.mxu0 %v8067_v7  ;;  %1137 = vmatpush2.bf16.msra.mxu1 %v8072_v12 }
  0x82   : >> { %1097 = vmatprep.subr.bf16.mxu0 %v8077_v13  ;;  %1138 = vmatprep.subr.bf16.mxu1 %v8082_v17 }
  0x85   : >> { %1098 = vmatpush2.bf16.msra.mxu0 %v8093_v30  ;;  %1139 = vmatpush2.bf16.msra.mxu1 %v8098_v31 }
  0x86   : >> { %1099 = vmatprep.subr.bf16.mxu0 %v8103_v32  ;;  %1140 = vmatprep.subr.bf16.mxu1 %v8108_v33 }
  0x89   : >> { %1100 = vmatpush2.bf16.msra.mxu0 %v8117_v34  ;;  %1141 = vmatpush2.bf16.msra.mxu1 %v8122_v35 }
  0x8a   : >> { %1101 = vmatprep.subr.bf16.mxu0 %v8127_v37  ;;  %1142 = vmatprep.subr.bf16.mxu1 %v8132_v38 }
  0x8d   : >> { %1102 = vmatpush2.bf16.msra.mxu0 %v8141_v39  ;;  %1143 = vmatpush2.bf16.msra.mxu1 %v8146_v40 }
  0x8e   : >> { %1171 = vmatprep.subr.bf16.mxu0 %v7493_v46  ;;  %1212 = vmatprep.subr.bf16.mxu1 %v7494_v47  ;;  %v7518_v46 = vld [vmem:[%s11886_s1 + $0x22c] ss:$16 sps:$4 sm:$0xff]   ;;  %v7519_v47 = vld [vmem:[%s11886_s1 + $0x220] ss:$16 sps:$4 sm:$0xff]  }
  0x90   : >> { %1104 = vmatmul.mubr.bf16.vlgmr.msra.gmra.mxu0 %v254_v45  ;;  %1145 = vmatmul.mubr.bf16.vlgmr.msra.gmra.mxu1 %v254_v45  ;;  %v7517_v45 = vld [vmem:[%s11886_s1 + $0x224] ss:$16 sps:$4 sm:$0xff]  }
  0x91   : >> { %1172 = vmatpush1.bf16.msra.mxu0 %v7495_v49  ;;  %1213 = vmatpush1.bf16.msra.mxu1 %v7496_v50  ;;  %v7520_v49 = vld [vmem:[%s11886_s1 + $0x228] ss:$16 sps:$4 sm:$0xff]   ;;  %v7521_v50 = vld [vmem:[%s11886_s1 + $0x204] ss:$16 sps:$4 sm:$0xff]  }
  0x92   : >> { %1173 = vmatprep.subr.bf16.mxu0 %v7497_v51  ;;  %1214 = vmatprep.subr.bf16.mxu1 %v7498_v52  ;;  %v7522_v51 = vld [vmem:[%s11886_s1 + $0x20c] ss:$16 sps:$4 sm:$0xff]   ;;  %v7523_v52 = vld [vmem:[%s11886_s1 + $0x200] ss:$16 sps:$4 sm:$0xff]  }
  0x93   : >> { %1203 = vmatprep.mubr.bf16.mxu0 %v8161_v48  ;;  %1244 = vmatprep.mubr.bf16.mxu1 %v8161_v48  ;;  %v8837_v48 = vld [vmem:[%s11886_s1 + $0x52c] ss:$16 sps:$4 sm:$0xff]  }
  0x94   : >> { %12014 = vst [vmem:[#allocation16_spill] sm:$0xff] %v8837_v48 }
  0x95   : >> { %1174 = vmatpush1.bf16.msra.mxu0 %v7499_v53  ;;  %1215 = vmatpush1.bf16.msra.mxu1 %v7500_v54  ;;  %v7524_v53 = vld [vmem:[%s11886_s1 + $0x208] ss:$16 sps:$4 sm:$0xff]   ;;  %v7525_v54 = vld [vmem:[%s11886_s1 + $0x3e4] ss:$16 sps:$4 sm:$0xff]  }
  0x96   : >> { %1175 = vmatprep.subr.bf16.mxu0 %v7501_v55  ;;  %1216 = vmatprep.subr.bf16.mxu1 %v7502_v56  ;;  %v7526_v55 = vld [vmem:[%s11886_s1 + $0x3ec] ss:$16 sps:$4 sm:$0xff]   ;;  %v7527_v56 = vld [vmem:[%s11886_s1 + $0x3e0] ss:$16 sps:$4 sm:$0xff]  }
  0x99   : >> { %1176 = vmatpush1.bf16.msra.mxu0 %v7503_v57  ;;  %1217 = vmatpush1.bf16.msra.mxu1 %v7504_v58  ;;  %v7528_v57 = vld [vmem:[%s11886_s1 + $0x3e8] ss:$16 sps:$4 sm:$0xff]   ;;  %v7529_v58 = vld [vmem:[%s11886_s1 + $0x3c4] ss:$16 sps:$4 sm:$0xff]  }
  0x9a   : >> { %1177 = vmatprep.subr.bf16.mxu0 %v7505_v59  ;;  %1218 = vmatprep.subr.bf16.mxu1 %v7506_v60  ;;  %v7530_v59 = vld [vmem:[%s11886_s1 + $0x3cc] ss:$16 sps:$4 sm:$0xff]   ;;  %v7531_v60 = vld [vmem:[%s11886_s1 + $0x3c0] ss:$16 sps:$4 sm:$0xff]  }
  0x9d   : >> { %1178 = vmatpush1.bf16.msra.mxu0 %v7507_v61  ;;  %1219 = vmatpush1.bf16.msra.mxu1 %v7508_v62  ;;  %v7532_v61 = vld [vmem:[%s11886_s1 + $0x3c8] ss:$16 sps:$4 sm:$0xff]   ;;  %v7533_v62 = vld [vmem:[%s11886_s1 + $0x3a4] ss:$16 sps:$4 sm:$0xff]  }
  0x9e   : >> { %1179 = vmatprep.subr.bf16.mxu0 %v7509_v63  ;;  %1220 = vmatprep.subr.bf16.mxu1 %v7510_v26  ;;  %v7534_v63 = vld [vmem:[%s11886_s1 + $0x3ac] ss:$16 sps:$4 sm:$0xff]   ;;  %v7535_v26 = vld [vmem:[%s11886_s1 + $0x3a0] ss:$16 sps:$4 sm:$0xff]  }
  0xa1   : >> { %1180 = vmatpush1.bf16.msra.mxu0 %v7511_v28  ;;  %1221 = vmatpush1.bf16.msra.mxu1 %v7512_v36  ;;  %v7536_v28 = vld [vmem:[%s11886_s1 + $0x3a8] ss:$16 sps:$4 sm:$0xff]   ;;  %v7537_v36 = vld [vmem:[%s11886_s1 + $0x384] ss:$16 sps:$4 sm:$0xff]  }
  0xa2   : >> { %1181 = vmatprep.subr.bf16.mxu0 %v7513_v41  ;;  %1222 = vmatprep.subr.bf16.mxu1 %v7514_v42  ;;  %v7538_v41 = vld [vmem:[%s11886_s1 + $0x38c] ss:$16 sps:$4 sm:$0xff]   ;;  %v7539_v42 = vld [vmem:[%s11886_s1 + $0x380] ss:$16 sps:$4 sm:$0xff]  }
  0xa5   : >> { %1182 = vmatpush1.bf16.msra.mxu0 %v7515_v43  ;;  %1223 = vmatpush1.bf16.msra.mxu1 %v7516_v44  ;;  %v7540_v43 = vld [vmem:[%s11886_s1 + $0x388] ss:$16 sps:$4 sm:$0xff]   ;;  %v5545_v44 = vld [vmem:[%s7782_s19 + $0x20] sm:$0xfe] }
  0xa6   : >> { %1183 = vmatprep.subr.bf16.mxu0 %v7517_v45  ;;  %1224 = vmatprep.subr.bf16.mxu1 %v7518_v46  ;;  %v5547_v45 = vld [vmem:[%s7782_s19 + $0x30] sm:$0x1]  ;;  %v7541_v46 = vld [vmem:[%s11886_s1 + $0x364] ss:$16 sps:$4 sm:$0xff]  }
  0xa9   : >> { %1184 = vmatpush1.bf16.msra.mxu0 %v7519_v47  ;;  %1225 = vmatpush1.bf16.msra.mxu1 %v7520_v49  ;;  %v7542_v47 = vld [vmem:[%s11886_s1 + $0x36c] ss:$16 sps:$4 sm:$0xff]   ;;  %v1153_v49 = vpack.c.bf16 %v5547_v45, %v5545_v44  ;;  %v7576_v44 = vld [vmem:[%s11886_s1 + $0x1c0] ss:$16 sps:$4 sm:$0xff]   ;;  %v7577_v45 = vld [vmem:[%s11886_s1 + $0x1c8] ss:$16 sps:$4 sm:$0xff]  }
  0xaa   : >> { %1185 = vmatprep.subr.bf16.mxu0 %v7521_v50  ;;  %1226 = vmatprep.subr.bf16.mxu1 %v7522_v51  ;;  %v7543_v50 = vld [vmem:[%s11886_s1 + $0x360] ss:$16 sps:$4 sm:$0xff]   ;;  %v7544_v51 = vld [vmem:[%s11886_s1 + $0x368] ss:$16 sps:$4 sm:$0xff]  }
  0xad   : >> { %1186 = vmatpush1.bf16.msra.mxu0 %v7523_v52  ;;  %1227 = vmatpush1.bf16.msra.mxu1 %v7524_v53  ;;  %v7545_v52 = vld [vmem:[%s11886_s1 + $0x344] ss:$16 sps:$4 sm:$0xff]   ;;  %v7546_v53 = vld [vmem:[%s11886_s1 + $0x34c] ss:$16 sps:$4 sm:$0xff]  }
  0xae   : >> { %1187 = vmatprep.subr.bf16.mxu0 %v7525_v54  ;;  %1228 = vmatprep.subr.bf16.mxu1 %v7526_v55  ;;  %v1158_v54 = vshll.u32 %v1153_v49, 16  ;;  %v7547_v55 = vld [vmem:[%s11886_s1 + $0x340] ss:$16 sps:$4 sm:$0xff]  }
  0xb1   : >> { %1188 = vmatpush2.bf16.msra.mxu0 %v7527_v56  ;;  %1229 = vmatpush2.bf16.msra.mxu1 %v7528_v57  ;;  %v7548_v56 = vld [vmem:[%s11886_s1 + $0x324] ss:$16 sps:$4 sm:$0xff]   ;;  %v1156_v57 = vshrl.u32 %v1153_v49, 16  ;;  %v7580_v49 = vld [vmem:[%s11886_s1 + $0x1a0] ss:$16 sps:$4 sm:$0xff]  }
  0xb2   : >> { %1189 = vmatprep.subr.bf16.mxu0 %v7529_v58  ;;  %1230 = vmatprep.subr.bf16.mxu1 %v7530_v59  ;;  %v1160_v58 = vrot.slane %v1158_v54, 1  ;;  %v7549_v59 = vld [vmem:[%s11886_s1 + $0x320] ss:$16 sps:$4 sm:$0xff]   ;;  %v8549_v54 = vld [vmem:[%s11886_s1 + $0x4ac] ss:$16 sps:$4 sm:$0xff]  }
  0xb5   : >> { %1190 = vmatpush2.bf16.msra.mxu0 %v7531_v60  ;;  %1231 = vmatpush2.bf16.msra.mxu1 %v7532_v61  ;;  %v8338_v60 = vor.u32 %v1160_v58, %v1156_v57  ;;  %v7567_v61 = vld [vmem:[%s11886_s1 + $0xc] ss:$16 sps:$4 sm:$0xff]  }
  0xb6   : >> { %1191 = vmatprep.subr.bf16.mxu0 %v7533_v62  ;;  %1232 = vmatprep.subr.bf16.mxu1 %v7534_v63  ;;  %v7568_v62 = vld [vmem:[%s11886_s1] ss:$16 sps:$4 sm:$0xff]   ;;  %v7569_v63 = vld [vmem:[%s11886_s1 + $0x8] ss:$16 sps:$4 sm:$0xff]  }
  0xb7   : >> { %12002 = vst [vmem:[#allocation4_spill] sm:$0xff] %v8338_v60 }
  0xb9   : >> { %1192 = vmatpush2.bf16.msra.mxu0 %v7535_v26  ;;  %1233 = vmatpush2.bf16.msra.mxu1 %v7536_v28  ;;  %v7570_v26 = vld [vmem:[%s11886_s1 + $0x1e4] ss:$16 sps:$4 sm:$0xff]   ;;  %v7571_v28 = vld [vmem:[%s11886_s1 + $0x1ec] ss:$16 sps:$4 sm:$0xff]  }
  0xba   : >> { %1193 = vmatprep.subr.bf16.mxu0 %v7537_v36  ;;  %1234 = vmatprep.subr.bf16.mxu1 %v7538_v41  ;;  %v7572_v36 = vld [vmem:[%s11886_s1 + $0x1e0] ss:$16 sps:$4 sm:$0xff]   ;;  %v7573_v41 = vld [vmem:[%s11886_s1 + $0x1e8] ss:$16 sps:$4 sm:$0xff]  }
  0xbd   : >> { %1194 = vmatpush2.bf16.msra.mxu0 %v7539_v42  ;;  %1235 = vmatpush2.bf16.msra.mxu1 %v7540_v43  ;;  %v7574_v42 = vld [vmem:[%s11886_s1 + $0x1c4] ss:$16 sps:$4 sm:$0xff]   ;;  %v7575_v43 = vld [vmem:[%s11886_s1 + $0x1cc] ss:$16 sps:$4 sm:$0xff]  }
  0xbe   : >> { %1195 = vmatprep.subr.bf16.mxu0 %v7541_v46  ;;  %1236 = vmatprep.subr.bf16.mxu1 %v7542_v47  ;;  %v7578_v46 = vld [vmem:[%s11886_s1 + $0x1a4] ss:$16 sps:$4 sm:$0xff]   ;;  %v7579_v47 = vld [vmem:[%s11886_s1 + $0x1ac] ss:$16 sps:$4 sm:$0xff]  }
  0xc1   : >> { %1196 = vmatpush2.bf16.msra.mxu0 %v7543_v50  ;;  %1237 = vmatpush2.bf16.msra.mxu1 %v7544_v51  ;;  %v7581_v50 = vld [vmem:[%s11886_s1 + $0x1a8] ss:$16 sps:$4 sm:$0xff]   ;;  %v7582_v51 = vld [vmem:[%s11886_s1 + $0x184] ss:$16 sps:$4 sm:$0xff]  }
  0xc2   : >> { %1197 = vmatprep.subr.bf16.mxu0 %v7545_v52  ;;  %1238 = vmatprep.subr.bf16.mxu1 %v7546_v53  ;;  %v7583_v52 = vld [vmem:[%s11886_s1 + $0x18c] ss:$16 sps:$4 sm:$0xff]   ;;  %v8544_v53 = vld [vmem:[%s11886_s1 + $0x4a4] ss:$16 sps:$4 sm:$0xff]  }
  0xc5   : >> { %1198 = vmatpush2.bf16.msra.mxu0 %v7547_v55  ;;  %1239 = vmatpush2.bf16.msra.mxu1 %v7824_v3  ;;  %v5480_v3 = vld [vmem:[%s7782_s19 + $0x28] sm:$0xff]  ;;  %v8554_v55 = vld [vmem:[%s11886_s1 + $0x4a0] ss:$16 sps:$4 sm:$0xff]  }
  0xc6   : >> { %1199 = vmatprep.subr.bf16.mxu0 %v7548_v56  ;;  %1240 = vmatprep.subr.bf16.mxu1 %v7832_v5  ;;  %v8344_v5 = vpack.c.bf16 %v5480_v3, %v5480_v3  ;;  %v8559_v56 = vld [vmem:[%s11886_s1 + $0x4a8] ss:$16 sps:$4 sm:$0xff]  }
  0xc8   : >> { %12003 = vst [vmem:[#allocation5_spill] sm:$0xff] %v8344_v5 }
  0xc9   : >> { %1200 = vmatpush2.bf16.msra.mxu0 %v7549_v59  ;;  %1241 = vmatpush2.bf16.msra.mxu1 %v7841_v8  ;;  %v7550_v8 = vld [vmem:[%s11886_s1 + $0xa0] ss:$16 sps:$4 sm:$0xff]  }
  0xca   : >> { %1201 = vmatprep.subr.bf16.mxu0 %v7846_v9  ;;  %1242 = vmatprep.subr.bf16.mxu1 %v7852_v10  ;;  %v7551_v9 = vld [vmem:[%s11886_s1 + $0x84] ss:$16 sps:$4 sm:$0xff]   ;;  %v7552_v10 = vld [vmem:[%s11886_s1 + $0x80] ss:$16 sps:$4 sm:$0xff]  }
  0xcd   : >> { %1202 = vmatpush2.bf16.msra.mxu0 %v7857_v11  ;;  %1243 = vmatpush2.bf16.msra.mxu1 %v7863_v14  ;;  %v7553_v11 = vld [vmem:[%s11886_s1 + $0x88] ss:$16 sps:$4 sm:$0xff]   ;;  %v7554_v14 = vld [vmem:[%s11886_s1 + $0x64] ss:$16 sps:$4 sm:$0xff]  }
  0xce   : >> { %1253 = vmatprep.subr.bf16.mxu0 %v7868_v15  ;;  %1294 = vmatprep.subr.bf16.mxu1 %v7875_v16  ;;  %v7555_v15 = vld [vmem:[%s11886_s1 + $0x6c] ss:$16 sps:$4 sm:$0xff]   ;;  %v7556_v16 = vld [vmem:[%s11886_s1 + $0x60] ss:$16 sps:$4 sm:$0xff]  }
  0xd0   : >> { %1204 = vmatmul.mubr.bf16.vlgmr.msra.gmra.mxu0 %v8338_v60  ;;  %1245 = vmatmul.mubr.bf16.vlgmr.msra.gmra.mxu1 %v8338_v60  ;;  %v8832_v60 = vld [vmem:[%s11886_s1 + $0x524] ss:$16 sps:$4 sm:$0xff]  }
  0xd1   : >> { %1254 = vmatpush1.bf16.msra.mxu0 %v7880_v18  ;;  %1295 = vmatpush1.bf16.msra.mxu1 %v7887_v19  ;;  %v7557_v18 = vld [vmem:[%s11886_s1 + $0x68] ss:$16 sps:$4 sm:$0xff]   ;;  %v7558_v19 = vld [vmem:[%s11886_s1 + $0x44] ss:$16 sps:$4 sm:$0xff]   ;;  %12013 = vst [vmem:[#allocation15_spill] sm:$0xff] %v8832_v60 }
  0xd2   : >> { %1255 = vmatprep.subr.bf16.mxu0 %v7892_v20  ;;  %1296 = vmatprep.subr.bf16.mxu1 %v7899_v21  ;;  %v7559_v20 = vld [vmem:[%s11886_s1 + $0x4c] ss:$16 sps:$4 sm:$0xff]   ;;  %v7560_v21 = vld [vmem:[%s11886_s1 + $0x40] ss:$16 sps:$4 sm:$0xff]  }
  0xd3   : >> { %1285 = vmatprep.mubr.bf16.mxu0 %v8344_v5  ;;  %1326 = vmatprep.mubr.bf16.mxu1 %v8344_v5  ;;  %v8849_v5 = vld [vmem:[%s11886_s1 + $0x528] ss:$16 sps:$4 sm:$0xff]  }
  0xd4   : >> { %12016 = vst [vmem:[#allocation18_spill] sm:$0xff] %v8849_v5 }
  0xd5   : >> { %1256 = vmatpush1.bf16.msra.mxu0 %v7904_v22  ;;  %1297 = vmatpush1.bf16.msra.mxu1 %v7911_v23  ;;  %v7561_v22 = vld [vmem:[%s11886_s1 + $0x48] ss:$16 sps:$4 sm:$0xff]   ;;  %v7562_v23 = vld [vmem:[%s11886_s1 + $0x24] ss:$16 sps:$4 sm:$0xff]  }
  0xd6   : >> { %1257 = vmatprep.subr.bf16.mxu0 %v7916_v24  ;;  %1298 = vmatprep.subr.bf16.mxu1 %v7923_v25  ;;  %v7563_v24 = vld [vmem:[%s11886_s1 + $0x2c] ss:$16 sps:$4 sm:$0xff]   ;;  %v7564_v25 = vld [vmem:[%s11886_s1 + $0x20] ss:$16 sps:$4 sm:$0xff]  }
  0xd9   : >> { %1258 = vmatpush1.bf16.msra.mxu0 %v7550_v8  ;;  %1299 = vmatpush1.bf16.msra.mxu1 %v7933_v27  ;;  %v7565_v27 = vld [vmem:[%s11886_s1 + $0x28] ss:$16 sps:$4 sm:$0xff]   ;;  %v8568_v8 = vld [vmem:[%s11886_s1 + $0x484] ss:$16 sps:$4 sm:$0xff]  }
  0xda   : >> { %1259 = vmatprep.subr.bf16.mxu0 %v7551_v9  ;;  %1300 = vmatprep.subr.bf16.mxu1 %v7943_v29  ;;  %v7566_v29 = vld [vmem:[%s11886_s1 + $0x4] ss:$16 sps:$4 sm:$0xff]   ;;  %v8573_v9 = vld [vmem:[%s11886_s1 + $0x48c] ss:$16 sps:$4 sm:$0xff]  }
  0xdd   : >> { %1260 = vmatpush1.bf16.msra.mxu0 %v7552_v10  ;;  %1301 = vmatpush1.bf16.msra.mxu1 %v7553_v11  ;;  %v8580_v10 = vld [vmem:[%s11886_s1 + $0x480] ss:$16 sps:$4 sm:$0xff]   ;;  %v8585_v11 = vld [vmem:[%s11886_s1 + $0x488] ss:$16 sps:$4 sm:$0xff]  }
  0xde   : >> { %1261 = vmatprep.subr.bf16.mxu0 %v7554_v14  ;;  %1302 = vmatprep.subr.bf16.mxu1 %v7555_v15  ;;  %v8592_v14 = vld [vmem:[%s11886_s1 + $0x464] ss:$16 sps:$4 sm:$0xff]   ;;  %v8597_v15 = vld [vmem:[%s11886_s1 + $0x46c] ss:$16 sps:$4 sm:$0xff]  }
  0xe1   : >> { %1262 = vmatpush1.bf16.msra.mxu0 %v7556_v16  ;;  %1303 = vmatpush1.bf16.msra.mxu1 %v7557_v18  ;;  %v8604_v16 = vld [vmem:[%s11886_s1 + $0x460] ss:$16 sps:$4 sm:$0xff]   ;;  %v8609_v18 = vld [vmem:[%s11886_s1 + $0x468] ss:$16 sps:$4 sm:$0xff]  }
  0xe2   : >> { %1263 = vmatprep.subr.bf16.mxu0 %v7558_v19  ;;  %1304 = vmatprep.subr.bf16.mxu1 %v7559_v20  ;;  %v8616_v19 = vld [vmem:[%s11886_s1 + $0x444] ss:$16 sps:$4 sm:$0xff]   ;;  %v8621_v20 = vld [vmem:[%s11886_s1 + $0x44c] ss:$16 sps:$4 sm:$0xff]  }
  0xe5   : >> { %1264 = vmatpush1.bf16.msra.mxu0 %v7560_v21  ;;  %1305 = vmatpush1.bf16.msra.mxu1 %v7561_v22  ;;  %v8628_v21 = vld [vmem:[%s11886_s1 + $0x440] ss:$16 sps:$4 sm:$0xff]   ;;  %v8633_v22 = vld [vmem:[%s11886_s1 + $0x448] ss:$16 sps:$4 sm:$0xff]  }
  0xe6   : >> { %1265 = vmatprep.subr.bf16.mxu0 %v7562_v23  ;;  %1306 = vmatprep.subr.bf16.mxu1 %v7563_v24  ;;  %v8640_v23 = vld [vmem:[%s11886_s1 + $0x424] ss:$16 sps:$4 sm:$0xff]   ;;  %v8645_v24 = vld [vmem:[%s11886_s1 + $0x42c] ss:$16 sps:$4 sm:$0xff]  }
  0xe9   : >> { %1266 = vmatpush1.bf16.msra.mxu0 %v7564_v25  ;;  %1307 = vmatpush1.bf16.msra.mxu1 %v7565_v27  ;;  %v8652_v25 = vld [vmem:[%s11886_s1 + $0x420] ss:$16 sps:$4 sm:$0xff]   ;;  %v8657_v27 = vld [vmem:[%s11886_s1 + $0x428] ss:$16 sps:$4 sm:$0xff]  }
  0xea   : >> { %1267 = vmatprep.subr.bf16.mxu0 %v7566_v29  ;;  %1308 = vmatprep.subr.bf16.mxu1 %v7567_v61  ;;  %v8664_v29 = vld [vmem:[%s11886_s1 + $0x404] ss:$16 sps:$4 sm:$0xff]   ;;  %v8669_v61 = vld [vmem:[%s11886_s1 + $0x40c] ss:$16 sps:$4 sm:$0xff]  }
  0xed   : >> { %1268 = vmatpush1.bf16.msra.mxu0 %v7568_v62  ;;  %1309 = vmatpush1.bf16.msra.mxu1 %v7569_v63  ;;  %v8676_v62 = vld [vmem:[%s11886_s1 + $0x400] ss:$16 sps:$4 sm:$0xff]   ;;  %v8681_v63 = vld [vmem:[%s11886_s1 + $0x408] ss:$16 sps:$4 sm:$0xff]  }
  0xee   : >> { %1269 = vmatprep.subr.bf16.mxu0 %v7570_v26  ;;  %1310 = vmatprep.subr.bf16.mxu1 %v7571_v28  ;;  %v8688_v26 = vld [vmem:[%s11886_s1 + $0x5e4] ss:$16 sps:$4 sm:$0xff]   ;;  %v8693_v28 = vld [vmem:[%s11886_s1 + $0x5ec] ss:$16 sps:$4 sm:$0xff]  }
  0xf1   : >> { %1270 = vmatpush2.bf16.msra.mxu0 %v7572_v36  ;;  %1311 = vmatpush2.bf16.msra.mxu1 %v7573_v41  ;;  %v8700_v36 = vld [vmem:[%s11886_s1 + $0x5e0] ss:$16 sps:$4 sm:$0xff]   ;;  %v8705_v41 = vld [vmem:[%s11886_s1 + $0x5e8] ss:$16 sps:$4 sm:$0xff]  }
  0xf2   : >> { %1271 = vmatprep.subr.bf16.mxu0 %v7574_v42  ;;  %1312 = vmatprep.subr.bf16.mxu1 %v7575_v43  ;;  %v8712_v42 = vld [vmem:[%s11886_s1 + $0x5c4] ss:$16 sps:$4 sm:$0xff]   ;;  %v8717_v43 = vld [vmem:[%s11886_s1 + $0x5cc] ss:$16 sps:$4 sm:$0xff]  }
  0xf5   : >> { %1272 = vmatpush2.bf16.msra.mxu0 %v7576_v44  ;;  %1313 = vmatpush2.bf16.msra.mxu1 %v7577_v45  ;;  %v8724_v44 = vld [vmem:[%s11886_s1 + $0x5c0] ss:$16 sps:$4 sm:$0xff]   ;;  %v8729_v45 = vld [vmem:[%s11886_s1 + $0x5c8] ss:$16 sps:$4 sm:$0xff]  }
  0xf6   : >> { %1273 = vmatprep.subr.bf16.mxu0 %v7578_v46  ;;  %1314 = vmatprep.subr.bf16.mxu1 %v7579_v47  ;;  %v8736_v46 = vld [vmem:[%s11886_s1 + $0x5a4] ss:$16 sps:$4 sm:$0xff]   ;;  %v8741_v47 = vld [vmem:[%s11886_s1 + $0x5ac] ss:$16 sps:$4 sm:$0xff]  }
  0xf9   : >> { %1274 = vmatpush2.bf16.msra.mxu0 %v7580_v49  ;;  %1315 = vmatpush2.bf16.msra.mxu1 %v7581_v50  ;;  %v8748_v49 = vld [vmem:[%s11886_s1 + $0x5a0] ss:$16 sps:$4 sm:$0xff]   ;;  %v8753_v50 = vld [vmem:[%s11886_s1 + $0x5a8] ss:$16 sps:$4 sm:$0xff]  }
  0xfa   : >> { %1275 = vmatprep.subr.bf16.mxu0 %v7582_v51  ;;  %1316 = vmatprep.subr.bf16.mxu1 %v7583_v52  ;;  %v8760_v51 = vld [vmem:[%s11886_s1 + $0x584] ss:$16 sps:$4 sm:$0xff]   ;;  %v8765_v52 = vld [vmem:[%s11886_s1 + $0x58c] ss:$16 sps:$4 sm:$0xff]  }
  0xfd   : >> { %1276 = vmatpush2.bf16.msra.mxu0 %v8047_v1  ;;  %1317 = vmatpush2.bf16.msra.mxu1 %v8052_v2  ;;  %v1401_v1 = vld [vmem:[%s7782_s19 + $0x8] sm:$0xfc]  ;;  %v1403_v2 = vld [vmem:[%s7782_s19 + $0x18] sm:$0x3] }
  0xfe   : >> { %1277 = vmatprep.subr.bf16.mxu0 %v8057_v4  ;;  %1318 = vmatprep.subr.bf16.mxu1 %v8062_v6  ;;  %v5479_v4 = vld [vmem:[%s7782_s19 + $0x20] sm:$0xff] }
  0xff   : >> { %v8484_v6 = vld [vmem:[%s11886_s1 + $0x4e4] ss:$16 sps:$4 sm:$0xff]  }
 0x101   : >> { %1278 = vmatpush2.bf16.msra.mxu0 %v8067_v7  ;;  %1319 = vmatpush2.bf16.msra.mxu1 %v8072_v12  ;;  %v8489_v7 = vld [vmem:[%s11886_s1 + $0x4ec] ss:$16 sps:$4 sm:$0xff]   ;;  %v8494_v12 = vld [vmem:[%s11886_s1 + $0x4e0] ss:$16 sps:$4 sm:$0xff]  }
 0x102   : >> { %1279 = vmatprep.subr.bf16.mxu0 %v8077_v13  ;;  %1320 = vmatprep.subr.bf16.mxu1 %v8082_v17  ;;  %v8499_v13 = vld [vmem:[%s11886_s1 + $0x4e8] ss:$16 sps:$4 sm:$0xff]   ;;  %v1409_v17 = vpack.c.bf16 %v1403_v2, %v1401_v1  ;;  %v8772_v1 = vld [vmem:[%s11886_s1 + $0x580] ss:$16 sps:$4 sm:$0xff]  }
 0x103   : >> { %v8777_v2 = vld [vmem:[%s11886_s1 + $0x588] ss:$16 sps:$4 sm:$0xff]  }
 0x105   : >> { %1280 = vmatpush2.bf16.msra.mxu0 %v8093_v30  ;;  %1321 = vmatpush2.bf16.msra.mxu1 %v8098_v31  ;;  %v8501_v30 = vpack.c.bf16 %v5479_v4, %v5479_v4  ;;  %v8510_v31 = vld [vmem:[%s11886_s1 + $0x4c4] ss:$16 sps:$4 sm:$0xff]  }
 0x106   : >> { %1281 = vmatprep.subr.bf16.mxu0 %v8103_v32  ;;  %1322 = vmatprep.subr.bf16.mxu1 %v8108_v33  ;;  %v8515_v32 = vld [vmem:[%s11886_s1 + $0x4cc] ss:$16 sps:$4 sm:$0xff]   ;;  %v8520_v33 = vld [vmem:[%s11886_s1 + $0x4c0] ss:$16 sps:$4 sm:$0xff]   ;;  %v8784_v4 = vld [vmem:[%s11886_s1 + $0x564] ss:$16 sps:$4 sm:$0xff]  }
 0x107   : >> { %12004 = vst [vmem:[#allocation6_spill] sm:$0xff] %v8501_v30  ;;  %12005 = vst [vmem:[#allocation7_spill] sm:$0xff] %v8784_v4 }
 0x109   : >> { %1282 = vmatpush2.bf16.msra.mxu0 %v8117_v34  ;;  %1323 = vmatpush2.bf16.msra.mxu1 %v8122_v35  ;;  %v8525_v34 = vld [vmem:[%s11886_s1 + $0x4c8] ss:$16 sps:$4 sm:$0xff]   ;;  %v1413_v35 = vrot.slane %v1409_v17, 1  ;;  %v8789_v17 = vld [vmem:[%s11886_s1 + $0x56c] ss:$16 sps:$4 sm:$0xff]  }
 0x10a   : >> { %1283 = vmatprep.subr.bf16.mxu0 %v8127_v37  ;;  %1324 = vmatprep.subr.bf16.mxu1 %v8132_v38  ;;  %12006 = vst [vmem:[#allocation8_spill] sm:$0xff] %v8789_v17 }
 0x10d   : >> { %1284 = vmatpush2.bf16.msra.mxu0 %v8141_v39  ;;  %1325 = vmatpush2.bf16.msra.mxu1 %v8146_v40 }
 0x10e   : >> { %1736 = vmatprep.subr.bf16.mxu0 %v8484_v6  ;;  %1777 = vmatprep.subr.bf16.mxu1 %v8489_v7 }
 0x110   : >> { %v8527_v37 = vpop.f32.mrf.mxu0  ;;  %v8529_v38 = vpop.f32.mrf.mxu1  ;;  %1286 = vmatmul.mubr.bf16.vlgmr.msra.gmra.mxu0 %v8501_v30  ;;  %1327 = vmatmul.mubr.bf16.vlgmr.msra.gmra.mxu1 %v8501_v30  ;;  %v8842_v30 = vld [vmem:[%s11886_s1 + $0x520] ss:$16 sps:$4 sm:$0xff]  }
 0x111   : >> { %1737 = vmatpush1.bf16.msra.mxu0 %v8494_v12  ;;  %1778 = vmatpush1.bf16.msra.mxu1 %v8499_v13  ;;  %12015 = vst [vmem:[#allocation17_spill] sm:$0xff] %v8842_v30 }
 0x112   : >> { %v8535_v39 = vpop.f32.mrf.mxu0  ;;  %v8537_v40 = vpop.f32.mrf.mxu1  ;;  %1738 = vmatprep.subr.bf16.mxu0 %v8510_v31  ;;  %1779 = vmatprep.subr.bf16.mxu1 %v8515_v32 }
 0x113   : >> { %1768 = vmatprep.mubr.bf16.mxu0 %v1413_v35  ;;  %1809 = vmatprep.mubr.bf16.mxu1 %v1413_v35  ;;  %v8796_v35 = vld [vmem:[%s11886_s1 + $0x560] ss:$16 sps:$4 sm:$0xff]  }
 0x114   : >> { %v707_v57 = vpop.f32.mrf.mxu0  ;;  %v748_v58 = vpop.f32.mrf.mxu1  ;;  %12007 = vst [vmem:[#allocation9_spill] sm:$0xff] %v8796_v35 }
 0x115   : >> { %1739 = vmatpush1.bf16.msra.mxu0 %v8520_v33  ;;  %1780 = vmatpush1.bf16.msra.mxu1 %v8525_v34  ;;  %v8801_v57 = vld [vmem:[%s11886_s1 + $0x568] ss:$16 sps:$4 sm:$0xff]   ;;  %v8808_v58 = vld [vmem:[%s11886_s1 + $0x544] ss:$16 sps:$4 sm:$0xff]  }
 0x116   : >> { %v708_v59 = vpop.f32.mrf.mxu0  ;;  %v749_v3 = vpop.f32.mrf.mxu1  ;;  %1740 = vmatprep.subr.bf16.mxu0 %v8544_v53  ;;  %1781 = vmatprep.subr.bf16.mxu1 %v8549_v54  ;;  %12008 = vst [vmem:[#allocation10_spill] sm:$0xff] %v8801_v57  ;;  %12009 = vst [vmem:[#allocation11_spill] sm:$0xff] %v8808_v58 }
 0x117   : >> { %v8813_v59 = vld [vmem:[%s11886_s1 + $0x54c] ss:$16 sps:$4 sm:$0xff]   ;;  %v8820_v3 = vld [vmem:[%s11886_s1 + $0x540] ss:$16 sps:$4 sm:$0xff]  }
 0x118   : >> { %12010 = vst [vmem:[#allocation12_spill] sm:$0xff] %v8813_v59  ;;  %12011 = vst [vmem:[#allocation13_spill] sm:$0xff] %v8820_v3 }
 0x119   : >> { %1741 = vmatpush1.bf16.msra.mxu0 %v8554_v55  ;;  %1782 = vmatpush1.bf16.msra.mxu1 %v8559_v56 }
 0x11a   : >> { %1742 = vmatprep.subr.bf16.mxu0 %v8568_v8  ;;  %1783 = vmatprep.subr.bf16.mxu1 %v8573_v9 }
 0x11d   : >> { %1743 = vmatpush1.bf16.msra.mxu0 %v8580_v10  ;;  %1784 = vmatpush1.bf16.msra.mxu1 %v8585_v11 }
 0x11e   : >> { %1744 = vmatprep.subr.bf16.mxu0 %v8592_v14  ;;  %1785 = vmatprep.subr.bf16.mxu1 %v8597_v15 }
 0x121   : >> { %1745 = vmatpush1.bf16.msra.mxu0 %v8604_v16  ;;  %1786 = vmatpush1.bf16.msra.mxu1 %v8609_v18 }
 0x122   : >> { %1746 = vmatprep.subr.bf16.mxu0 %v8616_v19  ;;  %1787 = vmatprep.subr.bf16.mxu1 %v8621_v20 }
 0x125   : >> { %1747 = vmatpush1.bf16.msra.mxu0 %v8628_v21  ;;  %1788 = vmatpush1.bf16.msra.mxu1 %v8633_v22 }
 0x126   : >> { %1748 = vmatprep.subr.bf16.mxu0 %v8640_v23  ;;  %1789 = vmatprep.subr.bf16.mxu1 %v8645_v24 }
 0x129   : >> { %1749 = vmatpush1.bf16.msra.mxu0 %v8652_v25  ;;  %1790 = vmatpush1.bf16.msra.mxu1 %v8657_v27 }
 0x12a   : >> { %1750 = vmatprep.subr.bf16.mxu0 %v8664_v29  ;;  %1791 = vmatprep.subr.bf16.mxu1 %v8669_v61 }
 0x12d   : >> { %1751 = vmatpush1.bf16.msra.mxu0 %v8676_v62  ;;  %1792 = vmatpush1.bf16.msra.mxu1 %v8681_v63 }
 0x12e   : >> { %1752 = vmatprep.subr.bf16.mxu0 %v8688_v26  ;;  %1793 = vmatprep.subr.bf16.mxu1 %v8693_v28 }
 0x131   : >> { %1753 = vmatpush2.bf16.msra.mxu0 %v8700_v36  ;;  %1794 = vmatpush2.bf16.msra.mxu1 %v8705_v41 }
 0x132   : >> { %1754 = vmatprep.subr.bf16.mxu0 %v8712_v42  ;;  %1795 = vmatprep.subr.bf16.mxu1 %v8717_v43 }
 0x135   : >> { %1755 = vmatpush2.bf16.msra.mxu0 %v8724_v44  ;;  %1796 = vmatpush2.bf16.msra.mxu1 %v8729_v45 }
 0x136   : >> { %1756 = vmatprep.subr.bf16.mxu0 %v8736_v46  ;;  %1797 = vmatprep.subr.bf16.mxu1 %v8741_v47 }
 0x139   : >> { %1757 = vmatpush2.bf16.msra.mxu0 %v8748_v49  ;;  %1798 = vmatpush2.bf16.msra.mxu1 %v8753_v50 }
 0x13a   : >> { %1758 = vmatprep.subr.bf16.mxu0 %v8760_v51  ;;  %1799 = vmatprep.subr.bf16.mxu1 %v8765_v52 }
 0x13d   : >> { %1759 = vmatpush2.bf16.msra.mxu0 %v8772_v1  ;;  %1800 = vmatpush2.bf16.msra.mxu1 %v8777_v2 }
 0x13e   : >> { %1760 = vmatprep.subr.bf16.mxu0 %v8784_v4  ;;  %1801 = vmatprep.subr.bf16.mxu1 %v8789_v17  ;;  %v5744_v17 = vld [vmem:[%s7782_s19 + $0x38] sm:$0x3] }
 0x141   : >> { %1761 = vmatpush2.bf16.msra.mxu0 %v8796_v35  ;;  %1802 = vmatpush2.bf16.msra.mxu1 %v8801_v57  ;;  %v8858_v57 = vld [vmem:[%s11886_s1 + $0x504] ss:$16 sps:$4 sm:$0xff]   ;;  %v5742_v35 = vld [vmem:[%s7782_s19 + $0x28] sm:$0xfc] }
 0x142   : >> { %1762 = vmatprep.subr.bf16.mxu0 %v8808_v58  ;;  %1803 = vmatprep.subr.bf16.mxu1 %v8813_v59  ;;  %v1400_v59 = vld [vmem:[%s7782_s19] sm:$0xfc]  ;;  %v1402_v58 = vld [vmem:[%s7782_s19 + $0x10] sm:$0x3]  ;;  %12017 = vst [vmem:[#allocation19_spill] sm:$0xff] %v8858_v57 }
 0x145   : >> { %1763 = vmatpush2.bf16.msra.mxu0 %v8820_v3  ;;  %1804 = vmatpush2.bf16.msra.mxu1 %v8825_v0  ;;  %v8863_v0 = vld [vmem:[%s11886_s1 + $0x50c] ss:$16 sps:$4 sm:$0xff]   ;;  %v1408_v3 = vpack.c.bf16 %v1402_v58, %v1400_v59  ;;  %v1823_v58 = vpack.c.bf16 %v5744_v17, %v5742_v35 }
 0x146   : >> { %1764 = vmatprep.subr.bf16.mxu0 %v8832_v60  ;;  %1805 = vmatprep.subr.bf16.mxu1 %v8837_v48  ;;  %v8872_v48 = vld [vmem:[%s11886_s1 + $0x500] ss:$16 sps:$4 sm:$0xff]   ;;  %v8877_v60 = vld [vmem:[%s11886_s1 + $0x508] ss:$16 sps:$4 sm:$0xff]  }
 0x147   : >> { %v1412_v59 = vrot.slane %v1408_v3, 1 }
 0x149   : >> { %1765 = vmatpush2.bf16.msra.mxu0 %v8842_v30  ;;  %1806 = vmatpush2.bf16.msra.mxu1 %v8849_v5  ;;  %v8885_v5 = vrot.slane %v1823_v58, 1  ;;  %v9129_v58 = vld [vmem:[%s11886_s1 + $0x62c] ss:$16 sps:$4 sm:$0xff]  }
 0x14a   : >> { %1766 = vmatprep.subr.bf16.mxu0 %v8858_v57  ;;  %1807 = vmatprep.subr.bf16.mxu1 %v8863_v0 }
 0x14b   : >> { %12018 = vst [vmem:[#allocation20_spill] sm:$0xff] %v8885_v5 }
 0x14d   : >> { %1767 = vmatpush2.bf16.msra.mxu0 %v8872_v48  ;;  %1808 = vmatpush2.bf16.msra.mxu1 %v8877_v60 }
 0x14e   : >> { %1830 = vmatprep.subr.bf16.mxu0 %v8484_v6  ;;  %1871 = vmatprep.subr.bf16.mxu1 %v8489_v7 }
 0x150   : >> { %v1105_v30 = vpop.f32.mrf.mxu0  ;;  %v1146_v4 = vpop.f32.mrf.mxu1  ;;  %1769 = vmatmul.mubr.bf16.vlgmr.msra.gmra.mxu0 %v1412_v59  ;;  %1810 = vmatmul.mubr.bf16.vlgmr.msra.gmra.mxu1 %v1412_v59  ;;  %v9136_v59 = vld [vmem:[%s11886_s1 + $0x620] ss:$16 sps:$4 sm:$0xff]  }
 0x151   : >> { %v8888_v57 = vadd.f32 %v1105_v30, %v8527_v37  ;;  %v8891_v17 = vadd.f32 %v1146_v4, %v8529_v38  ;;  %1831 = vmatpush1.bf16.msra.mxu0 %v8494_v12  ;;  %1872 = vmatpush1.bf16.msra.mxu1 %v8499_v13  ;;  %v12026_v37 = vld [vmem:[#allocation10_spill] sm:$0xff]  ;;  %v12027_v38 = vld [vmem:[#allocation11_spill] sm:$0xff] }
 0x152   : >> { %v1107_v35 = vpop.f32.mrf.mxu0  ;;  %v1148_v6 = vpop.f32.mrf.mxu1  ;;  %1832 = vmatprep.subr.bf16.mxu0 %v8510_v31  ;;  %1873 = vmatprep.subr.bf16.mxu1 %v8515_v32  ;;  %v12023_v32 = vld [vmem:[#allocation7_spill] sm:$0xff]  ;;  %v9124_v4 = vld [vmem:[%s11886_s1 + $0x624] ss:$16 sps:$4 sm:$0xff]  }
 0x153   : >> { %12019 = vst [vmem:[#allocation21_spill] sm:$0xff] %v8888_v57  ;;  %12020 = vst [vmem:[#allocation22_spill] sm:$0xff] %v8891_v17  ;;  %v8898_v7 = vadd.f32 %v1107_v35, %v8535_v39  ;;  %v8901_v3 = vadd.f32 %v1148_v6, %v8537_v40  ;;  %1862 = vmatprep.mubr.bf16.mxu0 %v8885_v5  ;;  %1903 = vmatprep.mubr.bf16.mxu1 %v8885_v5  ;;  %v12028_v39 = vld [vmem:[#allocation12_spill] sm:$0xff]  ;;  %v12029_v40 = vld [vmem:[#allocation13_spill] sm:$0xff] }
 0x154   : >> { %v1109_v30 = vpop.f32.mrf.mxu0  ;;  %v1150_v12 = vpop.f32.mrf.mxu1  ;;  %v9141_v35 = vld [vmem:[%s11886_s1 + $0x628] ss:$16 sps:$4 sm:$0xff]   ;;  %v9148_v6 = vld [vmem:[%s11886_s1 + $0x604] ss:$16 sps:$4 sm:$0xff]   ;;  %v9328_v17 = vld [vmem:[%s11886_s1 + $0x720] ss:$16 sps:$4 sm:$0xff]  }
 0x155   : >> { %12021 = vst [vmem:[#allocation23_spill] sm:$0xff] %v8898_v7  ;;  %12022 = vst [vmem:[#allocation24_spill] sm:$0xff] %v8901_v3  ;;  %1833 = vmatpush1.bf16.msra.mxu0 %v8520_v33  ;;  %1874 = vmatpush1.bf16.msra.mxu1 %v8525_v34  ;;  %v12024_v33 = vld [vmem:[#allocation8_spill] sm:$0xff]  ;;  %v12025_v34 = vld [vmem:[#allocation9_spill] sm:$0xff] }
 0x156   : >> { %v1110_v13 = vpop.f32.mrf.mxu0  ;;  %v1151_v31 = vpop.f32.mrf.mxu1  ;;  %1834 = vmatprep.subr.bf16.mxu0 %v8544_v53  ;;  %1875 = vmatprep.subr.bf16.mxu1 %v8549_v54  ;;  %v12030_v53 = vld [vmem:[#allocation14_spill] sm:$0xff]  ;;  %v9153_v30 = vld [vmem:[%s11886_s1 + $0x60c] ss:$16 sps:$4 sm:$0xff]   ;;  %v9309_v5 = vld [vmem:[%s11886_s1 + $0x748] ss:$16 sps:$4 sm:$0xff]  }
 0x157   : >> { %v5741_v54 = vld [vmem:[%s7782_s19 + $0x20] sm:$0xfc]  ;;  %v9165_v13 = vld [vmem:[%s11886_s1 + $0x608] ss:$16 sps:$4 sm:$0xff]   ;;  %12042 = vst [vmem:[#allocation12_spill] sm:$0xff] %v9309_v5 }
 0x158   : >> { %v9160_v12 = vld [vmem:[%s11886_s1 + $0x600] ss:$16 sps:$4 sm:$0xff]   ;;  %v9172_v31 = vld [vmem:[%s11886_s1 + $0x7e4] ss:$16 sps:$4 sm:$0xff]   ;;  %v9321_v7 = vld [vmem:[%s11886_s1 + $0x72c] ss:$16 sps:$4 sm:$0xff]  }
 0x159   : >> { %1835 = vmatpush1.bf16.msra.mxu0 %v8554_v55  ;;  %1876 = vmatpush1.bf16.msra.mxu1 %v8559_v56  ;;  %v5743_v55 = vld [vmem:[%s7782_s19 + $0x30] sm:$0x3]  ;;  %v12031_v56 = vld [vmem:[#allocation15_spill] sm:$0xff]  ;;  %v9316_v3 = vld [vmem:[%s11886_s1 + $0x724] ss:$16 sps:$4 sm:$0xff]   ;;  %12044 = vst [vmem:[#allocation14_spill] sm:$0xff] %v9321_v7 }
 0x15a   : >> { %1836 = vmatprep.subr.bf16.mxu0 %v8568_v8  ;;  %1877 = vmatprep.subr.bf16.mxu1 %v8573_v9  ;;  %v12032_v8 = vld [vmem:[#allocation16_spill] sm:$0xff]  ;;  %v1822_v9 = vpack.c.bf16 %v5743_v55, %v5741_v54  ;;  %v9225_v54 = vld [vmem:[%s11886_s1 + $0x7ac] ss:$16 sps:$4 sm:$0xff]   ;;  %12043 = vst [vmem:[#allocation13_spill] sm:$0xff] %v9316_v3  ;;  %12045 = vst [vmem:[#allocation15_spill] sm:$0xff] %v9328_v17 }
 0x15b   : >> { %v9232_v55 = vld [vmem:[%s11886_s1 + $0x7a0] ss:$16 sps:$4 sm:$0xff]   ;;  %v9333_v57 = vld [vmem:[%s11886_s1 + $0x728] ss:$16 sps:$4 sm:$0xff]  }
 0x15c   : >> { %12046 = vst [vmem:[#allocation16_spill] sm:$0xff] %v9333_v57 }
 0x15d   : >> { %1837 = vmatpush1.bf16.msra.mxu0 %v8580_v10  ;;  %1878 = vmatpush1.bf16.msra.mxu1 %v8585_v11  ;;  %v12033_v10 = vld [vmem:[#allocation17_spill] sm:$0xff]  ;;  %v12034_v11 = vld [vmem:[#allocation18_spill] sm:$0xff] }
 0x15e   : >> { %1838 = vmatprep.subr.bf16.mxu0 %v8592_v14  ;;  %1879 = vmatprep.subr.bf16.mxu1 %v8597_v15  ;;  %v12035_v14 = vld [vmem:[#allocation19_spill] sm:$0xff]  ;;  %v8966_v15 = vld [vmem:[%s11886_s1 + $0x6e4] ss:$16 sps:$4 sm:$0xff]  }
 0x161   : >> { %1839 = vmatpush1.bf16.msra.mxu0 %v8604_v16  ;;  %1880 = vmatpush1.bf16.msra.mxu1 %v8609_v18  ;;  %v8971_v16 = vld [vmem:[%s11886_s1 + $0x6ec] ss:$16 sps:$4 sm:$0xff]   ;;  %v8973_v18 = vrot.slane %v1822_v9, 1 }
 0x162   : >> { %1840 = vmatprep.subr.bf16.mxu0 %v8616_v19  ;;  %1881 = vmatprep.subr.bf16.mxu1 %v8621_v20  ;;  %v8985_v19 = vld [vmem:[%s11886_s1 + $0x6e8] ss:$16 sps:$4 sm:$0xff]   ;;  %v9249_v9 = vld [vmem:[%s11886_s1 + $0x78c] ss:$16 sps:$4 sm:$0xff]  }
 0x163   : >> { %12036 = vst [vmem:[#allocation7_spill] sm:$0xff] %v8973_v18 }
 0x165   : >> { %1841 = vmatpush1.bf16.msra.mxu0 %v8628_v21  ;;  %1882 = vmatpush1.bf16.msra.mxu1 %v8633_v22  ;;  %v9010_v22 = vld [vmem:[%s11886_s1 + $0x6c0] ss:$16 sps:$4 sm:$0xff]  }
 0x166   : >> { %1842 = vmatprep.subr.bf16.mxu0 %v8640_v23  ;;  %1883 = vmatprep.subr.bf16.mxu1 %v8645_v24  ;;  %v9015_v23 = vld [vmem:[%s11886_s1 + $0x6c8] ss:$16 sps:$4 sm:$0xff]  }
 0x169   : >> { %1843 = vmatpush1.bf16.msra.mxu0 %v8652_v25  ;;  %1884 = vmatpush1.bf16.msra.mxu1 %v8657_v27  ;;  %v9026_v27 = vld [vmem:[%s11886_s1 + $0x6a4] ss:$16 sps:$4 sm:$0xff]  }
 0x16a   : >> { %1844 = vmatprep.subr.bf16.mxu0 %v8664_v29  ;;  %1885 = vmatprep.subr.bf16.mxu1 %v8669_v61  ;;  %v9031_v29 = vld [vmem:[%s11886_s1 + $0x6ac] ss:$16 sps:$4 sm:$0xff]  }
 0x16b   : >> { %v12037_v61 = vld [vmem:[#allocation5_spill] sm:$0xff] }
 0x16d   : >> { %1845 = vmatpush1.bf16.msra.mxu0 %v8676_v62  ;;  %1886 = vmatpush1.bf16.msra.mxu1 %v8681_v63 }
 0x16e   : >> { %1846 = vmatprep.subr.bf16.mxu0 %v8688_v26  ;;  %1887 = vmatprep.subr.bf16.mxu1 %v8693_v28  ;;  %v9040_v26 = vld [vmem:[%s11886_s1 + $0x6a0] ss:$16 sps:$4 sm:$0xff]   ;;  %v9045_v28 = vld [vmem:[%s11886_s1 + $0x6a8] ss:$16 sps:$4 sm:$0xff]  }
 0x171   : >> { %1847 = vmatpush2.bf16.msra.mxu0 %v8700_v36  ;;  %1888 = vmatpush2.bf16.msra.mxu1 %v8705_v41 }
 0x172   : >> { %1848 = vmatprep.subr.bf16.mxu0 %v8712_v42  ;;  %1889 = vmatprep.subr.bf16.mxu1 %v8717_v43  ;;  %v9052_v42 = vld [vmem:[%s11886_s1 + $0x684] ss:$16 sps:$4 sm:$0xff]   ;;  %v9057_v43 = vld [vmem:[%s11886_s1 + $0x68c] ss:$16 sps:$4 sm:$0xff]  }
 0x175   : >> { %1849 = vmatpush2.bf16.msra.mxu0 %v8724_v44  ;;  %1890 = vmatpush2.bf16.msra.mxu1 %v8729_v45  ;;  %v9064_v44 = vld [vmem:[%s11886_s1 + $0x680] ss:$16 sps:$4 sm:$0xff]   ;;  %v9069_v45 = vld [vmem:[%s11886_s1 + $0x688] ss:$16 sps:$4 sm:$0xff]  }
 0x176   : >> { %1850 = vmatprep.subr.bf16.mxu0 %v8736_v46  ;;  %1891 = vmatprep.subr.bf16.mxu1 %v8741_v47  ;;  %v9076_v46 = vld [vmem:[%s11886_s1 + $0x664] ss:$16 sps:$4 sm:$0xff]   ;;  %v9081_v47 = vld [vmem:[%s11886_s1 + $0x66c] ss:$16 sps:$4 sm:$0xff]  }
 0x179   : >> { %1851 = vmatpush2.bf16.msra.mxu0 %v8748_v49  ;;  %1892 = vmatpush2.bf16.msra.mxu1 %v8753_v50  ;;  %v9088_v49 = vld [vmem:[%s11886_s1 + $0x660] ss:$16 sps:$4 sm:$0xff]   ;;  %v9093_v50 = vld [vmem:[%s11886_s1 + $0x668] ss:$16 sps:$4 sm:$0xff]  }
 0x17a   : >> { %1852 = vmatprep.subr.bf16.mxu0 %v8760_v51  ;;  %1893 = vmatprep.subr.bf16.mxu1 %v8765_v52  ;;  %v9100_v51 = vld [vmem:[%s11886_s1 + $0x644] ss:$16 sps:$4 sm:$0xff]   ;;  %v9105_v52 = vld [vmem:[%s11886_s1 + $0x64c] ss:$16 sps:$4 sm:$0xff]  }
 0x17d   : >> { %1853 = vmatpush2.bf16.msra.mxu0 %v8772_v1  ;;  %1894 = vmatpush2.bf16.msra.mxu1 %v8777_v2  ;;  %v9112_v1 = vld [vmem:[%s11886_s1 + $0x640] ss:$16 sps:$4 sm:$0xff]   ;;  %v9117_v2 = vld [vmem:[%s11886_s1 + $0x648] ss:$16 sps:$4 sm:$0xff]  }
 0x17e   : >> { %1854 = vmatprep.subr.bf16.mxu0 %v12023_v32  ;;  %1895 = vmatprep.subr.bf16.mxu1 %v12024_v33  ;;  %v9177_v32 = vld [vmem:[%s11886_s1 + $0x7ec] ss:$16 sps:$4 sm:$0xff]   ;;  %v9184_v33 = vld [vmem:[%s11886_s1 + $0x7e0] ss:$16 sps:$4 sm:$0xff]  }
 0x181   : >> { %1855 = vmatpush2.bf16.msra.mxu0 %v12025_v34  ;;  %1896 = vmatpush2.bf16.msra.mxu1 %v12026_v37  ;;  %v9189_v34 = vld [vmem:[%s11886_s1 + $0x7e8] ss:$16 sps:$4 sm:$0xff]   ;;  %v9196_v37 = vld [vmem:[%s11886_s1 + $0x7c4] ss:$16 sps:$4 sm:$0xff]  }
 0x182   : >> { %1856 = vmatprep.subr.bf16.mxu0 %v12027_v38  ;;  %1897 = vmatprep.subr.bf16.mxu1 %v12028_v39  ;;  %v9201_v38 = vld [vmem:[%s11886_s1 + $0x7cc] ss:$16 sps:$4 sm:$0xff]   ;;  %v9208_v39 = vld [vmem:[%s11886_s1 + $0x7c0] ss:$16 sps:$4 sm:$0xff]  }
 0x185   : >> { %1857 = vmatpush2.bf16.msra.mxu0 %v12029_v40  ;;  %1898 = vmatpush2.bf16.msra.mxu1 %v12030_v53  ;;  %v9213_v40 = vld [vmem:[%s11886_s1 + $0x7c8] ss:$16 sps:$4 sm:$0xff]   ;;  %v9220_v53 = vld [vmem:[%s11886_s1 + $0x7a4] ss:$16 sps:$4 sm:$0xff]  }
 0x186   : >> { %1858 = vmatprep.subr.bf16.mxu0 %v12031_v56  ;;  %1899 = vmatprep.subr.bf16.mxu1 %v12032_v8  ;;  %v9237_v56 = vld [vmem:[%s11886_s1 + $0x7a8] ss:$16 sps:$4 sm:$0xff]   ;;  %v9244_v8 = vld [vmem:[%s11886_s1 + $0x784] ss:$16 sps:$4 sm:$0xff]  }
 0x189   : >> { %1859 = vmatpush2.bf16.msra.mxu0 %v12033_v10  ;;  %1900 = vmatpush2.bf16.msra.mxu1 %v12034_v11  ;;  %v9256_v10 = vld [vmem:[%s11886_s1 + $0x780] ss:$16 sps:$4 sm:$0xff]   ;;  %v9261_v11 = vld [vmem:[%s11886_s1 + $0x788] ss:$16 sps:$4 sm:$0xff]  }
 0x18a   : >> { %1860 = vmatprep.subr.bf16.mxu0 %v12035_v14  ;;  %1901 = vmatprep.subr.bf16.mxu1 %v8863_v0  ;;  %v8980_v0 = vld [vmem:[%s11886_s1 + $0x6e0] ss:$16 sps:$4 sm:$0xff]   ;;  %v9268_v14 = vld [vmem:[%s11886_s1 + $0x764] ss:$16 sps:$4 sm:$0xff]  }
 0x18d   : >> { %1861 = vmatpush2.bf16.msra.mxu0 %v8872_v48  ;;  %1902 = vmatpush2.bf16.msra.mxu1 %v8877_v60  ;;  %v8992_v48 = vld [vmem:[%s11886_s1 + $0x6c4] ss:$16 sps:$4 sm:$0xff]   ;;  %v8997_v60 = vld [vmem:[%s11886_s1 + $0x6cc] ss:$16 sps:$4 sm:$0xff]  }
 0x18e   : >> { %2307 = vmatprep.subr.bf16.mxu0 %v8966_v15  ;;  %2348 = vmatprep.subr.bf16.mxu1 %v8971_v16 }
 0x190   : >> { %v8999_v20 = vpop.f32.mrf.mxu0  ;;  %v9001_v21 = vpop.f32.mrf.mxu1  ;;  %1863 = vmatmul.mubr.bf16.vlgmr.msra.gmra.mxu0 %v8973_v18  ;;  %1904 = vmatmul.mubr.bf16.vlgmr.msra.gmra.mxu1 %v8973_v18  ;;  %v9304_v18 = vld [vmem:[%s11886_s1 + $0x740] ss:$16 sps:$4 sm:$0xff]  }
 0x191   : >> { %2308 = vmatpush1.bf16.msra.mxu0 %v8980_v0  ;;  %2349 = vmatpush1.bf16.msra.mxu1 %v8985_v19  ;;  %12041 = vst [vmem:[#allocation11_spill] sm:$0xff] %v9304_v18 }
 0x192   : >> { %v9017_v24 = vpop.f32.mrf.mxu0  ;;  %v9019_v25 = vpop.f32.mrf.mxu1  ;;  %2309 = vmatprep.subr.bf16.mxu0 %v8992_v48  ;;  %2350 = vmatprep.subr.bf16.mxu1 %v8997_v60 }
 0x193   : >> { %2339 = vmatprep.mubr.bf16.mxu0 %v12037_v61  ;;  %2380 = vmatprep.mubr.bf16.mxu1 %v12037_v61  ;;  %v9273_v61 = vld [vmem:[%s11886_s1 + $0x76c] ss:$16 sps:$4 sm:$0xff]  }
 0x194   : >> { %v1209_v62 = vpop.f32.mrf.mxu0  ;;  %v1250_v63 = vpop.f32.mrf.mxu1 }
 0x195   : >> { %2310 = vmatpush1.bf16.msra.mxu0 %v9010_v22  ;;  %2351 = vmatpush1.bf16.msra.mxu1 %v9015_v23  ;;  %v9280_v62 = vld [vmem:[%s11886_s1 + $0x760] ss:$16 sps:$4 sm:$0xff]   ;;  %v9285_v63 = vld [vmem:[%s11886_s1 + $0x768] ss:$16 sps:$4 sm:$0xff]  }
 0x196   : >> { %v1210_v36 = vpop.f32.mrf.mxu0  ;;  %v1251_v41 = vpop.f32.mrf.mxu1  ;;  %2311 = vmatprep.subr.bf16.mxu0 %v9026_v27  ;;  %2352 = vmatprep.subr.bf16.mxu1 %v9031_v29  ;;  %12038 = vst [vmem:[#allocation8_spill] sm:$0xff] %v9285_v63 }
 0x197   : >> { %v9292_v36 = vld [vmem:[%s11886_s1 + $0x744] ss:$16 sps:$4 sm:$0xff]   ;;  %v9297_v41 = vld [vmem:[%s11886_s1 + $0x74c] ss:$16 sps:$4 sm:$0xff]  }
 0x198   : >> { %12039 = vst [vmem:[#allocation9_spill] sm:$0xff] %v9292_v36  ;;  %12040 = vst [vmem:[#allocation10_spill] sm:$0xff] %v9297_v41 }
 0x199   : >> { %2312 = vmatpush1.bf16.msra.mxu0 %v9040_v26  ;;  %2353 = vmatpush1.bf16.msra.mxu1 %v9045_v28 }
 0x19a   : >> { %2313 = vmatprep.subr.bf16.mxu0 %v9052_v42  ;;  %2354 = vmatprep.subr.bf16.mxu1 %v9057_v43 }
 0x19d   : >> { %2314 = vmatpush1.bf16.msra.mxu0 %v9064_v44  ;;  %2355 = vmatpush1.bf16.msra.mxu1 %v9069_v45 }
 0x19e   : >> { %2315 = vmatprep.subr.bf16.mxu0 %v9076_v46  ;;  %2356 = vmatprep.subr.bf16.mxu1 %v9081_v47 }
 0x1a1   : >> { %2316 = vmatpush1.bf16.msra.mxu0 %v9088_v49  ;;  %2357 = vmatpush1.bf16.msra.mxu1 %v9093_v50 }
 0x1a2   : >> { %2317 = vmatprep.subr.bf16.mxu0 %v9100_v51  ;;  %2358 = vmatprep.subr.bf16.mxu1 %v9105_v52 }
 0x1a5   : >> { %2318 = vmatpush1.bf16.msra.mxu0 %v9112_v1  ;;  %2359 = vmatpush1.bf16.msra.mxu1 %v9117_v2 }
 0x1a6   : >> { %2319 = vmatprep.subr.bf16.mxu0 %v9124_v4  ;;  %2360 = vmatprep.subr.bf16.mxu1 %v9129_v58 }
 0x1a9   : >> { %2320 = vmatpush1.bf16.msra.mxu0 %v9136_v59  ;;  %2361 = vmatpush1.bf16.msra.mxu1 %v9141_v35 }
 0x1aa   : >> { %2321 = vmatprep.subr.bf16.mxu0 %v9148_v6  ;;  %2362 = vmatprep.subr.bf16.mxu1 %v9153_v30 }
 0x1ad   : >> { %2322 = vmatpush1.bf16.msra.mxu0 %v9160_v12  ;;  %2363 = vmatpush1.bf16.msra.mxu1 %v9165_v13 }
 0x1ae   : >> { %2323 = vmatprep.subr.bf16.mxu0 %v9172_v31  ;;  %2364 = vmatprep.subr.bf16.mxu1 %v9177_v32 }
 0x1b1   : >> { %2324 = vmatpush2.bf16.msra.mxu0 %v9184_v33  ;;  %2365 = vmatpush2.bf16.msra.mxu1 %v9189_v34 }
 0x1b2   : >> { %2325 = vmatprep.subr.bf16.mxu0 %v9196_v37  ;;  %2366 = vmatprep.subr.bf16.mxu1 %v9201_v38 }
 0x1b5   : >> { %2326 = vmatpush2.bf16.msra.mxu0 %v9208_v39  ;;  %2367 = vmatpush2.bf16.msra.mxu1 %v9213_v40 }
 0x1b6   : >> { %2327 = vmatprep.subr.bf16.mxu0 %v9220_v53  ;;  %2368 = vmatprep.subr.bf16.mxu1 %v9225_v54 }
 0x1b9   : >> { %2328 = vmatpush2.bf16.msra.mxu0 %v9232_v55  ;;  %2369 = vmatpush2.bf16.msra.mxu1 %v9237_v56 }
 0x1ba   : >> { %2329 = vmatprep.subr.bf16.mxu0 %v9244_v8  ;;  %2370 = vmatprep.subr.bf16.mxu1 %v9249_v9 }
 0x1bd   : >> { %2330 = vmatpush2.bf16.msra.mxu0 %v9256_v10  ;;  %2371 = vmatpush2.bf16.msra.mxu1 %v9261_v11 }
 0x1be   : >> { %2331 = vmatprep.subr.bf16.mxu0 %v9268_v14  ;;  %2372 = vmatprep.subr.bf16.mxu1 %v9273_v61 }
 0x1c1   : >> { %2332 = vmatpush2.bf16.msra.mxu0 %v9280_v62  ;;  %2373 = vmatpush2.bf16.msra.mxu1 %v9285_v63  ;;  %v12050_v63 = vld [vmem:[#allocation6_spill] sm:$0xff] }
 0x1c2   : >> { %2333 = vmatprep.subr.bf16.mxu0 %v9292_v36  ;;  %2374 = vmatprep.subr.bf16.mxu1 %v9297_v41  ;;  %v5876_v41 = vld [vmem:[%s7782_s19 + $0x48] sm:$0xff] }
 0x1c5   : >> { %2334 = vmatpush2.bf16.msra.mxu0 %v9304_v18  ;;  %2375 = vmatpush2.bf16.msra.mxu1 %v9309_v5  ;;  %v9340_v18 = vld [vmem:[%s11886_s1 + $0x704] ss:$16 sps:$4 sm:$0xff]   ;;  %v9345_v5 = vld [vmem:[%s11886_s1 + $0x70c] ss:$16 sps:$4 sm:$0xff]  }
 0x1c6   : >> { %2335 = vmatprep.subr.bf16.mxu0 %v9316_v3  ;;  %2376 = vmatprep.subr.bf16.mxu1 %v9321_v7  ;;  %12047 = vst [vmem:[#allocation17_spill] sm:$0xff] %v9340_v18  ;;  %12048 = vst [vmem:[#allocation18_spill] sm:$0xff] %v9345_v5  ;;  %v9352_v3 = vld [vmem:[%s11886_s1 + $0x700] ss:$16 sps:$4 sm:$0xff]   ;;  %v9357_v7 = vld [vmem:[%s11886_s1 + $0x708] ss:$16 sps:$4 sm:$0xff]  }
 0x1c9   : >> { %2336 = vmatpush2.bf16.msra.mxu0 %v9328_v17  ;;  %2377 = vmatpush2.bf16.msra.mxu1 %v9333_v57  ;;  %v9366_v57 = vpack.c.bf16 %v5876_v41, %v5876_v41 }
 0x1ca   : >> { %2337 = vmatprep.subr.bf16.mxu0 %v9340_v18  ;;  %2378 = vmatprep.subr.bf16.mxu1 %v9345_v5 }
 0x1cb   : >> { %12049 = vst [vmem:[#allocation19_spill] sm:$0xff] %v9366_v57 }
 0x1cd   : >> { %2338 = vmatpush2.bf16.msra.mxu0 %v9352_v3  ;;  %2379 = vmatpush2.bf16.msra.mxu1 %v9357_v7 }
 0x1ce   : >> { %2395 = vmatprep.subr.bf16.mxu0 %v8966_v15  ;;  %2436 = vmatprep.subr.bf16.mxu1 %v8971_v16 }
 0x1d0   : >> { %v1287_v17 = vpop.f32.mrf.mxu0  ;;  %v1328_v36 = vpop.f32.mrf.mxu1  ;;  %2340 = vmatmul.mubr.bf16.vlgmr.msra.gmra.mxu0 %v12050_v63  ;;  %2381 = vmatmul.mubr.bf16.vlgmr.msra.gmra.mxu1 %v12050_v63 }
 0x1d1   : >> { %v9371_v18 = vadd.f32 %v1287_v17, %v8999_v20  ;;  %v9374_v5 = vadd.f32 %v1328_v36, %v9001_v21  ;;  %2396 = vmatpush1.bf16.msra.mxu0 %v8980_v0  ;;  %2437 = vmatpush1.bf16.msra.mxu1 %v8985_v19  ;;  %v12052_v20 = vld [vmem:[#allocation9_spill] sm:$0xff]  ;;  %v12053_v21 = vld [vmem:[#allocation10_spill] sm:$0xff] }
 0x1d2   : >> { %v1289_v15 = vpop.f32.mrf.mxu0  ;;  %v1330_v16 = vpop.f32.mrf.mxu1  ;;  %2397 = vmatprep.subr.bf16.mxu0 %v8992_v48  ;;  %2438 = vmatprep.subr.bf16.mxu1 %v8997_v60  ;;  %v12051_v60 = vld [vmem:[#allocation8_spill] sm:$0xff] }
 0x1d3   : >> { %v9381_v41 = vadd.f32 %v1289_v15, %v9017_v24  ;;  %v9384_v63 = vadd.f32 %v1330_v16, %v9019_v25  ;;  %2427 = vmatprep.mubr.bf16.mxu0 %v9366_v57  ;;  %2468 = vmatprep.mubr.bf16.mxu1 %v9366_v57  ;;  %v12056_v24 = vld [vmem:[#allocation13_spill] sm:$0xff]  ;;  %v12057_v25 = vld [vmem:[#allocation14_spill] sm:$0xff] }
 0x1d4   : >> { %v1291_v17 = vpop.f32.mrf.mxu0  ;;  %v1332_v0 = vpop.f32.mrf.mxu1  ;;  %v9598_v36 = vld [vmem:[%s11886_s1 + $0x840] ss:$16 sps:$4 sm:$0xff]   ;;  %v9603_v15 = vld [vmem:[%s11886_s1 + $0x848] ss:$16 sps:$4 sm:$0xff]   ;;  %v9610_v16 = vld [vmem:[%s11886_s1 + $0x824] ss:$16 sps:$4 sm:$0xff]  }
 0x1d5   : >> { %2398 = vmatpush1.bf16.msra.mxu0 %v9010_v22  ;;  %2439 = vmatpush1.bf16.msra.mxu1 %v9015_v23  ;;  %v12054_v22 = vld [vmem:[#allocation11_spill] sm:$0xff]  ;;  %v12055_v23 = vld [vmem:[#allocation12_spill] sm:$0xff]  ;;  %v6008_v57 = vld [vmem:[%s7782_s19 + $0x58] sm:$0x1] }
 0x1d6   : >> { %v1292_v19 = vpop.f32.mrf.mxu0  ;;  %v1333_v48 = vpop.f32.mrf.mxu1  ;;  %2399 = vmatprep.subr.bf16.mxu0 %v9026_v27  ;;  %2440 = vmatprep.subr.bf16.mxu1 %v9031_v29  ;;  %v12058_v27 = vld [vmem:[#allocation15_spill] sm:$0xff]  ;;  %v12059_v29 = vld [vmem:[#allocation16_spill] sm:$0xff] }
 0x1d7   : >> { %v9615_v17 = vld [vmem:[%s11886_s1 + $0x82c] ss:$16 sps:$4 sm:$0xff]   ;;  %v9622_v0 = vld [vmem:[%s11886_s1 + $0x820] ss:$16 sps:$4 sm:$0xff]   ;;  %v9627_v19 = vld [vmem:[%s11886_s1 + $0x828] ss:$16 sps:$4 sm:$0xff]  }
 0x1d8   : >> { %v9634_v48 = vld [vmem:[%s11886_s1 + $0x804] ss:$16 sps:$4 sm:$0xff]  }
 0x1d9   : >> { %2400 = vmatpush1.bf16.msra.mxu0 %v9040_v26  ;;  %2441 = vmatpush1.bf16.msra.mxu1 %v9045_v28  ;;  %v5875_v26 = vld [vmem:[%s7782_s19 + $0x40] sm:$0xff]  ;;  %v12060_v28 = vld [vmem:[#allocation17_spill] sm:$0xff] }
 0x1da   : >> { %2401 = vmatprep.subr.bf16.mxu0 %v9052_v42  ;;  %2442 = vmatprep.subr.bf16.mxu1 %v9057_v43  ;;  %v12061_v42 = vld [vmem:[#allocation18_spill] sm:$0xff] }
 0x1db   : >> { %v9448_v43 = vld [vmem:[%s11886_s1 + $0x8e4] ss:$16 sps:$4 sm:$0xff]  }
 0x1dd   : >> { %2402 = vmatpush1.bf16.msra.mxu0 %v9064_v44  ;;  %2443 = vmatpush1.bf16.msra.mxu1 %v9069_v45  ;;  %v9453_v44 = vld [vmem:[%s11886_s1 + $0x8ec] ss:$16 sps:$4 sm:$0xff]   ;;  %v9455_v45 = vpack.c.bf16 %v5875_v26, %v5875_v26  ;;  %v9694_v26 = vld [vmem:[%s11886_s1 + $0x9c0] ss:$16 sps:$4 sm:$0xff]  }
 0x1de   : >> { %2403 = vmatprep.subr.bf16.mxu0 %v9076_v46  ;;  %2444 = vmatprep.subr.bf16.mxu1 %v9081_v47  ;;  %v9462_v46 = vld [vmem:[%s11886_s1 + $0x8e0] ss:$16 sps:$4 sm:$0xff]   ;;  %v9467_v47 = vld [vmem:[%s11886_s1 + $0x8e8] ss:$16 sps:$4 sm:$0xff]  }
 0x1df   : >> { %12062 = vst [vmem:[#allocation5_spill] sm:$0xff] %v9455_v45 }
 0x1e1   : >> { %2404 = vmatpush1.bf16.msra.mxu0 %v9088_v49  ;;  %2445 = vmatpush1.bf16.msra.mxu1 %v9093_v50 }
 0x1e2   : >> { %2405 = vmatprep.subr.bf16.mxu0 %v9100_v51  ;;  %2446 = vmatprep.subr.bf16.mxu1 %v9105_v52  ;;  %v12063_v51 = vld [vmem:[#allocation21_spill] sm:$0xff] }
 0x1e5   : >> { %2406 = vmatpush1.bf16.msra.mxu0 %v9112_v1  ;;  %2447 = vmatpush1.bf16.msra.mxu1 %v9117_v2  ;;  %v12065_v1 = vld [vmem:[#allocation22_spill] sm:$0xff] }
 0x1e6   : >> { %2407 = vmatprep.subr.bf16.mxu0 %v9124_v4  ;;  %2448 = vmatprep.subr.bf16.mxu1 %v9129_v58  ;;  %v9494_v4 = vld [vmem:[%s11886_s1 + $0x8c0] ss:$16 sps:$4 sm:$0xff]   ;;  %v9499_v58 = vld [vmem:[%s11886_s1 + $0x8c8] ss:$16 sps:$4 sm:$0xff]  }
 0x1e9   : >> { %2408 = vmatpush1.bf16.msra.mxu0 %v9136_v59  ;;  %2449 = vmatpush1.bf16.msra.mxu1 %v9141_v35 }
 0x1ea   : >> { %2409 = vmatprep.subr.bf16.mxu0 %v9148_v6  ;;  %2450 = vmatprep.subr.bf16.mxu1 %v9153_v30  ;;  %v9506_v6 = vld [vmem:[%s11886_s1 + $0x8a4] ss:$16 sps:$4 sm:$0xff]   ;;  %v9511_v30 = vld [vmem:[%s11886_s1 + $0x8ac] ss:$16 sps:$4 sm:$0xff]  }
 0x1ed   : >> { %2410 = vmatpush1.bf16.msra.mxu0 %v9160_v12  ;;  %2451 = vmatpush1.bf16.msra.mxu1 %v9165_v13  ;;  %v12067_v12 = vld [vmem:[#allocation23_spill] sm:$0xff] }
 0x1ee   : >> { %2411 = vmatprep.subr.bf16.mxu0 %v9172_v31  ;;  %2452 = vmatprep.subr.bf16.mxu1 %v9177_v32  ;;  %v12069_v31 = vld [vmem:[#allocation24_spill] sm:$0xff] }
 0x1f1   : >> { %2412 = vmatpush2.bf16.msra.mxu0 %v9184_v33  ;;  %2453 = vmatpush2.bf16.msra.mxu1 %v9189_v34  ;;  %v12071_v33 = vld [vmem:[#allocation3_spill] sm:$0xff] }
 0x1f2   : >> { %2413 = vmatprep.subr.bf16.mxu0 %v9196_v37  ;;  %2454 = vmatprep.subr.bf16.mxu1 %v9201_v38  ;;  %v9526_v38 = vld [vmem:[%s11886_s1 + $0x8a0] ss:$16 sps:$4 sm:$0xff]  }
 0x1f5   : >> { %2414 = vmatpush2.bf16.msra.mxu0 %v9208_v39  ;;  %2455 = vmatpush2.bf16.msra.mxu1 %v9213_v40  ;;  %v9531_v39 = vld [vmem:[%s11886_s1 + $0x8a8] ss:$16 sps:$4 sm:$0xff]  }
 0x1f6   : >> { %2415 = vmatprep.subr.bf16.mxu0 %v9220_v53  ;;  %2456 = vmatprep.subr.bf16.mxu1 %v9225_v54  ;;  %v9538_v54 = vld [vmem:[%s11886_s1 + $0x884] ss:$16 sps:$4 sm:$0xff]  }
 0x1f9   : >> { %2416 = vmatpush2.bf16.msra.mxu0 %v9232_v55  ;;  %2457 = vmatpush2.bf16.msra.mxu1 %v9237_v56  ;;  %v9543_v55 = vld [vmem:[%s11886_s1 + $0x88c] ss:$16 sps:$4 sm:$0xff]   ;;  %v9550_v56 = vld [vmem:[%s11886_s1 + $0x880] ss:$16 sps:$4 sm:$0xff]  }
 0x1fa   : >> { %2417 = vmatprep.subr.bf16.mxu0 %v9244_v8  ;;  %2458 = vmatprep.subr.bf16.mxu1 %v9249_v9  ;;  %v9555_v8 = vld [vmem:[%s11886_s1 + $0x888] ss:$16 sps:$4 sm:$0xff]   ;;  %v9562_v9 = vld [vmem:[%s11886_s1 + $0x864] ss:$16 sps:$4 sm:$0xff]  }
 0x1fd   : >> { %2418 = vmatpush2.bf16.msra.mxu0 %v9256_v10  ;;  %2459 = vmatpush2.bf16.msra.mxu1 %v9261_v11  ;;  %v9567_v10 = vld [vmem:[%s11886_s1 + $0x86c] ss:$16 sps:$4 sm:$0xff]   ;;  %v9574_v11 = vld [vmem:[%s11886_s1 + $0x860] ss:$16 sps:$4 sm:$0xff]  }
 0x1fe   : >> { %2419 = vmatprep.subr.bf16.mxu0 %v9268_v14  ;;  %2460 = vmatprep.subr.bf16.mxu1 %v9273_v61  ;;  %v9579_v14 = vld [vmem:[%s11886_s1 + $0x868] ss:$16 sps:$4 sm:$0xff]   ;;  %v9586_v61 = vld [vmem:[%s11886_s1 + $0x844] ss:$16 sps:$4 sm:$0xff]  }
 0x201   : >> { %2420 = vmatpush2.bf16.msra.mxu0 %v9280_v62  ;;  %2461 = vmatpush2.bf16.msra.mxu1 %v12051_v60  ;;  %v9591_v62 = vld [vmem:[%s11886_s1 + $0x84c] ss:$16 sps:$4 sm:$0xff]  }
 0x202   : >> { %2421 = vmatprep.subr.bf16.mxu0 %v12052_v20  ;;  %2462 = vmatprep.subr.bf16.mxu1 %v12053_v21  ;;  %v9639_v60 = vld [vmem:[%s11886_s1 + $0x80c] ss:$16 sps:$4 sm:$0xff]   ;;  %v9646_v20 = vld [vmem:[%s11886_s1 + $0x800] ss:$16 sps:$4 sm:$0xff]   ;;  %v9651_v21 = vld [vmem:[%s11886_s1 + $0x808] ss:$16 sps:$4 sm:$0xff]  }
 0x205   : >> { %2422 = vmatpush2.bf16.msra.mxu0 %v12054_v22  ;;  %2463 = vmatpush2.bf16.msra.mxu1 %v12055_v23  ;;  %v9658_v22 = vld [vmem:[%s11886_s1 + $0x9e4] ss:$16 sps:$4 sm:$0xff]   ;;  %v9663_v23 = vld [vmem:[%s11886_s1 + $0x9ec] ss:$16 sps:$4 sm:$0xff]  }
 0x206   : >> { %2423 = vmatprep.subr.bf16.mxu0 %v12056_v24  ;;  %2464 = vmatprep.subr.bf16.mxu1 %v12057_v25  ;;  %v9670_v24 = vld [vmem:[%s11886_s1 + $0x9e0] ss:$16 sps:$4 sm:$0xff]   ;;  %v9675_v25 = vld [vmem:[%s11886_s1 + $0x9e8] ss:$16 sps:$4 sm:$0xff]  }
 0x209   : >> { %2424 = vmatpush2.bf16.msra.mxu0 %v12058_v27  ;;  %2465 = vmatpush2.bf16.msra.mxu1 %v12059_v29  ;;  %v9682_v27 = vld [vmem:[%s11886_s1 + $0x9c4] ss:$16 sps:$4 sm:$0xff]   ;;  %v9687_v29 = vld [vmem:[%s11886_s1 + $0x9cc] ss:$16 sps:$4 sm:$0xff]  }
 0x20a   : >> { %2425 = vmatprep.subr.bf16.mxu0 %v12060_v28  ;;  %2466 = vmatprep.subr.bf16.mxu1 %v12061_v42  ;;  %v9699_v28 = vld [vmem:[%s11886_s1 + $0x9c8] ss:$16 sps:$4 sm:$0xff]   ;;  %v9706_v42 = vld [vmem:[%s11886_s1 + $0x9a4] ss:$16 sps:$4 sm:$0xff]  }
 0x20d   : >> { %2426 = vmatpush2.bf16.msra.mxu0 %v9352_v3  ;;  %2467 = vmatpush2.bf16.msra.mxu1 %v9357_v7  ;;  %v9474_v3 = vld [vmem:[%s11886_s1 + $0x8c4] ss:$16 sps:$4 sm:$0xff]   ;;  %v9479_v7 = vld [vmem:[%s11886_s1 + $0x8cc] ss:$16 sps:$4 sm:$0xff]  }
 0x20e   : >> { %2870 = vmatprep.subr.bf16.mxu0 %v9448_v43  ;;  %2911 = vmatprep.subr.bf16.mxu1 %v9453_v44 }
 0x210   : >> { %v1770_v49 = vpop.f32.mrf.mxu0  ;;  %v1811_v50 = vpop.f32.mrf.mxu1  ;;  %2428 = vmatmul.mubr.bf16.vlgmr.msra.gmra.mxu0 %v9455_v45  ;;  %2469 = vmatmul.mubr.bf16.vlgmr.msra.gmra.mxu1 %v9455_v45  ;;  %v6006_v45 = vld [vmem:[%s7782_s19 + $0x48] sm:$0xfe] }
 0x211   : >> { %v9484_v52 = vadd.f32 %v1770_v49, %v12063_v51  ;;  %v9487_v2 = vadd.f32 %v1811_v50, %v12065_v1  ;;  %2871 = vmatpush1.bf16.msra.mxu0 %v9462_v46  ;;  %2912 = vmatpush1.bf16.msra.mxu1 %v9467_v47  ;;  %v9711_v49 = vld [vmem:[%s11886_s1 + $0x9ac] ss:$16 sps:$4 sm:$0xff]   ;;  %v9718_v50 = vld [vmem:[%s11886_s1 + $0x9a0] ss:$16 sps:$4 sm:$0xff]   ;;  %v9723_v51 = vld [vmem:[%s11886_s1 + $0x9a8] ss:$16 sps:$4 sm:$0xff]  }
 0x212   : >> { %v1772_v59 = vpop.f32.mrf.mxu0  ;;  %v1813_v35 = vpop.f32.mrf.mxu1  ;;  %2872 = vmatprep.subr.bf16.mxu0 %v9474_v3  ;;  %2913 = vmatprep.subr.bf16.mxu1 %v9479_v7  ;;  %v9730_v1 = vld [vmem:[%s11886_s1 + $0x984] ss:$16 sps:$4 sm:$0xff]  }
 0x213   : >> { %12064 = vst [vmem:[#allocation6_spill] sm:$0xff] %v9484_v52  ;;  %12066 = vst [vmem:[#allocation8_spill] sm:$0xff] %v9487_v2  ;;  %v9514_v13 = vadd.f32 %v1772_v59, %v12067_v12  ;;  %v9517_v32 = vadd.f32 %v1813_v35, %v12069_v31  ;;  %2902 = vmatprep.mubr.bf16.mxu0 %v12071_v33  ;;  %2943 = vmatprep.mubr.bf16.mxu1 %v12071_v33  ;;  %v9735_v59 = vld [vmem:[%s11886_s1 + $0x98c] ss:$16 sps:$4 sm:$0xff]   ;;  %v9742_v35 = vld [vmem:[%s11886_s1 + $0x980] ss:$16 sps:$4 sm:$0xff]  }
 0x214   : >> { %v1774_v34 = vpop.f32.mrf.mxu0  ;;  %v1815_v37 = vpop.f32.mrf.mxu1  ;;  %v9747_v12 = vld [vmem:[%s11886_s1 + $0x988] ss:$16 sps:$4 sm:$0xff]   ;;  %v9754_v31 = vld [vmem:[%s11886_s1 + $0x964] ss:$16 sps:$4 sm:$0xff]   ;;  %v9759_v33 = vld [vmem:[%s11886_s1 + $0x96c] ss:$16 sps:$4 sm:$0xff]  }
 0x215   : >> { %12068 = vst [vmem:[#allocation9_spill] sm:$0xff] %v9514_v13  ;;  %12070 = vst [vmem:[#allocation10_spill] sm:$0xff] %v9517_v32  ;;  %2873 = vmatpush1.bf16.msra.mxu0 %v9494_v4  ;;  %2914 = vmatpush1.bf16.msra.mxu1 %v9499_v58  ;;  %v9766_v34 = vld [vmem:[%s11886_s1 + $0x960] ss:$16 sps:$4 sm:$0xff]   ;;  %v9771_v37 = vld [vmem:[%s11886_s1 + $0x968] ss:$16 sps:$4 sm:$0xff]  }
 0x216   : >> { %v1775_v40 = vpop.f32.mrf.mxu0  ;;  %v1816_v53 = vpop.f32.mrf.mxu1  ;;  %2874 = vmatprep.subr.bf16.mxu0 %v9506_v6  ;;  %2915 = vmatprep.subr.bf16.mxu1 %v9511_v30  ;;  %12072 = vst [vmem:[#allocation11_spill] sm:$0xff] %v9754_v31  ;;  %12073 = vst [vmem:[#allocation12_spill] sm:$0xff] %v9759_v33  ;;  %v9792_v32 = vld [vmem:[%s11886_s1 + $0x940] ss:$16 sps:$4 sm:$0xff]   ;;  %v9797_v13 = vld [vmem:[%s11886_s1 + $0x948] ss:$16 sps:$4 sm:$0xff]  }
 0x217   : >> { %12074 = vst [vmem:[#allocation13_spill] sm:$0xff] %v9766_v34  ;;  %12075 = vst [vmem:[#allocation14_spill] sm:$0xff] %v9771_v37  ;;  %v9778_v40 = vld [vmem:[%s11886_s1 + $0x944] ss:$16 sps:$4 sm:$0xff]   ;;  %v9783_v53 = vld [vmem:[%s11886_s1 + $0x94c] ss:$16 sps:$4 sm:$0xff]  }
 0x218   : >> { %12076 = vst [vmem:[#allocation15_spill] sm:$0xff] %v9778_v40  ;;  %12077 = vst [vmem:[#allocation16_spill] sm:$0xff] %v9783_v53  ;;  %v9804_v2 = vld [vmem:[%s11886_s1 + $0x924] ss:$16 sps:$4 sm:$0xff]   ;;  %v9809_v52 = vld [vmem:[%s11886_s1 + $0x92c] ss:$16 sps:$4 sm:$0xff]  }
 0x219   : >> { %2875 = vmatpush1.bf16.msra.mxu0 %v9526_v38  ;;  %2916 = vmatpush1.bf16.msra.mxu1 %v9531_v39  ;;  %12078 = vst [vmem:[#allocation17_spill] sm:$0xff] %v9792_v32  ;;  %12079 = vst [vmem:[#allocation18_spill] sm:$0xff] %v9797_v13 }
 0x21a   : >> { %2876 = vmatprep.subr.bf16.mxu0 %v9538_v54  ;;  %2917 = vmatprep.subr.bf16.mxu1 %v9543_v55  ;;  %12080 = vst [vmem:[#allocation21_spill] sm:$0xff] %v9804_v2  ;;  %12081 = vst [vmem:[#allocation22_spill] sm:$0xff] %v9809_v52 }
 0x21d   : >> { %2877 = vmatpush1.bf16.msra.mxu0 %v9550_v56  ;;  %2918 = vmatpush1.bf16.msra.mxu1 %v9555_v8 }
 0x21e   : >> { %2878 = vmatprep.subr.bf16.mxu0 %v9562_v9  ;;  %2919 = vmatprep.subr.bf16.mxu1 %v9567_v10 }
 0x221   : >> { %2879 = vmatpush1.bf16.msra.mxu0 %v9574_v11  ;;  %2920 = vmatpush1.bf16.msra.mxu1 %v9579_v14 }
 0x222   : >> { %2880 = vmatprep.subr.bf16.mxu0 %v9586_v61  ;;  %2921 = vmatprep.subr.bf16.mxu1 %v9591_v62 }
 0x225   : >> { %2881 = vmatpush1.bf16.msra.mxu0 %v9598_v36  ;;  %2922 = vmatpush1.bf16.msra.mxu1 %v9603_v15 }
 0x226   : >> { %2882 = vmatprep.subr.bf16.mxu0 %v9610_v16  ;;  %2923 = vmatprep.subr.bf16.mxu1 %v9615_v17 }
 0x229   : >> { %2883 = vmatpush1.bf16.msra.mxu0 %v9622_v0  ;;  %2924 = vmatpush1.bf16.msra.mxu1 %v9627_v19 }
 0x22a   : >> { %2884 = vmatprep.subr.bf16.mxu0 %v9634_v48  ;;  %2925 = vmatprep.subr.bf16.mxu1 %v9639_v60 }
 0x22d   : >> { %2885 = vmatpush1.bf16.msra.mxu0 %v9646_v20  ;;  %2926 = vmatpush1.bf16.msra.mxu1 %v9651_v21 }
 0x22e   : >> { %2886 = vmatprep.subr.bf16.mxu0 %v9658_v22  ;;  %2927 = vmatprep.subr.bf16.mxu1 %v9663_v23 }
 0x231   : >> { %2887 = vmatpush2.bf16.msra.mxu0 %v9670_v24  ;;  %2928 = vmatpush2.bf16.msra.mxu1 %v9675_v25 }
 0x232   : >> { %2888 = vmatprep.subr.bf16.mxu0 %v9682_v27  ;;  %2929 = vmatprep.subr.bf16.mxu1 %v9687_v29 }
 0x235   : >> { %2889 = vmatpush2.bf16.msra.mxu0 %v9694_v26  ;;  %2930 = vmatpush2.bf16.msra.mxu1 %v9699_v28 }
 0x236   : >> { %2890 = vmatprep.subr.bf16.mxu0 %v9706_v42  ;;  %2931 = vmatprep.subr.bf16.mxu1 %v9711_v49 }
 0x239   : >> { %2891 = vmatpush2.bf16.msra.mxu0 %v9718_v50  ;;  %2932 = vmatpush2.bf16.msra.mxu1 %v9723_v51 }
 0x23a   : >> { %2892 = vmatprep.subr.bf16.mxu0 %v9730_v1  ;;  %2933 = vmatprep.subr.bf16.mxu1 %v9735_v59 }
 0x23d   : >> { %2893 = vmatpush2.bf16.msra.mxu0 %v9742_v35  ;;  %2934 = vmatpush2.bf16.msra.mxu1 %v9747_v12 }
 0x23e   : >> { %2894 = vmatprep.subr.bf16.mxu0 %v9754_v31  ;;  %2935 = vmatprep.subr.bf16.mxu1 %v9759_v33  ;;  %v12086_v31 = vld [vmem:[#allocation4_spill] sm:$0xff] }
 0x241   : >> { %2895 = vmatpush2.bf16.msra.mxu0 %v9766_v34  ;;  %2936 = vmatpush2.bf16.msra.mxu1 %v9771_v37  ;;  %v2957_v37 = vpack.c.bf16 %v6008_v57, %v6006_v45  ;;  %v9828_v57 = vld [vmem:[%s11886_s1 + $0x904] ss:$16 sps:$4 sm:$0xff]   ;;  %v9833_v45 = vld [vmem:[%s11886_s1 + $0x90c] ss:$16 sps:$4 sm:$0xff]  }
 0x242   : >> { %2896 = vmatprep.subr.bf16.mxu0 %v9778_v40  ;;  %2937 = vmatprep.subr.bf16.mxu1 %v9783_v53  ;;  %v9816_v40 = vld [vmem:[%s11886_s1 + $0x920] ss:$16 sps:$4 sm:$0xff]   ;;  %v9821_v53 = vld [vmem:[%s11886_s1 + $0x928] ss:$16 sps:$4 sm:$0xff]   ;;  %12084 = vst [vmem:[#allocation3_spill] sm:$0xff] %v9833_v45 }
 0x243   : >> { %12082 = vst [vmem:[#allocation23_spill] sm:$0xff] %v9816_v40  ;;  %12083 = vst [vmem:[#allocation24_spill] sm:$0xff] %v9821_v53 }
 0x245   : >> { %2897 = vmatpush2.bf16.msra.mxu0 %v9792_v32  ;;  %2938 = vmatpush2.bf16.msra.mxu1 %v9797_v13  ;;  %v2968_v13 = vshll.u32 %v2957_v37, 16  ;;  %v2966_v32 = vshrl.u32 %v2957_v37, 16  ;;  %v10031_v37 = vld [vmem:[%s11886_s1 + $0xa8c] ss:$16 sps:$4 sm:$0xff]  }
 0x246   : >> { %2898 = vmatprep.subr.bf16.mxu0 %v9804_v2  ;;  %2939 = vmatprep.subr.bf16.mxu1 %v9809_v52  ;;  %v9840_v2 = vld [vmem:[%s11886_s1 + $0x900] ss:$16 sps:$4 sm:$0xff]   ;;  %v9845_v52 = vld [vmem:[%s11886_s1 + $0x908] ss:$16 sps:$4 sm:$0xff]  }
 0x247   : >> { %v2970_v34 = vrot.slane %v2968_v13, 1 }
 0x249   : >> { %2899 = vmatpush2.bf16.msra.mxu0 %v9816_v40  ;;  %2940 = vmatpush2.bf16.msra.mxu1 %v9821_v53  ;;  %v9853_v53 = vor.u32 %v2970_v34, %v2966_v32  ;;  %v10026_v34 = vld [vmem:[%s11886_s1 + $0xa84] ss:$16 sps:$4 sm:$0xff]  }
 0x24a   : >> { %2900 = vmatprep.subr.bf16.mxu0 %v9828_v57  ;;  %2941 = vmatprep.subr.bf16.mxu1 %v9833_v45 }
 0x24b   : >> { %12085 = vst [vmem:[#allocation25_spill] sm:$0xff] %v9853_v53 }
 0x24d   : >> { %2901 = vmatpush2.bf16.msra.mxu0 %v9840_v2  ;;  %2942 = vmatpush2.bf16.msra.mxu1 %v9845_v52 }
 0x24e   : >> { %2974 = vmatprep.subr.bf16.mxu0 %v9448_v43  ;;  %3015 = vmatprep.subr.bf16.mxu1 %v9453_v44 }
 0x250   : >> { %v1864_v40 = vpop.f32.mrf.mxu0  ;;  %v1905_v33 = vpop.f32.mrf.mxu1  ;;  %2903 = vmatmul.mubr.bf16.vlgmr.msra.gmra.mxu0 %v12086_v31  ;;  %2944 = vmatmul.mubr.bf16.vlgmr.msra.gmra.mxu1 %v12086_v31 }
 0x251   : >> { %v9858_v45 = vadd.f32 %v1864_v40, %v9371_v18  ;;  %v9861_v13 = vadd.f32 %v1905_v33, %v9374_v5  ;;  %2975 = vmatpush1.bf16.msra.mxu0 %v9462_v46  ;;  %3016 = vmatpush1.bf16.msra.mxu1 %v9467_v47  ;;  %v10038_v40 = vld [vmem:[%s11886_s1 + $0xa80] ss:$16 sps:$4 sm:$0xff]  }
 0x252   : >> { %v1866_v43 = vpop.f32.mrf.mxu0  ;;  %v1907_v44 = vpop.f32.mrf.mxu1  ;;  %2976 = vmatprep.subr.bf16.mxu0 %v9474_v3  ;;  %3017 = vmatprep.subr.bf16.mxu1 %v9479_v7  ;;  %v12087_v3 = vld [vmem:[#allocation11_spill] sm:$0xff]  ;;  %v12088_v7 = vld [vmem:[#allocation12_spill] sm:$0xff] }
 0x253   : >> { %v9868_v32 = vadd.f32 %v1866_v43, %v9381_v41  ;;  %v9871_v31 = vadd.f32 %v1907_v44, %v9384_v63  ;;  %3006 = vmatprep.mubr.bf16.mxu0 %v9853_v53  ;;  %3047 = vmatprep.mubr.bf16.mxu1 %v9853_v53  ;;  %v6005_v41 = vld [vmem:[%s7782_s19 + $0x40] sm:$0xfe]  ;;  %v6007_v63 = vld [vmem:[%s7782_s19 + $0x50] sm:$0x1]  ;;  %v10055_v44 = vld [vmem:[%s11886_s1 + $0xa6c] ss:$16 sps:$4 sm:$0xff]  }
 0x254   : >> { %v1868_v5 = vpop.f32.mrf.mxu0  ;;  %v1909_v18 = vpop.f32.mrf.mxu1  ;;  %v10050_v43 = vld [vmem:[%s11886_s1 + $0xa64] ss:$16 sps:$4 sm:$0xff]   ;;  %v10283_v53 = vld [vmem:[%s11886_s1 + $0xb48] ss:$16 sps:$4 sm:$0xff]  }
 0x255   : >> { %2977 = vmatpush1.bf16.msra.mxu0 %v9494_v4  ;;  %3018 = vmatpush1.bf16.msra.mxu1 %v9499_v58  ;;  %v2956_v4 = vpack.c.bf16 %v6007_v63, %v6005_v41  ;;  %v12089_v58 = vld [vmem:[#allocation13_spill] sm:$0xff]  ;;  %v10062_v5 = vld [vmem:[%s11886_s1 + $0xa60] ss:$16 sps:$4 sm:$0xff]  }
 0x256   : >> { %v1869_v46 = vpop.f32.mrf.mxu0  ;;  %v1910_v47 = vpop.f32.mrf.mxu1  ;;  %2978 = vmatprep.subr.bf16.mxu0 %v9506_v6  ;;  %3019 = vmatprep.subr.bf16.mxu1 %v9511_v30  ;;  %v12090_v6 = vld [vmem:[#allocation14_spill] sm:$0xff]  ;;  %v12091_v30 = vld [vmem:[#allocation15_spill] sm:$0xff] }
 0x257   : >> { %v10067_v18 = vld [vmem:[%s11886_s1 + $0xa68] ss:$16 sps:$4 sm:$0xff]   ;;  %v10074_v46 = vld [vmem:[%s11886_s1 + $0xa44] ss:$16 sps:$4 sm:$0xff]   ;;  %v10079_v47 = vld [vmem:[%s11886_s1 + $0xa4c] ss:$16 sps:$4 sm:$0xff]  }
 0x258   : >> { %v10086_v41 = vld [vmem:[%s11886_s1 + $0xa40] ss:$16 sps:$4 sm:$0xff]   ;;  %v10091_v63 = vld [vmem:[%s11886_s1 + $0xa48] ss:$16 sps:$4 sm:$0xff]  }
 0x259   : >> { %2979 = vmatpush1.bf16.msra.mxu0 %v9526_v38  ;;  %3020 = vmatpush1.bf16.msra.mxu1 %v9531_v39  ;;  %v12092_v38 = vld [vmem:[#allocation16_spill] sm:$0xff]  ;;  %v2961_v39 = vshll.u32 %v2956_v4, 16 }
 0x25a   : >> { %2980 = vmatprep.subr.bf16.mxu0 %v9538_v54  ;;  %3021 = vmatprep.subr.bf16.mxu1 %v9543_v55  ;;  %v12093_v54 = vld [vmem:[#allocation17_spill] sm:$0xff]  ;;  %v12094_v55 = vld [vmem:[#allocation18_spill] sm:$0xff] }
 0x25d   : >> { %2981 = vmatpush1.bf16.msra.mxu0 %v9550_v56  ;;  %3022 = vmatpush1.bf16.msra.mxu1 %v9555_v8  ;;  %v12095_v56 = vld [vmem:[#allocation21_spill] sm:$0xff]  ;;  %v12096_v8 = vld [vmem:[#allocation22_spill] sm:$0xff] }
 0x25e   : >> { %2982 = vmatprep.subr.bf16.mxu0 %v9562_v9  ;;  %3023 = vmatprep.subr.bf16.mxu1 %v9567_v10  ;;  %v2959_v9 = vshrl.u32 %v2956_v4, 16  ;;  %v2963_v10 = vrot.slane %v2961_v39, 1  ;;  %v10110_v4 = vld [vmem:[%s11886_s1 + $0xa20] ss:$16 sps:$4 sm:$0xff]   ;;  %v10139_v39 = vld [vmem:[%s11886_s1 + $0xa08] ss:$16 sps:$4 sm:$0xff]  }
 0x261   : >> { %2983 = vmatpush1.bf16.msra.mxu0 %v9574_v11  ;;  %3024 = vmatpush1.bf16.msra.mxu1 %v9579_v14  ;;  %v12097_v11 = vld [vmem:[#allocation23_spill] sm:$0xff]  ;;  %v12098_v14 = vld [vmem:[#allocation24_spill] sm:$0xff] }
 0x262   : >> { %2984 = vmatprep.subr.bf16.mxu0 %v9586_v61  ;;  %3025 = vmatprep.subr.bf16.mxu1 %v9591_v62  ;;  %v12099_v61 = vld [vmem:[#allocation3_spill] sm:$0xff]  ;;  %v9936_v62 = vld [vmem:[%s11886_s1 + $0xae4] ss:$16 sps:$4 sm:$0xff]   ;;  %12116 = vst [vmem:[#allocation23_spill] sm:$0xff] %v10283_v53 }
 0x265   : >> { %2985 = vmatpush1.bf16.msra.mxu0 %v9598_v36  ;;  %3026 = vmatpush1.bf16.msra.mxu1 %v9603_v15  ;;  %v9941_v36 = vld [vmem:[%s11886_s1 + $0xaec] ss:$16 sps:$4 sm:$0xff]   ;;  %v9943_v15 = vor.u32 %v2963_v10, %v2959_v9  ;;  %v10170_v9 = vld [vmem:[%s11886_s1 + $0xbc4] ss:$16 sps:$4 sm:$0xff]  }
 0x266   : >> { %2986 = vmatprep.subr.bf16.mxu0 %v9610_v16  ;;  %3027 = vmatprep.subr.bf16.mxu1 %v9615_v17  ;;  %v9950_v16 = vld [vmem:[%s11886_s1 + $0xae0] ss:$16 sps:$4 sm:$0xff]   ;;  %v9955_v17 = vld [vmem:[%s11886_s1 + $0xae8] ss:$16 sps:$4 sm:$0xff]   ;;  %v10175_v10 = vld [vmem:[%s11886_s1 + $0xbcc] ss:$16 sps:$4 sm:$0xff]  }
 0x267   : >> { %12100 = vst [vmem:[#allocation4_spill] sm:$0xff] %v9943_v15 }
 0x269   : >> { %2987 = vmatpush1.bf16.msra.mxu0 %v9622_v0  ;;  %3028 = vmatpush1.bf16.msra.mxu1 %v9627_v19 }
 0x26a   : >> { %2988 = vmatprep.subr.bf16.mxu0 %v9634_v48  ;;  %3029 = vmatprep.subr.bf16.mxu1 %v9639_v60  ;;  %v12101_v48 = vld [vmem:[#allocation6_spill] sm:$0xff] }
 0x26d   : >> { %2989 = vmatpush1.bf16.msra.mxu0 %v9646_v20  ;;  %3030 = vmatpush1.bf16.msra.mxu1 %v9651_v21  ;;  %v12103_v20 = vld [vmem:[#allocation8_spill] sm:$0xff] }
 0x26e   : >> { %2990 = vmatprep.subr.bf16.mxu0 %v9658_v22  ;;  %3031 = vmatprep.subr.bf16.mxu1 %v9663_v23  ;;  %v9982_v22 = vld [vmem:[%s11886_s1 + $0xac0] ss:$16 sps:$4 sm:$0xff]   ;;  %v9987_v23 = vld [vmem:[%s11886_s1 + $0xac8] ss:$16 sps:$4 sm:$0xff]  }
 0x271   : >> { %2991 = vmatpush2.bf16.msra.mxu0 %v9670_v24  ;;  %3032 = vmatpush2.bf16.msra.mxu1 %v9675_v25 }
 0x272   : >> { %2992 = vmatprep.subr.bf16.mxu0 %v9682_v27  ;;  %3033 = vmatprep.subr.bf16.mxu1 %v9687_v29  ;;  %v9994_v27 = vld [vmem:[%s11886_s1 + $0xaa4] ss:$16 sps:$4 sm:$0xff]   ;;  %v9999_v29 = vld [vmem:[%s11886_s1 + $0xaac] ss:$16 sps:$4 sm:$0xff]  }
 0x275   : >> { %2993 = vmatpush2.bf16.msra.mxu0 %v9694_v26  ;;  %3034 = vmatpush2.bf16.msra.mxu1 %v9699_v28  ;;  %v12105_v26 = vld [vmem:[#allocation9_spill] sm:$0xff] }
 0x276   : >> { %2994 = vmatprep.subr.bf16.mxu0 %v9706_v42  ;;  %3035 = vmatprep.subr.bf16.mxu1 %v9711_v49  ;;  %v12107_v42 = vld [vmem:[#allocation10_spill] sm:$0xff] }
 0x279   : >> { %2995 = vmatpush2.bf16.msra.mxu0 %v9718_v50  ;;  %3036 = vmatpush2.bf16.msra.mxu1 %v9723_v51  ;;  %v12109_v50 = vld [vmem:[#allocation20_spill] sm:$0xff] }
 0x27a   : >> { %2996 = vmatprep.subr.bf16.mxu0 %v9730_v1  ;;  %3037 = vmatprep.subr.bf16.mxu1 %v9735_v59  ;;  %v10014_v59 = vld [vmem:[%s11886_s1 + $0xaa0] ss:$16 sps:$4 sm:$0xff]  }
 0x27d   : >> { %2997 = vmatpush2.bf16.msra.mxu0 %v9742_v35  ;;  %3038 = vmatpush2.bf16.msra.mxu1 %v9747_v12  ;;  %v10019_v35 = vld [vmem:[%s11886_s1 + $0xaa8] ss:$16 sps:$4 sm:$0xff]  }
 0x27e   : >> { %2998 = vmatprep.subr.bf16.mxu0 %v12087_v3  ;;  %3039 = vmatprep.subr.bf16.mxu1 %v12088_v7  ;;  %v10098_v3 = vld [vmem:[%s11886_s1 + $0xa24] ss:$16 sps:$4 sm:$0xff]   ;;  %v10103_v7 = vld [vmem:[%s11886_s1 + $0xa2c] ss:$16 sps:$4 sm:$0xff]  }
 0x281   : >> { %2999 = vmatpush2.bf16.msra.mxu0 %v12089_v58  ;;  %3040 = vmatpush2.bf16.msra.mxu1 %v12090_v6  ;;  %v10115_v58 = vld [vmem:[%s11886_s1 + $0xa28] ss:$16 sps:$4 sm:$0xff]   ;;  %v10122_v6 = vld [vmem:[%s11886_s1 + $0xa04] ss:$16 sps:$4 sm:$0xff]  }
 0x282   : >> { %3000 = vmatprep.subr.bf16.mxu0 %v12091_v30  ;;  %3041 = vmatprep.subr.bf16.mxu1 %v12092_v38  ;;  %v10127_v30 = vld [vmem:[%s11886_s1 + $0xa0c] ss:$16 sps:$4 sm:$0xff]   ;;  %v10134_v38 = vld [vmem:[%s11886_s1 + $0xa00] ss:$16 sps:$4 sm:$0xff]  }
 0x285   : >> { %3001 = vmatpush2.bf16.msra.mxu0 %v12093_v54  ;;  %3042 = vmatpush2.bf16.msra.mxu1 %v12094_v55  ;;  %v10146_v54 = vld [vmem:[%s11886_s1 + $0xbe4] ss:$16 sps:$4 sm:$0xff]   ;;  %v10151_v55 = vld [vmem:[%s11886_s1 + $0xbec] ss:$16 sps:$4 sm:$0xff]  }
 0x286   : >> { %3002 = vmatprep.subr.bf16.mxu0 %v12095_v56  ;;  %3043 = vmatprep.subr.bf16.mxu1 %v12096_v8  ;;  %v10158_v56 = vld [vmem:[%s11886_s1 + $0xbe0] ss:$16 sps:$4 sm:$0xff]   ;;  %v10163_v8 = vld [vmem:[%s11886_s1 + $0xbe8] ss:$16 sps:$4 sm:$0xff]  }
 0x289   : >> { %3003 = vmatpush2.bf16.msra.mxu0 %v12097_v11  ;;  %3044 = vmatpush2.bf16.msra.mxu1 %v12098_v14  ;;  %v10182_v11 = vld [vmem:[%s11886_s1 + $0xbc0] ss:$16 sps:$4 sm:$0xff]   ;;  %v10187_v14 = vld [vmem:[%s11886_s1 + $0xbc8] ss:$16 sps:$4 sm:$0xff]  }
 0x28a   : >> { %3004 = vmatprep.subr.bf16.mxu0 %v9828_v57  ;;  %3045 = vmatprep.subr.bf16.mxu1 %v12099_v61  ;;  %v10043_v57 = vld [vmem:[%s11886_s1 + $0xa88] ss:$16 sps:$4 sm:$0xff]   ;;  %v10194_v61 = vld [vmem:[%s11886_s1 + $0xba4] ss:$16 sps:$4 sm:$0xff]  }
 0x28d   : >> { %3005 = vmatpush2.bf16.msra.mxu0 %v9840_v2  ;;  %3046 = vmatpush2.bf16.msra.mxu1 %v9845_v52  ;;  %v9962_v2 = vld [vmem:[%s11886_s1 + $0xac4] ss:$16 sps:$4 sm:$0xff]   ;;  %v9967_v52 = vld [vmem:[%s11886_s1 + $0xacc] ss:$16 sps:$4 sm:$0xff]  }
 0x28e   : >> { %3449 = vmatprep.subr.bf16.mxu0 %v9936_v62  ;;  %3490 = vmatprep.subr.bf16.mxu1 %v9941_v36 }
 0x290   : >> { %v2341_v0 = vpop.f32.mrf.mxu0  ;;  %v2382_v19 = vpop.f32.mrf.mxu1  ;;  %3007 = vmatmul.mubr.bf16.vlgmr.msra.gmra.mxu0 %v9943_v15  ;;  %3048 = vmatmul.mubr.bf16.vlgmr.msra.gmra.mxu1 %v9943_v15  ;;  %v10278_v15 = vld [vmem:[%s11886_s1 + $0xb40] ss:$16 sps:$4 sm:$0xff]  }
 0x291   : >> { %v9972_v60 = vadd.f32 %v2341_v0, %v12101_v48  ;;  %v9975_v21 = vadd.f32 %v2382_v19, %v12103_v20  ;;  %3450 = vmatpush1.bf16.msra.mxu0 %v9950_v16  ;;  %3491 = vmatpush1.bf16.msra.mxu1 %v9955_v17  ;;  %v10199_v0 = vld [vmem:[%s11886_s1 + $0xbac] ss:$16 sps:$4 sm:$0xff]   ;;  %v10206_v19 = vld [vmem:[%s11886_s1 + $0xba0] ss:$16 sps:$4 sm:$0xff]   ;;  %v10211_v48 = vld [vmem:[%s11886_s1 + $0xba8] ss:$16 sps:$4 sm:$0xff]  }
 0x292   : >> { %v2343_v24 = vpop.f32.mrf.mxu0  ;;  %v2384_v25 = vpop.f32.mrf.mxu1  ;;  %3451 = vmatprep.subr.bf16.mxu0 %v9962_v2  ;;  %3492 = vmatprep.subr.bf16.mxu1 %v9967_v52  ;;  %v10218_v20 = vld [vmem:[%s11886_s1 + $0xb84] ss:$16 sps:$4 sm:$0xff]   ;;  %12115 = vst [vmem:[#allocation22_spill] sm:$0xff] %v10278_v15 }
 0x293   : >> { %12102 = vst [vmem:[#allocation11_spill] sm:$0xff] %v9972_v60  ;;  %12104 = vst [vmem:[#allocation12_spill] sm:$0xff] %v9975_v21  ;;  %v10002_v28 = vadd.f32 %v2343_v24, %v12105_v26  ;;  %v10005_v49 = vadd.f32 %v2384_v25, %v12107_v42  ;;  %3481 = vmatprep.mubr.bf16.mxu0 %v12109_v50  ;;  %3522 = vmatprep.mubr.bf16.mxu1 %v12109_v50  ;;  %v10223_v24 = vld [vmem:[%s11886_s1 + $0xb8c] ss:$16 sps:$4 sm:$0xff]   ;;  %v10230_v25 = vld [vmem:[%s11886_s1 + $0xb80] ss:$16 sps:$4 sm:$0xff]  }
 0x294   : >> { %v2345_v51 = vpop.f32.mrf.mxu0  ;;  %v2386_v1 = vpop.f32.mrf.mxu1  ;;  %v10235_v26 = vld [vmem:[%s11886_s1 + $0xb88] ss:$16 sps:$4 sm:$0xff]   ;;  %v10242_v42 = vld [vmem:[%s11886_s1 + $0xb64] ss:$16 sps:$4 sm:$0xff]   ;;  %v10247_v50 = vld [vmem:[%s11886_s1 + $0xb6c] ss:$16 sps:$4 sm:$0xff]  }
 0x295   : >> { %12106 = vst [vmem:[#allocation13_spill] sm:$0xff] %v10002_v28  ;;  %12108 = vst [vmem:[#allocation14_spill] sm:$0xff] %v10005_v49  ;;  %3452 = vmatpush1.bf16.msra.mxu0 %v9982_v22  ;;  %3493 = vmatpush1.bf16.msra.mxu1 %v9987_v23  ;;  %v10254_v51 = vld [vmem:[%s11886_s1 + $0xb60] ss:$16 sps:$4 sm:$0xff]   ;;  %v10259_v1 = vld [vmem:[%s11886_s1 + $0xb68] ss:$16 sps:$4 sm:$0xff]  }
 0x296   : >> { %v2346_v12 = vpop.f32.mrf.mxu0  ;;  %v2387_v33 = vpop.f32.mrf.mxu1  ;;  %3453 = vmatprep.subr.bf16.mxu0 %v9994_v27  ;;  %3494 = vmatprep.subr.bf16.mxu1 %v9999_v29  ;;  %12110 = vst [vmem:[#allocation15_spill] sm:$0xff] %v10247_v50  ;;  %12111 = vst [vmem:[#allocation16_spill] sm:$0xff] %v10254_v51  ;;  %v10290_v49 = vld [vmem:[%s11886_s1 + $0xb24] ss:$16 sps:$4 sm:$0xff]   ;;  %v10295_v28 = vld [vmem:[%s11886_s1 + $0xb2c] ss:$16 sps:$4 sm:$0xff]  }
 0x297   : >> { %12112 = vst [vmem:[#allocation17_spill] sm:$0xff] %v10259_v1  ;;  %v10266_v12 = vld [vmem:[%s11886_s1 + $0xb44] ss:$16 sps:$4 sm:$0xff]   ;;  %v10271_v33 = vld [vmem:[%s11886_s1 + $0xb4c] ss:$16 sps:$4 sm:$0xff]   ;;  %12117 = vst [vmem:[#allocation24_spill] sm:$0xff] %v10290_v49 }
 0x298   : >> { %12113 = vst [vmem:[#allocation18_spill] sm:$0xff] %v10266_v12  ;;  %12114 = vst [vmem:[#allocation21_spill] sm:$0xff] %v10271_v33  ;;  %v10302_v21 = vld [vmem:[%s11886_s1 + $0xb20] ss:$16 sps:$4 sm:$0xff]   ;;  %v10307_v60 = vld [vmem:[%s11886_s1 + $0xb28] ss:$16 sps:$4 sm:$0xff]  }
 0x299   : >> { %3454 = vmatpush1.bf16.msra.mxu0 %v10014_v59  ;;  %3495 = vmatpush1.bf16.msra.mxu1 %v10019_v35  ;;  %12118 = vst [vmem:[#allocation3_spill] sm:$0xff] %v10295_v28  ;;  %12119 = vst [vmem:[#allocation6_spill] sm:$0xff] %v10302_v21 }
 0x29a   : >> { %3455 = vmatprep.subr.bf16.mxu0 %v10026_v34  ;;  %3496 = vmatprep.subr.bf16.mxu1 %v10031_v37  ;;  %12120 = vst [vmem:[#allocation8_spill] sm:$0xff] %v10307_v60 }
 0x29d   : >> { %3456 = vmatpush1.bf16.msra.mxu0 %v10038_v40  ;;  %3497 = vmatpush1.bf16.msra.mxu1 %v10043_v57 }
 0x29e   : >> { %3457 = vmatprep.subr.bf16.mxu0 %v10050_v43  ;;  %3498 = vmatprep.subr.bf16.mxu1 %v10055_v44 }
 0x2a1   : >> { %3458 = vmatpush1.bf16.msra.mxu0 %v10062_v5  ;;  %3499 = vmatpush1.bf16.msra.mxu1 %v10067_v18 }
 0x2a2   : >> { %3459 = vmatprep.subr.bf16.mxu0 %v10074_v46  ;;  %3500 = vmatprep.subr.bf16.mxu1 %v10079_v47 }
 0x2a5   : >> { %3460 = vmatpush1.bf16.msra.mxu0 %v10086_v41  ;;  %3501 = vmatpush1.bf16.msra.mxu1 %v10091_v63 }
 0x2a6   : >> { %3461 = vmatprep.subr.bf16.mxu0 %v10098_v3  ;;  %3502 = vmatprep.subr.bf16.mxu1 %v10103_v7 }
 0x2a9   : >> { %3462 = vmatpush1.bf16.msra.mxu0 %v10110_v4  ;;  %3503 = vmatpush1.bf16.msra.mxu1 %v10115_v58 }
 0x2aa   : >> { %3463 = vmatprep.subr.bf16.mxu0 %v10122_v6  ;;  %3504 = vmatprep.subr.bf16.mxu1 %v10127_v30 }
 0x2ad   : >> { %3464 = vmatpush1.bf16.msra.mxu0 %v10134_v38  ;;  %3505 = vmatpush1.bf16.msra.mxu1 %v10139_v39 }
 0x2ae   : >> { %3465 = vmatprep.subr.bf16.mxu0 %v10146_v54  ;;  %3506 = vmatprep.subr.bf16.mxu1 %v10151_v55 }
 0x2b1   : >> { %3466 = vmatpush2.bf16.msra.mxu0 %v10158_v56  ;;  %3507 = vmatpush2.bf16.msra.mxu1 %v10163_v8 }
 0x2b2   : >> { %3467 = vmatprep.subr.bf16.mxu0 %v10170_v9  ;;  %3508 = vmatprep.subr.bf16.mxu1 %v10175_v10 }
 0x2b5   : >> { %3468 = vmatpush2.bf16.msra.mxu0 %v10182_v11  ;;  %3509 = vmatpush2.bf16.msra.mxu1 %v10187_v14 }
 0x2b6   : >> { %3469 = vmatprep.subr.bf16.mxu0 %v10194_v61  ;;  %3510 = vmatprep.subr.bf16.mxu1 %v10199_v0 }
 0x2b9   : >> { %3470 = vmatpush2.bf16.msra.mxu0 %v10206_v19  ;;  %3511 = vmatpush2.bf16.msra.mxu1 %v10211_v48 }
 0x2ba   : >> { %3471 = vmatprep.subr.bf16.mxu0 %v10218_v20  ;;  %3512 = vmatprep.subr.bf16.mxu1 %v10223_v24 }
 0x2bd   : >> { %3472 = vmatpush2.bf16.msra.mxu0 %v10230_v25  ;;  %3513 = vmatpush2.bf16.msra.mxu1 %v10235_v26 }
 0x2be   : >> { %3473 = vmatprep.subr.bf16.mxu0 %v10242_v42  ;;  %3514 = vmatprep.subr.bf16.mxu1 %v10247_v50  ;;  %v12123_v50 = vld [vmem:[#allocation7_spill] sm:$0xff] }
 0x2c1   : >> { %3474 = vmatpush2.bf16.msra.mxu0 %v10254_v51  ;;  %3515 = vmatpush2.bf16.msra.mxu1 %v10259_v1 }
 0x2c2   : >> { %3475 = vmatprep.subr.bf16.mxu0 %v10266_v12  ;;  %3516 = vmatprep.subr.bf16.mxu1 %v10271_v33  ;;  %v6138_v33 = vld [vmem:[%s7782_s19 + $0x48] sm:$0xfc]  ;;  %v6140_v12 = vld [vmem:[%s7782_s19 + $0x58] sm:$0x3] }
 0x2c3   : >> { %v3536_v1 = vpack.c.bf16 %v6140_v12, %v6138_v33  ;;  %v10555_v33 = vld [vmem:[%s11886_s1 + $0xc68] ss:$16 sps:$4 sm:$0xff]  }
 0x2c5   : >> { %3476 = vmatpush2.bf16.msra.mxu0 %v10278_v15  ;;  %3517 = vmatpush2.bf16.msra.mxu1 %v10283_v53  ;;  %v10314_v15 = vld [vmem:[%s11886_s1 + $0xb04] ss:$16 sps:$4 sm:$0xff]   ;;  %v10319_v53 = vld [vmem:[%s11886_s1 + $0xb0c] ss:$16 sps:$4 sm:$0xff]  }
 0x2c6   : >> { %3477 = vmatprep.subr.bf16.mxu0 %v10290_v49  ;;  %3518 = vmatprep.subr.bf16.mxu1 %v10295_v28  ;;  %12121 = vst [vmem:[#allocation9_spill] sm:$0xff] %v10314_v15  ;;  %v10328_v28 = vld [vmem:[%s11886_s1 + $0xb00] ss:$16 sps:$4 sm:$0xff]   ;;  %v10333_v49 = vld [vmem:[%s11886_s1 + $0xb08] ss:$16 sps:$4 sm:$0xff]  }
 0x2c9   : >> { %3478 = vmatpush2.bf16.msra.mxu0 %v10302_v21  ;;  %3519 = vmatpush2.bf16.msra.mxu1 %v10307_v60  ;;  %v10341_v60 = vrot.slane %v3536_v1, 1 }
 0x2ca   : >> { %3479 = vmatprep.subr.bf16.mxu0 %v10314_v15  ;;  %3520 = vmatprep.subr.bf16.mxu1 %v10319_v53 }
 0x2cb   : >> { %12122 = vst [vmem:[#allocation10_spill] sm:$0xff] %v10341_v60 }
 0x2cd   : >> { %3480 = vmatpush2.bf16.msra.mxu0 %v10328_v28  ;;  %3521 = vmatpush2.bf16.msra.mxu1 %v10333_v49 }
 0x2ce   : >> { %3543 = vmatprep.subr.bf16.mxu0 %v9936_v62  ;;  %3584 = vmatprep.subr.bf16.mxu1 %v9941_v36 }
 0x2d0   : >> { %v2429_v21 = vpop.f32.mrf.mxu0  ;;  %v2470_v51 = vpop.f32.mrf.mxu1  ;;  %3482 = vmatmul.mubr.bf16.vlgmr.msra.gmra.mxu0 %v12123_v50  ;;  %3523 = vmatmul.mubr.bf16.vlgmr.msra.gmra.mxu1 %v12123_v50 }
 0x2d1   : >> { %v10346_v15 = vadd.f32 %v2429_v21, %v9858_v45  ;;  %v10349_v12 = vadd.f32 %v2470_v51, %v9861_v13  ;;  %3544 = vmatpush1.bf16.msra.mxu0 %v9950_v16  ;;  %3585 = vmatpush1.bf16.msra.mxu1 %v9955_v17  ;;  %v12128_v21 = vld [vmem:[#allocation21_spill] sm:$0xff]  ;;  %v10550_v51 = vld [vmem:[%s11886_s1 + $0xc60] ss:$16 sps:$4 sm:$0xff]  }
 0x2d2   : >> { %v2431_v62 = vpop.f32.mrf.mxu0  ;;  %v2472_v36 = vpop.f32.mrf.mxu1  ;;  %3545 = vmatprep.subr.bf16.mxu0 %v9962_v2  ;;  %3586 = vmatprep.subr.bf16.mxu1 %v9967_v52  ;;  %v12126_v2 = vld [vmem:[#allocation17_spill] sm:$0xff]  ;;  %v12127_v52 = vld [vmem:[#allocation18_spill] sm:$0xff] }
 0x2d3   : >> { %v10356_v1 = vadd.f32 %v2431_v62, %v9868_v32  ;;  %v10359_v50 = vadd.f32 %v2472_v36, %v9871_v31  ;;  %3575 = vmatprep.mubr.bf16.mxu0 %v10341_v60  ;;  %3616 = vmatprep.mubr.bf16.mxu1 %v10341_v60  ;;  %v12124_v32 = vld [vmem:[#allocation15_spill] sm:$0xff]  ;;  %v12125_v31 = vld [vmem:[#allocation16_spill] sm:$0xff] }
 0x2d4   : >> { %v2433_v45 = vpop.f32.mrf.mxu0  ;;  %v2474_v13 = vpop.f32.mrf.mxu1  ;;  %v10562_v62 = vld [vmem:[%s11886_s1 + $0xc44] ss:$16 sps:$4 sm:$0xff]   ;;  %v10567_v36 = vld [vmem:[%s11886_s1 + $0xc4c] ss:$16 sps:$4 sm:$0xff]   ;;  %v10771_v60 = vld [vmem:[%s11886_s1 + $0xd48] ss:$16 sps:$4 sm:$0xff]  }
 0x2d5   : >> { %3546 = vmatpush1.bf16.msra.mxu0 %v9982_v22  ;;  %3587 = vmatpush1.bf16.msra.mxu1 %v9987_v23  ;;  %v12129_v22 = vld [vmem:[#allocation22_spill] sm:$0xff]  ;;  %v12130_v23 = vld [vmem:[#allocation23_spill] sm:$0xff] }
 0x2d6   : >> { %v2434_v16 = vpop.f32.mrf.mxu0  ;;  %v2475_v17 = vpop.f32.mrf.mxu1  ;;  %3547 = vmatprep.subr.bf16.mxu0 %v9994_v27  ;;  %3588 = vmatprep.subr.bf16.mxu1 %v9999_v29  ;;  %v6137_v27 = vld [vmem:[%s7782_s19 + $0x40] sm:$0xfc]  ;;  %v6139_v29 = vld [vmem:[%s7782_s19 + $0x50] sm:$0x3]  ;;  %v10579_v13 = vld [vmem:[%s11886_s1 + $0xc48] ss:$16 sps:$4 sm:$0xff]  }
 0x2d7   : >> { %v10574_v45 = vld [vmem:[%s11886_s1 + $0xc40] ss:$16 sps:$4 sm:$0xff]   ;;  %v10586_v16 = vld [vmem:[%s11886_s1 + $0xc24] ss:$16 sps:$4 sm:$0xff]   ;;  %v10591_v17 = vld [vmem:[%s11886_s1 + $0xc2c] ss:$16 sps:$4 sm:$0xff]  }
 0x2d9   : >> { %3548 = vmatpush1.bf16.msra.mxu0 %v10014_v59  ;;  %3589 = vmatpush1.bf16.msra.mxu1 %v10019_v35  ;;  %v12131_v59 = vld [vmem:[#allocation24_spill] sm:$0xff]  ;;  %v12132_v35 = vld [vmem:[#allocation3_spill] sm:$0xff] }
 0x2da   : >> { %3549 = vmatprep.subr.bf16.mxu0 %v10026_v34  ;;  %3590 = vmatprep.subr.bf16.mxu1 %v10031_v37  ;;  %v3535_v34 = vpack.c.bf16 %v6139_v29, %v6137_v27  ;;  %v12133_v37 = vld [vmem:[#allocation6_spill] sm:$0xff]  ;;  %v10639_v27 = vld [vmem:[%s11886_s1 + $0xdec] ss:$16 sps:$4 sm:$0xff]   ;;  %12150 = vst [vmem:[#allocation24_spill] sm:$0xff] %v10771_v60 }
 0x2db   : >> { %v10646_v29 = vld [vmem:[%s11886_s1 + $0xde0] ss:$16 sps:$4 sm:$0xff]  }
 0x2dd   : >> { %3550 = vmatpush1.bf16.msra.mxu0 %v10038_v40  ;;  %3591 = vmatpush1.bf16.msra.mxu1 %v10043_v57  ;;  %v12134_v40 = vld [vmem:[#allocation8_spill] sm:$0xff]  ;;  %v12135_v57 = vld [vmem:[#allocation9_spill] sm:$0xff] }
 0x2de   : >> { %3551 = vmatprep.subr.bf16.mxu0 %v10050_v43  ;;  %3592 = vmatprep.subr.bf16.mxu1 %v10055_v44  ;;  %v10424_v43 = vld [vmem:[%s11886_s1 + $0xce4] ss:$16 sps:$4 sm:$0xff]   ;;  %v10429_v44 = vld [vmem:[%s11886_s1 + $0xcec] ss:$16 sps:$4 sm:$0xff]  }
 0x2e1   : >> { %3552 = vmatpush1.bf16.msra.mxu0 %v10062_v5  ;;  %3593 = vmatpush1.bf16.msra.mxu1 %v10067_v18  ;;  %v10431_v5 = vrot.slane %v3535_v34, 1  ;;  %v10443_v18 = vld [vmem:[%s11886_s1 + $0xce8] ss:$16 sps:$4 sm:$0xff]   ;;  %v10663_v34 = vld [vmem:[%s11886_s1 + $0xdcc] ss:$16 sps:$4 sm:$0xff]  }
 0x2e2   : >> { %3553 = vmatprep.subr.bf16.mxu0 %v10074_v46  ;;  %3594 = vmatprep.subr.bf16.mxu1 %v10079_v47 }
 0x2e3   : >> { %12136 = vst [vmem:[#allocation20_spill] sm:$0xff] %v10431_v5 }
 0x2e5   : >> { %3554 = vmatpush1.bf16.msra.mxu0 %v10086_v41  ;;  %3595 = vmatpush1.bf16.msra.mxu1 %v10091_v63  ;;  %v12137_v41 = vld [vmem:[#allocation11_spill] sm:$0xff] }
 0x2e6   : >> { %3555 = vmatprep.subr.bf16.mxu0 %v10098_v3  ;;  %3596 = vmatprep.subr.bf16.mxu1 %v10103_v7  ;;  %v12139_v3 = vld [vmem:[#allocation12_spill] sm:$0xff] }
 0x2e9   : >> { %3556 = vmatpush1.bf16.msra.mxu0 %v10110_v4  ;;  %3597 = vmatpush1.bf16.msra.mxu1 %v10115_v58  ;;  %v10470_v4 = vld [vmem:[%s11886_s1 + $0xcc0] ss:$16 sps:$4 sm:$0xff]   ;;  %v10475_v58 = vld [vmem:[%s11886_s1 + $0xcc8] ss:$16 sps:$4 sm:$0xff]  }
 0x2ea   : >> { %3557 = vmatprep.subr.bf16.mxu0 %v10122_v6  ;;  %3598 = vmatprep.subr.bf16.mxu1 %v10127_v30 }
 0x2ed   : >> { %3558 = vmatpush1.bf16.msra.mxu0 %v10134_v38  ;;  %3599 = vmatpush1.bf16.msra.mxu1 %v10139_v39  ;;  %v10482_v38 = vld [vmem:[%s11886_s1 + $0xca4] ss:$16 sps:$4 sm:$0xff]   ;;  %v10487_v39 = vld [vmem:[%s11886_s1 + $0xcac] ss:$16 sps:$4 sm:$0xff]  }
 0x2ee   : >> { %3559 = vmatprep.subr.bf16.mxu0 %v10146_v54  ;;  %3600 = vmatprep.subr.bf16.mxu1 %v10151_v55  ;;  %v12141_v54 = vld [vmem:[#allocation13_spill] sm:$0xff] }
 0x2f1   : >> { %3560 = vmatpush2.bf16.msra.mxu0 %v10158_v56  ;;  %3601 = vmatpush2.bf16.msra.mxu1 %v10163_v8  ;;  %v12143_v56 = vld [vmem:[#allocation14_spill] sm:$0xff] }
 0x2f2   : >> { %3561 = vmatprep.subr.bf16.mxu0 %v10170_v9  ;;  %3602 = vmatprep.subr.bf16.mxu1 %v10175_v10  ;;  %v12145_v9 = vld [vmem:[#allocation19_spill] sm:$0xff] }
 0x2f5   : >> { %3562 = vmatpush2.bf16.msra.mxu0 %v10182_v11  ;;  %3603 = vmatpush2.bf16.msra.mxu1 %v10187_v14  ;;  %v10502_v14 = vld [vmem:[%s11886_s1 + $0xca0] ss:$16 sps:$4 sm:$0xff]  }
 0x2f6   : >> { %3563 = vmatprep.subr.bf16.mxu0 %v10194_v61  ;;  %3604 = vmatprep.subr.bf16.mxu1 %v10199_v0  ;;  %v10507_v61 = vld [vmem:[%s11886_s1 + $0xca8] ss:$16 sps:$4 sm:$0xff]  }
 0x2f9   : >> { %3564 = vmatpush2.bf16.msra.mxu0 %v10206_v19  ;;  %3605 = vmatpush2.bf16.msra.mxu1 %v10211_v48  ;;  %v10514_v48 = vld [vmem:[%s11886_s1 + $0xc84] ss:$16 sps:$4 sm:$0xff]  }
 0x2fa   : >> { %3565 = vmatprep.subr.bf16.mxu0 %v10218_v20  ;;  %3606 = vmatprep.subr.bf16.mxu1 %v10223_v24  ;;  %v10519_v20 = vld [vmem:[%s11886_s1 + $0xc8c] ss:$16 sps:$4 sm:$0xff]   ;;  %v10526_v24 = vld [vmem:[%s11886_s1 + $0xc80] ss:$16 sps:$4 sm:$0xff]  }
 0x2fd   : >> { %3566 = vmatpush2.bf16.msra.mxu0 %v10230_v25  ;;  %3607 = vmatpush2.bf16.msra.mxu1 %v10235_v26  ;;  %v10531_v25 = vld [vmem:[%s11886_s1 + $0xc88] ss:$16 sps:$4 sm:$0xff]   ;;  %v10538_v26 = vld [vmem:[%s11886_s1 + $0xc64] ss:$16 sps:$4 sm:$0xff]  }
 0x2fe   : >> { %3567 = vmatprep.subr.bf16.mxu0 %v10242_v42  ;;  %3608 = vmatprep.subr.bf16.mxu1 %v12124_v32  ;;  %v10543_v42 = vld [vmem:[%s11886_s1 + $0xc6c] ss:$16 sps:$4 sm:$0xff]   ;;  %v10598_v32 = vld [vmem:[%s11886_s1 + $0xc20] ss:$16 sps:$4 sm:$0xff]  }
 0x301   : >> { %3568 = vmatpush2.bf16.msra.mxu0 %v12125_v31  ;;  %3609 = vmatpush2.bf16.msra.mxu1 %v12126_v2  ;;  %v10603_v31 = vld [vmem:[%s11886_s1 + $0xc28] ss:$16 sps:$4 sm:$0xff]   ;;  %v10610_v2 = vld [vmem:[%s11886_s1 + $0xc04] ss:$16 sps:$4 sm:$0xff]  }
 0x302   : >> { %3569 = vmatprep.subr.bf16.mxu0 %v12127_v52  ;;  %3610 = vmatprep.subr.bf16.mxu1 %v12128_v21  ;;  %v10615_v52 = vld [vmem:[%s11886_s1 + $0xc0c] ss:$16 sps:$4 sm:$0xff]   ;;  %v10622_v21 = vld [vmem:[%s11886_s1 + $0xc00] ss:$16 sps:$4 sm:$0xff]  }
 0x305   : >> { %3570 = vmatpush2.bf16.msra.mxu0 %v12129_v22  ;;  %3611 = vmatpush2.bf16.msra.mxu1 %v12130_v23  ;;  %v10627_v22 = vld [vmem:[%s11886_s1 + $0xc08] ss:$16 sps:$4 sm:$0xff]   ;;  %v10634_v23 = vld [vmem:[%s11886_s1 + $0xde4] ss:$16 sps:$4 sm:$0xff]  }
 0x306   : >> { %3571 = vmatprep.subr.bf16.mxu0 %v12131_v59  ;;  %3612 = vmatprep.subr.bf16.mxu1 %v12132_v35  ;;  %v10651_v59 = vld [vmem:[%s11886_s1 + $0xde8] ss:$16 sps:$4 sm:$0xff]   ;;  %v10658_v35 = vld [vmem:[%s11886_s1 + $0xdc4] ss:$16 sps:$4 sm:$0xff]  }
 0x309   : >> { %3572 = vmatpush2.bf16.msra.mxu0 %v12133_v37  ;;  %3613 = vmatpush2.bf16.msra.mxu1 %v12134_v40  ;;  %v10670_v37 = vld [vmem:[%s11886_s1 + $0xdc0] ss:$16 sps:$4 sm:$0xff]   ;;  %v10675_v40 = vld [vmem:[%s11886_s1 + $0xdc8] ss:$16 sps:$4 sm:$0xff]  }
 0x30a   : >> { %3573 = vmatprep.subr.bf16.mxu0 %v12135_v57  ;;  %3614 = vmatprep.subr.bf16.mxu1 %v10319_v53  ;;  %v10438_v53 = vld [vmem:[%s11886_s1 + $0xce0] ss:$16 sps:$4 sm:$0xff]   ;;  %v10682_v57 = vld [vmem:[%s11886_s1 + $0xda4] ss:$16 sps:$4 sm:$0xff]  }
 0x30d   : >> { %3574 = vmatpush2.bf16.msra.mxu0 %v10328_v28  ;;  %3615 = vmatpush2.bf16.msra.mxu1 %v10333_v49  ;;  %v10450_v28 = vld [vmem:[%s11886_s1 + $0xcc4] ss:$16 sps:$4 sm:$0xff]   ;;  %v10455_v49 = vld [vmem:[%s11886_s1 + $0xccc] ss:$16 sps:$4 sm:$0xff]  }
 0x30e   : >> { %4020 = vmatprep.subr.bf16.mxu0 %v10424_v43  ;;  %4061 = vmatprep.subr.bf16.mxu1 %v10429_v44 }
 0x310   : >> { %v2904_v46 = vpop.f32.mrf.mxu0  ;;  %v2945_v47 = vpop.f32.mrf.mxu1  ;;  %3576 = vmatmul.mubr.bf16.vlgmr.msra.gmra.mxu0 %v10431_v5  ;;  %3617 = vmatmul.mubr.bf16.vlgmr.msra.gmra.mxu1 %v10431_v5  ;;  %v10766_v5 = vld [vmem:[%s11886_s1 + $0xd40] ss:$16 sps:$4 sm:$0xff]  }
 0x311   : >> { %v10460_v63 = vadd.f32 %v2904_v46, %v12137_v41  ;;  %v10463_v7 = vadd.f32 %v2945_v47, %v12139_v3  ;;  %4021 = vmatpush1.bf16.msra.mxu0 %v10438_v53  ;;  %4062 = vmatpush1.bf16.msra.mxu1 %v10443_v18  ;;  %v10687_v46 = vld [vmem:[%s11886_s1 + $0xdac] ss:$16 sps:$4 sm:$0xff]   ;;  %v10694_v47 = vld [vmem:[%s11886_s1 + $0xda0] ss:$16 sps:$4 sm:$0xff]   ;;  %v10699_v41 = vld [vmem:[%s11886_s1 + $0xda8] ss:$16 sps:$4 sm:$0xff]  }
 0x312   : >> { %v2906_v6 = vpop.f32.mrf.mxu0  ;;  %v2947_v30 = vpop.f32.mrf.mxu1  ;;  %4022 = vmatprep.subr.bf16.mxu0 %v10450_v28  ;;  %4063 = vmatprep.subr.bf16.mxu1 %v10455_v49  ;;  %v10706_v3 = vld [vmem:[%s11886_s1 + $0xd84] ss:$16 sps:$4 sm:$0xff]   ;;  %12149 = vst [vmem:[#allocation23_spill] sm:$0xff] %v10766_v5 }
 0x313   : >> { %12138 = vst [vmem:[#allocation7_spill] sm:$0xff] %v10460_v63  ;;  %12140 = vst [vmem:[#allocation15_spill] sm:$0xff] %v10463_v7  ;;  %v10490_v55 = vadd.f32 %v2906_v6, %v12141_v54  ;;  %v10493_v8 = vadd.f32 %v2947_v30, %v12143_v56  ;;  %4052 = vmatprep.mubr.bf16.mxu0 %v12145_v9  ;;  %4093 = vmatprep.mubr.bf16.mxu1 %v12145_v9  ;;  %v10711_v6 = vld [vmem:[%s11886_s1 + $0xd8c] ss:$16 sps:$4 sm:$0xff]   ;;  %v10718_v30 = vld [vmem:[%s11886_s1 + $0xd80] ss:$16 sps:$4 sm:$0xff]  }
 0x314   : >> { %v2908_v10 = vpop.f32.mrf.mxu0  ;;  %v2949_v11 = vpop.f32.mrf.mxu1  ;;  %v10723_v54 = vld [vmem:[%s11886_s1 + $0xd88] ss:$16 sps:$4 sm:$0xff]   ;;  %v10730_v56 = vld [vmem:[%s11886_s1 + $0xd64] ss:$16 sps:$4 sm:$0xff]   ;;  %v10735_v9 = vld [vmem:[%s11886_s1 + $0xd6c] ss:$16 sps:$4 sm:$0xff]  }
 0x315   : >> { %12142 = vst [vmem:[#allocation16_spill] sm:$0xff] %v10490_v55  ;;  %12144 = vst [vmem:[#allocation17_spill] sm:$0xff] %v10493_v8  ;;  %4023 = vmatpush1.bf16.msra.mxu0 %v10470_v4  ;;  %4064 = vmatpush1.bf16.msra.mxu1 %v10475_v58  ;;  %v10742_v10 = vld [vmem:[%s11886_s1 + $0xd60] ss:$16 sps:$4 sm:$0xff]   ;;  %v10747_v11 = vld [vmem:[%s11886_s1 + $0xd68] ss:$16 sps:$4 sm:$0xff]  }
 0x316   : >> { %v2909_v0 = vpop.f32.mrf.mxu0  ;;  %v2950_v19 = vpop.f32.mrf.mxu1  ;;  %4024 = vmatprep.subr.bf16.mxu0 %v10482_v38  ;;  %4065 = vmatprep.subr.bf16.mxu1 %v10487_v39  ;;  %12146 = vst [vmem:[#allocation18_spill] sm:$0xff] %v10747_v11  ;;  %v10778_v8 = vld [vmem:[%s11886_s1 + $0xd24] ss:$16 sps:$4 sm:$0xff]   ;;  %v10783_v55 = vld [vmem:[%s11886_s1 + $0xd2c] ss:$16 sps:$4 sm:$0xff]  }
 0x317   : >> { %v10754_v0 = vld [vmem:[%s11886_s1 + $0xd44] ss:$16 sps:$4 sm:$0xff]   ;;  %v10759_v19 = vld [vmem:[%s11886_s1 + $0xd4c] ss:$16 sps:$4 sm:$0xff]   ;;  %12151 = vst [vmem:[#allocation3_spill] sm:$0xff] %v10778_v8  ;;  %12152 = vst [vmem:[#allocation6_spill] sm:$0xff] %v10783_v55 }
 0x318   : >> { %12147 = vst [vmem:[#allocation21_spill] sm:$0xff] %v10754_v0  ;;  %12148 = vst [vmem:[#allocation22_spill] sm:$0xff] %v10759_v19  ;;  %v10790_v7 = vld [vmem:[%s11886_s1 + $0xd20] ss:$16 sps:$4 sm:$0xff]   ;;  %v10795_v63 = vld [vmem:[%s11886_s1 + $0xd28] ss:$16 sps:$4 sm:$0xff]  }
 0x319   : >> { %4025 = vmatpush1.bf16.msra.mxu0 %v10502_v14  ;;  %4066 = vmatpush1.bf16.msra.mxu1 %v10507_v61  ;;  %12153 = vst [vmem:[#allocation8_spill] sm:$0xff] %v10790_v7  ;;  %12154 = vst [vmem:[#allocation9_spill] sm:$0xff] %v10795_v63 }
 0x31a   : >> { %4026 = vmatprep.subr.bf16.mxu0 %v10514_v48  ;;  %4067 = vmatprep.subr.bf16.mxu1 %v10519_v20 }
 0x31d   : >> { %4027 = vmatpush1.bf16.msra.mxu0 %v10526_v24  ;;  %4068 = vmatpush1.bf16.msra.mxu1 %v10531_v25 }
 0x31e   : >> { %4028 = vmatprep.subr.bf16.mxu0 %v10538_v26  ;;  %4069 = vmatprep.subr.bf16.mxu1 %v10543_v42 }
 0x321   : >> { %4029 = vmatpush1.bf16.msra.mxu0 %v10550_v51  ;;  %4070 = vmatpush1.bf16.msra.mxu1 %v10555_v33 }
 0x322   : >> { %4030 = vmatprep.subr.bf16.mxu0 %v10562_v62  ;;  %4071 = vmatprep.subr.bf16.mxu1 %v10567_v36 }
 0x325   : >> { %4031 = vmatpush1.bf16.msra.mxu0 %v10574_v45  ;;  %4072 = vmatpush1.bf16.msra.mxu1 %v10579_v13 }
 0x326   : >> { %4032 = vmatprep.subr.bf16.mxu0 %v10586_v16  ;;  %4073 = vmatprep.subr.bf16.mxu1 %v10591_v17 }
 0x329   : >> { %4033 = vmatpush1.bf16.msra.mxu0 %v10598_v32  ;;  %4074 = vmatpush1.bf16.msra.mxu1 %v10603_v31 }
 0x32a   : >> { %4034 = vmatprep.subr.bf16.mxu0 %v10610_v2  ;;  %4075 = vmatprep.subr.bf16.mxu1 %v10615_v52 }
 0x32d   : >> { %4035 = vmatpush1.bf16.msra.mxu0 %v10622_v21  ;;  %4076 = vmatpush1.bf16.msra.mxu1 %v10627_v22 }
 0x32e   : >> { %4036 = vmatprep.subr.bf16.mxu0 %v10634_v23  ;;  %4077 = vmatprep.subr.bf16.mxu1 %v10639_v27 }
 0x331   : >> { %4037 = vmatpush2.bf16.msra.mxu0 %v10646_v29  ;;  %4078 = vmatpush2.bf16.msra.mxu1 %v10651_v59 }
 0x332   : >> { %4038 = vmatprep.subr.bf16.mxu0 %v10658_v35  ;;  %4079 = vmatprep.subr.bf16.mxu1 %v10663_v34 }
 0x335   : >> { %4039 = vmatpush2.bf16.msra.mxu0 %v10670_v37  ;;  %4080 = vmatpush2.bf16.msra.mxu1 %v10675_v40 }
 0x336   : >> { %4040 = vmatprep.subr.bf16.mxu0 %v10682_v57  ;;  %4081 = vmatprep.subr.bf16.mxu1 %v10687_v46 }
 0x339   : >> { %4041 = vmatpush2.bf16.msra.mxu0 %v10694_v47  ;;  %4082 = vmatpush2.bf16.msra.mxu1 %v10699_v41 }
 0x33a   : >> { %4042 = vmatprep.subr.bf16.mxu0 %v10706_v3  ;;  %4083 = vmatprep.subr.bf16.mxu1 %v10711_v6 }
 0x33d   : >> { %4043 = vmatpush2.bf16.msra.mxu0 %v10718_v30  ;;  %4084 = vmatpush2.bf16.msra.mxu1 %v10723_v54 }
 0x33e   : >> { %4044 = vmatprep.subr.bf16.mxu0 %v10730_v56  ;;  %4085 = vmatprep.subr.bf16.mxu1 %v10735_v9 }
 0x341   : >> { %4045 = vmatpush2.bf16.msra.mxu0 %v10742_v10  ;;  %4086 = vmatpush2.bf16.msra.mxu1 %v10747_v11  ;;  %v12158_v11 = vld [vmem:[#allocation5_spill] sm:$0xff] }
 0x342   : >> { %4046 = vmatprep.subr.bf16.mxu0 %v10754_v0  ;;  %4087 = vmatprep.subr.bf16.mxu1 %v10759_v19  ;;  %v6272_v19 = vld [vmem:[%s7782_s19 + $0x68] sm:$0xff] }
 0x345   : >> { %4047 = vmatpush2.bf16.msra.mxu0 %v10766_v5  ;;  %4088 = vmatpush2.bf16.msra.mxu1 %v10771_v60  ;;  %v10802_v5 = vld [vmem:[%s11886_s1 + $0xd04] ss:$16 sps:$4 sm:$0xff]   ;;  %v10807_v60 = vld [vmem:[%s11886_s1 + $0xd0c] ss:$16 sps:$4 sm:$0xff]  }
 0x346   : >> { %4048 = vmatprep.subr.bf16.mxu0 %v10778_v8  ;;  %4089 = vmatprep.subr.bf16.mxu1 %v10783_v55  ;;  %12155 = vst [vmem:[#allocation11_spill] sm:$0xff] %v10802_v5  ;;  %12156 = vst [vmem:[#allocation12_spill] sm:$0xff] %v10807_v60  ;;  %v10814_v8 = vld [vmem:[%s11886_s1 + $0xd00] ss:$16 sps:$4 sm:$0xff]   ;;  %v10819_v55 = vld [vmem:[%s11886_s1 + $0xd08] ss:$16 sps:$4 sm:$0xff]  }
 0x347   : >> { %12157 = vst [vmem:[#allocation13_spill] sm:$0xff] %v10819_v55 }
 0x349   : >> { %4049 = vmatpush2.bf16.msra.mxu0 %v10790_v7  ;;  %4090 = vmatpush2.bf16.msra.mxu1 %v10795_v63  ;;  %v4107_v63 = vpack.c.bf16 %v6272_v19, %v6272_v19  ;;  %v11057_v19 = vld [vmem:[%s11886_s1 + $0xe48] ss:$16 sps:$4 sm:$0xff]  }
 0x34a   : >> { %4050 = vmatprep.subr.bf16.mxu0 %v10802_v5  ;;  %4091 = vmatprep.subr.bf16.mxu1 %v10807_v60 }
 0x34d   : >> { %4051 = vmatpush2.bf16.msra.mxu0 %v10814_v8  ;;  %4092 = vmatpush2.bf16.msra.mxu1 %v10819_v55 }
 0x34e   : >> { %4108 = vmatprep.subr.bf16.mxu0 %v10424_v43  ;;  %4149 = vmatprep.subr.bf16.mxu1 %v10429_v44 }
 0x350   : >> { %v3008_v7 = vpop.f32.mrf.mxu0  ;;  %v3049_v0 = vpop.f32.mrf.mxu1  ;;  %4053 = vmatmul.mubr.bf16.vlgmr.msra.gmra.mxu0 %v12158_v11  ;;  %4094 = vmatmul.mubr.bf16.vlgmr.msra.gmra.mxu1 %v12158_v11 }
 0x351   : >> { %v10831_v5 = vadd.f32 %v3008_v7, %v10346_v15  ;;  %v10834_v60 = vadd.f32 %v3049_v0, %v10349_v12  ;;  %4109 = vmatpush1.bf16.msra.mxu0 %v10438_v53  ;;  %4150 = vmatpush1.bf16.msra.mxu1 %v10443_v18  ;;  %v12164_v7 = vld [vmem:[#allocation3_spill] sm:$0xff]  ;;  %v11052_v0 = vld [vmem:[%s11886_s1 + $0xe40] ss:$16 sps:$4 sm:$0xff]  }
 0x352   : >> { %v3010_v43 = vpop.f32.mrf.mxu0  ;;  %v3051_v55 = vpop.f32.mrf.mxu1  ;;  %4110 = vmatprep.subr.bf16.mxu0 %v10450_v28  ;;  %4151 = vmatprep.subr.bf16.mxu1 %v10455_v49  ;;  %v12161_v28 = vld [vmem:[#allocation22_spill] sm:$0xff]  ;;  %v12162_v49 = vld [vmem:[#allocation23_spill] sm:$0xff] }
 0x353   : >> { %v10841_v44 = vadd.f32 %v3010_v43, %v10356_v1  ;;  %v10844_v11 = vadd.f32 %v3051_v55, %v10359_v50  ;;  %4140 = vmatprep.mubr.bf16.mxu0 %v4107_v63  ;;  %4181 = vmatprep.mubr.bf16.mxu1 %v4107_v63  ;;  %v12159_v1 = vld [vmem:[#allocation18_spill] sm:$0xff]  ;;  %v12160_v50 = vld [vmem:[#allocation21_spill] sm:$0xff]  ;;  %v12163_v63 = vld [vmem:[#allocation24_spill] sm:$0xff] }
 0x354   : >> { %v3012_v15 = vpop.f32.mrf.mxu0  ;;  %v3053_v12 = vpop.f32.mrf.mxu1  ;;  %v12168_v55 = vld [vmem:[#allocation11_spill] sm:$0xff]  ;;  %v11064_v43 = vld [vmem:[%s11886_s1 + $0xe24] ss:$16 sps:$4 sm:$0xff]  }
 0x355   : >> { %4111 = vmatpush1.bf16.msra.mxu0 %v10470_v4  ;;  %4152 = vmatpush1.bf16.msra.mxu1 %v10475_v58  ;;  %v12165_v4 = vld [vmem:[#allocation6_spill] sm:$0xff]  ;;  %v12166_v58 = vld [vmem:[#allocation8_spill] sm:$0xff]  ;;  %v11069_v15 = vld [vmem:[%s11886_s1 + $0xe2c] ss:$16 sps:$4 sm:$0xff]  }
 0x356   : >> { %v3013_v53 = vpop.f32.mrf.mxu0  ;;  %v3054_v18 = vpop.f32.mrf.mxu1  ;;  %4112 = vmatprep.subr.bf16.mxu0 %v10482_v38  ;;  %4153 = vmatprep.subr.bf16.mxu1 %v10487_v39  ;;  %v12167_v38 = vld [vmem:[#allocation9_spill] sm:$0xff]  ;;  %v6271_v39 = vld [vmem:[%s7782_s19 + $0x60] sm:$0xff] }
 0x357   : >> { %v11076_v12 = vld [vmem:[%s11886_s1 + $0xe20] ss:$16 sps:$4 sm:$0xff]   ;;  %v11081_v53 = vld [vmem:[%s11886_s1 + $0xe28] ss:$16 sps:$4 sm:$0xff]   ;;  %v11088_v18 = vld [vmem:[%s11886_s1 + $0xe04] ss:$16 sps:$4 sm:$0xff]  }
 0x359   : >> { %4113 = vmatpush1.bf16.msra.mxu0 %v10502_v14  ;;  %4154 = vmatpush1.bf16.msra.mxu1 %v10507_v61  ;;  %v12169_v14 = vld [vmem:[#allocation12_spill] sm:$0xff] }
 0x35a   : >> { %4114 = vmatprep.subr.bf16.mxu0 %v10514_v48  ;;  %4155 = vmatprep.subr.bf16.mxu1 %v10519_v20  ;;  %v10906_v61 = vld [vmem:[%s11886_s1 + $0xee4] ss:$16 sps:$4 sm:$0xff]   ;;  %v10911_v48 = vld [vmem:[%s11886_s1 + $0xeec] ss:$16 sps:$4 sm:$0xff]   ;;  %v4106_v20 = vpack.c.bf16 %v6271_v39, %v6271_v39  ;;  %v11148_v39 = vld [vmem:[%s11886_s1 + $0xfc0] ss:$16 sps:$4 sm:$0xff]  }
 0x35d   : >> { %4115 = vmatpush1.bf16.msra.mxu0 %v10526_v24  ;;  %4156 = vmatpush1.bf16.msra.mxu1 %v10531_v25  ;;  %v12170_v24 = vld [vmem:[#allocation13_spill] sm:$0xff]  ;;  %v10918_v25 = vld [vmem:[%s11886_s1 + $0xee0] ss:$16 sps:$4 sm:$0xff]  }
 0x35e   : >> { %4116 = vmatprep.subr.bf16.mxu0 %v10538_v26  ;;  %4157 = vmatprep.subr.bf16.mxu1 %v10543_v42  ;;  %v10923_v26 = vld [vmem:[%s11886_s1 + $0xee8] ss:$16 sps:$4 sm:$0xff]   ;;  %v10935_v42 = vld [vmem:[%s11886_s1 + $0xecc] ss:$16 sps:$4 sm:$0xff]  }
 0x361   : >> { %4117 = vmatpush1.bf16.msra.mxu0 %v10550_v51  ;;  %4158 = vmatpush1.bf16.msra.mxu1 %v10555_v33 }
 0x362   : >> { %4118 = vmatprep.subr.bf16.mxu0 %v10562_v62  ;;  %4159 = vmatprep.subr.bf16.mxu1 %v10567_v36  ;;  %v12171_v62 = vld [vmem:[#allocation7_spill] sm:$0xff] }
 0x365   : >> { %4119 = vmatpush1.bf16.msra.mxu0 %v10574_v45  ;;  %4160 = vmatpush1.bf16.msra.mxu1 %v10579_v13  ;;  %v12173_v45 = vld [vmem:[#allocation15_spill] sm:$0xff] }
 0x366   : >> { %4120 = vmatprep.subr.bf16.mxu0 %v10586_v16  ;;  %4161 = vmatprep.subr.bf16.mxu1 %v10591_v17  ;;  %v10948_v16 = vld [vmem:[%s11886_s1 + $0xec0] ss:$16 sps:$4 sm:$0xff]   ;;  %v10953_v17 = vld [vmem:[%s11886_s1 + $0xec8] ss:$16 sps:$4 sm:$0xff]  }
 0x369   : >> { %4121 = vmatpush1.bf16.msra.mxu0 %v10598_v32  ;;  %4162 = vmatpush1.bf16.msra.mxu1 %v10603_v31 }
 0x36a   : >> { %4122 = vmatprep.subr.bf16.mxu0 %v10610_v2  ;;  %4163 = vmatprep.subr.bf16.mxu1 %v10615_v52  ;;  %v10960_v2 = vld [vmem:[%s11886_s1 + $0xea4] ss:$16 sps:$4 sm:$0xff]   ;;  %v10965_v52 = vld [vmem:[%s11886_s1 + $0xeac] ss:$16 sps:$4 sm:$0xff]  }
 0x36d   : >> { %4123 = vmatpush1.bf16.msra.mxu0 %v10622_v21  ;;  %4164 = vmatpush1.bf16.msra.mxu1 %v10627_v22  ;;  %v12175_v21 = vld [vmem:[#allocation16_spill] sm:$0xff] }
 0x36e   : >> { %4124 = vmatprep.subr.bf16.mxu0 %v10634_v23  ;;  %4165 = vmatprep.subr.bf16.mxu1 %v10639_v27  ;;  %v12177_v23 = vld [vmem:[#allocation17_spill] sm:$0xff] }
 0x371   : >> { %4125 = vmatpush2.bf16.msra.mxu0 %v10646_v29  ;;  %4166 = vmatpush2.bf16.msra.mxu1 %v10651_v59  ;;  %v12179_v29 = vld [vmem:[#allocation25_spill] sm:$0xff] }
 0x372   : >> { %4126 = vmatprep.subr.bf16.mxu0 %v10658_v35  ;;  %4167 = vmatprep.subr.bf16.mxu1 %v10663_v34  ;;  %v10980_v34 = vld [vmem:[%s11886_s1 + $0xea0] ss:$16 sps:$4 sm:$0xff]  }
 0x375   : >> { %4127 = vmatpush2.bf16.msra.mxu0 %v10670_v37  ;;  %4168 = vmatpush2.bf16.msra.mxu1 %v10675_v40  ;;  %v10985_v37 = vld [vmem:[%s11886_s1 + $0xea8] ss:$16 sps:$4 sm:$0xff]  }
 0x376   : >> { %4128 = vmatprep.subr.bf16.mxu0 %v10682_v57  ;;  %4169 = vmatprep.subr.bf16.mxu1 %v10687_v46  ;;  %v10992_v46 = vld [vmem:[%s11886_s1 + $0xe84] ss:$16 sps:$4 sm:$0xff]  }
 0x379   : >> { %4129 = vmatpush2.bf16.msra.mxu0 %v10694_v47  ;;  %4170 = vmatpush2.bf16.msra.mxu1 %v10699_v41  ;;  %v10997_v47 = vld [vmem:[%s11886_s1 + $0xe8c] ss:$16 sps:$4 sm:$0xff]   ;;  %v11004_v41 = vld [vmem:[%s11886_s1 + $0xe80] ss:$16 sps:$4 sm:$0xff]  }
 0x37a   : >> { %4130 = vmatprep.subr.bf16.mxu0 %v10706_v3  ;;  %4171 = vmatprep.subr.bf16.mxu1 %v10711_v6  ;;  %v11009_v3 = vld [vmem:[%s11886_s1 + $0xe88] ss:$16 sps:$4 sm:$0xff]   ;;  %v11016_v6 = vld [vmem:[%s11886_s1 + $0xe64] ss:$16 sps:$4 sm:$0xff]  }
 0x37d   : >> { %4131 = vmatpush2.bf16.msra.mxu0 %v10718_v30  ;;  %4172 = vmatpush2.bf16.msra.mxu1 %v10723_v54  ;;  %v11021_v30 = vld [vmem:[%s11886_s1 + $0xe6c] ss:$16 sps:$4 sm:$0xff]   ;;  %v11028_v54 = vld [vmem:[%s11886_s1 + $0xe60] ss:$16 sps:$4 sm:$0xff]  }
 0x37e   : >> { %4132 = vmatprep.subr.bf16.mxu0 %v10730_v56  ;;  %4173 = vmatprep.subr.bf16.mxu1 %v10735_v9  ;;  %v11033_v56 = vld [vmem:[%s11886_s1 + $0xe68] ss:$16 sps:$4 sm:$0xff]   ;;  %v11040_v9 = vld [vmem:[%s11886_s1 + $0xe44] ss:$16 sps:$4 sm:$0xff]  }
 0x381   : >> { %4133 = vmatpush2.bf16.msra.mxu0 %v10742_v10  ;;  %4174 = vmatpush2.bf16.msra.mxu1 %v12159_v1  ;;  %v11045_v10 = vld [vmem:[%s11886_s1 + $0xe4c] ss:$16 sps:$4 sm:$0xff]  }
 0x382   : >> { %4134 = vmatprep.subr.bf16.mxu0 %v12160_v50  ;;  %4175 = vmatprep.subr.bf16.mxu1 %v12161_v28  ;;  %v11093_v1 = vld [vmem:[%s11886_s1 + $0xe0c] ss:$16 sps:$4 sm:$0xff]   ;;  %v11100_v50 = vld [vmem:[%s11886_s1 + $0xe00] ss:$16 sps:$4 sm:$0xff]   ;;  %v11105_v28 = vld [vmem:[%s11886_s1 + $0xe08] ss:$16 sps:$4 sm:$0xff]  }
 0x385   : >> { %4135 = vmatpush2.bf16.msra.mxu0 %v12162_v49  ;;  %4176 = vmatpush2.bf16.msra.mxu1 %v12163_v63  ;;  %v11112_v49 = vld [vmem:[%s11886_s1 + $0xfe4] ss:$16 sps:$4 sm:$0xff]   ;;  %v11117_v63 = vld [vmem:[%s11886_s1 + $0xfec] ss:$16 sps:$4 sm:$0xff]  }
 0x386   : >> { %4136 = vmatprep.subr.bf16.mxu0 %v12164_v7  ;;  %4177 = vmatprep.subr.bf16.mxu1 %v12165_v4  ;;  %v11124_v7 = vld [vmem:[%s11886_s1 + $0xfe0] ss:$16 sps:$4 sm:$0xff]   ;;  %v11129_v4 = vld [vmem:[%s11886_s1 + $0xfe8] ss:$16 sps:$4 sm:$0xff]  }
 0x389   : >> { %4137 = vmatpush2.bf16.msra.mxu0 %v12166_v58  ;;  %4178 = vmatpush2.bf16.msra.mxu1 %v12167_v38  ;;  %v11136_v58 = vld [vmem:[%s11886_s1 + $0xfc4] ss:$16 sps:$4 sm:$0xff]   ;;  %v11141_v38 = vld [vmem:[%s11886_s1 + $0xfcc] ss:$16 sps:$4 sm:$0xff]  }
 0x38a   : >> { %4138 = vmatprep.subr.bf16.mxu0 %v12168_v55  ;;  %4179 = vmatprep.subr.bf16.mxu1 %v12169_v14  ;;  %v11153_v55 = vld [vmem:[%s11886_s1 + $0xfc8] ss:$16 sps:$4 sm:$0xff]   ;;  %v11160_v14 = vld [vmem:[%s11886_s1 + $0xfa4] ss:$16 sps:$4 sm:$0xff]  }
 0x38d   : >> { %4139 = vmatpush2.bf16.msra.mxu0 %v10814_v8  ;;  %4180 = vmatpush2.bf16.msra.mxu1 %v12170_v24  ;;  %v10930_v8 = vld [vmem:[%s11886_s1 + $0xec4] ss:$16 sps:$4 sm:$0xff]   ;;  %v11172_v24 = vld [vmem:[%s11886_s1 + $0xfa0] ss:$16 sps:$4 sm:$0xff]  }
 0x38e   : >> { %4583 = vmatprep.subr.bf16.mxu0 %v10906_v61  ;;  %4624 = vmatprep.subr.bf16.mxu1 %v10911_v48 }
 0x390   : >> { %v3483_v51 = vpop.f32.mrf.mxu0  ;;  %v3524_v33 = vpop.f32.mrf.mxu1  ;;  %4141 = vmatmul.mubr.bf16.vlgmr.msra.gmra.mxu0 %v4106_v20  ;;  %4182 = vmatmul.mubr.bf16.vlgmr.msra.gmra.mxu1 %v4106_v20  ;;  %v11165_v20 = vld [vmem:[%s11886_s1 + $0xfac] ss:$16 sps:$4 sm:$0xff]  }
 0x391   : >> { %v10938_v36 = vadd.f32 %v3483_v51, %v12171_v62  ;;  %v10941_v13 = vadd.f32 %v3524_v33, %v12173_v45  ;;  %4584 = vmatpush1.bf16.msra.mxu0 %v10918_v25  ;;  %4625 = vmatpush1.bf16.msra.mxu1 %v10923_v26  ;;  %v11177_v51 = vld [vmem:[%s11886_s1 + $0xfa8] ss:$16 sps:$4 sm:$0xff]   ;;  %v11184_v33 = vld [vmem:[%s11886_s1 + $0xf84] ss:$16 sps:$4 sm:$0xff]   ;;  %v11189_v62 = vld [vmem:[%s11886_s1 + $0xf8c] ss:$16 sps:$4 sm:$0xff]  }
 0x392   : >> { %v3485_v32 = vpop.f32.mrf.mxu0  ;;  %v3526_v31 = vpop.f32.mrf.mxu1  ;;  %4585 = vmatprep.subr.bf16.mxu0 %v10930_v8  ;;  %4626 = vmatprep.subr.bf16.mxu1 %v10935_v42  ;;  %v11196_v45 = vld [vmem:[%s11886_s1 + $0xf80] ss:$16 sps:$4 sm:$0xff]  }
 0x393   : >> { %12172 = vst [vmem:[#allocation14_spill] sm:$0xff] %v10938_v36  ;;  %12174 = vst [vmem:[#allocation19_spill] sm:$0xff] %v10941_v13  ;;  %v10968_v22 = vadd.f32 %v3485_v32, %v12175_v21  ;;  %v10971_v27 = vadd.f32 %v3526_v31, %v12177_v23  ;;  %4615 = vmatprep.mubr.bf16.mxu0 %v12179_v29  ;;  %4656 = vmatprep.mubr.bf16.mxu1 %v12179_v29  ;;  %v11201_v32 = vld [vmem:[%s11886_s1 + $0xf88] ss:$16 sps:$4 sm:$0xff]   ;;  %v11208_v31 = vld [vmem:[%s11886_s1 + $0xf64] ss:$16 sps:$4 sm:$0xff]  }
 0x394   : >> { %v3487_v59 = vpop.f32.mrf.mxu0  ;;  %v3528_v35 = vpop.f32.mrf.mxu1  ;;  %12180 = vst [vmem:[#allocation21_spill] sm:$0xff] %v11208_v31  ;;  %v11213_v21 = vld [vmem:[%s11886_s1 + $0xf6c] ss:$16 sps:$4 sm:$0xff]   ;;  %v11220_v23 = vld [vmem:[%s11886_s1 + $0xf60] ss:$16 sps:$4 sm:$0xff]  }
 0x395   : >> { %12176 = vst [vmem:[#allocation5_spill] sm:$0xff] %v10968_v22  ;;  %12178 = vst [vmem:[#allocation18_spill] sm:$0xff] %v10971_v27  ;;  %4586 = vmatpush1.bf16.msra.mxu0 %v10948_v16  ;;  %4627 = vmatpush1.bf16.msra.mxu1 %v10953_v17  ;;  %v11225_v29 = vld [vmem:[%s11886_s1 + $0xf68] ss:$16 sps:$4 sm:$0xff]   ;;  %v11232_v59 = vld [vmem:[%s11886_s1 + $0xf44] ss:$16 sps:$4 sm:$0xff]  }
 0x396   : >> { %v3488_v40 = vpop.f32.mrf.mxu0  ;;  %v3529_v57 = vpop.f32.mrf.mxu1  ;;  %4587 = vmatprep.subr.bf16.mxu0 %v10960_v2  ;;  %4628 = vmatprep.subr.bf16.mxu1 %v10965_v52  ;;  %12181 = vst [vmem:[#allocation22_spill] sm:$0xff] %v11213_v21  ;;  %12182 = vst [vmem:[#allocation23_spill] sm:$0xff] %v11220_v23  ;;  %v11237_v35 = vld [vmem:[%s11886_s1 + $0xf4c] ss:$16 sps:$4 sm:$0xff]   ;;  %v11246_v27 = vld [vmem:[%s11886_s1 + $0xf40] ss:$16 sps:$4 sm:$0xff]  }
 0x397   : >> { %12183 = vst [vmem:[#allocation24_spill] sm:$0xff] %v11225_v29  ;;  %12184 = vst [vmem:[#allocation3_spill] sm:$0xff] %v11232_v59  ;;  %v6402_v40 = vld [vmem:[%s7782_s19 + $0x68] sm:$0xfe]  ;;  %v6404_v57 = vld [vmem:[%s7782_s19 + $0x78] sm:$0x1] }
 0x398   : >> { %12185 = vst [vmem:[#allocation6_spill] sm:$0xff] %v11237_v35  ;;  %12186 = vst [vmem:[#allocation8_spill] sm:$0xff] %v11246_v27  ;;  %v11251_v22 = vld [vmem:[%s11886_s1 + $0xf48] ss:$16 sps:$4 sm:$0xff]   ;;  %v11258_v13 = vld [vmem:[%s11886_s1 + $0xf24] ss:$16 sps:$4 sm:$0xff]  }
 0x399   : >> { %4588 = vmatpush1.bf16.msra.mxu0 %v10980_v34  ;;  %4629 = vmatpush1.bf16.msra.mxu1 %v10985_v37  ;;  %12187 = vst [vmem:[#allocation9_spill] sm:$0xff] %v11251_v22  ;;  %12188 = vst [vmem:[#allocation11_spill] sm:$0xff] %v11258_v13  ;;  %v11263_v36 = vld [vmem:[%s11886_s1 + $0xf2c] ss:$16 sps:$4 sm:$0xff]  }
 0x39a   : >> { %4589 = vmatprep.subr.bf16.mxu0 %v10992_v46  ;;  %4630 = vmatprep.subr.bf16.mxu1 %v10997_v47  ;;  %12189 = vst [vmem:[#allocation12_spill] sm:$0xff] %v11263_v36 }
 0x39d   : >> { %4590 = vmatpush1.bf16.msra.mxu0 %v11004_v41  ;;  %4631 = vmatpush1.bf16.msra.mxu1 %v11009_v3 }
 0x39e   : >> { %4591 = vmatprep.subr.bf16.mxu0 %v11016_v6  ;;  %4632 = vmatprep.subr.bf16.mxu1 %v11021_v30 }
 0x3a1   : >> { %4592 = vmatpush1.bf16.msra.mxu0 %v11028_v54  ;;  %4633 = vmatpush1.bf16.msra.mxu1 %v11033_v56 }
 0x3a2   : >> { %4593 = vmatprep.subr.bf16.mxu0 %v11040_v9  ;;  %4634 = vmatprep.subr.bf16.mxu1 %v11045_v10 }
 0x3a5   : >> { %4594 = vmatpush1.bf16.msra.mxu0 %v11052_v0  ;;  %4635 = vmatpush1.bf16.msra.mxu1 %v11057_v19 }
 0x3a6   : >> { %4595 = vmatprep.subr.bf16.mxu0 %v11064_v43  ;;  %4636 = vmatprep.subr.bf16.mxu1 %v11069_v15 }
 0x3a9   : >> { %4596 = vmatpush1.bf16.msra.mxu0 %v11076_v12  ;;  %4637 = vmatpush1.bf16.msra.mxu1 %v11081_v53 }
 0x3aa   : >> { %4597 = vmatprep.subr.bf16.mxu0 %v11088_v18  ;;  %4638 = vmatprep.subr.bf16.mxu1 %v11093_v1 }
 0x3ad   : >> { %4598 = vmatpush1.bf16.msra.mxu0 %v11100_v50  ;;  %4639 = vmatpush1.bf16.msra.mxu1 %v11105_v28 }
 0x3ae   : >> { %4599 = vmatprep.subr.bf16.mxu0 %v11112_v49  ;;  %4640 = vmatprep.subr.bf16.mxu1 %v11117_v63 }
 0x3b1   : >> { %4600 = vmatpush2.bf16.msra.mxu0 %v11124_v7  ;;  %4641 = vmatpush2.bf16.msra.mxu1 %v11129_v4 }
 0x3b2   : >> { %4601 = vmatprep.subr.bf16.mxu0 %v11136_v58  ;;  %4642 = vmatprep.subr.bf16.mxu1 %v11141_v38 }
 0x3b5   : >> { %4602 = vmatpush2.bf16.msra.mxu0 %v11148_v39  ;;  %4643 = vmatpush2.bf16.msra.mxu1 %v11153_v55 }
 0x3b6   : >> { %4603 = vmatprep.subr.bf16.mxu0 %v11160_v14  ;;  %4644 = vmatprep.subr.bf16.mxu1 %v11165_v20 }
 0x3b9   : >> { %4604 = vmatpush2.bf16.msra.mxu0 %v11172_v24  ;;  %4645 = vmatpush2.bf16.msra.mxu1 %v11177_v51 }
 0x3ba   : >> { %4605 = vmatprep.subr.bf16.mxu0 %v11184_v33  ;;  %4646 = vmatprep.subr.bf16.mxu1 %v11189_v62 }
 0x3bd   : >> { %4606 = vmatpush2.bf16.msra.mxu0 %v11196_v45  ;;  %4647 = vmatpush2.bf16.msra.mxu1 %v11201_v32 }
 0x3be   : >> { %4607 = vmatprep.subr.bf16.mxu0 %v11208_v31  ;;  %4648 = vmatprep.subr.bf16.mxu1 %v11213_v21  ;;  %v12193_v31 = vld [vmem:[#allocation4_spill] sm:$0xff] }
 0x3c1   : >> { %4608 = vmatpush2.bf16.msra.mxu0 %v11220_v23  ;;  %4649 = vmatpush2.bf16.msra.mxu1 %v11225_v29  ;;  %v4670_v29 = vpack.c.bf16 %v6404_v57, %v6402_v40  ;;  %v11282_v40 = vld [vmem:[%s11886_s1 + $0xf04] ss:$16 sps:$4 sm:$0xff]   ;;  %v11287_v57 = vld [vmem:[%s11886_s1 + $0xf0c] ss:$16 sps:$4 sm:$0xff]  }
 0x3c2   : >> { %4609 = vmatprep.subr.bf16.mxu0 %v11232_v59  ;;  %4650 = vmatprep.subr.bf16.mxu1 %v11237_v35  ;;  %v11270_v59 = vld [vmem:[%s11886_s1 + $0xf20] ss:$16 sps:$4 sm:$0xff]   ;;  %v11275_v35 = vld [vmem:[%s11886_s1 + $0xf28] ss:$16 sps:$4 sm:$0xff]   ;;  %12192 = vst [vmem:[#allocation15_spill] sm:$0xff] %v11282_v40 }
 0x3c3   : >> { %12190 = vst [vmem:[#allocation13_spill] sm:$0xff] %v11270_v59  ;;  %12191 = vst [vmem:[#allocation7_spill] sm:$0xff] %v11275_v35 }
 0x3c5   : >> { %4610 = vmatpush2.bf16.msra.mxu0 %v11246_v27  ;;  %4651 = vmatpush2.bf16.msra.mxu1 %v11251_v22  ;;  %v4681_v22 = vshll.u32 %v4670_v29, 16  ;;  %v4679_v27 = vshrl.u32 %v4670_v29, 16 }
 0x3c6   : >> { %4611 = vmatprep.subr.bf16.mxu0 %v11258_v13  ;;  %4652 = vmatprep.subr.bf16.mxu1 %v11263_v36  ;;  %v11294_v13 = vld [vmem:[%s11886_s1 + $0xf00] ss:$16 sps:$4 sm:$0xff]   ;;  %v11299_v36 = vld [vmem:[%s11886_s1 + $0xf08] ss:$16 sps:$4 sm:$0xff]  }
 0x3c7   : >> { %v4683_v23 = vrot.slane %v4681_v22, 1 }
 0x3c9   : >> { %4612 = vmatpush2.bf16.msra.mxu0 %v11270_v59  ;;  %4653 = vmatpush2.bf16.msra.mxu1 %v11275_v35  ;;  %v4684_v35 = vor.u32 %v4683_v23, %v4679_v27  ;;  %v11477_v23 = vld [vmem:[%s11886_s1 + $0x108c] ss:$16 sps:$4 sm:$0xff]  }
 0x3ca   : >> { %4613 = vmatprep.subr.bf16.mxu0 %v11282_v40  ;;  %4654 = vmatprep.subr.bf16.mxu1 %v11287_v57 }
 0x3cd   : >> { %4614 = vmatpush2.bf16.msra.mxu0 %v11294_v13  ;;  %4655 = vmatpush2.bf16.msra.mxu1 %v11299_v36 }
 0x3ce   : >> { %4687 = vmatprep.subr.bf16.mxu0 %v10906_v61  ;;  %4728 = vmatprep.subr.bf16.mxu1 %v10911_v48 }
 0x3d0   : >> { %v3577_v59 = vpop.f32.mrf.mxu0  ;;  %v3618_v21 = vpop.f32.mrf.mxu1  ;;  %4616 = vmatmul.mubr.bf16.vlgmr.msra.gmra.mxu0 %v12193_v31  ;;  %4657 = vmatmul.mubr.bf16.vlgmr.msra.gmra.mxu1 %v12193_v31 }
 0x3d1   : >> { %v11310_v40 = vadd.f32 %v3577_v59, %v10831_v5  ;;  %v11313_v22 = vadd.f32 %v3618_v21, %v10834_v60  ;;  %4688 = vmatpush1.bf16.msra.mxu0 %v10918_v25  ;;  %4729 = vmatpush1.bf16.msra.mxu1 %v10923_v26  ;;  %v11472_v21 = vld [vmem:[%s11886_s1 + $0x1084] ss:$16 sps:$4 sm:$0xff]   ;;  %v11484_v59 = vld [vmem:[%s11886_s1 + $0x1080] ss:$16 sps:$4 sm:$0xff]  }
 0x3d2   : >> { %v3579_v61 = vpop.f32.mrf.mxu0  ;;  %v3620_v29 = vpop.f32.mrf.mxu1  ;;  %4689 = vmatprep.subr.bf16.mxu0 %v10930_v8  ;;  %4730 = vmatprep.subr.bf16.mxu1 %v10935_v42  ;;  %v12194_v8 = vld [vmem:[#allocation21_spill] sm:$0xff]  ;;  %v12195_v42 = vld [vmem:[#allocation22_spill] sm:$0xff] }
 0x3d3   : >> { %v11320_v48 = vadd.f32 %v3579_v61, %v10841_v44  ;;  %v11323_v27 = vadd.f32 %v3620_v29, %v10844_v11  ;;  %4719 = vmatprep.mubr.bf16.mxu0 %v4684_v35  ;;  %4760 = vmatprep.mubr.bf16.mxu1 %v4684_v35  ;;  %v6401_v44 = vld [vmem:[%s7782_s19 + $0x60] sm:$0xfe]  ;;  %v6403_v11 = vld [vmem:[%s7782_s19 + $0x70] sm:$0x1]  ;;  %v11489_v35 = vld [vmem:[%s11886_s1 + $0x1088] ss:$16 sps:$4 sm:$0xff]  }
 0x3d4   : >> { %v3581_v60 = vpop.f32.mrf.mxu0  ;;  %v3622_v5 = vpop.f32.mrf.mxu1  ;;  %v11501_v61 = vld [vmem:[%s11886_s1 + $0x106c] ss:$16 sps:$4 sm:$0xff]   ;;  %v11508_v29 = vld [vmem:[%s11886_s1 + $0x1060] ss:$16 sps:$4 sm:$0xff]  }
 0x3d5   : >> { %4690 = vmatpush1.bf16.msra.mxu0 %v10948_v16  ;;  %4731 = vmatpush1.bf16.msra.mxu1 %v10953_v17  ;;  %v4669_v16 = vpack.c.bf16 %v6403_v11, %v6401_v44  ;;  %v12196_v17 = vld [vmem:[#allocation23_spill] sm:$0xff]  ;;  %v11520_v5 = vld [vmem:[%s11886_s1 + $0x1044] ss:$16 sps:$4 sm:$0xff]  }
 0x3d6   : >> { %v3582_v25 = vpop.f32.mrf.mxu0  ;;  %v3623_v26 = vpop.f32.mrf.mxu1  ;;  %4691 = vmatprep.subr.bf16.mxu0 %v10960_v2  ;;  %4732 = vmatprep.subr.bf16.mxu1 %v10965_v52  ;;  %v12197_v2 = vld [vmem:[#allocation24_spill] sm:$0xff]  ;;  %v12198_v52 = vld [vmem:[#allocation3_spill] sm:$0xff] }
 0x3d7   : >> { %v11513_v60 = vld [vmem:[%s11886_s1 + $0x1068] ss:$16 sps:$4 sm:$0xff]   ;;  %v11525_v25 = vld [vmem:[%s11886_s1 + $0x104c] ss:$16 sps:$4 sm:$0xff]   ;;  %v11532_v26 = vld [vmem:[%s11886_s1 + $0x1040] ss:$16 sps:$4 sm:$0xff]  }
 0x3d8   : >> { %v11537_v44 = vld [vmem:[%s11886_s1 + $0x1048] ss:$16 sps:$4 sm:$0xff]   ;;  %v11544_v11 = vld [vmem:[%s11886_s1 + $0x1024] ss:$16 sps:$4 sm:$0xff]  }
 0x3d9   : >> { %4692 = vmatpush1.bf16.msra.mxu0 %v10980_v34  ;;  %4733 = vmatpush1.bf16.msra.mxu1 %v10985_v37  ;;  %v12199_v34 = vld [vmem:[#allocation6_spill] sm:$0xff]  ;;  %v4674_v37 = vshll.u32 %v4669_v16, 16 }
 0x3da   : >> { %4693 = vmatprep.subr.bf16.mxu0 %v10992_v46  ;;  %4734 = vmatprep.subr.bf16.mxu1 %v10997_v47  ;;  %v12200_v46 = vld [vmem:[#allocation8_spill] sm:$0xff]  ;;  %v12201_v47 = vld [vmem:[#allocation9_spill] sm:$0xff] }
 0x3dd   : >> { %4694 = vmatpush1.bf16.msra.mxu0 %v11004_v41  ;;  %4735 = vmatpush1.bf16.msra.mxu1 %v11009_v3  ;;  %v12202_v41 = vld [vmem:[#allocation11_spill] sm:$0xff]  ;;  %v12203_v3 = vld [vmem:[#allocation12_spill] sm:$0xff] }
 0x3de   : >> { %4695 = vmatprep.subr.bf16.mxu0 %v11016_v6  ;;  %4736 = vmatprep.subr.bf16.mxu1 %v11021_v30  ;;  %v4672_v6 = vshrl.u32 %v4669_v16, 16  ;;  %v4676_v30 = vrot.slane %v4674_v37, 1  ;;  %v11561_v16 = vld [vmem:[%s11886_s1 + $0x1028] ss:$16 sps:$4 sm:$0xff]   ;;  %v11592_v37 = vld [vmem:[%s11886_s1 + $0x11e4] ss:$16 sps:$4 sm:$0xff]  }
 0x3e1   : >> { %4696 = vmatpush1.bf16.msra.mxu0 %v11028_v54  ;;  %4737 = vmatpush1.bf16.msra.mxu1 %v11033_v56  ;;  %v12204_v54 = vld [vmem:[#allocation13_spill] sm:$0xff]  ;;  %v12205_v56 = vld [vmem:[#allocation7_spill] sm:$0xff] }
 0x3e2   : >> { %4697 = vmatprep.subr.bf16.mxu0 %v11040_v9  ;;  %4738 = vmatprep.subr.bf16.mxu1 %v11045_v10  ;;  %v12206_v9 = vld [vmem:[#allocation15_spill] sm:$0xff]  ;;  %v11386_v10 = vld [vmem:[%s11886_s1 + $0x10e4] ss:$16 sps:$4 sm:$0xff]  }
 0x3e5   : >> { %4698 = vmatpush1.bf16.msra.mxu0 %v11052_v0  ;;  %4739 = vmatpush1.bf16.msra.mxu1 %v11057_v19  ;;  %v11391_v0 = vld [vmem:[%s11886_s1 + $0x10ec] ss:$16 sps:$4 sm:$0xff]   ;;  %v4677_v19 = vor.u32 %v4676_v30, %v4672_v6  ;;  %v11628_v30 = vld [vmem:[%s11886_s1 + $0x11c0] ss:$16 sps:$4 sm:$0xff]  }
 0x3e6   : >> { %4699 = vmatprep.subr.bf16.mxu0 %v11064_v43  ;;  %4740 = vmatprep.subr.bf16.mxu1 %v11069_v15  ;;  %v11398_v43 = vld [vmem:[%s11886_s1 + $0x10e0] ss:$16 sps:$4 sm:$0xff]   ;;  %v11403_v15 = vld [vmem:[%s11886_s1 + $0x10e8] ss:$16 sps:$4 sm:$0xff]   ;;  %v11621_v6 = vld [vmem:[%s11886_s1 + $0x11cc] ss:$16 sps:$4 sm:$0xff]  }
 0x3e9   : >> { %4700 = vmatpush1.bf16.msra.mxu0 %v11076_v12  ;;  %4741 = vmatpush1.bf16.msra.mxu1 %v11081_v53 }
 0x3ea   : >> { %4701 = vmatprep.subr.bf16.mxu0 %v11088_v18  ;;  %4742 = vmatprep.subr.bf16.mxu1 %v11093_v1  ;;  %v12207_v18 = vld [vmem:[#allocation14_spill] sm:$0xff] }
 0x3ed   : >> { %4702 = vmatpush1.bf16.msra.mxu0 %v11100_v50  ;;  %4743 = vmatpush1.bf16.msra.mxu1 %v11105_v28  ;;  %v12209_v50 = vld [vmem:[#allocation19_spill] sm:$0xff] }
 0x3ee   : >> { %4703 = vmatprep.subr.bf16.mxu0 %v11112_v49  ;;  %4744 = vmatprep.subr.bf16.mxu1 %v11117_v63  ;;  %v11428_v49 = vld [vmem:[%s11886_s1 + $0x10c0] ss:$16 sps:$4 sm:$0xff]   ;;  %v11433_v63 = vld [vmem:[%s11886_s1 + $0x10c8] ss:$16 sps:$4 sm:$0xff]  }
 0x3f1   : >> { %4704 = vmatpush2.bf16.msra.mxu0 %v11124_v7  ;;  %4745 = vmatpush2.bf16.msra.mxu1 %v11129_v4 }
 0x3f2   : >> { %4705 = vmatprep.subr.bf16.mxu0 %v11136_v58  ;;  %4746 = vmatprep.subr.bf16.mxu1 %v11141_v38  ;;  %v11440_v58 = vld [vmem:[%s11886_s1 + $0x10a4] ss:$16 sps:$4 sm:$0xff]   ;;  %v11445_v38 = vld [vmem:[%s11886_s1 + $0x10ac] ss:$16 sps:$4 sm:$0xff]  }
 0x3f5   : >> { %4706 = vmatpush2.bf16.msra.mxu0 %v11148_v39  ;;  %4747 = vmatpush2.bf16.msra.mxu1 %v11153_v55  ;;  %v12211_v39 = vld [vmem:[#allocation5_spill] sm:$0xff] }
 0x3f6   : >> { %4707 = vmatprep.subr.bf16.mxu0 %v11160_v14  ;;  %4748 = vmatprep.subr.bf16.mxu1 %v11165_v20  ;;  %v12213_v14 = vld [vmem:[#allocation18_spill] sm:$0xff] }
 0x3f9   : >> { %4708 = vmatpush2.bf16.msra.mxu0 %v11172_v24  ;;  %4749 = vmatpush2.bf16.msra.mxu1 %v11177_v51  ;;  %v12215_v24 = vld [vmem:[#allocation10_spill] sm:$0xff] }
 0x3fa   : >> { %4709 = vmatprep.subr.bf16.mxu0 %v11184_v33  ;;  %4750 = vmatprep.subr.bf16.mxu1 %v11189_v62  ;;  %v11460_v62 = vld [vmem:[%s11886_s1 + $0x10a0] ss:$16 sps:$4 sm:$0xff]  }
 0x3fd   : >> { %4710 = vmatpush2.bf16.msra.mxu0 %v11196_v45  ;;  %4751 = vmatpush2.bf16.msra.mxu1 %v11201_v32  ;;  %v11465_v45 = vld [vmem:[%s11886_s1 + $0x10a8] ss:$16 sps:$4 sm:$0xff]  }
 0x3fe   : >> { %4711 = vmatprep.subr.bf16.mxu0 %v12194_v8  ;;  %4752 = vmatprep.subr.bf16.mxu1 %v12195_v42  ;;  %v11549_v8 = vld [vmem:[%s11886_s1 + $0x102c] ss:$16 sps:$4 sm:$0xff]   ;;  %v11556_v42 = vld [vmem:[%s11886_s1 + $0x1020] ss:$16 sps:$4 sm:$0xff]  }
 0x401   : >> { %4712 = vmatpush2.bf16.msra.mxu0 %v12196_v17  ;;  %4753 = vmatpush2.bf16.msra.mxu1 %v12197_v2  ;;  %v11568_v17 = vld [vmem:[%s11886_s1 + $0x1004] ss:$16 sps:$4 sm:$0xff]   ;;  %v11573_v2 = vld [vmem:[%s11886_s1 + $0x100c] ss:$16 sps:$4 sm:$0xff]  }
 0x402   : >> { %4713 = vmatprep.subr.bf16.mxu0 %v12198_v52  ;;  %4754 = vmatprep.subr.bf16.mxu1 %v12199_v34  ;;  %v11580_v52 = vld [vmem:[%s11886_s1 + $0x1000] ss:$16 sps:$4 sm:$0xff]   ;;  %v11585_v34 = vld [vmem:[%s11886_s1 + $0x1008] ss:$16 sps:$4 sm:$0xff]  }
 0x405   : >> { %4714 = vmatpush2.bf16.msra.mxu0 %v12200_v46  ;;  %4755 = vmatpush2.bf16.msra.mxu1 %v12201_v47  ;;  %v11597_v46 = vld [vmem:[%s11886_s1 + $0x11ec] ss:$16 sps:$4 sm:$0xff]   ;;  %v11604_v47 = vld [vmem:[%s11886_s1 + $0x11e0] ss:$16 sps:$4 sm:$0xff]  }
 0x406   : >> { %4715 = vmatprep.subr.bf16.mxu0 %v12202_v41  ;;  %4756 = vmatprep.subr.bf16.mxu1 %v12203_v3  ;;  %v11609_v41 = vld [vmem:[%s11886_s1 + $0x11e8] ss:$16 sps:$4 sm:$0xff]   ;;  %v11616_v3 = vld [vmem:[%s11886_s1 + $0x11c4] ss:$16 sps:$4 sm:$0xff]  }
 0x409   : >> { %4716 = vmatpush2.bf16.msra.mxu0 %v12204_v54  ;;  %4757 = vmatpush2.bf16.msra.mxu1 %v12205_v56  ;;  %v11633_v54 = vld [vmem:[%s11886_s1 + $0x11c8] ss:$16 sps:$4 sm:$0xff]   ;;  %v11640_v56 = vld [vmem:[%s11886_s1 + $0x11a4] ss:$16 sps:$4 sm:$0xff]  }
 0x40a   : >> { %4717 = vmatprep.subr.bf16.mxu0 %v12206_v9  ;;  %4758 = vmatprep.subr.bf16.mxu1 %v11287_v57  ;;  %v11496_v57 = vld [vmem:[%s11886_s1 + $0x1064] ss:$16 sps:$4 sm:$0xff]   ;;  %v11645_v9 = vld [vmem:[%s11886_s1 + $0x11ac] ss:$16 sps:$4 sm:$0xff]  }
 0x40d   : >> { %4718 = vmatpush2.bf16.msra.mxu0 %v11294_v13  ;;  %4759 = vmatpush2.bf16.msra.mxu1 %v11299_v36  ;;  %v11410_v13 = vld [vmem:[%s11886_s1 + $0x10c4] ss:$16 sps:$4 sm:$0xff]   ;;  %v11415_v36 = vld [vmem:[%s11886_s1 + $0x10cc] ss:$16 sps:$4 sm:$0xff]  }
 0x40e   : >> { %5162 = vmatprep.subr.bf16.mxu0 %v11386_v10  ;;  %5203 = vmatprep.subr.bf16.mxu1 %v11391_v0 }
 0x410   : >> { %v4054_v12 = vpop.f32.mrf.mxu0  ;;  %v4095_v53 = vpop.f32.mrf.mxu1  ;;  %4720 = vmatmul.mubr.bf16.vlgmr.msra.gmra.mxu0 %v4677_v19  ;;  %4761 = vmatmul.mubr.bf16.vlgmr.msra.gmra.mxu1 %v4677_v19  ;;  %v11652_v19 = vld [vmem:[%s11886_s1 + $0x11a0] ss:$16 sps:$4 sm:$0xff]  }
 0x411   : >> { %v11418_v1 = vadd.f32 %v4054_v12, %v12207_v18  ;;  %v11421_v28 = vadd.f32 %v4095_v53, %v12209_v50  ;;  %5163 = vmatpush1.bf16.msra.mxu0 %v11398_v43  ;;  %5204 = vmatpush1.bf16.msra.mxu1 %v11403_v15  ;;  %v11657_v12 = vld [vmem:[%s11886_s1 + $0x11a8] ss:$16 sps:$4 sm:$0xff]   ;;  %v11664_v53 = vld [vmem:[%s11886_s1 + $0x1184] ss:$16 sps:$4 sm:$0xff]   ;;  %v11669_v18 = vld [vmem:[%s11886_s1 + $0x118c] ss:$16 sps:$4 sm:$0xff]  }
 0x412   : >> { %v4056_v7 = vpop.f32.mrf.mxu0  ;;  %v4097_v4 = vpop.f32.mrf.mxu1  ;;  %5164 = vmatprep.subr.bf16.mxu0 %v11410_v13  ;;  %5205 = vmatprep.subr.bf16.mxu1 %v11415_v36  ;;  %v11676_v50 = vld [vmem:[%s11886_s1 + $0x1180] ss:$16 sps:$4 sm:$0xff]  }
 0x413   : >> { %12208 = vst [vmem:[#allocation16_spill] sm:$0xff] %v11418_v1  ;;  %12210 = vst [vmem:[#allocation17_spill] sm:$0xff] %v11421_v28  ;;  %v11448_v55 = vadd.f32 %v4056_v7, %v12211_v39  ;;  %v11451_v20 = vadd.f32 %v4097_v4, %v12213_v14  ;;  %5194 = vmatprep.mubr.bf16.mxu0 %v12215_v24  ;;  %5235 = vmatprep.mubr.bf16.mxu1 %v12215_v24  ;;  %v11681_v7 = vld [vmem:[%s11886_s1 + $0x1188] ss:$16 sps:$4 sm:$0xff]   ;;  %v11688_v4 = vld [vmem:[%s11886_s1 + $0x1164] ss:$16 sps:$4 sm:$0xff]  }
 0x414   : >> { %v4058_v51 = vpop.f32.mrf.mxu0  ;;  %v4099_v33 = vpop.f32.mrf.mxu1  ;;  %v11693_v39 = vld [vmem:[%s11886_s1 + $0x116c] ss:$16 sps:$4 sm:$0xff]   ;;  %v11700_v14 = vld [vmem:[%s11886_s1 + $0x1160] ss:$16 sps:$4 sm:$0xff]   ;;  %v11705_v24 = vld [vmem:[%s11886_s1 + $0x1168] ss:$16 sps:$4 sm:$0xff]  }
 0x415   : >> { %12212 = vst [vmem:[#allocation25_spill] sm:$0xff] %v11448_v55  ;;  %12214 = vst [vmem:[#allocation4_spill] sm:$0xff] %v11451_v20  ;;  %5165 = vmatpush1.bf16.msra.mxu0 %v11428_v49  ;;  %5206 = vmatpush1.bf16.msra.mxu1 %v11433_v63  ;;  %v11712_v51 = vld [vmem:[%s11886_s1 + $0x1144] ss:$16 sps:$4 sm:$0xff]   ;;  %v11717_v33 = vld [vmem:[%s11886_s1 + $0x114c] ss:$16 sps:$4 sm:$0xff]  }
 0x416   : >> { %v4059_v32 = vpop.f32.mrf.mxu0  ;;  %v4100_v31 = vpop.f32.mrf.mxu1  ;;  %5166 = vmatprep.subr.bf16.mxu0 %v11440_v58  ;;  %5207 = vmatprep.subr.bf16.mxu1 %v11445_v38  ;;  %12216 = vst [vmem:[#allocation21_spill] sm:$0xff] %v11693_v39  ;;  %12217 = vst [vmem:[#allocation22_spill] sm:$0xff] %v11700_v14  ;;  %v11736_v20 = vld [vmem:[%s11886_s1 + $0x1124] ss:$16 sps:$4 sm:$0xff]   ;;  %v11741_v55 = vld [vmem:[%s11886_s1 + $0x112c] ss:$16 sps:$4 sm:$0xff]  }
 0x417   : >> { %12218 = vst [vmem:[#allocation23_spill] sm:$0xff] %v11705_v24  ;;  %12219 = vst [vmem:[#allocation24_spill] sm:$0xff] %v11712_v51  ;;  %v11724_v32 = vld [vmem:[%s11886_s1 + $0x1140] ss:$16 sps:$4 sm:$0xff]   ;;  %v11729_v31 = vld [vmem:[%s11886_s1 + $0x1148] ss:$16 sps:$4 sm:$0xff]  }
 0x418   : >> { %12220 = vst [vmem:[#allocation3_spill] sm:$0xff] %v11717_v33  ;;  %12221 = vst [vmem:[#allocation6_spill] sm:$0xff] %v11724_v32  ;;  %v11748_v28 = vld [vmem:[%s11886_s1 + $0x1120] ss:$16 sps:$4 sm:$0xff]   ;;  %v11753_v1 = vld [vmem:[%s11886_s1 + $0x1128] ss:$16 sps:$4 sm:$0xff]  }
 0x419   : >> { %5167 = vmatpush1.bf16.msra.mxu0 %v11460_v62  ;;  %5208 = vmatpush1.bf16.msra.mxu1 %v11465_v45  ;;  %12222 = vst [vmem:[#allocation8_spill] sm:$0xff] %v11729_v31  ;;  %12223 = vst [vmem:[#allocation9_spill] sm:$0xff] %v11736_v20 }
 0x41a   : >> { %5168 = vmatprep.subr.bf16.mxu0 %v11472_v21  ;;  %5209 = vmatprep.subr.bf16.mxu1 %v11477_v23  ;;  %12224 = vst [vmem:[#allocation11_spill] sm:$0xff] %v11741_v55  ;;  %12225 = vst [vmem:[#allocation12_spill] sm:$0xff] %v11748_v28 }
 0x41b   : >> { %12226 = vst [vmem:[#allocation13_spill] sm:$0xff] %v11753_v1 }
 0x41d   : >> { %5169 = vmatpush1.bf16.msra.mxu0 %v11484_v59  ;;  %5210 = vmatpush1.bf16.msra.mxu1 %v11489_v35 }
 0x41e   : >> { %5170 = vmatprep.subr.bf16.mxu0 %v11496_v57  ;;  %5211 = vmatprep.subr.bf16.mxu1 %v11501_v61 }
 0x421   : >> { %5171 = vmatpush1.bf16.msra.mxu0 %v11508_v29  ;;  %5212 = vmatpush1.bf16.msra.mxu1 %v11513_v60 }
 0x422   : >> { %5172 = vmatprep.subr.bf16.mxu0 %v11520_v5  ;;  %5213 = vmatprep.subr.bf16.mxu1 %v11525_v25 }
 0x425   : >> { %5173 = vmatpush1.bf16.msra.mxu0 %v11532_v26  ;;  %5214 = vmatpush1.bf16.msra.mxu1 %v11537_v44 }
 0x426   : >> { %5174 = vmatprep.subr.bf16.mxu0 %v11544_v11  ;;  %5215 = vmatprep.subr.bf16.mxu1 %v11549_v8 }
 0x429   : >> { %5175 = vmatpush1.bf16.msra.mxu0 %v11556_v42  ;;  %5216 = vmatpush1.bf16.msra.mxu1 %v11561_v16 }
 0x42a   : >> { %5176 = vmatprep.subr.bf16.mxu0 %v11568_v17  ;;  %5217 = vmatprep.subr.bf16.mxu1 %v11573_v2 }
 0x42d   : >> { %5177 = vmatpush1.bf16.msra.mxu0 %v11580_v52  ;;  %5218 = vmatpush1.bf16.msra.mxu1 %v11585_v34 }
 0x42e   : >> { %5178 = vmatprep.subr.bf16.mxu0 %v11592_v37  ;;  %5219 = vmatprep.subr.bf16.mxu1 %v11597_v46 }
 0x431   : >> { %5179 = vmatpush2.bf16.msra.mxu0 %v11604_v47  ;;  %5220 = vmatpush2.bf16.msra.mxu1 %v11609_v41 }
 0x432   : >> { %5180 = vmatprep.subr.bf16.mxu0 %v11616_v3  ;;  %5221 = vmatprep.subr.bf16.mxu1 %v11621_v6 }
 0x435   : >> { %5181 = vmatpush2.bf16.msra.mxu0 %v11628_v30  ;;  %5222 = vmatpush2.bf16.msra.mxu1 %v11633_v54 }
 0x436   : >> { %5182 = vmatprep.subr.bf16.mxu0 %v11640_v56  ;;  %5223 = vmatprep.subr.bf16.mxu1 %v11645_v9 }
 0x439   : >> { %5183 = vmatpush2.bf16.msra.mxu0 %v11652_v19  ;;  %5224 = vmatpush2.bf16.msra.mxu1 %v11657_v12 }
 0x43a   : >> { %5184 = vmatprep.subr.bf16.mxu0 %v11664_v53  ;;  %5225 = vmatprep.subr.bf16.mxu1 %v11669_v18 }
 0x43d   : >> { %5185 = vmatpush2.bf16.msra.mxu0 %v11676_v50  ;;  %5226 = vmatpush2.bf16.msra.mxu1 %v11681_v7 }
 0x43e   : >> { %5186 = vmatprep.subr.bf16.mxu0 %v11688_v4  ;;  %5227 = vmatprep.subr.bf16.mxu1 %v11693_v39  ;;  %v12228_v39 = vld [vmem:[#allocation20_spill] sm:$0xff] }
 0x441   : >> { %5187 = vmatpush2.bf16.msra.mxu0 %v11700_v14  ;;  %5228 = vmatpush2.bf16.msra.mxu1 %v11705_v24 }
 0x442   : >> { %5188 = vmatprep.subr.bf16.mxu0 %v11712_v51  ;;  %5229 = vmatprep.subr.bf16.mxu1 %v11717_v33  ;;  %v6534_v33 = vld [vmem:[%s7782_s19 + $0x68] sm:$0xfc]  ;;  %v6536_v51 = vld [vmem:[%s7782_s19 + $0x78] sm:$0x3] }
 0x443   : >> { %v5249_v24 = vpack.c.bf16 %v6536_v51, %v6534_v33 }
 0x445   : >> { %5189 = vmatpush2.bf16.msra.mxu0 %v11724_v32  ;;  %5230 = vmatpush2.bf16.msra.mxu1 %v11729_v31  ;;  %v11760_v32 = vld [vmem:[%s11886_s1 + $0x1104] ss:$16 sps:$4 sm:$0xff]   ;;  %v11765_v31 = vld [vmem:[%s11886_s1 + $0x110c] ss:$16 sps:$4 sm:$0xff]  }
 0x446   : >> { %5190 = vmatprep.subr.bf16.mxu0 %v11736_v20  ;;  %5231 = vmatprep.subr.bf16.mxu1 %v11741_v55  ;;  %12227 = vst [vmem:[#allocation7_spill] sm:$0xff] %v11760_v32  ;;  %v11774_v55 = vld [vmem:[%s11886_s1 + $0x1100] ss:$16 sps:$4 sm:$0xff]   ;;  %v11779_v20 = vld [vmem:[%s11886_s1 + $0x1108] ss:$16 sps:$4 sm:$0xff]  }
 0x449   : >> { %5191 = vmatpush2.bf16.msra.mxu0 %v11748_v28  ;;  %5232 = vmatpush2.bf16.msra.mxu1 %v11753_v1  ;;  %v5253_v1 = vrot.slane %v5249_v24, 1 }
 0x44a   : >> { %5192 = vmatprep.subr.bf16.mxu0 %v11760_v32  ;;  %5233 = vmatprep.subr.bf16.mxu1 %v11765_v31 }
 0x44d   : >> { %5193 = vmatpush2.bf16.msra.mxu0 %v11774_v55  ;;  %5234 = vmatpush2.bf16.msra.mxu1 %v11779_v20 }
 0x44e   : >> { %5256 = vmatprep.subr.bf16.mxu0 %v11386_v10  ;;  %5297 = vmatprep.subr.bf16.mxu1 %v11391_v0 }
 0x450   : >> { %v4142_v28 = vpop.f32.mrf.mxu0  ;;  %v4183_v14 = vpop.f32.mrf.mxu1  ;;  %5195 = vmatmul.mubr.bf16.vlgmr.msra.gmra.mxu0 %v12228_v39  ;;  %5236 = vmatmul.mubr.bf16.vlgmr.msra.gmra.mxu1 %v12228_v39 }
 0x451   : >> { %v11790_v32 = vadd.f32 %v4142_v28, %v11310_v40  ;;  %v11793_v51 = vadd.f32 %v4183_v14, %v11313_v22  ;;  %5257 = vmatpush1.bf16.msra.mxu0 %v11398_v43  ;;  %5298 = vmatpush1.bf16.msra.mxu1 %v11403_v15  ;;  %v12234_v28 = vld [vmem:[#allocation6_spill] sm:$0xff] }
 0x452   : >> { %v4144_v10 = vpop.f32.mrf.mxu0  ;;  %v4185_v33 = vpop.f32.mrf.mxu1  ;;  %5258 = vmatprep.subr.bf16.mxu0 %v11410_v13  ;;  %5299 = vmatprep.subr.bf16.mxu1 %v11415_v36  ;;  %v12231_v13 = vld [vmem:[#allocation23_spill] sm:$0xff]  ;;  %v12232_v36 = vld [vmem:[#allocation24_spill] sm:$0xff] }
 0x453   : >> { %v11800_v0 = vadd.f32 %v4144_v10, %v11320_v48  ;;  %v11803_v39 = vadd.f32 %v4185_v33, %v11323_v27  ;;  %5288 = vmatprep.mubr.bf16.mxu0 %v5253_v1  ;;  %5329 = vmatprep.mubr.bf16.mxu1 %v5253_v1  ;;  %v12229_v48 = vld [vmem:[#allocation21_spill] sm:$0xff]  ;;  %v12230_v27 = vld [vmem:[#allocation22_spill] sm:$0xff]  ;;  %v12233_v1 = vld [vmem:[#allocation3_spill] sm:$0xff]  ;;  %v5343_v10 = vlaneseq }
 0x454   : >> { %v4146_v40 = vpop.f32.mrf.mxu0  ;;  %v4187_v22 = vpop.f32.mrf.mxu1 }
 0x455   : >> { %5259 = vmatpush1.bf16.msra.mxu0 %v11428_v49  ;;  %5300 = vmatpush1.bf16.msra.mxu1 %v11433_v63  ;;  %v12235_v49 = vld [vmem:[#allocation8_spill] sm:$0xff]  ;;  %v6533_v63 = vld [vmem:[%s7782_s19 + $0x60] sm:$0xfc]  ;;  %v5344_v33 = vshrl.u32 %v5343_v10, 7 }
 0x456   : >> { %v4147_v43 = vpop.f32.mrf.mxu0  ;;  %v4188_v15 = vpop.f32.mrf.mxu1  ;;  %5260 = vmatprep.subr.bf16.mxu0 %v11440_v58  ;;  %5301 = vmatprep.subr.bf16.mxu1 %v11445_v38  ;;  %v6535_v58 = vld [vmem:[%s7782_s19 + $0x70] sm:$0x3]  ;;  %v12236_v38 = vld [vmem:[#allocation9_spill] sm:$0xff]  ;;  %s6611_s19 = sshll.u32 %s7598_s24, 5  ;;  %s177_s24 = sadd.s32 1, %s7598_s24  }
 0x457   : >> { %v5349_v40 = vsub.s32 1, %v5344_v33  ;;  %v5357_v22 = vsub.s32 3, %v5344_v33  ;;  %v12245_v43 = vld [vmem:[#allocation2_spill] sm:$0xff]  ;;  %s5385_s10 = scalar_lea.vmem %s7636_s20, %s6611_s19  ;;  %p174_p4 = scmp.ge.s32.totalorder %s177_s24, 2  }
 0x459   : >> { %5261 = vmatpush1.bf16.msra.mxu0 %v11460_v62  ;;  %5302 = vmatpush1.bf16.msra.mxu1 %v11465_v45  ;;  %v12237_v62 = vld [vmem:[#allocation11_spill] sm:$0xff]  ;;  %v5248_v45 = vpack.c.bf16 %v6535_v58, %v6533_v63 }
 0x45a   : >> { %5262 = vmatprep.subr.bf16.mxu0 %v11472_v21  ;;  %5303 = vmatprep.subr.bf16.mxu1 %v11477_v23  ;;  %v12238_v21 = vld [vmem:[#allocation12_spill] sm:$0xff]  ;;  %v12239_v23 = vld [vmem:[#allocation13_spill] sm:$0xff] }
 0x45d   : >> { %5263 = vmatpush1.bf16.msra.mxu0 %v11484_v59  ;;  %5304 = vmatpush1.bf16.msra.mxu1 %v11489_v35  ;;  %v12240_v59 = vld [vmem:[#allocation7_spill] sm:$0xff]  ;;  %v5252_v35 = vrot.slane %v5248_v45, 1 }
 0x45e   : >> { %5264 = vmatprep.subr.bf16.mxu0 %v11496_v57  ;;  %5305 = vmatprep.subr.bf16.mxu1 %v11501_v61 }
 0x461   : >> { %5265 = vmatpush1.bf16.msra.mxu0 %v11508_v29  ;;  %5306 = vmatpush1.bf16.msra.mxu1 %v11513_v60  ;;  %v12241_v29 = vld [vmem:[#allocation16_spill] sm:$0xff] }
 0x462   : >> { %5266 = vmatprep.subr.bf16.mxu0 %v11520_v5  ;;  %5307 = vmatprep.subr.bf16.mxu1 %v11525_v25  ;;  %v12242_v5 = vld [vmem:[#allocation17_spill] sm:$0xff] }
 0x465   : >> { %5267 = vmatpush1.bf16.msra.mxu0 %v11532_v26  ;;  %5308 = vmatpush1.bf16.msra.mxu1 %v11537_v44 }
 0x466   : >> { %5268 = vmatprep.subr.bf16.mxu0 %v11544_v11  ;;  %5309 = vmatprep.subr.bf16.mxu1 %v11549_v8  ;;  %v12243_v11 = vld [vmem:[#allocation25_spill] sm:$0xff] }
 0x469   : >> { %5269 = vmatpush1.bf16.msra.mxu0 %v11556_v42  ;;  %5310 = vmatpush1.bf16.msra.mxu1 %v11561_v16  ;;  %v12244_v42 = vld [vmem:[#allocation4_spill] sm:$0xff] }
 0x46a   : >> { %5270 = vmatprep.subr.bf16.mxu0 %v11568_v17  ;;  %5311 = vmatprep.subr.bf16.mxu1 %v11573_v2 }
 0x46d   : >> { %5271 = vmatpush1.bf16.msra.mxu0 %v11580_v52  ;;  %5312 = vmatpush1.bf16.msra.mxu1 %v11585_v34 }
 0x46e   : >> { %5272 = vmatprep.subr.bf16.mxu0 %v11592_v37  ;;  %5313 = vmatprep.subr.bf16.mxu1 %v11597_v46 }
 0x471   : >> { %5273 = vmatpush2.bf16.msra.mxu0 %v11604_v47  ;;  %5314 = vmatpush2.bf16.msra.mxu1 %v11609_v41 }
 0x472   : >> { %5274 = vmatprep.subr.bf16.mxu0 %v11616_v3  ;;  %5315 = vmatprep.subr.bf16.mxu1 %v11621_v6 }
 0x475   : >> { %5275 = vmatpush2.bf16.msra.mxu0 %v11628_v30  ;;  %5316 = vmatpush2.bf16.msra.mxu1 %v11633_v54 }
 0x476   : >> { %5276 = vmatprep.subr.bf16.mxu0 %v11640_v56  ;;  %5317 = vmatprep.subr.bf16.mxu1 %v11645_v9 }
 0x479   : >> { %5277 = vmatpush2.bf16.msra.mxu0 %v11652_v19  ;;  %5318 = vmatpush2.bf16.msra.mxu1 %v11657_v12 }
 0x47a   : >> { %5278 = vmatprep.subr.bf16.mxu0 %v11664_v53  ;;  %5319 = vmatprep.subr.bf16.mxu1 %v11669_v18 }
 0x47d   : >> { %5279 = vmatpush2.bf16.msra.mxu0 %v11676_v50  ;;  %5320 = vmatpush2.bf16.msra.mxu1 %v11681_v7 }
 0x47e   : >> { %5280 = vmatprep.subr.bf16.mxu0 %v11688_v4  ;;  %5321 = vmatprep.subr.bf16.mxu1 %v12229_v48 }
 0x481   : >> { %5281 = vmatpush2.bf16.msra.mxu0 %v12230_v27  ;;  %5322 = vmatpush2.bf16.msra.mxu1 %v12231_v13  ;;  %v5350_v27 = vrot.slane %v12245_v43, %v5349_v40  ;;  %v5358_v13 = vrot.slane %v12245_v43, %v5357_v22 }
 0x482   : >> { %5282 = vmatprep.subr.bf16.mxu0 %v12232_v36  ;;  %5323 = vmatprep.subr.bf16.mxu1 %v12233_v1 }
 0x485   : >> { %5283 = vmatpush2.bf16.msra.mxu0 %v12234_v28  ;;  %5324 = vmatpush2.bf16.msra.mxu1 %v12235_v49 }
 0x486   : >> { %5284 = vmatprep.subr.bf16.mxu0 %v12236_v38  ;;  %5325 = vmatprep.subr.bf16.mxu1 %v12237_v62 }
 0x489   : >> { %5285 = vmatpush2.bf16.msra.mxu0 %v12238_v21  ;;  %5326 = vmatpush2.bf16.msra.mxu1 %v12239_v23 }
 0x48a   : >> { %5286 = vmatprep.subr.bf16.mxu0 %v12240_v59  ;;  %5327 = vmatprep.subr.bf16.mxu1 %v11765_v31 }
 0x48d   : >> { %5287 = vmatpush2.bf16.msra.mxu0 %v11774_v55  ;;  %5328 = vmatpush2.bf16.msra.mxu1 %v11779_v20 }
 0x490   : >> { %v4617_v57 = vpop.f32.mrf.mxu0  ;;  %v4658_v61 = vpop.f32.mrf.mxu1  ;;  %5289 = vmatmul.mubr.bf16.vlgmr.msra.gmra.mxu0 %v5252_v35  ;;  %5330 = vmatmul.mubr.bf16.vlgmr.msra.gmra.mxu1 %v5252_v35 }
 0x491   : >> { %v4665_v60 = vadd.f32 %v4617_v57, %v12241_v29  ;;  %v4667_v25 = vadd.f32 %v4658_v61, %v12242_v5 }
 0x492   : >> { %v4619_v26 = vpop.f32.mrf.mxu0  ;;  %v4660_v44 = vpop.f32.mrf.mxu1 }
 0x493   : >> { %v4666_v8 = vadd.f32 %v4619_v26, %v12243_v11  ;;  %v4668_v16 = vadd.f32 %v4660_v44, %v12244_v42 }
 0x494   : >> { %v4621_v17 = vpop.f32.mrf.mxu0  ;;  %v4662_v2 = vpop.f32.mrf.mxu1 }
 0x496   : >> { %v4622_v52 = vpop.f32.mrf.mxu0  ;;  %v4663_v55 = vpop.f32.mrf.mxu1 }
 0x4d0   : >> { %v4721_v34 = vpop.f32.mrf.mxu0  ;;  %v4762_v20 = vpop.f32.mrf.mxu1 }
 0x4d1   : >> { %v4769_v37 = vadd.f32 %v4721_v34, %v11790_v32  ;;  %v4771_v46 = vadd.f32 %v4762_v20, %v11793_v51 }
 0x4d2   : >> { %v4723_v47 = vpop.f32.mrf.mxu0  ;;  %v4764_v41 = vpop.f32.mrf.mxu1 }
 0x4d3   : >> { %v4770_v3 = vadd.f32 %v4723_v47, %v11800_v0  ;;  %v4772_v6 = vadd.f32 %v4764_v41, %v11803_v39  ;;  %v5345_v0 = vsub.s32 0, %v5344_v33  ;;  %v5353_v39 = vsub.s32 2, %v5344_v33 }
 0x4d4   : >> { %v4725_v30 = vpop.f32.mrf.mxu0  ;;  %v4766_v54 = vpop.f32.mrf.mxu1 }
 0x4d5   : >> { %v5346_v15 = vrot.slane %v12245_v43, %v5345_v0  ;;  %v5354_v48 = vrot.slane %v12245_v43, %v5353_v39 }
 0x4d6   : >> { %v4726_v56 = vpop.f32.mrf.mxu0  ;;  %v4767_v9 = vpop.f32.mrf.mxu1 }
 0x510   : >> { %v5196_v19 = vpop.f32.mrf.mxu0  ;;  %v5237_v12 = vpop.f32.mrf.mxu1 }
 0x511   : >> { %v5244_v53 = vadd.f32 %v5196_v19, %v4665_v60  ;;  %v5246_v18 = vadd.f32 %v5237_v12, %v4667_v25 }
 0x512   : >> { %v5198_v50 = vpop.f32.mrf.mxu0  ;;  %v5239_v7 = vpop.f32.mrf.mxu1 }
 0x513   : >> { %v5245_v4 = vadd.f32 %v5198_v50, %v4666_v8  ;;  %v5247_v14 = vadd.f32 %v5239_v7, %v4668_v16  ;;  %v5363_v36 = vadd.f32 %v5346_v15, %v5244_v53  ;;  %v5365_v1 = vadd.f32 %v5354_v48, %v5246_v18 }
 0x514   : >> { %v5200_v24 = vpop.f32.mrf.mxu0  ;;  %v5241_v32 = vpop.f32.mrf.mxu1 }
 0x515   : >> { %v5364_v38 = vadd.f32 %v5350_v27, %v5245_v4  ;;  %v5366_v62 = vadd.f32 %v5358_v13, %v5247_v14  ;;  %v5367_v61 = vmax.f32 %v5363_v36, 0.0  ;;  %v5369_v29 = vmax.f32 %v5365_v1, 0.0 }
 0x516   : >> { %v5201_v31 = vpop.f32.mrf.mxu0  ;;  %v5242_v51 = vpop.f32.mrf.mxu1 }
 0x517   : >> { %v5368_v8 = vmax.f32 %v5364_v38, 0.0  ;;  %v5370_v42 = vmax.f32 %v5366_v62, 0.0 }
 0x550   : >> { %v5290_v28 = vpop.f32.mrf.mxu0  ;;  %v5331_v49 = vpop.f32.mrf.mxu1 }
 0x551   : >> { %v5338_v63 = vadd.f32 %v5290_v28, %v4769_v37  ;;  %v5340_v58 = vadd.f32 %v5331_v49, %v4771_v46 }
 0x552   : >> { %v5292_v45 = vpop.f32.mrf.mxu0  ;;  %v5333_v21 = vpop.f32.mrf.mxu1 }
 0x553   : >> { %v5371_v23 = vadd.f32 %v5346_v15, %v5338_v63  ;;  %v5373_v59 = vadd.f32 %v5354_v48, %v5340_v58  ;;  %v5339_v35 = vadd.f32 %v5292_v45, %v4770_v3  ;;  %v5341_v57 = vadd.f32 %v5333_v21, %v4772_v6 }
 0x554   : >> { %v5294_v60 = vpop.f32.mrf.mxu0  ;;  %v5335_v5 = vpop.f32.mrf.mxu1 }
 0x555   : >> { %v5375_v25 = vmax.f32 %v5371_v23, 0.0  ;;  %v5377_v26 = vmax.f32 %v5373_v59, 0.0  ;;  %v5372_v44 = vadd.f32 %v5350_v27, %v5339_v35  ;;  %v5374_v11 = vadd.f32 %v5358_v13, %v5341_v57 }
 0x556   : >> { %v5295_v16 = vpop.f32.mrf.mxu0  ;;  %v5336_v17 = vpop.f32.mrf.mxu1 }
 0x557   : >> { %v5379_v2 = vmax.f32 %v5367_v61, %v5375_v25  ;;  %v5381_v52 = vmax.f32 %v5369_v29, %v5377_v26  ;;  %v5376_v55 = vmax.f32 %v5372_v44, 0.0  ;;  %v5378_v34 = vmax.f32 %v5374_v11, 0.0  ;;  %176 = sbr.rel (!%p174_p4) target bundleno = 15 (0xf), region = 82 }
 0x559   : >> { %5386 = vst [vmem:[%s5385_s10] sm:$0xff] %v5379_v2  ;;  %5388 = vst [vmem:[%s5385_s10 + $0x10] sm:$0xff] %v5381_v52  ;;  %v5380_v20 = vmax.f32 %v5368_v8, %v5376_v55  ;;  %v5382_v37 = vmax.f32 %v5370_v42, %v5378_v34 }
 0x55b   : >> { %5387 = vst [vmem:[%s5385_s10 + $0x8] sm:$0xff] %v5380_v20  ;;  %5389 = vst [vmem:[%s5385_s10 + $0x18] sm:$0xff] %v5382_v37 }
 0x55c PF: > { %s13_s12 = sadd.s32 1, %s7594_s12  }
 0x55d   : > { %p10_p5 = scmp.ge.s32.totalorder %s13_s12, 4  }
 0x55f   :  { %12 = sbr.rel (!%p10_p5) target bundleno = 1 (0x1), region = 93 }

// kernel: multiscale_crnn_forward.17
= control target key start
LH: loop header
LB: loop body
LE: loop exit
PB: predicated region body
PF: predicated region fallthrough
CT: control target
= control target key end

     0   :  { %vm20_vm0 = vcmask 254976   ;;  %v336_v0 = vmov 0.0   ;;  %s470_s0 = inlined_call_operand.vmem [shape: f32[8,2,128], index: 0, kind: input, shape index: {}]   ;;  %s471_s1 = inlined_call_operand.vmem [shape: f32[8,2,128], index: 1, kind: input, shape index: {}]   ;;  %s472_s2 = inlined_call_operand.vmem [shape: bf16[32,128], index: 2, kind: input, shape index: {}]   ;;  %s473_s3 = inlined_call_operand.vmem [shape: bf16[32,128], index: 3, kind: input, shape index: {}]   ;;  %s474_s4 = inlined_call_operand.vmem [shape: f32[8,2,32], index: 4, kind: output, shape index: {0}]   ;;  %s475_s5 = inlined_call_operand.vmem [shape: f32[8,2,32], index: 5, kind: output, shape index: {1}]  }
   0x1   :  { %21 = vst.msk [vmem:[#allocation2] sm:$0x3] %vm20_vm0, %v336_v0  ;;  %22 = vst.msk [vmem:[#allocation3] sm:$0x3] %vm20_vm0, %v336_v0  ;;  %v379_v1 = vld [vmem:[%s472_s2] sm:$0xf] }
   0x2   :  { %23 = vst.msk [vmem:[#allocation4] sm:$0x3] %vm20_vm0, %v336_v0  ;;  %24 = vst.msk [vmem:[#allocation5] sm:$0x3] %vm20_vm0, %v336_v0  ;;  %v384_v2 = vld [vmem:[%s472_s2 + $0x4] sm:$0xf] }
   0x3   :  { %v389_v3 = vld [vmem:[%s472_s2 + $0x8] sm:$0xf]  ;;  %v394_v4 = vld [vmem:[%s472_s2 + $0xc] sm:$0xf]  ;;  %v399_v5 = vld [vmem:[%s473_s3] sm:$0xf] }
   0x4   :  { %v404_v6 = vld [vmem:[%s473_s3 + $0x4] sm:$0xf]  ;;  %v409_v7 = vld [vmem:[%s473_s3 + $0x8] sm:$0xf]  ;;  %v414_v8 = vld [vmem:[%s473_s3 + $0xc] sm:$0xf] }
   0x5   :  { %s416_s2 = smov 0  }
   0x6 LB: > { %v268_v9 = vcombine.low %v389_v3, %v394_v4  ;;  %v273_v10 = vcombine.low %v409_v7, %v414_v8  ;;  %v337_v11 = vmov 0.0   ;;  %v267_v13 = vcombine.low %v379_v1, %v384_v2  ;;  %s339_s3 = smov 32   ;;  %s142_s9 = ssub.s32 7, %s334_s2  ;;  %s334_s2 = sphi %s416_s2, %s38_s2  }
   0x7   : > { %282 = vmatprep.subr.bf16.mxu0 %v337_v11  ;;  %290 = vmatprep.subr.bf16.mxu1 %v337_v11  ;;  %v272_v14 = vcombine.low %v399_v5, %v404_v6  ;;  %vm338_vm1 = vmmov 0   ;;  %vm57_vm2 = vcmask 261120   ;;  %s266_s10 = sshll.u32 %s334_s2, 1  ;;  %s433_s11 = sshll.u32 %s142_s9, 1 }
   0x8   : > { %v42_v12 = vld [vmem:[#allocation2] sm:$0x3]  ;;  %283 = vmatpush3.bf16.msra.mxu0 %v268_v9  ;;  %291 = vmatpush3.bf16.msra.mxu1 %v273_v10  ;;  %v43_v16 = vld [vmem:[#allocation3] sm:$0x3]  ;;  %s40_s14 = scalar_lea.vmem %s470_s0, %s266_s10  ;;  %s144_s17 = scalar_lea.vmem %s471_s1, %s433_s11 }
   0x9   : > { %v146_v15 = vld [vmem:[#allocation4] sm:$0x3]  ;;  %284 = vmatprep.subr.bf16.mxu0 %v337_v11  ;;  %292 = vmatprep.subr.bf16.mxu1 %v337_v11  ;;  %v44_v17 = vpack.c.bf16 %v42_v12, %v42_v12  ;;  %v147_v19 = vld [vmem:[#allocation5] sm:$0x3]  ;;  %v41_v20 = vld [vmem:[%s40_s14] sm:$0x3]  ;;  %s140_s22 = scalar_lea.vmem %s474_s4, %s266_s10  ;;  %s243_s25 = scalar_lea.vmem %s475_s5, %s433_s11 }
   0xa   : > { %286 = vmatprep.mubr.msk.bf16.mxu0 %vm338_vm1, %v337_v11  ;;  %294 = vmatprep.mubr.msk.bf16.mxu1 %vm338_vm1, %v337_v11  ;;  %v148_v18 = vpack.c.bf16 %v146_v15, %v146_v15  ;;  %v145_v21 = vld [vmem:[%s144_s17] sm:$0x3]  ;;  %s340_s18 = smov 64   ;;  %s341_s19 = smov 96  }
   0xb   : > { %110 = vrot.lane.b32.xlu1 %v43_v16, %s339_s3  ;;  %s38_s2 = sadd.s32 1, %s334_s2  }
   0xc   : > { %285 = vmatpush3.bf16.msra.mxu0 %v267_v13  ;;  %293 = vmatpush3.bf16.msra.mxu1 %v272_v14  ;;  %p35_p0 = scmp.ge.s32.totalorder %s38_s2, 8  }
   0xf   : > { %287 = vmatmul.mubr.msk.bf16.vlgmr.msra.gmra.mxu0 %vm57_vm2, %v44_v17  ;;  %295 = vmatmul.mubr.msk.bf16.vlgmr.msra.gmra.mxu1 %vm57_vm2, %v148_v18 }
  0x10   : > { %213 = vrot.lane.b32.xlu1 %v147_v19, %s339_s3 }
  0x7d   : > { %v111_v46 = vpop.permute.xlu1 %110 }
  0x82   : > { %v214_v48 = vpop.permute.xlu1 %213 }
  0xcf   : > { %v95_v22 = vpop.f32.mrf.mxu0  ;;  %v198_v23 = vpop.f32.mrf.mxu1 }
  0xd0   : > { %v101_v24 = vadd.f32 %v95_v22, %v41_v20  ;;  %v204_v25 = vadd.f32 %v198_v23, %v145_v21 }
  0xd1   : > { %v288_v26 = vpop.f32.mrf.mxu0  ;;  %v296_v27 = vpop.f32.mrf.mxu1 }
  0xd2   : > { %312 = vtanh.f32 %v101_v24  ;;  %v270_v34 = vmul.f32 -1.442695, %v101_v24  ;;  %v275_v35 = vmul.f32 -1.442695, %v204_v25 }
  0xd3   : > { %v98_v28 = vpop.f32.mrf.mxu0  ;;  %v201_v29 = vpop.f32.mrf.mxu1  ;;  %314 = vtanh.f32 %v204_v25 }
  0xd4   : > { %316 = vpow2.f32 %v270_v34 }
  0xd5   : > { %v289_v30 = vpop.f32.mrf.mxu0  ;;  %v297_v31 = vpop.f32.mrf.mxu1  ;;  %318 = vpow2.f32 %v275_v35 }
  0xdf   : > { %v313_v32 = vpop.eup %312 }
  0xe0   : > { %115 = vrot.lane.b32.xlu0 %v313_v32, %s340_s18  ;;  %v315_v33 = vpop.eup %314 }
  0xe1   : > { %v317_v36 = vpop.eup %316 }
  0xe2   : > { %v105_v37 = vadd.f32 1.0, %v317_v36  ;;  %v319_v38 = vpop.eup %318 }
  0xe3   : > { %v208_v39 = vadd.f32 1.0, %v319_v38 }
  0xe4   : > { %218 = vrot.lane.b32.xlu0 %v315_v33, %s340_s18  ;;  %320 = vrcp.f32 %v105_v37 }
  0xe5   : > { %322 = vrcp.f32 %v208_v39 }
  0xf1   : > { %v321_v40 = vpop.eup %320 }
  0xf2   : > { %v323_v43 = vpop.eup %322  ;;  %v113_v47 = vmul.f32 %v321_v40, %v111_v46 }
  0xf3   : > { %v216_v51 = vmul.f32 %v323_v43, %v214_v48 }
 0x152   : > { %v116_v41 = vpop.permute.xlu0 %115 }
 0x153   : > { %v118_v42 = vmul.f32 %v321_v40, %v116_v41 }
 0x155   : > { %120 = vrot.lane.b32.xlu0 %v118_v42, %s339_s3 }
 0x156   : > { %v219_v44 = vpop.permute.xlu0 %218 }
 0x157   : > { %v221_v45 = vmul.f32 %v323_v43, %v219_v44 }
 0x159   : > { %223 = vrot.lane.b32.xlu1 %v221_v45, %s339_s3 }
 0x1c7   : > { %v121_v49 = vpop.permute.xlu0 %120 }
 0x1c8   : > { %v123_v50 = vadd.f32 %v121_v49, %v113_v47 }
 0x1ca   : > { %324 = vtanh.f32 %v123_v50 }
 0x1cb   : > { %v224_v52 = vpop.permute.xlu1 %223 }
 0x1cc   : > { %v226_v53 = vadd.f32 %v224_v52, %v216_v51 }
 0x1ce   : > { %326 = vtanh.f32 %v226_v53 }
 0x1d7   : > { %v325_v54 = vpop.eup %324 }
 0x1d8   : > { %126 = vrot.lane.b32.xlu0 %v325_v54, %s340_s18 }
 0x1db   : > { %v327_v55 = vpop.eup %326 }
 0x1dc   : > { %229 = vrot.lane.b32.xlu1 %v327_v55, %s340_s18 }
 0x1e0   : > { %136 = vrot.lane.b32.xlu1 %v123_v50, %s341_s19 }
 0x1e4   : > { %239 = vrot.lane.b32.xlu1 %v226_v53, %s341_s19 }
 0x24a   : > { %v127_v56 = vpop.permute.xlu0 %126 }
 0x24b   : > { %v129_v57 = vmul.f32 %v321_v40, %v127_v56 }
 0x24d   : > { %131 = vrot.lane.b32.xlu0 %v129_v57, %s339_s3 }
 0x24e   : > { %v230_v58 = vpop.permute.xlu1 %229 }
 0x24f   : > { %v232_v59 = vmul.f32 %v323_v43, %v230_v58 }
 0x251   : > { %234 = vrot.lane.b32.xlu0 %v232_v59, %s339_s3 }
 0x252   : > { %v137_v60 = vpop.permute.xlu1 %136 }
 0x253   : > { %139 = vst.msk [vmem:[#allocation3] sm:$0x3] %vm20_vm0, %v137_v60 }
 0x256   : > { %v240_v61 = vpop.permute.xlu1 %239 }
 0x257   : > { %242 = vst.msk [vmem:[#allocation5] sm:$0x3] %vm20_vm0, %v240_v61 }
 0x2bf   : > { %v132_v62 = vpop.permute.xlu0 %131 }
 0x2c0   : > { %134 = vst.msk [vmem:[#allocation2] sm:$0x3] %vm20_vm0, %v132_v62  ;;  %141 = vst.msk [vmem:[%s140_s22] sm:$0x3] %vm20_vm0, %v132_v62 }
 0x2c3   : > { %v235_v63 = vpop.permute.xlu0 %234  ;;  %37 = sbr.rel (!%p35_p0) target bundleno = 6 (0x6), region = 55 }
 0x2c4   : > { %237 = vst.msk [vmem:[#allocation4] sm:$0x3] %vm20_vm0, %v235_v63  ;;  %244 = vst.msk [vmem:[%s243_s25] sm:$0x3] %vm20_vm0, %v235_v63 }

// kernel: multiscale_crnn_forward.18
= control target key start
LH: loop header
LB: loop body
LE: loop exit
PB: predicated region body
PF: predicated region fallthrough
CT: control target
= control target key end

     0   :  { %v143_v0 = vmov 0.0   ;;  %vm144_vm0 = vmmov 0   ;;  %vm61_vm1 = vcmask 523264   ;;  %s189_s1 = inlined_call_operand.vmem [shape: bf16[64,128], index: 1, kind: input, shape index: {}]   ;;  %s190_s0 = inlined_call_operand.vmem [shape: bf16[16,64], index: 0, kind: input, shape index: {}]   ;;  %s191_s2 = inlined_call_operand.vmem [shape: f32[1,128], index: 2, kind: input, shape index: {}]   ;;  %s192_s3 = inlined_call_operand.vmem [shape: f32[16,128], index: 3, kind: output, shape index: {}]  }
   0x1   :  { %124 = vmatprep.subr.bf16.mxu0 %v143_v0  ;;  %v138_v1 = vld [vmem:[%s189_s1 + $0x18] sm:$0xff]   ;;  %132 = vmatprep.mubr.msk.bf16.mxu0 %vm144_vm0, %v143_v0  ;;  %v139_v2 = vld [vmem:[%s189_s1 + $0x10] sm:$0xff]   ;;  %v140_v3 = vld [vmem:[%s189_s1 + $0x8] sm:$0xff]  }
   0x2   :  { %125 = vmatpush3.bf16.msra.mxu0 %v138_v1  ;;  %v141_v4 = vld [vmem:[%s189_s1] sm:$0xff]  }
   0x3   :  { %126 = vmatprep.subr.bf16.mxu0 %v143_v0  ;;  %v142_v5 = vld [vmem:[%s190_s0] sm:$0xff]  }
   0x4   :  { %v112_v6 = vld [vmem:[%s191_s2] ss:$0 sm:$0xff] }
   0x6   :  { %127 = vmatpush3.bf16.msra.mxu0 %v139_v2 }
   0x7   :  { %128 = vmatprep.subr.bf16.mxu0 %v143_v0 }
   0xa   :  { %129 = vmatpush3.bf16.msra.mxu0 %v140_v3 }
   0xb   :  { %130 = vmatprep.subr.bf16.mxu0 %v143_v0 }
   0xe   :  { %131 = vmatpush3.bf16.msra.mxu0 %v141_v4 }
  0x11   :  { %133 = vmatmul.mubr.msk.bf16.vlgmr.msra.gmra.mxu0 %vm61_vm1, %v142_v5 }
  0xd1   :  { %v99_v7 = vpop.f32.mrf.mxu0 }
  0xd2   :  { %v100_v8 = vadd.f32 %v112_v6, %v99_v7 }
  0xd3   :  { %v134_v9 = vpop.f32.mrf.mxu0 }
  0xd4   :  { %106 = vst [vmem:[%s192_s3] sm:$0xff] %v100_v8 }
  0xd5   :  { %v102_v10 = vpop.f32.mrf.mxu0 }
  0xd6   :  { %v103_v11 = vadd.f32 %v112_v6, %v102_v10 }
  0xd7   :  { %v135_v12 = vpop.f32.mrf.mxu0 }
  0xd8   :  { %107 = vst [vmem:[%s192_s3 + $0x8] sm:$0xff] %v103_v11 }

// kernel: multiscale_crnn_forward.21
= control target key start
LH: loop header
LB: loop body
LE: loop exit
PB: predicated region body
PF: predicated region fallthrough
CT: control target
= control target key end

     0   :  { %vm26_vm0 = vcmask 517120   ;;  %v298_v0 = vmov 0.0   ;;  %vm299_vm1 = vmmov 0   ;;  %s392_s0 = inlined_call_operand.vmem [shape: f32[8,2,64], index: 0, kind: input, shape index: {}]   ;;  %s393_s1 = inlined_call_operand.vmem [shape: bf16[64,32], index: 1, kind: input, shape index: {}]   ;;  %s394_s2 = inlined_call_operand.vmem [shape: f32[1,32], index: 2, kind: input, shape index: {}]   ;;  %s395_s3 = inlined_call_operand.vmem [shape: bf16[32,32], index: 3, kind: input, shape index: {}]   ;;  %s396_s4 = inlined_call_operand.vmem [shape: f32[1,32], index: 4, kind: input, shape index: {}]   ;;  %s397_s5 = inlined_call_operand.hbm [shape: f32[2,32], index: 5, kind: output, shape index: {}]  }
   0x1   :  { %27 = vst.msk [vmem:[#allocation2] sm:$0x3] %vm26_vm0, %v298_v0  ;;  %247 = vmatprep.subr.bf16.mxu0 %v298_v0  ;;  %v270_v1 = vld [vmem:[%s393_s1 + $0x18] sm:$0xff]   ;;  %259 = vmatprep.subr.bf16.mxu1 %v298_v0  ;;  %v271_v2 = vld [vmem:[%s393_s1 + $0x10] sm:$0xff]   ;;  %v29_v3 = vld [vmem:[%s392_s0] sm:$0x3] }
   0x2   :  { %255 = vmatprep.mubr.msk.bf16.mxu0 %vm299_vm1, %v298_v0  ;;  %263 = vmatprep.mubr.msk.bf16.mxu1 %vm299_vm1, %v298_v0  ;;  %v30_v4 = vld [vmem:[%s392_s0 + $0x2] sm:$0x3]  ;;  %v31_v5 = vld [vmem:[%s392_s0 + $0x4] sm:$0x3]  ;;  %v32_v6 = vld [vmem:[%s392_s0 + $0x6] sm:$0x3] }
   0x3   :  { %248 = vmatpush3.bf16.msra.mxu0 %v270_v1  ;;  %v272_v7 = vld [vmem:[%s393_s1 + $0x8] sm:$0xff]   ;;  %v38_v8 = vsel %vm26_vm0, %v29_v3, 0.0  ;;  %v39_v9 = vsel %vm26_vm0, %v30_v4, 0.0  ;;  %v41_v10 = vsel %vm26_vm0, %v31_v5, 0.0  ;;  %v43_v14 = vsel %vm26_vm0, %v32_v6, 0.0 }
   0x4   :  { %249 = vmatprep.subr.bf16.mxu0 %v298_v0  ;;  %v33_v11 = vld [vmem:[%s392_s0 + $0x8] sm:$0x3]  ;;  %v34_v12 = vld [vmem:[%s392_s0 + $0xa] sm:$0x3]  ;;  %v40_v13 = vadd.f32 %v39_v9, %v38_v8 }
   0x6   :  { %v42_v15 = vadd.f32 %v41_v10, %v40_v13 }
   0x7   :  { %250 = vmatpush3.bf16.msra.mxu0 %v271_v2 }
   0x8   :  { %251 = vmatprep.subr.bf16.mxu0 %v298_v0 }
   0x9   :  { %10 = vsyncpa [#allocation4], 0  ;;  %v273_v16 = vld [vmem:[%s393_s1] sm:$0xff]   ;;  %v45_v17 = vsel %vm26_vm0, %v33_v11, 0.0  ;;  %v35_v18 = vld [vmem:[%s392_s0 + $0xc] sm:$0x3]  ;;  %v44_v19 = vadd.f32 %v43_v14, %v42_v15 }
   0xa   :  { %v47_v20 = vsel %vm26_vm0, %v34_v12, 0.0  ;;  %v36_v21 = vld [vmem:[%s392_s0 + $0xe] sm:$0x3]  ;;  %v49_v23 = vsel %vm26_vm0, %v35_v18, 0.0  ;;  %v28_v27 = vld [vmem:[#allocation2] sm:$0x3] }
   0xb   :  { %252 = vmatpush3.bf16.msra.mxu0 %v272_v7  ;;  %v46_v22 = vadd.f32 %v45_v17, %v44_v19  ;;  %v51_v25 = vsel %vm26_vm0, %v36_v21, 0.0  ;;  %vm100_vm2 = vcmask 523264   ;;  %v274_v33 = vld [vmem:[%s395_s3 + $0x8] sm:$0xff]   ;;  %v275_v34 = vld [vmem:[%s395_s3] sm:$0xff]   ;;  %vm169_vm3 = vcmask 261120   ;;  %s300_s23 = smov [#allocation3]  }
   0xc   :  { %253 = vmatprep.subr.bf16.mxu0 %v298_v0  ;;  %260 = vmatpush3.bf16.msra.mxu1 %v274_v33  ;;  %v229_v35 = vld [vmem:[%s394_s2] ss:$0 sm:$0xff]  ;;  %s221_s3 = sshll.u32 %s300_s23, 4  ;;  %vm213_vm4 = vcmask 254976   ;;  %s222_s3 = int_to_ptr.vmem [resolvable:$true] %s221_s3 }
   0xd   :  { %v48_v24 = vadd.f32 %v47_v20, %v46_v22  ;;  %261 = vmatprep.subr.bf16.mxu1 %v298_v0  ;;  %v235_v43 = vld [vmem:[%s396_s4] ss:$0 sm:$0xff]  ;;  %s276_s2 = scalar_lea.vmem %s222_s3, 32  ;;  %p281_p1 = scmp.lt.s32.totalorder %s222_s3, %s222_s3 }
   0xe   :  { %p277_p0 = scmp.ne.s32.totalorder %s222_s3, %s276_s2  ;;  %p282_p2 = scmp.lt.s32.totalorder %s276_s2, %s276_s2 }
   0xf   :  { %254 = vmatpush3.bf16.msra.mxu0 %v273_v16  ;;  %v50_v26 = vadd.f32 %v49_v23, %v48_v24 }
  0x10   :  { %262 = vmatpush3.bf16.msra.mxu1 %v275_v34  ;;  %p283_p3 = por %p282_p2, %p281_p1 }
  0x11   :  { %v52_v28 = vadd.f32 %v51_v25, %v50_v26 }
  0x12   :  { %p284_p4 = pnand %p283_p3, %p277_p0 }
  0x13   :  { %v53_v29 = vadd.f32 %v52_v28, %v28_v27 }
  0x15   :  { %54 = vst.msk [vmem:[#allocation2] sm:$0x3] %vm26_vm0, %v53_v29 }
  0x1c   :  { %v58_v30 = vld [vmem:[#allocation2] sm:$0x3] }
  0x1d   :  { %v59_v31 = vmul.f32 0.125, %v58_v30 }
  0x1f   :  { %v60_v32 = vpack.c.bf16 %v59_v31, %v59_v31 }
  0x21   :  { %256 = vmatmul.mubr.msk.bf16.vlgmr.msra.gmra.mxu0 %vm100_vm2, %v60_v32 }
  0xe1   :  { %v138_v36 = vpop.f32.mrf.mxu0 }
  0xe2   :  { %v139_v37 = vadd.f32 %v229_v35, %v138_v36 }
  0xe3   :  { %v257_v38 = vpop.f32.mrf.mxu0 }
  0xe4   :  { %v144_v39 = vmax.f32 %v139_v37, 0.0 }
  0xe5   :  { %v141_v40 = vpop.f32.mrf.mxu0 }
  0xe6   :  { %v145_v41 = vpack.c.bf16 %v144_v39, %v144_v39 }
  0xe7   :  { %v258_v42 = vpop.f32.mrf.mxu0 }
  0xe8   :  { %264 = vmatmul.mubr.msk.bf16.vlgmr.msra.gmra.mxu1 %vm169_vm3, %v145_v41 }
 0x1a8   :  { %v207_v44 = vpop.f32.mrf.mxu1 }
 0x1a9   :  { %v208_v45 = vadd.f32 %v235_v43, %v207_v44 }
 0x1aa   :  { %v265_v46 = vpop.f32.mrf.mxu1 }
 0x1ab   :  { %214 = vst.msk [vmem:[#allocation3] sm:$0x3] %vm213_vm4, %v208_v45 }
 0x1ac   :  { %v210_v47 = vpop.f32.mrf.mxu1 }
 0x1ad   :  { %287 = shalt.err (!%p284_p4)
}
 0x1ae   :  { %224 = dma.vmem_to_hbm [thread:$0]  %s222_s3, 32, %s397_s5, [#allocation4]   ;;  %v266_v48 = vpop.f32.mrf.mxu1 }
 0x1af   :  { %296 = dma.done.wait [#allocation4], 32  }
 0x1b0   :  { %297 = vsyncadd [#allocation4], 4294967264 }
 0x1b1   :  { %228 = vsyncpa [#allocation4], 1 }

</bundles_post_ra>
